<compile_context>
chip_gen: v7x
topology: tpu7x:2x2x1
jax: 0.10.0
libtpu: 0.0.40
codegen_flags: <defaults>
</compile_context>

<pallas_src>
import jax
import jax.numpy as jnp
from jax.experimental import pallas as pl
from jax.experimental.pallas import tpu as pltpu

C_IN = 64      # CNN2 input channels (fixed by the module)
C_OUT = 192    # output channels of both BlockCNN convs
C_PAD = 256    # lane-dense padded channel count (2 x 128 lanes)
K1 = 3 * C_IN  # conv1 folded contraction depth (3 kw taps x 64 channels)
_EPS = 1e-5    # BatchNorm2d default eps


# ---------------------------------------------------------------------------
# Fused Pallas kernel: conv1+BN+ReLU -> conv2+BN+ReLU -> 2x2 maxpool
# ---------------------------------------------------------------------------
def _cnn2_fused_kernel(x_ref, w1_ref, g1_ref, b1_ref, w2_ref, g2_ref, b2_ref,
                       o_ref, xp_ref, y1p_ref):
    N, H, W, Cin = x_ref.shape
    Cp = w1_ref.shape[-1]                    # 256 padded channels
    H1, W1 = H, W                            # conv1 (k=3, p=1): same spatial
    R1 = N * H1 * W1

    # ---- In-kernel zero padding of the input (no HBM-side padded copy).
    xp_ref[...] = jnp.zeros_like(xp_ref)
    xp_ref[:, 1:1 + H, 1:1 + W, :] = x_ref[...]

    # ---- Block 1: Conv2d(64->192, k=3, s=1, p=1), kw taps folded into K.
    # 3 bf16 MXU dots of (R1, 192) x (192, 256) with f32 accumulation.
    # (Conv bias omitted: exactly cancelled by training-mode BN mean below.)
    acc1 = None
    for kh in range(3):
        rows = jnp.concatenate(
            [xp_ref[:, kh:kh + H1, kw:kw + W1, :].reshape(R1, Cin)
             for kw in range(3)], axis=-1)                       # (R1, 192) bf16
        part = jnp.dot(rows, w1_ref[kh], preferred_element_type=jnp.float32)
        acc1 = part if acc1 is None else acc1 + part

    # BatchNorm1 (training mode: batch mean, biased var) + ReLU, folded scale.
    mean1 = jnp.mean(acc1, axis=0, keepdims=True)
    d1 = acc1 - mean1
    var1 = jnp.mean(d1 * d1, axis=0, keepdims=True)
    scale1 = jax.lax.rsqrt(var1 + _EPS) * g1_ref[...]            # (1, 256)
    y1 = jnp.maximum(d1 * scale1 + b1_ref[...], 0.0)

    # ---- Stage block-1 output (bf16) into a zero-filled, width-aligned slab
    # (spatial zero padding for conv2 plus extra zero columns up to Wb).
    y1p_ref[...] = jnp.zeros_like(y1p_ref)
    y1p_ref[:, 1:1 + H1, 1:1 + W1, :] = (
        y1.reshape(N, H1, W1, Cp).astype(y1p_ref.dtype))

    # ---- Block 2: Conv2d(192->192, k=2, s=1, p=1) over the widened width Wb.
    H2, W2 = H1 + 1, W1 + 1
    Wb = y1p_ref.shape[2] - 1                # smallest 8-aligned width >= W2
    Rb = N * H2 * Wb                         # rows incl. all-zero pad columns
    R2 = N * H2 * W2                         # rows of real conv outputs
    acc2 = None
    for kh in range(2):
        for kw in range(2):
            rows = y1p_ref[:, kh:kh + H2, kw:kw + Wb, :].reshape(Rb, Cp)
            part = jnp.dot(rows, w2_ref[kh * 2 + kw],
                           preferred_element_type=jnp.float32)
            acc2 = part if acc2 is None else acc2 + part

    # BN2 statistics over the R2 valid rows only.  The Rb - R2 pad rows of
    # acc2 are exactly zero (zero y1p pad frame, zero w2 tails), so their
    # contribution is removed in closed form.  Folded scale, then ReLU.
    inv_r2 = 1.0 / R2
    mean2 = jnp.sum(acc2, axis=0, keepdims=True) * inv_r2
    d2 = acc2 - mean2
    var2 = (jnp.sum(d2 * d2, axis=0, keepdims=True)
            - (Rb - R2) * mean2 * mean2) * inv_r2
    scale2 = jax.lax.rsqrt(var2 + _EPS) * g2_ref[...]
    y2 = jnp.maximum(d2 * scale2 + b2_ref[...], 0.0)

    # ---- max_pool2d(kernel=2, stride=2), floor mode; the module's trailing
    # F.relu is a no-op (inputs already >= 0).  Single unmasked store.
    Hp, Wp = H2 // 2, W2 // 2
    y2v = y2.reshape(N, H2, Wb, Cp)[:, :2 * Hp, :2 * Wp, :]       # valid region
    mh = jnp.max(y2v.reshape(N, Hp, 2, 2 * Wp, Cp), axis=2)       # pool along H
    o_ref[...] = jnp.max(mh.reshape(N, Hp, Wp, 2, Cp), axis=3)    # pool along W


def _full_spec(shape):
    # Single-block (full-array) BlockSpec; grid=(1,).
    return pl.BlockSpec(shape, lambda i: (0,) * len(shape))


# ---------------------------------------------------------------------------
# Parameters (PyTorch layout) and one-time weight prep (outside the jit)
# ---------------------------------------------------------------------------
def init_params(key):
    k = jax.random.split(key, 8)
    return {
        # BlockCNN(64, 192, 3, 1, 1)
        "w1": jax.random.normal(k[0], (C_OUT, C_IN, 3, 3), jnp.float32) * 0.05,
        "bias1": 0.05 * jax.random.normal(k[1], (C_OUT,), jnp.float32),
        "g1": 1.0 + 0.1 * jax.random.normal(k[2], (C_OUT,), jnp.float32),
        "beta1": 0.1 * jax.random.normal(k[3], (C_OUT,), jnp.float32),
        # BlockCNN(192, 192, 2, 1, 1)
        "w2": jax.random.normal(k[4], (C_OUT, C_OUT, 2, 2), jnp.float32) * 0.05,
        "bias2": 0.05 * jax.random.normal(k[5], (C_OUT,), jnp.float32),
        "g2": 1.0 + 0.1 * jax.random.normal(k[6], (C_OUT,), jnp.float32),
        "beta2": 0.1 * jax.random.normal(k[7], (C_OUT,), jnp.float32),
    }


def prepare_params(params):
    """One-time fold / pad / bf16-cast of weights into the kernel layout."""
    def fold_w1(w):
        # (Cout, Cin, 3, 3) -> (kh, kw*Cin + ci, Cout_pad): kw folded into K.
        co, ci, kh, kw = w.shape
        w = jnp.transpose(w, (2, 3, 1, 0)).reshape(kh, kw * ci, co)
        return jnp.pad(w, ((0, 0), (0, 0), (0, C_PAD - co))).astype(jnp.bfloat16)

    def taps_w2(w):
        co, ci, kh, kw = w.shape
        w = jnp.transpose(w, (2, 3, 1, 0)).reshape(kh * kw, ci, co)
        return jnp.pad(w, ((0, 0), (0, C_PAD - ci),
                           (0, C_PAD - co))).astype(jnp.bfloat16)

    def vec(v):
        return jnp.pad(v, (0, C_PAD - v.shape[0])).reshape(1, C_PAD).astype(jnp.float32)

    # Conv biases intentionally dropped: cancelled by training-mode BN.
    return {
        "w1": fold_w1(params["w1"]),                   # (3, 192, 256) bf16
        "g1": vec(params["g1"]), "beta1": vec(params["beta1"]),
        "w2": taps_w2(params["w2"]),                   # (4, 256, 256) bf16
        "g2": vec(params["g2"]), "beta2": vec(params["beta2"]),
    }


# ---------------------------------------------------------------------------
# Forward wrapper
# ---------------------------------------------------------------------------
@jax.jit
def cnn2_forward(x_nchw, p):
    x = jnp.transpose(x_nchw, (0, 2, 3, 1)).astype(jnp.bfloat16)  # NCHW -> NHWC
    N, H, W, Cin = x.shape
    H2, W2 = H + 1, W + 1                                          # conv2 output
    Wb = ((W2 + 7) // 8) * 8                                       # 8-aligned width
    Hp, Wp = H2 // 2, W2 // 2                                      # floor pooling

    out = pl.pallas_call(
        _cnn2_fused_kernel,
        out_shape=jax.ShapeDtypeStruct((N, Hp, Wp, C_PAD), jnp.float32),
        grid=(1,),
        in_specs=[_full_spec(x.shape),
                  _full_spec(p["w1"].shape), _full_spec((1, C_PAD)),
                  _full_spec((1, C_PAD)),
                  _full_spec(p["w2"].shape), _full_spec((1, C_PAD)),
                  _full_spec((1, C_PAD))],
        out_specs=_full_spec((N, Hp, Wp, C_PAD)),
        scratch_shapes=[
            pltpu.VMEM((N, H + 2, W + 2, Cin), jnp.bfloat16),      # padded input
            pltpu.VMEM((N, H + 2, Wb + 1, C_PAD), jnp.bfloat16),   # padded block-1 out
        ],
        compiler_params=pltpu.CompilerParams(
            dimension_semantics=("arbitrary",)),
    )(x, p["w1"], p["g1"], p["beta1"], p["w2"], p["g2"], p["beta2"])

    return jnp.transpose(out[..., :C_OUT], (0, 3, 1, 2))           # back to NCHW


# ---------------------------------------------------------------------------
# Pure-JAX reference (same bf16 MXU operands, training-mode BatchNorm)
# ---------------------------------------------------------------------------
def cnn2_reference(x_nchw, params):
    def block(x_nhwc, w, b, gamma, beta, pad):
        wt = jnp.transpose(w, (2, 3, 1, 0)).astype(jnp.bfloat16)   # HWIO
        y = jax.lax.conv_general_dilated(
            x_nhwc.astype(jnp.bfloat16), wt, (1, 1),
            [(pad, pad), (pad, pad)],
            dimension_numbers=("NHWC", "HWIO", "NHWC"),
            preferred_element_type=jnp.float32)
        y = y + b.astype(jnp.float32)
        mean = jnp.mean(y, axis=(0, 1, 2), keepdims=True)
        var = jnp.mean((y - mean) ** 2, axis=(0, 1, 2), keepdims=True)
        y = (y - mean) * jax.lax.rsqrt(var + _EPS) * gamma + beta
        return jnp.maximum(y, 0.0)

    x = jnp.transpose(x_nchw, (0, 2, 3, 1))
    y1 = block(x, params["w1"], params["bias1"], params["g1"], params["beta1"], 1)
    y2 = block(y1, params["w2"], params["bias2"], params["g2"], params["beta2"], 1)
    N, H2, W2, C = y2.shape
    Hp, Wp = H2 // 2, W2 // 2
    pooled = jnp.max(
        y2[:, :2 * Hp, :2 * Wp, :].reshape(N, Hp, 2, Wp, 2, C), axis=(2, 4))
    return jnp.transpose(jnp.maximum(pooled, 0.0), (0, 3, 1, 2))


if __name__ == "__main__":
    key = jax.random.PRNGKey(0)
    kx, kp = jax.random.split(key)
    # Module requires C_in = 64 (NCHW, like PyTorch); keep spatial small.
    x = jax.random.normal(kx, (2, C_IN, 8, 8), jnp.float32)
    params = init_params(kp)
    prepped = prepare_params(params)        # hoisted out of the jitted forward

    out = cnn2_forward(x, prepped)
    jax.block_until_ready(out)

    # 8x8 -> conv(3,p1): 8x8 -> conv(2,p1): 9x9 -> maxpool(2,2): 4x4
    assert out.shape == (2, C_OUT, 4, 4), out.shape
    assert out.dtype == jnp.float32
    assert bool(jnp.all(jnp.isfinite(out)))

    # Numerical check against a pure-JAX reference that uses the same bf16
    # operands (loose tolerance covers accumulation-order differences).
    ref = cnn2_reference(x, params)
    err = float(jnp.max(jnp.abs(out - ref)))
    assert err < 5e-2, f"max |kernel - reference| = {err}"

    print("KERNEL_OK")
</pallas_src>

<mosaic_0001>
module attributes {stable_mosaic.version = 11 : i64} {
  func.func @_cnn2_fused_kernel(%arg0: i32, %arg1: memref<2x8x8x64xbf16, #tpu.memory_space<vmem>>, %arg2: memref<3x192x256xbf16, #tpu.memory_space<vmem>>, %arg3: memref<1x256xf32, #tpu.memory_space<vmem>>, %arg4: memref<1x256xf32, #tpu.memory_space<vmem>>, %arg5: memref<4x256x256xbf16, #tpu.memory_space<vmem>>, %arg6: memref<1x256xf32, #tpu.memory_space<vmem>>, %arg7: memref<1x256xf32, #tpu.memory_space<vmem>>, %arg8: memref<2x4x4x256xf32, #tpu.memory_space<vmem>>, %arg9: memref<2x10x10x64xbf16, #tpu.memory_space<vmem>>, %arg10: memref<2x10x17x256xbf16, #tpu.memory_space<vmem>>) attributes {dimension_semantics = [#tpu.dimension_semantics<arbitrary>], iteration_bounds = array<i64: 1>, scalar_prefetch = 0 : i64, scratch_operands = 2 : i64, tpu.core_type = #tpu.core_type<tc>, window_params = [{pipeline_mode = #tpu.pipeline_mode<synchronous>, transform_indices = @transform_0, window_bounds = array<i64: 2, 8, 8, 64>}, {pipeline_mode = #tpu.pipeline_mode<synchronous>, transform_indices = @transform_1, window_bounds = array<i64: 3, 192, 256>}, {pipeline_mode = #tpu.pipeline_mode<synchronous>, transform_indices = @transform_2, window_bounds = array<i64: 1, 256>}, {pipeline_mode = #tpu.pipeline_mode<synchronous>, transform_indices = @transform_3, window_bounds = array<i64: 1, 256>}, {pipeline_mode = #tpu.pipeline_mode<synchronous>, transform_indices = @transform_4, window_bounds = array<i64: 4, 256, 256>}, {pipeline_mode = #tpu.pipeline_mode<synchronous>, transform_indices = @transform_5, window_bounds = array<i64: 1, 256>}, {pipeline_mode = #tpu.pipeline_mode<synchronous>, transform_indices = @transform_6, window_bounds = array<i64: 1, 256>}, {pipeline_mode = #tpu.pipeline_mode<synchronous>, transform_indices = @transform_7, window_bounds = array<i64: 2, 4, 4, 256>}]} {
    %cst = arith.constant 0.000000e+00 : bf16
    %0 = vector.broadcast %cst : bf16 to vector<2x10x10x64xbf16>
    %c0 = arith.constant 0 : index
    %c0_0 = arith.constant 0 : index
    %c0_1 = arith.constant 0 : index
    %c0_2 = arith.constant 0 : index
    %1 = vector.load %arg9[%c0, %c0_0, %c0_1, %c0_2] : memref<2x10x10x64xbf16, #tpu.memory_space<vmem>>, vector<2x10x10x64xbf16>
    tpu.vector_store %arg9[%c0, %c0_0, %c0_1, %c0_2], %0 {strides = array<i32>} : memref<2x10x10x64xbf16, #tpu.memory_space<vmem>>, vector<2x10x10x64xbf16>,
    %c0_3 = arith.constant 0 : index
    %c0_4 = arith.constant 0 : index
    %c0_5 = arith.constant 0 : index
    %c0_6 = arith.constant 0 : index
    %2 = vector.load %arg1[%c0_3, %c0_4, %c0_5, %c0_6] : memref<2x8x8x64xbf16, #tpu.memory_space<vmem>>, vector<2x8x8x64xbf16>
    %c0_7 = arith.constant 0 : index
    %c1 = arith.constant 1 : index
    %c1_8 = arith.constant 1 : index
    %c0_9 = arith.constant 0 : index
    %3 = vector.load %arg9[%c0_7, %c1, %c1_8, %c0_9] : memref<2x10x10x64xbf16, #tpu.memory_space<vmem>>, vector<2x8x8x64xbf16>
    tpu.vector_store %arg9[%c0_7, %c1, %c1_8, %c0_9], %2 {strides = array<i32>} : memref<2x10x10x64xbf16, #tpu.memory_space<vmem>>, vector<2x8x8x64xbf16>,
    %c0_10 = arith.constant 0 : index
    %c0_11 = arith.constant 0 : index
    %c0_12 = arith.constant 0 : index
    %c0_13 = arith.constant 0 : index
    %4 = vector.load %arg9[%c0_10, %c0_11, %c0_12, %c0_13] : memref<2x10x10x64xbf16, #tpu.memory_space<vmem>>, vector<2x8x8x64xbf16>
    %5 = vector.shape_cast %4 : vector<2x8x8x64xbf16> to vector<128x64xbf16>
    %c0_14 = arith.constant 0 : index
    %c0_15 = arith.constant 0 : index
    %c1_16 = arith.constant 1 : index
    %c0_17 = arith.constant 0 : index
    %6 = vector.load %arg9[%c0_14, %c0_15, %c1_16, %c0_17] : memref<2x10x10x64xbf16, #tpu.memory_space<vmem>>, vector<2x8x8x64xbf16>
    %7 = vector.shape_cast %6 : vector<2x8x8x64xbf16> to vector<128x64xbf16>
    %c0_18 = arith.constant 0 : index
    %c0_19 = arith.constant 0 : index
    %c2 = arith.constant 2 : index
    %c0_20 = arith.constant 0 : index
    %8 = vector.load %arg9[%c0_18, %c0_19, %c2, %c0_20] : memref<2x10x10x64xbf16, #tpu.memory_space<vmem>>, vector<2x8x8x64xbf16>
    %9 = vector.shape_cast %8 : vector<2x8x8x64xbf16> to vector<128x64xbf16>
    %10 = tpu.concatenate %5, %7, %9 in 1 : vector<128x64xbf16>, vector<128x64xbf16>, vector<128x64xbf16> -> vector<128x192xbf16>
    %c0_21 = arith.constant 0 : index
    %c0_22 = arith.constant 0 : index
    %c0_23 = arith.constant 0 : index
    %11 = vector.load %arg2[%c0_21, %c0_22, %c0_23] : memref<3x192x256xbf16, #tpu.memory_space<vmem>>, vector<1x192x256xbf16>
    %12 = vector.shape_cast %11 : vector<1x192x256xbf16> to vector<192x256xbf16>
    %cst_24 = arith.constant dense<0.000000e+00> : vector<128x256xf32>
    %13 = tpu.matmul %10, %12, %cst_24 {dimension_numbers = #tpu.dot_dimension_numbers<[1], [0], [0], [1], [0, 0, 1, 1], [], []>} : vector<128x192xbf16>, vector<192x256xbf16>, vector<128x256xf32> -> vector<128x256xf32>
    %c0_25 = arith.constant 0 : index
    %c1_26 = arith.constant 1 : index
    %c0_27 = arith.constant 0 : index
    %c0_28 = arith.constant 0 : index
    %14 = vector.load %arg9[%c0_25, %c1_26, %c0_27, %c0_28] : memref<2x10x10x64xbf16, #tpu.memory_space<vmem>>, vector<2x8x8x64xbf16>
    %15 = vector.shape_cast %14 : vector<2x8x8x64xbf16> to vector<128x64xbf16>
    %c0_29 = arith.constant 0 : index
    %c1_30 = arith.constant 1 : index
    %c1_31 = arith.constant 1 : index
    %c0_32 = arith.constant 0 : index
    %16 = vector.load %arg9[%c0_29, %c1_30, %c1_31, %c0_32] : memref<2x10x10x64xbf16, #tpu.memory_space<vmem>>, vector<2x8x8x64xbf16>
    %17 = vector.shape_cast %16 : vector<2x8x8x64xbf16> to vector<128x64xbf16>
    %c0_33 = arith.constant 0 : index
    %c1_34 = arith.constant 1 : index
    %c2_35 = arith.constant 2 : index
    %c0_36 = arith.constant 0 : index
    %18 = vector.load %arg9[%c0_33, %c1_34, %c2_35, %c0_36] : memref<2x10x10x64xbf16, #tpu.memory_space<vmem>>, vector<2x8x8x64xbf16>
    %19 = vector.shape_cast %18 : vector<2x8x8x64xbf16> to vector<128x64xbf16>
    %20 = tpu.concatenate %15, %17, %19 in 1 : vector<128x64xbf16>, vector<128x64xbf16>, vector<128x64xbf16> -> vector<128x192xbf16>
    %c1_37 = arith.constant 1 : index
    %c0_38 = arith.constant 0 : index
    %c0_39 = arith.constant 0 : index
    %21 = vector.load %arg2[%c1_37, %c0_38, %c0_39] : memref<3x192x256xbf16, #tpu.memory_space<vmem>>, vector<1x192x256xbf16>
    %22 = vector.shape_cast %21 : vector<1x192x256xbf16> to vector<192x256xbf16>
    %cst_40 = arith.constant dense<0.000000e+00> : vector<128x256xf32>
    %23 = tpu.matmul %20, %22, %cst_40 {dimension_numbers = #tpu.dot_dimension_numbers<[1], [0], [0], [1], [0, 0, 1, 1], [], []>} : vector<128x192xbf16>, vector<192x256xbf16>, vector<128x256xf32> -> vector<128x256xf32>
    %24 = arith.addf %13, %23 : vector<128x256xf32>
    %c0_41 = arith.constant 0 : index
    %c2_42 = arith.constant 2 : index
    %c0_43 = arith.constant 0 : index
    %c0_44 = arith.constant 0 : index
    %25 = vector.load %arg9[%c0_41, %c2_42, %c0_43, %c0_44] : memref<2x10x10x64xbf16, #tpu.memory_space<vmem>>, vector<2x8x8x64xbf16>
    %26 = vector.shape_cast %25 : vector<2x8x8x64xbf16> to vector<128x64xbf16>
    %c0_45 = arith.constant 0 : index
    %c2_46 = arith.constant 2 : index
    %c1_47 = arith.constant 1 : index
    %c0_48 = arith.constant 0 : index
    %27 = vector.load %arg9[%c0_45, %c2_46, %c1_47, %c0_48] : memref<2x10x10x64xbf16, #tpu.memory_space<vmem>>, vector<2x8x8x64xbf16>
    %28 = vector.shape_cast %27 : vector<2x8x8x64xbf16> to vector<128x64xbf16>
    %c0_49 = arith.constant 0 : index
    %c2_50 = arith.constant 2 : index
    %c2_51 = arith.constant 2 : index
    %c0_52 = arith.constant 0 : index
    %29 = vector.load %arg9[%c0_49, %c2_50, %c2_51, %c0_52] : memref<2x10x10x64xbf16, #tpu.memory_space<vmem>>, vector<2x8x8x64xbf16>
    %30 = vector.shape_cast %29 : vector<2x8x8x64xbf16> to vector<128x64xbf16>
    %31 = tpu.concatenate %26, %28, %30 in 1 : vector<128x64xbf16>, vector<128x64xbf16>, vector<128x64xbf16> -> vector<128x192xbf16>
    %c2_53 = arith.constant 2 : index
    %c0_54 = arith.constant 0 : index
    %c0_55 = arith.constant 0 : index
    %32 = vector.load %arg2[%c2_53, %c0_54, %c0_55] : memref<3x192x256xbf16, #tpu.memory_space<vmem>>, vector<1x192x256xbf16>
    %33 = vector.shape_cast %32 : vector<1x192x256xbf16> to vector<192x256xbf16>
    %cst_56 = arith.constant dense<0.000000e+00> : vector<128x256xf32>
    %34 = tpu.matmul %31, %33, %cst_56 {dimension_numbers = #tpu.dot_dimension_numbers<[1], [0], [0], [1], [0, 0, 1, 1], [], []>} : vector<128x192xbf16>, vector<192x256xbf16>, vector<128x256xf32> -> vector<128x256xf32>
    %35 = arith.addf %24, %34 : vector<128x256xf32>
    %cst_57 = arith.constant dense<0.000000e+00> : vector<256xf32>
    %36 = vector.multi_reduction <add>, %35, %cst_57 [0] : vector<128x256xf32> to vector<256xf32>
    %37 = vector.shape_cast %36 : vector<256xf32> to vector<1x256xf32>
    %cst_58 = arith.constant 1.280000e+02 : f32
    %38 = vector.broadcast %cst_58 : f32 to vector<1x256xf32>
    %39 = arith.divf %37, %38 : vector<1x256xf32>
    %40 = vector.broadcast %39 : vector<1x256xf32> to vector<128x256xf32>
    %41 = arith.subf %35, %40 : vector<128x256xf32>
    %42 = arith.mulf %41, %41 : vector<128x256xf32>
    %cst_59 = arith.constant dense<0.000000e+00> : vector<256xf32>
    %43 = vector.multi_reduction <add>, %42, %cst_59 [0] : vector<128x256xf32> to vector<256xf32>
    %44 = vector.shape_cast %43 : vector<256xf32> to vector<1x256xf32>
    %cst_60 = arith.constant 1.280000e+02 : f32
    %45 = vector.broadcast %cst_60 : f32 to vector<1x256xf32>
    %46 = arith.divf %44, %45 : vector<1x256xf32>
    %cst_61 = arith.constant 9.99999974E-6 : f32
    %47 = vector.broadcast %cst_61 : f32 to vector<1x256xf32>
    %48 = arith.addf %46, %47 : vector<1x256xf32>
    %49 = math.rsqrt %48 : vector<1x256xf32>
    %c0_62 = arith.constant 0 : index
    %c0_63 = arith.constant 0 : index
    %50 = vector.load %arg3[%c0_62, %c0_63] : memref<1x256xf32, #tpu.memory_space<vmem>>, vector<1x256xf32>
    %51 = arith.mulf %49, %50 : vector<1x256xf32>
    %52 = vector.broadcast %51 : vector<1x256xf32> to vector<128x256xf32>
    %53 = arith.mulf %41, %52 : vector<128x256xf32>
    %c0_64 = arith.constant 0 : index
    %c0_65 = arith.constant 0 : index
    %54 = vector.load %arg4[%c0_64, %c0_65] : memref<1x256xf32, #tpu.memory_space<vmem>>, vector<1x256xf32>
    %55 = vector.broadcast %54 : vector<1x256xf32> to vector<128x256xf32>
    %56 = arith.addf %53, %55 : vector<128x256xf32>
    %cst_66 = arith.constant 0.000000e+00 : f32
    %57 = vector.broadcast %cst_66 : f32 to vector<128x256xf32>
    %58 = arith.maximumf %56, %57 : vector<128x256xf32>
    %cst_67 = arith.constant 0.000000e+00 : bf16
    %59 = vector.broadcast %cst_67 : bf16 to vector<2x10x17x256xbf16>
    %c0_68 = arith.constant 0 : index
    %c0_69 = arith.constant 0 : index
    %c0_70 = arith.constant 0 : index
    %c0_71 = arith.constant 0 : index
    %60 = vector.load %arg10[%c0_68, %c0_69, %c0_70, %c0_71] : memref<2x10x17x256xbf16, #tpu.memory_space<vmem>>, vector<2x10x17x256xbf16>
    tpu.vector_store %arg10[%c0_68, %c0_69, %c0_70, %c0_71], %59 {strides = array<i32>} : memref<2x10x17x256xbf16, #tpu.memory_space<vmem>>, vector<2x10x17x256xbf16>,
    %61 = vector.shape_cast %58 : vector<128x256xf32> to vector<2x8x8x256xf32>
    %62 = arith.truncf %61 : vector<2x8x8x256xf32> to vector<2x8x8x256xbf16>
    %c0_72 = arith.constant 0 : index
    %c1_73 = arith.constant 1 : index
    %c1_74 = arith.constant 1 : index
    %c0_75 = arith.constant 0 : index
    %63 = vector.load %arg10[%c0_72, %c1_73, %c1_74, %c0_75] : memref<2x10x17x256xbf16, #tpu.memory_space<vmem>>, vector<2x8x8x256xbf16>
    tpu.vector_store %arg10[%c0_72, %c1_73, %c1_74, %c0_75], %62 {strides = array<i32>} : memref<2x10x17x256xbf16, #tpu.memory_space<vmem>>, vector<2x8x8x256xbf16>,
    %c0_76 = arith.constant 0 : index
    %c0_77 = arith.constant 0 : index
    %c0_78 = arith.constant 0 : index
    %c0_79 = arith.constant 0 : index
    %64 = vector.load %arg10[%c0_76, %c0_77, %c0_78, %c0_79] : memref<2x10x17x256xbf16, #tpu.memory_space<vmem>>, vector<2x9x16x256xbf16>
    %65 = vector.shape_cast %64 : vector<2x9x16x256xbf16> to vector<288x256xbf16>
    %c0_80 = arith.constant 0 : index
    %c0_81 = arith.constant 0 : index
    %c0_82 = arith.constant 0 : index
    %66 = vector.load %arg5[%c0_80, %c0_81, %c0_82] : memref<4x256x256xbf16, #tpu.memory_space<vmem>>, vector<1x256x256xbf16>
    %67 = vector.shape_cast %66 : vector<1x256x256xbf16> to vector<256x256xbf16>
    %cst_83 = arith.constant dense<0.000000e+00> : vector<288x256xf32>
    %68 = tpu.matmul %65, %67, %cst_83 {dimension_numbers = #tpu.dot_dimension_numbers<[1], [0], [0], [1], [0, 0, 1, 1], [], []>} : vector<288x256xbf16>, vector<256x256xbf16>, vector<288x256xf32> -> vector<288x256xf32>
    %c0_84 = arith.constant 0 : index
    %c0_85 = arith.constant 0 : index
    %c1_86 = arith.constant 1 : index
    %c0_87 = arith.constant 0 : index
    %69 = vector.load %arg10[%c0_84, %c0_85, %c1_86, %c0_87] : memref<2x10x17x256xbf16, #tpu.memory_space<vmem>>, vector<2x9x16x256xbf16>
    %70 = vector.shape_cast %69 : vector<2x9x16x256xbf16> to vector<288x256xbf16>
    %c1_88 = arith.constant 1 : index
    %c0_89 = arith.constant 0 : index
    %c0_90 = arith.constant 0 : index
    %71 = vector.load %arg5[%c1_88, %c0_89, %c0_90] : memref<4x256x256xbf16, #tpu.memory_space<vmem>>, vector<1x256x256xbf16>
    %72 = vector.shape_cast %71 : vector<1x256x256xbf16> to vector<256x256xbf16>
    %cst_91 = arith.constant dense<0.000000e+00> : vector<288x256xf32>
    %73 = tpu.matmul %70, %72, %cst_91 {dimension_numbers = #tpu.dot_dimension_numbers<[1], [0], [0], [1], [0, 0, 1, 1], [], []>} : vector<288x256xbf16>, vector<256x256xbf16>, vector<288x256xf32> -> vector<288x256xf32>
    %74 = arith.addf %68, %73 : vector<288x256xf32>
    %c0_92 = arith.constant 0 : index
    %c1_93 = arith.constant 1 : index
    %c0_94 = arith.constant 0 : index
    %c0_95 = arith.constant 0 : index
    %75 = vector.load %arg10[%c0_92, %c1_93, %c0_94, %c0_95] : memref<2x10x17x256xbf16, #tpu.memory_space<vmem>>, vector<2x9x16x256xbf16>
    %76 = vector.shape_cast %75 : vector<2x9x16x256xbf16> to vector<288x256xbf16>
    %c2_96 = arith.constant 2 : index
    %c0_97 = arith.constant 0 : index
    %c0_98 = arith.constant 0 : index
    %77 = vector.load %arg5[%c2_96, %c0_97, %c0_98] : memref<4x256x256xbf16, #tpu.memory_space<vmem>>, vector<1x256x256xbf16>
    %78 = vector.shape_cast %77 : vector<1x256x256xbf16> to vector<256x256xbf16>
    %cst_99 = arith.constant dense<0.000000e+00> : vector<288x256xf32>
    %79 = tpu.matmul %76, %78, %cst_99 {dimension_numbers = #tpu.dot_dimension_numbers<[1], [0], [0], [1], [0, 0, 1, 1], [], []>} : vector<288x256xbf16>, vector<256x256xbf16>, vector<288x256xf32> -> vector<288x256xf32>
    %80 = arith.addf %74, %79 : vector<288x256xf32>
    %c0_100 = arith.constant 0 : index
    %c1_101 = arith.constant 1 : index
    %c1_102 = arith.constant 1 : index
    %c0_103 = arith.constant 0 : index
    %81 = vector.load %arg10[%c0_100, %c1_101, %c1_102, %c0_103] : memref<2x10x17x256xbf16, #tpu.memory_space<vmem>>, vector<2x9x16x256xbf16>
    %82 = vector.shape_cast %81 : vector<2x9x16x256xbf16> to vector<288x256xbf16>
    %c3 = arith.constant 3 : index
    %c0_104 = arith.constant 0 : index
    %c0_105 = arith.constant 0 : index
    %83 = vector.load %arg5[%c3, %c0_104, %c0_105] : memref<4x256x256xbf16, #tpu.memory_space<vmem>>, vector<1x256x256xbf16>
    %84 = vector.shape_cast %83 : vector<1x256x256xbf16> to vector<256x256xbf16>
    %cst_106 = arith.constant dense<0.000000e+00> : vector<288x256xf32>
    %85 = tpu.matmul %82, %84, %cst_106 {dimension_numbers = #tpu.dot_dimension_numbers<[1], [0], [0], [1], [0, 0, 1, 1], [], []>} : vector<288x256xbf16>, vector<256x256xbf16>, vector<288x256xf32> -> vector<288x256xf32>
    %86 = arith.addf %80, %85 : vector<288x256xf32>
    %cst_107 = arith.constant dense<0.000000e+00> : vector<256xf32>
    %87 = vector.multi_reduction <add>, %86, %cst_107 [0] : vector<288x256xf32> to vector<256xf32>
    %88 = vector.shape_cast %87 : vector<256xf32> to vector<1x256xf32>
    %cst_108 = arith.constant 0.00617283955 : f32
    %89 = vector.broadcast %cst_108 : f32 to vector<1x256xf32>
    %90 = arith.mulf %88, %89 : vector<1x256xf32>
    %91 = vector.broadcast %90 : vector<1x256xf32> to vector<288x256xf32>
    %92 = arith.subf %86, %91 : vector<288x256xf32>
    %93 = arith.mulf %92, %92 : vector<288x256xf32>
    %cst_109 = arith.constant dense<0.000000e+00> : vector<256xf32>
    %94 = vector.multi_reduction <add>, %93, %cst_109 [0] : vector<288x256xf32> to vector<256xf32>
    %95 = vector.shape_cast %94 : vector<256xf32> to vector<1x256xf32>
    %cst_110 = arith.constant 1.260000e+02 : f32
    %96 = vector.broadcast %cst_110 : f32 to vector<1x256xf32>
    %97 = arith.mulf %96, %90 : vector<1x256xf32>
    %98 = arith.mulf %97, %90 : vector<1x256xf32>
    %99 = arith.subf %95, %98 : vector<1x256xf32>
    %cst_111 = arith.constant 0.00617283955 : f32
    %100 = vector.broadcast %cst_111 : f32 to vector<1x256xf32>
    %101 = arith.mulf %99, %100 : vector<1x256xf32>
    %cst_112 = arith.constant 9.99999974E-6 : f32
    %102 = vector.broadcast %cst_112 : f32 to vector<1x256xf32>
    %103 = arith.addf %101, %102 : vector<1x256xf32>
    %104 = math.rsqrt %103 : vector<1x256xf32>
    %c0_113 = arith.constant 0 : index
    %c0_114 = arith.constant 0 : index
    %105 = vector.load %arg6[%c0_113, %c0_114] : memref<1x256xf32, #tpu.memory_space<vmem>>, vector<1x256xf32>
    %106 = arith.mulf %104, %105 : vector<1x256xf32>
    %107 = vector.broadcast %106 : vector<1x256xf32> to vector<288x256xf32>
    %108 = arith.mulf %92, %107 : vector<288x256xf32>
    %c0_115 = arith.constant 0 : index
    %c0_116 = arith.constant 0 : index
    %109 = vector.load %arg7[%c0_115, %c0_116] : memref<1x256xf32, #tpu.memory_space<vmem>>, vector<1x256xf32>
    %110 = vector.broadcast %109 : vector<1x256xf32> to vector<288x256xf32>
    %111 = arith.addf %108, %110 : vector<288x256xf32>
    %cst_117 = arith.constant 0.000000e+00 : f32
    %112 = vector.broadcast %cst_117 : f32 to vector<288x256xf32>
    %113 = arith.maximumf %111, %112 : vector<288x256xf32>
    %114 = vector.shape_cast %113 : vector<288x256xf32> to vector<2x9x16x256xf32>
    %115 = vector.extract_strided_slice %114 {offsets = [0, 0, 0, 0], sizes = [2, 8, 8, 256], strides = [1, 1, 1, 1]} : vector<2x9x16x256xf32> to vector<2x8x8x256xf32>
    %116 = vector.shape_cast %115 : vector<2x8x8x256xf32> to vector<2x4x2x8x256xf32>
    %cst_118 = arith.constant dense<0xFF800000> : vector<2x4x8x256xf32>
    %117 = vector.multi_reduction <maximumf>, %116, %cst_118 [2] : vector<2x4x2x8x256xf32> to vector<2x4x8x256xf32>
    %118 = vector.shape_cast %117 : vector<2x4x8x256xf32> to vector<2x4x4x2x256xf32>
    %cst_119 = arith.constant dense<0xFF800000> : vector<2x4x4x256xf32>
    %119 = vector.multi_reduction <maximumf>, %118, %cst_119 [3] : vector<2x4x4x2x256xf32> to vector<2x4x4x256xf32>
    %c0_120 = arith.constant 0 : index
    %c0_121 = arith.constant 0 : index
    %c0_122 = arith.constant 0 : index
    %c0_123 = arith.constant 0 : index
    %120 = vector.load %arg8[%c0_120, %c0_121, %c0_122, %c0_123] : memref<2x4x4x256xf32, #tpu.memory_space<vmem>>, vector<2x4x4x256xf32>
    tpu.vector_store %arg8[%c0_120, %c0_121, %c0_122, %c0_123], %119 {strides = array<i32>} : memref<2x4x4x256xf32, #tpu.memory_space<vmem>>, vector<2x4x4x256xf32>,
    return
  }
  func.func @transform_0(%arg0: i32) -> (i32, i32, i32, i32) {
    %c0_i32 = arith.constant 0 : i32
    %c0_i32_0 = arith.constant 0 : i32
    %c0_i32_1 = arith.constant 0 : i32
    %c0_i32_2 = arith.constant 0 : i32
    %c0_i32_3 = arith.constant 0 : i32
    return %c0_i32, %c0_i32_0, %c0_i32_1, %c0_i32_2 : i32, i32, i32, i32
  }
  func.func @transform_1(%arg0: i32) -> (i32, i32, i32) {
    %c0_i32 = arith.constant 0 : i32
    %c0_i32_0 = arith.constant 0 : i32
    %c0_i32_1 = arith.constant 0 : i32
    %c0_i32_2 = arith.constant 0 : i32
    return %c0_i32, %c0_i32_0, %c0_i32_1 : i32, i32, i32
  }
  func.func @transform_2(%arg0: i32) -> (i32, i32) {
    %c0_i32 = arith.constant 0 : i32
    %c0_i32_0 = arith.constant 0 : i32
    %c0_i32_1 = arith.constant 0 : i32
    return %c0_i32, %c0_i32_0 : i32, i32
  }
  func.func @transform_3(%arg0: i32) -> (i32, i32) {
    %c0_i32 = arith.constant 0 : i32
    %c0_i32_0 = arith.constant 0 : i32
    %c0_i32_1 = arith.constant 0 : i32
    return %c0_i32, %c0_i32_0 : i32, i32
  }
  func.func @transform_4(%arg0: i32) -> (i32, i32, i32) {
    %c0_i32 = arith.constant 0 : i32
    %c0_i32_0 = arith.constant 0 : i32
    %c0_i32_1 = arith.constant 0 : i32
    %c0_i32_2 = arith.constant 0 : i32
    return %c0_i32, %c0_i32_0, %c0_i32_1 : i32, i32, i32
  }
  func.func @transform_5(%arg0: i32) -> (i32, i32) {
    %c0_i32 = arith.constant 0 : i32
    %c0_i32_0 = arith.constant 0 : i32
    %c0_i32_1 = arith.constant 0 : i32
    return %c0_i32, %c0_i32_0 : i32, i32
  }
  func.func @transform_6(%arg0: i32) -> (i32, i32) {
    %c0_i32 = arith.constant 0 : i32
    %c0_i32_0 = arith.constant 0 : i32
    %c0_i32_1 = arith.constant 0 : i32
    return %c0_i32, %c0_i32_0 : i32, i32
  }
  func.func @transform_7(%arg0: i32) -> (i32, i32, i32, i32) {
    %c0_i32 = arith.constant 0 : i32
    %c0_i32_0 = arith.constant 0 : i32
    %c0_i32_1 = arith.constant 0 : i32
    %c0_i32_2 = arith.constant 0 : i32
    %c0_i32_3 = arith.constant 0 : i32
    return %c0_i32, %c0_i32_0, %c0_i32_1, %c0_i32_2 : i32, i32, i32, i32
  }
}

</mosaic_0001>

<bundles_post_ra>
// kernel: cnn2_forward.1
= control target key start
LH: loop header
LB: loop body
LE: loop exit
PB: predicated region body
PF: predicated region fallthrough
CT: control target
= control target key end

     0   :  { %12 = vsyncpa [#allocation5], 0  ;;  %s14004_s0 = inlined_call_operand.vmem [shape: bf16[2,8,8,64], index: 0, kind: input, shape index: {}]   ;;  %s14005_s1 = inlined_call_operand.hbm [shape: bf16[3,192,256], index: 1, kind: input, shape index: {}]   ;;  %s14006_s2 = inlined_call_operand.vmem [shape: f32[1,256], index: 2, kind: input, shape index: {}]   ;;  %s14007_s3 = inlined_call_operand.vmem [shape: f32[1,256], index: 3, kind: input, shape index: {}]   ;;  %s14008_s4 = inlined_call_operand.hbm [shape: bf16[4,256,256], index: 4, kind: input, shape index: {}]   ;;  %s14009_s5 = inlined_call_operand.vmem [shape: f32[1,256], index: 5, kind: input, shape index: {}]   ;;  %s14010_s6 = inlined_call_operand.vmem [shape: f32[1,256], index: 6, kind: input, shape index: {}]   ;;  %s14011_s7 = inlined_call_operand.vmem [shape: f32[2,4,4,256], index: 7, kind: output, shape index: {}]  }
   0x1   :  { %13 = vsyncpa [#allocation7], 0  ;;  %s9844_s24 = smov [#allocation4]   ;;  %s9796_s28 = scalar_lea.hbm %s14005_s1, 9216 }
   0x2   :  { %s21_s25 = sshll.u32 %s9844_s24, 4  ;;  %p9797_p0 = scmp.ne.s32.totalorder %s14005_s1, %s9796_s28  ;;  %s22_s25 = int_to_ptr.vmem [resolvable:$true] %s21_s25 }
   0x3   :  { %p9800_p1 = scmp.lt.u32.totalorder %s9796_s28, %s14005_s1 }
   0x5   :  { %p9802_p2 = pnand %p9800_p1, %p9797_p0 }
   0x7   :  { %9805 = shalt.err (!%p9802_p2)
}
   0x8   :  { %s9806_s10 = scalar_lea.vmem %s22_s25, 9216  ;;  %p9811_p4 = scmp.lt.s32.totalorder %s22_s25, %s22_s25 }
   0x9   :  { %p9807_p3 = scmp.ne.s32.totalorder %s22_s25, %s9806_s10  ;;  %p9812_p5 = scmp.lt.s32.totalorder %s9806_s10, %s9806_s10 }
   0xb   :  { %p9813_p6 = por %p9812_p5, %p9811_p4 }
   0xd   :  { %p9814_p7 = pnand %p9813_p6, %p9807_p3 }
   0xf   :  { %9817 = shalt.err (!%p9814_p7)
}
  0x10   :  { %s9845_s11 = smov 128   ;;  %s9846_s12 = smov 8  }
  0x11   :  { %27 = dma.hbm_to_vmem [thread:$0]  %s14005_s1, 9216, %s22_s25, [#allocation5], %s9845_s11, %s9845_s11, %s9846_s12  }
  0x12   :  { %s9847_s15 = smov [#allocation6]   ;;  %s9818_s19 = scalar_lea.hbm %s14008_s4, 16384 }
  0x13   :  { %s37_s16 = sshll.u32 %s9847_s15, 4  ;;  %p9819_p8 = scmp.ne.s32.totalorder %s14008_s4, %s9818_s19  ;;  %s38_s16 = int_to_ptr.vmem [resolvable:$true] %s37_s16 }
  0x14   :  { %p9822_p9 = scmp.lt.u32.totalorder %s9818_s19, %s14008_s4 }
  0x16   :  { %p9824_p10 = pnand %p9822_p9, %p9819_p8 }
  0x18   :  { %9827 = shalt.err (!%p9824_p10)
}
  0x19   :  { %s9828_s24 = scalar_lea.vmem %s38_s16, 16384  ;;  %p9833_p12 = scmp.lt.s32.totalorder %s38_s16, %s38_s16 }
  0x1a   :  { %p9829_p11 = scmp.ne.s32.totalorder %s38_s16, %s9828_s24  ;;  %p9834_p13 = scmp.lt.s32.totalorder %s9828_s24, %s9828_s24 }
  0x1c   :  { %p9835_p0 = por %p9834_p13, %p9833_p12 }
  0x1e   :  { %p9836_p1 = pnand %p9835_p0, %p9829_p11 }
  0x20   :  { %9839 = shalt.err (!%p9836_p1)
}
  0x21   :  { %43 = dma.hbm_to_vmem [thread:$0]  %s14008_s4, 16384, %s38_s16, [#allocation7], %s9845_s11, %s9845_s11, %s9846_s12  }
  0x22   :  { %9840 = dma.done.wait [#allocation5], 9216  }
  0x23   :  { %9841 = vsyncadd [#allocation5], 4294958080 }
  0x24   :  { %9842 = dma.done.wait [#allocation7], 16384  }
  0x25   :  { %9843 = vsyncadd [#allocation7], 4294950912  ;;  %vm55_vm0 = vcmask 519168   ;;  %vm57_vm1 = vcmask 516096   ;;  %v9848_v0 = vmov 0   ;;  %s9849_s20 = smov 64  }
  0x26   :  { %59 = vst.msk [vmem:[#allocation2 + $0x8] sm:$0xf] %vm55_vm0, %v9848_v0  ;;  %61 = vst.msk [vmem:[#allocation2 + $0x10] sm:$0xf] %vm55_vm0, %v9848_v0  ;;  %vm275_vm2 = vsmask.f32 7938 }
  0x27   :  { %60 = vst.msk [vmem:[#allocation2 + $0xc] sm:$0x1] %vm57_vm1, %v9848_v0  ;;  %62 = vst.msk [vmem:[#allocation2 + $0x14] sm:$0x1] %vm57_vm1, %v9848_v0  ;;  %v97_v1 = vld [vmem:[%s14004_s0] sm:$0xf] }
  0x28   :  { %56 = vst.msk [vmem:[#allocation2] sm:$0xf] %vm55_vm0, %v9848_v0  ;;  %63 = vst.msk [vmem:[#allocation2 + $0x18] sm:$0xf] %vm55_vm0, %v9848_v0  ;;  %v98_v2 = vld [vmem:[%s14004_s0 + $0x4] sm:$0xf] }
  0x29   :  { %58 = vst.msk [vmem:[#allocation2 + $0x4] sm:$0x1] %vm57_vm1, %v9848_v0  ;;  %64 = vst.msk [vmem:[#allocation2 + $0x1c] sm:$0x1] %vm57_vm1, %v9848_v0  ;;  %vm281_vm3 = vsmask.f32 256 }
  0x2a   :  { %65 = vst.msk [vmem:[#allocation2 + $0x20] sm:$0xf] %vm55_vm0, %v9848_v0  ;;  %67 = vst.msk [vmem:[#allocation2 + $0x28] sm:$0xf] %vm55_vm0, %v9848_v0  ;;  %v114_v3 = vshrl.u32 %v97_v1, 16  ;;  %v117_v4 = vshll.u32 %v97_v1, 16 }
  0x2b   :  { %66 = vst.msk [vmem:[#allocation2 + $0x24] sm:$0x1] %vm57_vm1, %v9848_v0  ;;  %68 = vst.msk [vmem:[#allocation2 + $0x2c] sm:$0x1] %vm57_vm1, %v9848_v0  ;;  %v122_v5 = vshrl.u32 %v98_v2, 16  ;;  %v125_v6 = vshll.u32 %v98_v2, 16 }
  0x2c   :  { %69 = vst.msk [vmem:[#allocation2 + $0x30] sm:$0xf] %vm55_vm0, %v9848_v0  ;;  %71 = vst.msk [vmem:[#allocation2 + $0x38] sm:$0xf] %vm55_vm0, %v9848_v0  ;;  %v116_v10 = vrot.slane %v114_v3, 7  ;;  %vm683_vm9 = vcmask 1042432  }
  0x2d   :  { %70 = vst.msk [vmem:[#allocation2 + $0x34] sm:$0x1] %vm57_vm1, %v9848_v0  ;;  %72 = vst.msk [vmem:[#allocation2 + $0x3c] sm:$0x1] %vm57_vm1, %v9848_v0  ;;  %v277_v7 = vld [vmem:[#allocation2 + $0x8] sm:$0xf] }
  0x2e   :  { %73 = vst.msk [vmem:[#allocation2 + $0x40] sm:$0xf] %vm55_vm0, %v9848_v0  ;;  %75 = vst.msk [vmem:[#allocation2 + $0x48] sm:$0xf] %vm55_vm0, %v9848_v0  ;;  %v283_v8 = vld [vmem:[#allocation2 + $0xc] sm:$0x1]  ;;  %v119_v21 = vor.u32 %v117_v4, %v116_v10 }
  0x2f   :  { %74 = vst.msk [vmem:[#allocation2 + $0x44] sm:$0x1] %vm57_vm1, %v9848_v0  ;;  %76 = vst.msk [vmem:[#allocation2 + $0x4c] sm:$0x1] %vm57_vm1, %v9848_v0  ;;  %v286_v9 = vld [vmem:[#allocation2 + $0x10] sm:$0xf] }
  0x30   :  { %77 = vst.msk [vmem:[#allocation2 + $0x50] sm:$0xf] %vm55_vm0, %v9848_v0  ;;  %79 = vst.msk [vmem:[#allocation2 + $0x58] sm:$0xf] %vm55_vm0, %v9848_v0  ;;  %v124_v11 = vrot.slane %v122_v5, 7  ;;  %v120_v22 = vrot.slane %v116_v10, 4 }
  0x31   :  { %78 = vst.msk [vmem:[#allocation2 + $0x54] sm:$0x1] %vm57_vm1, %v9848_v0  ;;  %80 = vst.msk [vmem:[#allocation2 + $0x5c] sm:$0x1] %vm57_vm1, %v9848_v0  ;;  %v99_v13 = vld [vmem:[%s14004_s0 + $0x8] sm:$0xf] }
  0x32   :  { %81 = vst.msk [vmem:[#allocation2 + $0x60] sm:$0xf] %vm55_vm0, %v9848_v0  ;;  %83 = vst.msk [vmem:[#allocation2 + $0x68] sm:$0xf] %vm55_vm0, %v9848_v0  ;;  %v100_v14 = vld [vmem:[%s14004_s0 + $0xc] sm:$0xf]  ;;  %v127_v23 = vor.u32 %v125_v6, %v124_v11 }
  0x33   :  { %82 = vst.msk [vmem:[#allocation2 + $0x64] sm:$0x1] %vm57_vm1, %v9848_v0  ;;  %84 = vst.msk [vmem:[#allocation2 + $0x6c] sm:$0x1] %vm57_vm1, %v9848_v0  ;;  %v289_v16 = vld [vmem:[#allocation2 + $0x14] sm:$0x1] }
  0x34   :  { %85 = vst.msk [vmem:[#allocation2 + $0x70] sm:$0xf] %vm55_vm0, %v9848_v0  ;;  %87 = vst.msk [vmem:[#allocation2 + $0x78] sm:$0xf] %vm55_vm0, %v9848_v0  ;;  %v130_v17 = vshrl.u32 %v99_v13, 16  ;;  %v133_v18 = vshll.u32 %v99_v13, 16 }
  0x35   :  { %86 = vst.msk [vmem:[#allocation2 + $0x74] sm:$0x1] %vm57_vm1, %v9848_v0  ;;  %88 = vst.msk [vmem:[#allocation2 + $0x7c] sm:$0x1] %vm57_vm1, %v9848_v0  ;;  %v138_v19 = vshrl.u32 %v100_v14, 16  ;;  %v141_v20 = vshll.u32 %v100_v14, 16 }
  0x36   :  { %89 = vst.msk [vmem:[#allocation2 + $0x80] sm:$0xf] %vm55_vm0, %v9848_v0  ;;  %91 = vst.msk [vmem:[#allocation2 + $0x88] sm:$0xf] %vm55_vm0, %v9848_v0  ;;  %v128_v24 = vrot.slane %v124_v11, 4  ;;  %v132_v26 = vrot.slane %v130_v17, 7 }
  0x37   :  { %90 = vst.msk [vmem:[#allocation2 + $0x84] sm:$0x1] %vm57_vm1, %v9848_v0  ;;  %92 = vst.msk [vmem:[#allocation2 + $0x8c] sm:$0x1] %vm57_vm1, %v9848_v0  ;;  %v292_v25 = vld [vmem:[#allocation2 + $0x18] sm:$0xf] }
  0x38   :  { %93 = vst.msk [vmem:[#allocation2 + $0x90] sm:$0xf] %vm55_vm0, %v9848_v0  ;;  %95 = vst.msk [vmem:[#allocation2 + $0x98] sm:$0xf] %vm55_vm0, %v9848_v0  ;;  %v140_v27 = vrot.slane %v138_v19, 7  ;;  %v135_v37 = vor.u32 %v133_v18, %v132_v26  ;;  %v136_v38 = vrot.slane %v132_v26, 4 }
  0x39   :  { %94 = vst.msk [vmem:[#allocation2 + $0x94] sm:$0x1] %vm57_vm1, %v9848_v0  ;;  %96 = vst.msk [vmem:[#allocation2 + $0x9c] sm:$0x1] %vm57_vm1, %v9848_v0  ;;  %v295_v28 = vld [vmem:[#allocation2 + $0x1c] sm:$0x1] }
  0x3a   :  { %3060 = vst [vmem:[#allocation3] sm:$0xff] %v9848_v0  ;;  %3072 = vst [vmem:[#allocation3 + $0x20] sm:$0xff] %v9848_v0  ;;  %v101_v29 = vld [vmem:[%s14004_s0 + $0x10] sm:$0xf]  ;;  %v298_v34 = vld [vmem:[#allocation2 + $0x20] sm:$0xf]  ;;  %v143_v39 = vor.u32 %v141_v20, %v140_v27 }
  0x3b   :  { %3077 = vst [vmem:[#allocation3 + $0x38] sm:$0xff] %v9848_v0  ;;  %3082 = vst [vmem:[#allocation3 + $0x50] sm:$0xff] %v9848_v0  ;;  %v301_v35 = vld [vmem:[#allocation2 + $0x24] sm:$0x1]  ;;  %v102_v36 = vld [vmem:[%s14004_s0 + $0x14] sm:$0xf] }
  0x3c   :  { %3087 = vst [vmem:[#allocation3 + $0x68] sm:$0xff] %v9848_v0  ;;  %3092 = vst [vmem:[#allocation3 + $0x80] sm:$0xff] %v9848_v0  ;;  %v144_v40 = vrot.slane %v140_v27, 4  ;;  %v146_v41 = vshrl.u32 %v101_v29, 16  ;;  %v149_v42 = vshll.u32 %v101_v29, 16  ;;  %v154_v43 = vshrl.u32 %v102_v36, 16 }
  0x3d   :  { %3097 = vst [vmem:[#allocation3 + $0x98] sm:$0xff] %v9848_v0  ;;  %3102 = vst [vmem:[#allocation3 + $0xb0] sm:$0xff] %v9848_v0  ;;  %v157_v44 = vshll.u32 %v102_v36, 16  ;;  %v103_v45 = vld [vmem:[%s14004_s0 + $0x18] sm:$0xf]  ;;  %vm684_vm10 = vcmask 1046532  }
  0x3e   :  { %3107 = vst [vmem:[#allocation3 + $0xc8] sm:$0xff] %v9848_v0  ;;  %3122 = vst [vmem:[#allocation3 + $0x110] sm:$0xff] %v9848_v0  ;;  %vm408_vm6 = vsmask.f32 3328  ;;  %vm409_vm7 = vsmask.f32 7440 }
  0x3f   :  { %3127 = vst [vmem:[#allocation3 + $0x128] sm:$0xff] %v9848_v0  ;;  %3132 = vst [vmem:[#allocation3 + $0x140] sm:$0xff] %v9848_v0  ;;  %v304_v50 = vld [vmem:[#allocation2 + $0x28] sm:$0xf]  ;;  %v10007_v51 = vld [vmem:[%s14004_s0 + $0x1c] sm:$0xf] }
  0x40   :  { %3137 = vst [vmem:[#allocation3 + $0x158] sm:$0xff] %v9848_v0  ;;  %3142 = vst [vmem:[#allocation3 + $0x170] sm:$0xff] %v9848_v0  ;;  %v148_v52 = vrot.slane %v146_v41, 7  ;;  %v156_v53 = vrot.slane %v154_v43, 7  ;;  %v307_v54 = vld [vmem:[#allocation2 + $0x2c] sm:$0x1] }
  0x41   :  { %3147 = vst [vmem:[#allocation3 + $0x188] sm:$0xff] %v9848_v0  ;;  %3152 = vst [vmem:[#allocation3 + $0x1a0] sm:$0xff] %v9848_v0  ;;  %v162_v55 = vshrl.u32 %v103_v45, 16  ;;  %v310_v56 = vld [vmem:[#allocation2 + $0x30] sm:$0xf]  ;;  %v165_v58 = vshll.u32 %v103_v45, 16 }
  0x42   :  { %3157 = vst [vmem:[#allocation3 + $0x1b8] sm:$0xff] %v9848_v0  ;;  %vm9963_vm4 = vmand %vm55_vm0, %vm275_vm2  ;;  %v313_v57 = vld [vmem:[#allocation2 + $0x34] sm:$0x1]  ;;  %v170_v59 = vshrl.u32 %v10007_v51, 16  ;;  %v151_v60 = vor.u32 %v149_v42, %v148_v52  ;;  %v152_v61 = vrot.slane %v148_v52, 4  ;;  %v159_v62 = vor.u32 %v157_v44, %v156_v53 }
  0x43   :  { %vm9975_vm5 = vmand %vm57_vm1, %vm281_vm3  ;;  %v278_v30 = vsel %vm9963_vm4, %v119_v21, %v277_v7  ;;  %v287_v32 = vsel %vm9963_vm4, %v127_v23, %v286_v9  ;;  %v293_v46 = vsel %vm9963_vm4, %v135_v37, %v292_v25  ;;  %v299_v48 = vsel %vm9963_vm4, %v143_v39, %v298_v34  ;;  %v316_v3 = vld [vmem:[#allocation2 + $0x38] sm:$0xf]  ;;  %v10018_v4 = vld [vmem:[%s14004_s0 + $0x20] sm:$0xf] }
  0x44   :  { %v284_v31 = vsel %vm9975_vm5, %v120_v22, %v283_v8  ;;  %v290_v33 = vsel %vm9975_vm5, %v128_v24, %v289_v16  ;;  %279 = vst [vmem:[#allocation2 + $0x8] sm:$0xf] %v278_v30  ;;  %288 = vst [vmem:[#allocation2 + $0x10] sm:$0xf] %v287_v32  ;;  %v296_v47 = vsel %vm9975_vm5, %v136_v38, %v295_v28  ;;  %v160_v63 = vrot.slane %v156_v53, 4 }
  0x45   :  { %285 = vst [vmem:[#allocation2 + $0xc] sm:$0x1] %v284_v31  ;;  %291 = vst [vmem:[#allocation2 + $0x14] sm:$0x1] %v290_v33  ;;  %v302_v49 = vsel %vm9975_vm5, %v144_v40, %v301_v35  ;;  %v10010_v0 = vrot.slane %v162_v55, 7  ;;  %v10012_v1 = vrot.slane %v170_v59, 7  ;;  %v305_v8 = vsel %vm9963_vm4, %v151_v60, %v304_v50 }
  0x46   :  { %294 = vst [vmem:[#allocation2 + $0x18] sm:$0xf] %v293_v46  ;;  %297 = vst [vmem:[#allocation2 + $0x1c] sm:$0x1] %v296_v47  ;;  %v173_v2 = vshll.u32 %v10007_v51, 16  ;;  %v308_v9 = vsel %vm9975_vm5, %v152_v61, %v307_v54  ;;  %v311_v10 = vsel %vm9963_vm4, %v159_v62, %v310_v56  ;;  %v314_v11 = vsel %vm9975_vm5, %v160_v63, %v313_v57 }
  0x47   :  { %300 = vst [vmem:[#allocation2 + $0x20] sm:$0xf] %v299_v48  ;;  %303 = vst [vmem:[#allocation2 + $0x24] sm:$0x1] %v302_v49  ;;  %v167_v21 = vor.u32 %v165_v58, %v10010_v0  ;;  %v178_v22 = vshrl.u32 %v10018_v4, 16  ;;  %v14123_v38 = vmov 0 }
  0x48   :  { %306 = vst [vmem:[#allocation2 + $0x28] sm:$0xf] %v305_v8  ;;  %309 = vst [vmem:[#allocation2 + $0x2c] sm:$0x1] %v308_v9  ;;  %v168_v46 = vrot.slane %v10010_v0, 4  ;;  %v175_v51 = vor.u32 %v173_v2, %v10012_v1  ;;  %vm854_vm12 = vcmask 523264  }
  0x49   :  { %312 = vst [vmem:[#allocation2 + $0x30] sm:$0xf] %v311_v10  ;;  %315 = vst [vmem:[#allocation2 + $0x34] sm:$0x1] %v314_v11  ;;  %v317_v32 = vsel %vm9963_vm4, %v167_v21, %v316_v3  ;;  %v319_v11 = vld [vmem:[#allocation2 + $0x3c] sm:$0x1] }
  0x4a   :  { %318 = vst [vmem:[#allocation2 + $0x38] sm:$0xf] %v317_v32  ;;  %vm10053_vm8 = vmor %vm408_vm6, %vm409_vm7  ;;  %v176_v32 = vrot.slane %v10012_v1, 4  ;;  %vm3062_vm13 = vcmask 1040384   ;;  %vm3064_vm14 = vcmask 1044484  }
  0x4b   :  { %v10020_v5 = vld [vmem:[#allocation2 + $0x8] sm:$0xf]  ;;  %v10022_v6 = vld [vmem:[#allocation2 + $0x10] sm:$0xf]  ;;  %v14124_v38 = vsel %vm10053_vm8, 4294967295, %v14123_v38  ;;  %vm10343_vm11 = vmor %vm683_vm9, %vm684_vm10  ;;  %vm8458_vm10 = vcmask 1041409  }
  0x4c   :  { %v927_v7 = vld [vmem:[#allocation2 + $0xc] sm:$0x1]  ;;  %v928_v13 = vld [vmem:[#allocation2 + $0x14] sm:$0x1]  ;;  %v944_v14 = vshrl.u32 %v10020_v5, 16  ;;  %v947_v16 = vshll.u32 %v10020_v5, 16  ;;  %vm11328_vm0 = vmand %vm3062_vm13, %vm281_vm3 }
  0x4d   :  { %v953_v17 = vshll.u32 %v927_v7, 16  ;;  %v958_v18 = vshrl.u32 %v10022_v6, 16  ;;  %v961_v19 = vshll.u32 %v10022_v6, 16  ;;  %v967_v20 = vshll.u32 %v928_v13, 16  ;;  %v10038_v27 = vld [vmem:[#allocation2 + $0x18] sm:$0xf] }
  0x4e   :  { %v946_v23 = vrot.slane %v944_v14, 4  ;;  %v949_v24 = vrot.slane %v947_v16, 5  ;;  %v10040_v30 = vld [vmem:[#allocation2 + $0x20] sm:$0xf]  ;;  %v10042_v31 = vld [vmem:[#allocation2 + $0x1c] sm:$0x1] }
  0x4f   :  { %v955_v25 = vrot.slane %v953_v17, 5  ;;  %v960_v26 = vrot.slane %v958_v18, 4  ;;  %v963_v28 = vrot.slane %v961_v19, 5  ;;  %v969_v29 = vrot.slane %v967_v20, 5  ;;  %v10046_v34 = vld [vmem:[#allocation2 + $0x24] sm:$0x1] }
  0x50   :  { %v950_v33 = vor.u32 %v949_v24, %v946_v23  ;;  %v972_v35 = vshrl.u32 %v10038_v27, 16  ;;  %v975_v36 = vshll.u32 %v10038_v27, 16  ;;  %v981_v37 = vshll.u32 %v10042_v31, 16  ;;  %14125 = vst [vmem:[#allocation10_spill] sm:$0xff] %v14124_v38  ;;  %v10061_v50 = vld [vmem:[#allocation2 + $0x28] sm:$0xf] }
  0x51   :  { %v964_v39 = vor.u32 %v963_v28, %v960_v26  ;;  %v986_v40 = vshrl.u32 %v10040_v30, 16  ;;  %v989_v41 = vshll.u32 %v10040_v30, 16  ;;  %v995_v42 = vshll.u32 %v10046_v34, 16  ;;  %v10066_v56 = vld [vmem:[#allocation2 + $0x30] sm:$0xf] }
  0x52   :  { %v951_v43 = vrot.slane %v950_v33, 4  ;;  %v974_v44 = vrot.slane %v972_v35, 4  ;;  %v977_v45 = vrot.slane %v975_v36, 5  ;;  %v983_v54 = vrot.slane %v981_v37, 5  ;;  %v10068_v57 = vld [vmem:[#allocation2 + $0x2c] sm:$0x1] }
  0x53   :  { %v965_v47 = vrot.slane %v964_v39, 4  ;;  %v988_v48 = vrot.slane %v986_v40, 4  ;;  %v991_v49 = vrot.slane %v989_v41, 5  ;;  %v997_v55 = vrot.slane %v995_v42, 5  ;;  %v10072_v60 = vld [vmem:[#allocation2 + $0x34] sm:$0x1] }
  0x54   :  { %v956_v52 = vsel %vm10053_vm8, %v951_v43, %v955_v25  ;;  %v978_v53 = vor.u32 %v977_v45, %v974_v44  ;;  %v1000_v61 = vshrl.u32 %v10061_v50, 16  ;;  %v1003_v62 = vshll.u32 %v10061_v50, 16  ;;  %v322_v17 = vld [vmem:[#allocation2 + $0x40] sm:$0xf]  ;;  %v325_v24 = vld [vmem:[#allocation2 + $0x44] sm:$0x1] }
  0x55   :  { %v970_v58 = vsel %vm10053_vm8, %v965_v47, %v969_v29  ;;  %v992_v59 = vor.u32 %v991_v49, %v988_v48  ;;  %v1009_v2 = vshll.u32 %v10068_v57, 16  ;;  %v1014_v3 = vshrl.u32 %v10066_v56, 16  ;;  %v10086_v25 = vld [vmem:[#allocation2 + $0x38] sm:$0xf]  ;;  %v106_v33 = vld [vmem:[%s14004_s0 + $0x24] sm:$0xf] }
  0x56   :  { %v8621_v63 = vcombine.low %v956_v52, %v970_v58  ;;  %v979_v0 = vrot.slane %v978_v53, 4  ;;  %v1002_v8 = vrot.slane %v1000_v61, 4  ;;  %v1005_v9 = vrot.slane %v1003_v62, 5  ;;  %v328_v40 = vld [vmem:[#allocation2 + $0x58] sm:$0xf] }
  0x57   :  { %v993_v7 = vrot.slane %v992_v59, 4  ;;  %v1017_v10 = vshll.u32 %v10066_v56, 16  ;;  %v1016_v14 = vrot.slane %v1014_v3, 4  ;;  %v1023_v16 = vshll.u32 %v10072_v60, 16  ;;  %v107_v44 = vld [vmem:[%s14004_s0 + $0x28] sm:$0xf] }
  0x58   :  { %1343 = vrot.lane.b32.xlu0 %v8621_v63, %s9849_s20  ;;  %v984_v13 = vsel %vm10053_vm8, %v979_v0, %v983_v54  ;;  %v181_v18 = vshll.u32 %v10018_v4, 16  ;;  %v1006_v20 = vor.u32 %v1005_v9, %v1002_v8  ;;  %v1011_v21 = vrot.slane %v1009_v2, 5  ;;  %v331_v49 = vld [vmem:[#allocation2 + $0x5c] sm:$0x1]  ;;  %v108_v4 = vld [vmem:[%s14004_s0 + $0x2c] sm:$0xf] }
  0x59   :  { %v998_v19 = vsel %vm10053_vm8, %v993_v7, %v997_v55  ;;  %v1019_v23 = vrot.slane %v1017_v10, 5  ;;  %v1025_v29 = vrot.slane %v1023_v16, 5  ;;  %v320_v37 = vsel %vm9975_vm5, %v168_v46, %v319_v11  ;;  %v334_v2 = vld [vmem:[#allocation2 + $0x60] sm:$0xf]  ;;  %v337_v3 = vld [vmem:[#allocation2 + $0x64] sm:$0x1] }
  0x5a   :  { %v8622_v28 = vcombine.low %v984_v13, %v998_v19  ;;  %v1007_v35 = vrot.slane %v1006_v20, 4  ;;  %v323_v39 = vsel %vm9963_vm4, %v175_v51, %v322_v17  ;;  %321 = vst [vmem:[#allocation2 + $0x3c] sm:$0x1] %v320_v37  ;;  %v326_v1 = vsel %vm9975_vm5, %v176_v32, %v325_v24  ;;  %v10121_v11 = vld [vmem:[%s14004_s0 + $0x30] sm:$0xf] }
  0x5b   :  { %v1020_v36 = vor.u32 %v1019_v23, %v1016_v14  ;;  %324 = vst [vmem:[#allocation2 + $0x40] sm:$0xf] %v323_v39  ;;  %v1028_v41 = vshrl.u32 %v10086_v25, 16  ;;  %v1031_v42 = vshll.u32 %v10086_v25, 16  ;;  %v180_v43 = vrot.slane %v178_v22, 7 }
  0x5c   :  { %1345 = vrot.lane.b32.xlu0 %v8622_v28, %s9849_s20  ;;  %v1012_v45 = vsel %vm10053_vm8, %v1007_v35, %v1011_v21  ;;  %327 = vst [vmem:[#allocation2 + $0x44] sm:$0x1] %v326_v1  ;;  %v186_v47 = vshrl.u32 %v106_v33, 16  ;;  %v189_v48 = vshll.u32 %v106_v33, 16  ;;  %v194_v58 = vshrl.u32 %v107_v44, 16 }
  0x5d   :  { %v1021_v46 = vrot.slane %v1020_v36, 4  ;;  %v1030_v51 = vrot.slane %v1028_v41, 4  ;;  %v1033_v52 = vrot.slane %v1031_v42, 5  ;;  %v183_v53 = vor.u32 %v181_v18, %v180_v43  ;;  %v340_v16 = vld [vmem:[#allocation2 + $0x68] sm:$0xf] }
  0x5e   :  { %v184_v54 = vrot.slane %v180_v43, 4  ;;  %v188_v55 = vrot.slane %v186_v47, 7  ;;  %v197_v59 = vshll.u32 %v107_v44, 16  ;;  %v196_v9 = vrot.slane %v194_v58, 7  ;;  %v343_v17 = vld [vmem:[#allocation2 + $0x6c] sm:$0x1] }
  0x5f   :  { %v1026_v22 = vsel %vm10053_vm8, %v1021_v46, %v1025_v29  ;;  %v1034_v62 = vor.u32 %v1033_v52, %v1030_v51  ;;  %v329_v63 = vsel %vm9963_vm4, %v183_v53, %v328_v40  ;;  %v202_v10 = vshrl.u32 %v108_v4, 16  ;;  %v346_v1 = vld [vmem:[#allocation2 + $0x70] sm:$0xf] }
  0x60   :  { %v8623_v61 = vcombine.low %v1012_v45, %v1026_v22  ;;  %v332_v0 = vsel %vm9975_vm5, %v184_v54, %v331_v49  ;;  %v191_v7 = vor.u32 %v189_v48, %v188_v55  ;;  %v192_v8 = vrot.slane %v188_v55, 4  ;;  %330 = vst [vmem:[#allocation2 + $0x58] sm:$0xf] %v329_v63  ;;  %v10147_v45 = vld [vmem:[%s14004_s0 + $0x34] sm:$0xf] }
  0x61   :  { %333 = vst [vmem:[#allocation2 + $0x5c] sm:$0x1] %v332_v0  ;;  %v205_v14 = vshll.u32 %v108_v4, 16  ;;  %v10127_v19 = vld [vmem:[#allocation2 + $0x3c] sm:$0x1]  ;;  %v199_v23 = vor.u32 %v197_v59, %v196_v9  ;;  %v200_v24 = vrot.slane %v196_v9, 4 }
  0x62   :  { %1347 = vrot.lane.b32.xlu1 %v8623_v61, %s9849_s20  ;;  %v10125_v18 = vld [vmem:[#allocation2 + $0x40] sm:$0xf]  ;;  %v335_v20 = vsel %vm9963_vm4, %v191_v7, %v334_v2  ;;  %v338_v21 = vsel %vm9975_vm5, %v192_v8, %v337_v3  ;;  %v1037_v29 = vshll.u32 %v10127_v19, 16  ;;  %v210_v35 = vshrl.u32 %v10121_v11, 16  ;;  %v349_v49 = vld [vmem:[#allocation2 + $0x74] sm:$0x1] }
  0x63   :  { %v10133_v28 = vld [vmem:[#allocation2 + $0x44] sm:$0x1]  ;;  %v1042_v32 = vshrl.u32 %v10125_v18, 16  ;;  %v1045_v33 = vshll.u32 %v10125_v18, 16  ;;  %336 = vst [vmem:[#allocation2 + $0x60] sm:$0xf] %v335_v20  ;;  %v341_v40 = vsel %vm9963_vm4, %v199_v23, %v340_v16  ;;  %v344_v44 = vsel %vm9975_vm5, %v200_v24, %v343_v17 }
  0x64   :  { %339 = vst [vmem:[#allocation2 + $0x64] sm:$0x1] %v338_v21  ;;  %v1035_v36 = vrot.slane %v1034_v62, 4  ;;  %v1051_v37 = vshll.u32 %v10133_v28, 16  ;;  %v204_v39 = vrot.slane %v202_v10, 7  ;;  %v1039_v41 = vrot.slane %v1037_v29, 5 }
  0x65   :  { %v1044_v42 = vrot.slane %v1042_v32, 4  ;;  %v1047_v43 = vrot.slane %v1045_v33, 5  ;;  %342 = vst [vmem:[#allocation2 + $0x68] sm:$0xf] %v341_v40  ;;  %345 = vst [vmem:[#allocation2 + $0x6c] sm:$0x1] %v344_v44 }
  0x66   :  { %v207_v47 = vor.u32 %v205_v14, %v204_v39  ;;  %v208_v48 = vrot.slane %v204_v39, 4  ;;  %v213_v51 = vshll.u32 %v10121_v11, 16  ;;  %v1053_v53 = vrot.slane %v1051_v37, 5  ;;  %v9396_v3 = vld [vmem:[#allocation4 + $0xc4] ss:$8 sps:$4 sm:$0xff]  }
  0x67   :  { %v1048_v52 = vor.u32 %v1047_v43, %v1044_v42  ;;  %v919_v54 = vld [vmem:[#allocation2 + $0x58] sm:$0xf]  ;;  %v10153_v22 = vrot.slane %v210_v35, 7  ;;  %v218_v61 = vshrl.u32 %v10147_v45, 16  ;;  %v1040_v62 = vsel %vm10053_vm8, %v1035_v36, %v1039_v41  ;;  %v9398_v7 = vld [vmem:[#allocation4 + $0xc0] ss:$8 sps:$4 sm:$0xff]   ;;  %1584 = vmatprep.subr.bf16.mxu0 %v9396_v3 }
  0x68   :  { %v10151_v4 = vld [vmem:[#allocation2 + $0x5c] sm:$0x1]  ;;  %v1056_v55 = vshrl.u32 %v919_v54, 16  ;;  %v1059_v58 = vshll.u32 %v919_v54, 16  ;;  %v347_v0 = vsel %vm9963_vm4, %v207_v47, %v346_v1  ;;  %v350_v2 = vsel %vm9975_vm5, %v208_v48, %v349_v49  ;;  %v352_v24 = vld [vmem:[#allocation2 + $0x78] sm:$0xf]  ;;  %1585 = vmatpush1.bf16.msra.mxu0 %v9398_v7 }
  0x69   :  { %v1065_v59 = vshll.u32 %v10151_v4, 16  ;;  %v1049_v63 = vrot.slane %v1048_v52, 4  ;;  %348 = vst [vmem:[#allocation2 + $0x70] sm:$0xf] %v347_v0  ;;  %351 = vst [vmem:[#allocation2 + $0x74] sm:$0x1] %v350_v2  ;;  %v215_v23 = vor.u32 %v213_v51, %v10153_v22 }
  0x6a   :  { %v920_v8 = vld [vmem:[#allocation2 + $0x60] sm:$0xf]  ;;  %v1058_v10 = vrot.slane %v1056_v55, 4  ;;  %v1061_v11 = vrot.slane %v1059_v58, 5  ;;  %v9399_v29 = vld [vmem:[#allocation4 + $0xd4] ss:$8 sps:$4 sm:$0xff]  }
  0x6b   :  { %v10163_v9 = vld [vmem:[#allocation2 + $0x64] sm:$0x1]  ;;  %v1054_v17 = vsel %vm10053_vm8, %v1049_v63, %v1053_v53  ;;  %v1070_v20 = vshrl.u32 %v920_v8, 16  ;;  %v1073_v21 = vshll.u32 %v920_v8, 16  ;;  %v1067_v35 = vrot.slane %v1065_v59, 5  ;;  %1586 = vmatprep.subr.bf16.mxu0 %v9399_v29 }
  0x6c   :  { %v8624_v32 = vcombine.low %v1040_v62, %v1054_v17  ;;  %v1062_v33 = vor.u32 %v1061_v11, %v1058_v10  ;;  %v1079_v36 = vshll.u32 %v10163_v9, 16  ;;  %v921_v37 = vld [vmem:[#allocation2 + $0x68] sm:$0xf]  ;;  %v355_v39 = vld [vmem:[#allocation2 + $0x7c] sm:$0x1]  ;;  %v221_v51 = vshll.u32 %v10147_v45, 16 }
  0x6d   :  { %v9401_v40 = vld [vmem:[#allocation4 + $0xd0] ss:$8 sps:$4 sm:$0xff]   ;;  %v1072_v1 = vrot.slane %v1070_v20, 4  ;;  %v1075_v41 = vrot.slane %v1073_v21, 5  ;;  %v10173_v42 = vld [vmem:[#allocation2 + $0x6c] sm:$0x1]  ;;  %v353_v0 = vsel %vm9963_vm4, %v215_v23, %v352_v24 }
  0x6e   :  { %v1084_v43 = vshrl.u32 %v921_v37, 16  ;;  %v1087_v44 = vshll.u32 %v921_v37, 16  ;;  %1349 = vrot.lane.b32.xlu1 %v8624_v32, %s9849_s20  ;;  %v1063_v47 = vrot.slane %v1062_v33, 4  ;;  %v1081_v48 = vrot.slane %v1079_v36, 5  ;;  %v10181_v52 = vld [vmem:[%s14004_s0 + $0x38] sm:$0xf]  ;;  %1587 = vmatpush1.bf16.msra.mxu0 %v9401_v40 }
  0x6f   :  { %v1093_v49 = vshll.u32 %v10173_v42, 16  ;;  %v1076_v53 = vor.u32 %v1075_v41, %v1072_v1  ;;  %v216_v58 = vrot.slane %v10153_v22, 4  ;;  %v220_v63 = vrot.slane %v218_v61, 7  ;;  %v358_v45 = vld [vmem:[#allocation2 + $0x80] sm:$0xf] }
  0x70   :  { %v1086_v54 = vrot.slane %v1084_v43, 4  ;;  %v1089_v55 = vrot.slane %v1087_v44, 5  ;;  %v1068_v62 = vsel %vm10053_vm8, %v1063_v47, %v1067_v35  ;;  %v361_v2 = vld [vmem:[#allocation2 + $0x84] sm:$0x1]  ;;  %v922_v7 = vld [vmem:[#allocation2 + $0x70] sm:$0xf] }
  0x71   :  { %v1077_v3 = vrot.slane %v1076_v53, 4  ;;  %v10189_v8 = vld [vmem:[#allocation2 + $0x74] sm:$0x1]  ;;  %354 = vst [vmem:[#allocation2 + $0x78] sm:$0xf] %v353_v0  ;;  %v356_v22 = vsel %vm9975_vm5, %v216_v58, %v355_v39  ;;  %v226_v61 = vshrl.u32 %v10181_v52, 16  ;;  %v223_v35 = vor.u32 %v221_v51, %v220_v63 }
  0x72   :  { %v1090_v10 = vor.u32 %v1089_v55, %v1086_v54  ;;  %v112_v11 = vld [vmem:[%s14004_s0 + $0x3c] sm:$0xf]  ;;  %v1095_v17 = vrot.slane %v1093_v49, 5  ;;  %v1098_v20 = vshrl.u32 %v922_v7, 16  ;;  %v1101_v21 = vshll.u32 %v922_v7, 16 }
  0x73   :  { %v1107_v23 = vshll.u32 %v10189_v8, 16  ;;  %357 = vst [vmem:[#allocation2 + $0x7c] sm:$0x1] %v356_v22  ;;  %v10198_v24 = vld [vmem:[#allocation2] sm:$0xf]  ;;  %v1082_v32 = vsel %vm10053_vm8, %v1077_v3, %v1081_v48  ;;  %v224_v36 = vrot.slane %v220_v63, 4  ;;  %v359_v53 = vsel %vm9963_vm4, %v223_v35, %v358_v45 }
  0x74   :  { %v9402_v29 = vld [vmem:[#allocation4 + $0xe4] ss:$8 sps:$4 sm:$0xff]   ;;  %v1091_v33 = vrot.slane %v1090_v10, 4  ;;  %v9404_v37 = vld [vmem:[#allocation4 + $0xe0] ss:$8 sps:$4 sm:$0xff]   ;;  %v8625_v1 = vcombine.low %v1068_v62, %v1082_v32  ;;  %v1100_v41 = vrot.slane %v1098_v20, 4 }
  0x75   :  { %v9405_v39 = vld [vmem:[#allocation4 + $0xf4] ss:$8 sps:$4 sm:$0xff]   ;;  %v1103_v43 = vrot.slane %v1101_v21, 5  ;;  %v367_v44 = vld [vmem:[#allocation2 + $0x8c] sm:$0x1]  ;;  %1588 = vmatprep.subr.bf16.mxu0 %v9402_v29  ;;  %v1109_v49 = vrot.slane %v1107_v23, 5  ;;  %v362_v48 = vsel %vm9975_vm5, %v224_v36, %v361_v2 }
  0x76   :  { %v10203_v47 = vld [vmem:[#allocation2 + $0x4] sm:$0x1]  ;;  %v228_v51 = vrot.slane %v226_v61, 7  ;;  %1589 = vmatpush1.bf16.msra.mxu0 %v9404_v37  ;;  %v9407_v54 = vld [vmem:[#allocation4 + $0xf0] ss:$8 sps:$4 sm:$0xff]   ;;  %1351 = vrot.lane.b32.xlu0 %v8625_v1, %s9849_s20  ;;  %v229_v58 = vshll.u32 %v10181_v52, 16  ;;  %v1096_v45 = vsel %vm10053_vm8, %v1091_v33, %v1095_v17 }
  0x77   :  { %v1104_v55 = vor.u32 %v1103_v43, %v1100_v41  ;;  %360 = vst [vmem:[#allocation2 + $0x80] sm:$0xf] %v359_v53  ;;  %363 = vst [vmem:[#allocation2 + $0x84] sm:$0x1] %v362_v48  ;;  %v234_v62 = vshrl.u32 %v112_v11, 16  ;;  %v237_v63 = vshll.u32 %v112_v11, 16  ;;  %1590 = vmatprep.subr.bf16.mxu0 %v9405_v39 }
  0x78   :  { %v10211_v0 = vld [vmem:[#allocation2 + $0x8] sm:$0xf]  ;;  %v232_v3 = vrot.slane %v228_v51, 4  ;;  %v370_v7 = vld [vmem:[#allocation2 + $0x90] sm:$0xf]  ;;  %v412_v10 = vshrl.u32 %v10198_v24, 16  ;;  %v231_v21 = vor.u32 %v229_v58, %v228_v51 }
  0x79   :  { %v364_v2 = vld [vmem:[#allocation2 + $0x88] sm:$0xf]  ;;  %v415_v22 = vshll.u32 %v10198_v24, 16  ;;  %v1105_v61 = vrot.slane %v1104_v55, 4  ;;  %v923_v20 = vld [vmem:[#allocation2 + $0x78] sm:$0xf] }
  0x7a   :  { %v236_v23 = vrot.slane %v234_v62, 7  ;;  %v373_v52 = vld [vmem:[#allocation2 + $0x94] sm:$0x1]  ;;  %v421_v11 = vshll.u32 %v10203_v47, 16  ;;  %v10218_v29 = vld [vmem:[#allocation2 + $0x7c] sm:$0x1]  ;;  %v368_v17 = vsel %vm9975_vm5, %v232_v3, %v367_v44  ;;  %1591 = vmatpush1.bf16.msra.mxu0 %v9407_v54  ;;  %v365_v54 = vsel %vm9963_vm4, %v231_v21, %v364_v2 }
  0x7b   :  { %v1112_v32 = vshrl.u32 %v923_v20, 16  ;;  %v1115_v35 = vshll.u32 %v923_v20, 16  ;;  %v426_v33 = vshrl.u32 %v10211_v0, 16  ;;  %v1110_v24 = vsel %vm10053_vm8, %v1105_v61, %v1109_v49  ;;  %369 = vst [vmem:[#allocation2 + $0x8c] sm:$0x1] %v368_v17 }
  0x7c   :  { %v1121_v36 = vshll.u32 %v10218_v29, 16  ;;  %v239_v37 = vor.u32 %v237_v63, %v236_v23  ;;  %v414_v39 = vrot.slane %v412_v10, 4  ;;  %v9408_v1 = vld [vmem:[#allocation4 + $0x104] ss:$8 sps:$4 sm:$0xff]   ;;  %v9410_v41 = vld [vmem:[#allocation4 + $0x100] ss:$8 sps:$4 sm:$0xff]   ;;  %v8626_v43 = vcombine.low %v1096_v45, %v1110_v24 }
  0x7d   :  { %v1114_v53 = vrot.slane %v1112_v32, 4  ;;  %v1117_v48 = vrot.slane %v1115_v35, 5  ;;  %v240_v51 = vrot.slane %v236_v23, 4  ;;  %v9411_v55 = vld [vmem:[#allocation4 + $0x114] ss:$8 sps:$4 sm:$0xff]   ;;  %v417_v62 = vrot.slane %v415_v22, 5  ;;  %1592 = vmatprep.subr.bf16.mxu0 %v9408_v1 }
  0x7e   :  { %v371_v49 = vsel %vm9963_vm4, %v239_v37, %v370_v7  ;;  %v10231_v58 = vld [vmem:[#allocation2 + $0xc] sm:$0x1]  ;;  %v9413_v63 = vld [vmem:[#allocation4 + $0x110] ss:$8 sps:$4 sm:$0xff]   ;;  %1353 = vrot.lane.b32.xlu1 %v8626_v43, %s9849_s20  ;;  %v924_v45 = vld [vmem:[#allocation2 + $0x80] sm:$0xf]  ;;  %1593 = vmatpush1.bf16.msra.mxu0 %v9410_v41 }
  0x7f   :  { %v10234_v3 = vld [vmem:[#allocation2 + $0x84] sm:$0x1]  ;;  %v1118_v10 = vor.u32 %v1117_v48, %v1114_v53  ;;  %v1123_v61 = vrot.slane %v1121_v36, 5  ;;  %366 = vst [vmem:[#allocation2 + $0x88] sm:$0xf] %v365_v54  ;;  %v374_v2 = vsel %vm9975_vm5, %v240_v51, %v373_v52  ;;  %v10238_v20 = vrot.slane %v421_v11, 5  ;;  %1594 = vmatprep.subr.bf16.mxu0 %v9411_v55 }
  0x80   :  { %372 = vst [vmem:[#allocation2 + $0x90] sm:$0xf] %v371_v49  ;;  %v1126_v12 = vshrl.u32 %v924_v45, 16  ;;  %v1129_v7 = vshll.u32 %v924_v45, 16  ;;  %v1135_v22 = vshll.u32 %v10234_v3, 16  ;;  %v428_v21 = vrot.slane %v426_v33, 4 }
  0x81   :  { %375 = vst [vmem:[#allocation2 + $0x94] sm:$0x1] %v374_v2  ;;  %v1119_v23 = vrot.slane %v1118_v10, 4  ;;  %v418_v32 = vor.u32 %v417_v62, %v414_v39  ;;  %v429_v35 = vshll.u32 %v10211_v0, 16  ;;  %v435_v17 = vshll.u32 %v10231_v58, 16 }
  0x82   :  { %v1128_v52 = vrot.slane %v1126_v12, 4  ;;  %v1131_v11 = vrot.slane %v1129_v7, 5  ;;  %v378_v36 = vld [vmem:[#allocation2 + $0x10] sm:$0xf]  ;;  %v10246_v1 = vld [vmem:[#allocation2 + $0x8c] sm:$0x1]  ;;  %1595 = vmatpush1.bf16.msra.mxu0 %v9413_v63 }
  0x83   :  { %v419_v41 = vrot.slane %v418_v32, 4  ;;  %v431_v33 = vrot.slane %v429_v35, 5  ;;  %v1124_v39 = vsel %vm10053_vm8, %v1119_v23, %v1123_v61  ;;  %v1137_v43 = vrot.slane %v1135_v22, 5  ;;  %v9414_v48 = vld [vmem:[#allocation4 + $0x124] ss:$8 sps:$4 sm:$0xff]  }
  0x84   :  { %v1132_v0 = vor.u32 %v1131_v11, %v1128_v52  ;;  %v1149_v53 = vshll.u32 %v10246_v1, 16  ;;  %v437_v54 = vrot.slane %v435_v17, 5  ;;  %v440_v49 = vshrl.u32 %v378_v36, 16  ;;  %v9416_v62 = vld [vmem:[#allocation4 + $0x120] ss:$8 sps:$4 sm:$0xff]   ;;  %1596 = vmatprep.subr.bf16.mxu0 %v9414_v48 }
  0x85   :  { %v424_v51 = vsel %vm10053_vm8, %v419_v41, %v10238_v20  ;;  %v432_v55 = vor.u32 %v431_v33, %v428_v21  ;;  %v9417_v45 = vld [vmem:[#allocation4 + $0x134] ss:$8 sps:$4 sm:$0xff]   ;;  %v443_v61 = vshll.u32 %v378_v36, 16  ;;  %v379_v17 = vld [vmem:[#allocation2 + $0x18] sm:$0xf]  ;;  %vm3439_vm4 = vcmask 1043456  }
  0x86   :  { %v1133_v10 = vrot.slane %v1132_v0, 4  ;;  %v925_v2 = vld [vmem:[#allocation2 + $0x88] sm:$0xf]  ;;  %v10254_v12 = vld [vmem:[#allocation2 + $0x14] sm:$0x1]  ;;  %1597 = vmatpush1.bf16.msra.mxu0 %v9416_v62  ;;  %v1151_v11 = vrot.slane %v1149_v53, 5  ;;  %vm11711_vm7 = vmand %vm3439_vm4, %vm275_vm2 }
  0x87   :  { %v926_v63 = vld [vmem:[#allocation2 + $0x90] sm:$0xf]  ;;  %14126 = vst [vmem:[#allocation11_spill] sm:$0xff] %v10254_v12  ;;  %v1140_v20 = vshrl.u32 %v925_v2, 16  ;;  %v1143_v21 = vshll.u32 %v925_v2, 16  ;;  %v433_v41 = vrot.slane %v432_v55, 4  ;;  %1598 = vmatprep.subr.bf16.mxu0 %v9417_v45 }
  0x88   :  { %v10260_v23 = vld [vmem:[#allocation2 + $0x94] sm:$0x1]  ;;  %v1154_v32 = vshrl.u32 %v926_v63, 16  ;;  %v1157_v35 = vshll.u32 %v926_v63, 16  ;;  %v1138_v52 = vsel %vm10053_vm8, %v1133_v10, %v1137_v43  ;;  %v9419_v33 = vld [vmem:[#allocation4 + $0x130] ss:$8 sps:$4 sm:$0xff]  }
  0x89   :  { %v1163_v36 = vshll.u32 %v10260_v23, 16  ;;  %v8627_v0 = vcombine.low %v1124_v39, %v1138_v52  ;;  %v1142_v48 = vrot.slane %v1140_v20, 4  ;;  %v1145_v22 = vrot.slane %v1143_v21, 5  ;;  %v10265_v16 = vld [vmem:[#allocation2 + $0x1c] sm:$0x1] }
  0x8a   :  { %v1156_v7 = vrot.slane %v1154_v32, 4  ;;  %14127 = vst [vmem:[#allocation12_spill] sm:$0xff] %v10265_v16  ;;  %v1159_v2 = vrot.slane %v1157_v35, 5  ;;  %v438_v62 = vsel %vm10053_vm8, %v433_v41, %v437_v54  ;;  %v442_v63 = vrot.slane %v440_v49, 4  ;;  %v380_v45 = vld [vmem:[#allocation2 + $0x20] sm:$0xf]  ;;  %1599 = vmatpush1.bf16.msra.mxu0 %v9419_v33 }
  0x8b   :  { %v1165_v37 = vrot.slane %v1163_v36, 5  ;;  %1355 = vrot.lane.b32.xlu0 %v8627_v0, %s9849_s20  ;;  %v1146_v43 = vor.u32 %v1145_v22, %v1142_v48  ;;  %v8581_v53 = vcombine.low %v424_v51, %v438_v62  ;;  %v445_v10 = vrot.slane %v443_v61, 5  ;;  %v381_v35 = vld [vmem:[#allocation2 + $0x28] sm:$0xf]  ;;  %v9420_v52 = vld [vmem:[#allocation4 + $0x144] ss:$8 sps:$4 sm:$0xff]  }
  0x8c   :  { %v449_v55 = vshll.u32 %v10254_v12, 16  ;;  %v1160_v39 = vor.u32 %v1159_v2, %v1156_v7  ;;  %v454_v20 = vshrl.u32 %v379_v17, 16  ;;  %v457_v21 = vshll.u32 %v379_v17, 16  ;;  %v10272_v54 = vld [vmem:[#allocation2 + $0x24] sm:$0x1]  ;;  %1600 = vmatprep.subr.bf16.mxu0 %v9420_v52 }
  0x8d   :  { %v463_v32 = vshll.u32 %v10265_v16, 16  ;;  %v1147_v36 = vrot.slane %v1146_v43, 4  ;;  %v446_v14 = vor.u32 %v445_v10, %v442_v63  ;;  %14128 = vst [vmem:[#allocation13_spill] sm:$0xff] %v10272_v54  ;;  %v9422_v49 = vld [vmem:[#allocation4 + $0x140] ss:$8 sps:$4 sm:$0xff]   ;;  %v468_v48 = vshrl.u32 %v380_v45, 16 }
  0x8e   :  { %v1161_v41 = vrot.slane %v1160_v39, 4  ;;  %v451_v22 = vrot.slane %v449_v55, 5  ;;  %v456_v51 = vrot.slane %v454_v20, 4  ;;  %v459_v61 = vrot.slane %v457_v21, 5  ;;  %v9423_v0 = vld [vmem:[#allocation4 + $0x154] ss:$8 sps:$4 sm:$0xff]   ;;  %1601 = vmatpush1.bf16.msra.mxu0 %v9422_v49 }
  0x8f   :  { %v1152_v7 = vsel %vm10053_vm8, %v1147_v36, %v1151_v11  ;;  %814 = vrot.lane.b32.xlu0 %v8581_v53, %s9849_s20  ;;  %v447_v17 = vrot.slane %v446_v14, 4  ;;  %v465_v33 = vrot.slane %v463_v32, 5  ;;  %v9425_v2 = vld [vmem:[#allocation4 + $0x150] ss:$8 sps:$4 sm:$0xff]   ;;  %v10279_v43 = vld [vmem:[#allocation2 + $0x2c] sm:$0x1]  ;;  %1602 = vmatprep.subr.bf16.mxu0 %v9423_v0 }
  0x90   :  { %v1166_v62 = vsel %vm10053_vm8, %v1161_v41, %v1165_v37  ;;  %v460_v63 = vor.u32 %v459_v61, %v456_v51  ;;  %14129 = vst [vmem:[#allocation14_spill] sm:$0xff] %v10279_v43  ;;  %v471_v10 = vshll.u32 %v380_v45, 16  ;;  %v477_v55 = vshll.u32 %v10272_v54, 16  ;;  %v382_v39 = vld [vmem:[#allocation2 + $0x30] sm:$0xf] }
  0x91   :  { %v8628_v20 = vcombine.low %v1152_v7, %v1166_v62  ;;  %v470_v11 = vrot.slane %v468_v48, 4  ;;  %v482_v21 = vshrl.u32 %v381_v35, 16  ;;  %v383_v53 = vld [vmem:[#allocation2 + $0x38] sm:$0xf]  ;;  %v10282_v14 = vld [vmem:[#allocation2 + $0x34] sm:$0x1]  ;;  %v452_v32 = vsel %vm10053_vm8, %v447_v17, %v451_v22 }
  0x92   :  { %14130 = vst [vmem:[#allocation15_spill] sm:$0xff] %v10282_v14  ;;  %v461_v52 = vrot.slane %v460_v63, 4  ;;  %v473_v36 = vrot.slane %v471_v10, 5  ;;  %v485_v37 = vshll.u32 %v381_v35, 16  ;;  %v9426_v49 = vld [vmem:[#allocation4 + $0x164] ss:$8 sps:$4 sm:$0xff]   ;;  %1603 = vmatpush1.bf16.msra.mxu0 %v9425_v2 }
  0x93   :  { %1357 = vrot.lane.b32.xlu1 %v8628_v20, %s9849_s20  ;;  %v479_v45 = vrot.slane %v477_v55, 5  ;;  %v484_v51 = vrot.slane %v482_v21, 4  ;;  %v491_v61 = vshll.u32 %v10279_v43, 16  ;;  %v9428_v0 = vld [vmem:[#allocation4 + $0x160] ss:$8 sps:$4 sm:$0xff]   ;;  %v496_v17 = vshrl.u32 %v382_v39, 16  ;;  %1604 = vmatprep.subr.bf16.mxu0 %v9426_v49 }
  0x94   :  { %v466_v7 = vsel %vm10053_vm8, %v461_v52, %v465_v33  ;;  %v474_v48 = vor.u32 %v473_v36, %v470_v11  ;;  %v487_v62 = vrot.slane %v485_v37, 5  ;;  %v10291_v22 = vld [vmem:[#allocation2 + $0x3c] sm:$0x1]  ;;  %v499_v41 = vshll.u32 %v382_v39, 16  ;;  %v384_v20 = vld [vmem:[#allocation2 + $0x50] sm:$0xf] }
  0x95   :  { %14131 = vst [vmem:[#allocation16_spill] sm:$0xff] %v10291_v22  ;;  %v9429_v35 = vld [vmem:[#allocation4 + $0x174] ss:$8 sps:$4 sm:$0xff]   ;;  %v8582_v63 = vcombine.low %v452_v32, %v466_v7  ;;  %v493_v10 = vrot.slane %v491_v61, 5  ;;  %v505_v55 = vshll.u32 %v10282_v14, 16  ;;  %v498_v2 = vrot.slane %v496_v17, 4 }
  0x96   :  { %v475_v21 = vrot.slane %v474_v48, 4  ;;  %v488_v15 = vor.u32 %v487_v62, %v484_v51  ;;  %v510_v24 = vshrl.u32 %v383_v53, 16  ;;  %v10294_v44 = vld [vmem:[#allocation2 + $0x54] sm:$0x1]  ;;  %v501_v11 = vrot.slane %v499_v41, 5  ;;  %1605 = vmatpush1.bf16.msra.mxu0 %v9428_v0 }
  0x97   :  { %14132 = vst [vmem:[#allocation17_spill] sm:$0xff] %v10294_v44  ;;  %816 = vrot.lane.b32.xlu1 %v8582_v63, %s9849_s20  ;;  %v513_v52 = vshll.u32 %v383_v53, 16  ;;  %v519_v36 = vshll.u32 %v10291_v22, 16  ;;  %v9431_v32 = vld [vmem:[#allocation4 + $0x170] ss:$8 sps:$4 sm:$0xff]   ;;  %1606 = vmatprep.subr.bf16.mxu0 %v9429_v35  ;;  %v507_v48 = vrot.slane %v505_v55, 5 }
  0x98   :  { %v480_v37 = vsel %vm10053_vm8, %v475_v21, %v479_v45  ;;  %v489_v49 = vrot.slane %v488_v15, 4  ;;  %v512_v51 = vrot.slane %v510_v24, 4  ;;  %v385_v61 = vld [vmem:[#allocation2 + $0x58] sm:$0xf]  ;;  %v502_v7 = vor.u32 %v501_v11, %v498_v2  ;;  %v10304_v41 = vld [vmem:[#allocation2 + $0x5c] sm:$0x1] }
  0x99   :  { %v515_v62 = vrot.slane %v513_v52, 5  ;;  %v521_v17 = vrot.slane %v519_v36, 5  ;;  %14133 = vst [vmem:[#allocation18_spill] sm:$0xff] %v10304_v41  ;;  %v524_v0 = vshrl.u32 %v384_v20, 16  ;;  %v527_v63 = vshll.u32 %v384_v20, 16 }
  0x9a   :  { %v494_v53 = vsel %vm10053_vm8, %v489_v49, %v493_v10  ;;  %v533_v39 = vshll.u32 %v10294_v44, 16  ;;  %v503_v40 = vrot.slane %v502_v7, 4  ;;  %v538_v15 = vshrl.u32 %v385_v61, 16  ;;  %1607 = vmatpush1.bf16.msra.mxu0 %v9431_v32  ;;  %v9434_v24 = vld [vmem:[#allocation4 + $0x4] ss:$8 sps:$4 sm:$0xff]  }
  0x9b   :  { %v8583_v33 = vcombine.low %v480_v37, %v494_v53  ;;  %v516_v45 = vor.u32 %v515_v62, %v512_v51  ;;  %v526_v55 = vrot.slane %v524_v0, 4  ;;  %v529_v21 = vrot.slane %v527_v63, 5  ;;  %v386_v11 = vld [vmem:[#allocation2 + $0x60] sm:$0xf]  ;;  %v10312_v37 = vld [vmem:[#allocation2 + $0x64] sm:$0x1]  ;;  %1841 = vmatprep.subr.bf16.mxu0 %v9434_v24 }
  0x9c   :  { %v541_v2 = vshll.u32 %v385_v61, 16  ;;  %v508_v10 = vsel %vm10053_vm8, %v503_v40, %v507_v48  ;;  %v540_v52 = vrot.slane %v538_v15, 4  ;;  %v547_v36 = vshll.u32 %v10304_v41, 16  ;;  %v387_v62 = vld [vmem:[#allocation2 + $0x68] sm:$0xf] }
  0x9d   :  { %818 = vrot.lane.b32.xlu0 %v8583_v33, %s9849_s20  ;;  %v517_v20 = vrot.slane %v516_v45, 4  ;;  %v530_v49 = vor.u32 %v529_v21, %v526_v55  ;;  %v535_v51 = vrot.slane %v533_v39, 5  ;;  %v10317_v53 = vld [vmem:[#allocation2 + $0x6c] sm:$0x1]  ;;  %v552_v40 = vshrl.u32 %v386_v11, 16 }
  0x9e   :  { %v543_v7 = vrot.slane %v541_v2, 5  ;;  %v549_v33 = vrot.slane %v547_v36, 5  ;;  %v555_v48 = vshll.u32 %v386_v11, 16  ;;  %v561_v15 = vshll.u32 %v10312_v37, 16  ;;  %v388_v39 = vld [vmem:[#allocation2 + $0x70] sm:$0xf] }
  0x9f   :  { %v522_v61 = vsel %vm10053_vm8, %v517_v20, %v521_v17  ;;  %v531_v63 = vrot.slane %v530_v49, 4  ;;  %v554_v24 = vrot.slane %v552_v40, 4  ;;  %v566_v32 = vshrl.u32 %v387_v62, 16  ;;  %v10390_v43 = vld [vmem:[#allocation2 + $0x24] sm:$0x1] }
  0xa0   :  { %v8584_v0 = vcombine.low %v508_v10, %v522_v61  ;;  %v544_v45 = vor.u32 %v543_v7, %v540_v52  ;;  %v557_v35 = vrot.slane %v555_v48, 5  ;;  %v569_v55 = vshll.u32 %v387_v62, 16  ;;  %v389_v10 = vld [vmem:[#allocation2 + $0x78] sm:$0xf]  ;;  %v10325_v7 = vld [vmem:[#allocation2 + $0x74] sm:$0x1] }
  0xa1   :  { %v536_v17 = vsel %vm10053_vm8, %v531_v63, %v535_v51  ;;  %v575_v11 = vshll.u32 %v10317_v53, 16  ;;  %v563_v52 = vrot.slane %v561_v15, 5  ;;  %v568_v36 = vrot.slane %v566_v32, 4  ;;  %14134 = vst [vmem:[#allocation19_spill] sm:$0xff] %v10325_v7  ;;  %v10330_v48 = vld [vmem:[#allocation2 + $0x7c] sm:$0x1] }
  0xa2   :  { %820 = vrot.lane.b32.xlu1 %v8584_v0, %s9849_s20  ;;  %v545_v2 = vrot.slane %v544_v45, 4  ;;  %v558_v20 = vor.u32 %v557_v35, %v554_v24  ;;  %v571_v49 = vrot.slane %v569_v55, 5  ;;  %14135 = vst [vmem:[#allocation20_spill] sm:$0xff] %v10330_v48  ;;  %v580_v0 = vshrl.u32 %v388_v39, 16  ;;  %v390_v62 = vld [vmem:[#allocation2 + $0x80] sm:$0xf] }
  0xa3   :  { %v577_v40 = vrot.slane %v575_v11, 5  ;;  %v583_v21 = vshll.u32 %v388_v39, 16  ;;  %v589_v35 = vshll.u32 %v10325_v7, 16  ;;  %v594_v32 = vshrl.u32 %v389_v10, 16  ;;  %v1170_v11 = vld [vmem:[#allocation2 + $0x20] sm:$0xe] }
  0xa4   :  { %v550_v61 = vsel %vm10053_vm8, %v545_v2, %v549_v33  ;;  %v559_v63 = vrot.slane %v558_v20, 4  ;;  %v572_v45 = vor.u32 %v571_v49, %v568_v36  ;;  %v582_v59 = vrot.slane %v580_v0, 4  ;;  %v1167_v36 = vld [vmem:[#allocation2 + $0x8] sm:$0xe]  ;;  %v10434_v12 = vld [vmem:[#allocation2 + $0x3c] sm:$0x1] }
  0xa5   :  { %v8585_v51 = vcombine.low %v536_v17, %v550_v61  ;;  %v597_v15 = vshll.u32 %v389_v10, 16  ;;  %v585_v33 = vrot.slane %v583_v21, 5  ;;  %v603_v2 = vshll.u32 %v10330_v48, 16  ;;  %v10341_v21 = vld [vmem:[#allocation2 + $0x84] sm:$0x1] }
  0xa6   :  { %v564_v24 = vsel %vm10053_vm8, %v559_v63, %v563_v52  ;;  %v573_v55 = vrot.slane %v572_v45, 4  ;;  %v596_v20 = vrot.slane %v594_v32, 4  ;;  %v591_v61 = vrot.slane %v589_v35, 5  ;;  %v9481_v17 = vld [vmem:[#allocation4 + $0x194] ss:$8 sps:$4 sm:$0xff]  }
  0xa7   :  { %822 = vrot.lane.b32.xlu0 %v8585_v51, %s9849_s20  ;;  %v599_v39 = vrot.slane %v597_v15, 5  ;;  %v586_v10 = vor.u32 %v585_v33, %v582_v59  ;;  %v605_v0 = vrot.slane %v603_v2, 5  ;;  %v1168_v51 = vld [vmem:[#allocation2 + $0x10] sm:$0xe]  ;;  %v8597_v32 = vrot.slane %v1167_v36, 9 }
  0xa8   :  { %v578_v49 = vsel %vm10053_vm8, %v573_v55, %v577_v40  ;;  %v9757_v15 = vld [vmem:[#allocation2 + $0xc] sm:$0x1]  ;;  %v391_v59 = vld [vmem:[#allocation2 + $0x88] sm:$0xf]  ;;  %v8598_v55 = vrot.slane %v1168_v51, 9  ;;  %v608_v2 = vshrl.u32 %v390_v62, 16 }
  0xa9   :  { %v8586_v52 = vcombine.low %v564_v24, %v578_v49  ;;  %v600_v63 = vor.u32 %v599_v39, %v596_v20  ;;  %v587_v45 = vrot.slane %v586_v10, 4  ;;  %v1217_v40 = vrot.slane %v9757_v15, 5  ;;  %v9758_v24 = vld [vmem:[#allocation2 + $0x14] sm:$0x1]  ;;  %v10352_v49 = vld [vmem:[#allocation2 + $0x8c] sm:$0x1] }
  0xaa   :  { %v1221_v33 = vrot.slane %v9758_v24, 5  ;;  %v611_v10 = vshll.u32 %v390_v62, 16  ;;  %v617_v36 = vshll.u32 %v10341_v21, 16  ;;  %v1169_v24 = vld [vmem:[#allocation2 + $0x18] sm:$0xe]  ;;  %v625_v26 = vshll.u32 %v391_v59, 16 }
  0xab   :  { %824 = vrot.lane.b32.xlu1 %v8586_v52, %s9849_s20  ;;  %v601_v35 = vrot.slane %v600_v63, 4  ;;  %v592_v20 = vsel %vm10053_vm8, %v587_v45, %v591_v61  ;;  %v1218_v39 = vsel %vm10343_vm11, %v8597_v32, %v1217_v40  ;;  %v610_v52 = vrot.slane %v608_v2, 4  ;;  %v1955_v40 = vld [vmem:[#allocation2 + $0x10] sm:$0xf] }
  0xac   :  { %v1222_v51 = vsel %vm10343_vm11, %v8598_v55, %v1221_v33  ;;  %v622_v63 = vshrl.u32 %v391_v59, 16  ;;  %v613_v32 = vrot.slane %v611_v10, 5  ;;  %v631_v16 = vshll.u32 %v10352_v49, 16  ;;  %v1956_v10 = vld [vmem:[#allocation2 + $0x18] sm:$0xf] }
  0xad   :  { %v606_v15 = vsel %vm10053_vm8, %v601_v35, %v605_v0  ;;  %v8629_v46 = vcombine.low %v1218_v39, %v1222_v51  ;;  %v10362_v0 = vld [vmem:[#allocation2 + $0x14] sm:$0x1]  ;;  %v619_v55 = vrot.slane %v617_v36, 5  ;;  %v8599_v33 = vrot.slane %v1169_v24, 9  ;;  %v10378_v36 = vld [vmem:[#allocation2 + $0x1c] sm:$0x1] }
  0xae   :  { %v8587_v45 = vcombine.low %v592_v20, %v606_v15  ;;  %v624_v13 = vrot.slane %v622_v63, 4  ;;  %v614_v35 = vor.u32 %v613_v32, %v610_v52  ;;  %v8600_v2 = vrot.slane %v1170_v11, 9  ;;  %v1171_v24 = vld [vmem:[#allocation2 + $0x28] sm:$0xe] }
  0xaf   :  { %8661 = vmatprep.mubr.msk.bf16.mxu0 %vm854_vm12, %v8629_v46  ;;  %v627_v20 = vrot.slane %v625_v26, 5  ;;  %v633_v39 = vrot.slane %v631_v16, 5  ;;  %v1988_v15 = vshrl.u32 %v1955_v40, 16  ;;  %v1991_v51 = vshll.u32 %v1955_v40, 16 }
  0xb0   :  { %826 = vrot.lane.b32.xlu0 %v8587_v45, %s9849_s20  ;;  %v615_v62 = vrot.slane %v614_v35, 4  ;;  %v14138_v59 = vrot.slane %v10042_v31, 5  ;;  %v14139_v45 = vrot.slane %v10046_v34, 5  ;;  %v1997_v26 = vshll.u32 %v10362_v0, 16 }
  0xb1   :  { %v628_v16 = vor.u32 %v627_v20, %v624_v13  ;;  %v1990_v52 = vrot.slane %v1988_v15, 4  ;;  %v1993_v31 = vrot.slane %v1991_v51, 5  ;;  %v2002_v40 = vshrl.u32 %v1956_v10, 16  ;;  %v10387_v13 = vld [vmem:[#allocation2 + $0x20] sm:$0xf] }
  0xb2   :  { %v10370_v63 = vsel %vm10343_vm11, %v8599_v33, %v14138_v59  ;;  %v10376_v46 = vsel %vm10343_vm11, %v8600_v2, %v14139_v45  ;;  %v620_v34 = vsel %vm10053_vm8, %v615_v62, %v619_v55  ;;  %v2005_v35 = vshll.u32 %v1956_v10, 16  ;;  %v1172_v33 = vld [vmem:[#allocation2 + $0x30] sm:$0xe]  ;;  %14140 = vst [vmem:[#allocation21_spill] sm:$0xff] %v10387_v13 }
  0xb3   :  { %v629_v2 = vrot.slane %v628_v16, 4  ;;  %v1994_v59 = vor.u32 %v1993_v31, %v1990_v52  ;;  %v1999_v45 = vrot.slane %v1997_v26, 5  ;;  %v2011_v61 = vshll.u32 %v10378_v36, 16  ;;  %v10394_v16 = vld [vmem:[#allocation2 + $0x28] sm:$0xf] }
  0xb4   :  { %v2004_v15 = vrot.slane %v2002_v40, 4  ;;  %v2007_v51 = vrot.slane %v2005_v35, 5  ;;  %v8601_v11 = vrot.slane %v1171_v24, 9  ;;  %v8602_v32 = vrot.slane %v1172_v33, 9  ;;  %14141 = vst [vmem:[#allocation22_spill] sm:$0xff] %v10394_v16 }
  0xb5   :  { %v634_v62 = vsel %vm10053_vm8, %v629_v2, %v633_v39  ;;  %v1995_v55 = vrot.slane %v1994_v59, 4  ;;  %v2013_v10 = vrot.slane %v2011_v61, 5  ;;  %v14142_v31 = vrot.slane %v10068_v57, 5  ;;  %v10402_v40 = vld [vmem:[#allocation2 + $0x2c] sm:$0x1] }
  0xb6   :  { %v8588_v26 = vcombine.low %v620_v34, %v634_v62  ;;  %v2008_v52 = vor.u32 %v2007_v51, %v2004_v15  ;;  %v2016_v24 = vshrl.u32 %v10387_v13, 16  ;;  %v14143_v61 = vrot.slane %v10072_v60, 5  ;;  %v1173_v33 = vld [vmem:[#allocation2 + $0x38] sm:$0xe]  ;;  %v10419_v60 = vld [vmem:[#allocation2 + $0x30] sm:$0xf] }
  0xb7   :  { %v10400_v20 = vsel %vm10343_vm11, %v8601_v11, %v14142_v31  ;;  %v2000_v39 = vsel %vm10053_vm8, %v1995_v55, %v1999_v45  ;;  %v2019_v34 = vshll.u32 %v10387_v13, 16  ;;  %v2025_v57 = vshll.u32 %v10390_v43, 16  ;;  %v1174_v11 = vld [vmem:[#allocation2 + $0x40] sm:$0xe]  ;;  %14144 = vst [vmem:[#allocation23_spill] sm:$0xff] %v10419_v60 }
  0xb8   :  { %v10411_v35 = vsel %vm10343_vm11, %v8602_v32, %v14143_v61  ;;  %828 = vrot.lane.b32.xlu1 %v8588_v26, %s9849_s20  ;;  %v2009_v2 = vrot.slane %v2008_v52, 4  ;;  %v2018_v15 = vrot.slane %v2016_v24, 4  ;;  %v2030_v45 = vshrl.u32 %v10394_v16, 16  ;;  %v10424_v31 = vld [vmem:[#allocation2 + $0x38] sm:$0xf] }
  0xb9   :  { %v2021_v51 = vrot.slane %v2019_v34, 5  ;;  %v2033_v62 = vshll.u32 %v10394_v16, 16  ;;  %v2039_v55 = vshll.u32 %v10402_v40, 16  ;;  %14145 = vst [vmem:[#allocation24_spill] sm:$0xff] %v10424_v31  ;;  %v2027_v61 = vrot.slane %v2025_v57, 5 }
  0xba   :  { %v2014_v52 = vsel %vm10053_vm8, %v2009_v2, %v2013_v10  ;;  %v2032_v24 = vrot.slane %v2030_v45, 4  ;;  %v10429_v59 = vld [vmem:[#allocation2 + $0x34] sm:$0x1]  ;;  %v8603_v34 = vrot.slane %v1173_v33, 9  ;;  %v8604_v44 = vrot.slane %v1174_v11, 9 }
  0xbb   :  { %v8725_v13 = vcombine.low %v2000_v39, %v2014_v52  ;;  %v2022_v22 = vor.u32 %v2021_v51, %v2018_v15  ;;  %v2035_v14 = vrot.slane %v2033_v62, 5  ;;  %v2041_v32 = vrot.slane %v2039_v55, 5  ;;  %v1176_v62 = vld [vmem:[#allocation2 + $0x60] sm:$0xe] }
  0xbc   :  { %v2044_v16 = vshrl.u32 %v10419_v60, 16  ;;  %v2047_v54 = vshll.u32 %v10419_v60, 16  ;;  %v2053_v10 = vshll.u32 %v10429_v59, 16  ;;  %v2058_v57 = vshrl.u32 %v10424_v31, 16 }
  0xbd   :  { %2387 = vrot.lane.b32.xlu0 %v8725_v13, %s9849_s20  ;;  %v2023_v26 = vrot.slane %v2022_v22, 4  ;;  %v2036_v41 = vor.u32 %v2035_v14, %v2032_v24  ;;  %v14146_v39 = vrot.slane %v10127_v19, 5  ;;  %v14147_v11 = vrot.slane %v10133_v28, 5  ;;  %v1175_v13 = vld [vmem:[#allocation2 + $0x58] sm:$0xe] }
  0xbe   :  { %v2046_v22 = vrot.slane %v2044_v16, 4  ;;  %v2049_v14 = vrot.slane %v2047_v54, 5  ;;  %v2060_v52 = vrot.slane %v2058_v57, 4  ;;  %v2061_v28 = vshll.u32 %v10424_v31, 16  ;;  %v10457_v24 = vld [vmem:[#allocation2 + $0x40] sm:$0xf] }
  0xbf   :  { %v10442_v33 = vsel %vm10343_vm11, %v8603_v34, %v14146_v39  ;;  %v10448_v2 = vsel %vm10343_vm11, %v8604_v44, %v14147_v11  ;;  %v2028_v45 = vsel %vm10053_vm8, %v2023_v26, %v2027_v61  ;;  %v2037_v51 = vrot.slane %v2036_v41, 4  ;;  %14148 = vst [vmem:[#allocation25_spill] sm:$0xff] %v10457_v24  ;;  %v10463_v61 = vld [vmem:[#allocation2 + $0x44] sm:$0x1] }
  0xc0   :  { %v2050_v55 = vor.u32 %v2049_v14, %v2046_v22  ;;  %v2067_v44 = vshll.u32 %v10434_v12, 16  ;;  %v8605_v41 = vrot.slane %v1175_v13, 9  ;;  %v2055_v11 = vrot.slane %v2053_v10, 5  ;;  %v10465_v22 = vld [vmem:[#allocation2 + $0x48] sm:$0xf] }
  0xc1   :  { %v2042_v26 = vsel %vm10053_vm8, %v2037_v51, %v2041_v32  ;;  %v2063_v57 = vrot.slane %v2061_v28, 5  ;;  %14149 = vst [vmem:[#allocation26_spill] sm:$0xff] %v10465_v22  ;;  %v14150_v15 = vrot.slane %v10151_v4, 5  ;;  %v8606_v16 = vrot.slane %v1176_v62, 9  ;;  %v10476_v51 = vld [vmem:[#allocation2 + $0x4c] sm:$0x1] }
  0xc2   :  { %v8726_v34 = vcombine.low %v2028_v45, %v2042_v26  ;;  %v2051_v39 = vrot.slane %v2050_v55, 4  ;;  %v2072_v32 = vshrl.u32 %v10457_v24, 16  ;;  %v2069_v45 = vrot.slane %v2067_v44, 5  ;;  %v9432_v28 = vld [vmem:[#allocation4] ss:$8 sps:$4 sm:$0xff]  }
  0xc3   :  { %v10472_v54 = vsel %vm10343_vm11, %v8605_v41, %v14150_v15  ;;  %v2064_v13 = vor.u32 %v2063_v57, %v2060_v52  ;;  %v2075_v10 = vshll.u32 %v10457_v24, 16  ;;  %v2081_v55 = vshll.u32 %v10463_v61, 16  ;;  %v1177_v52 = vld [vmem:[#allocation2 + $0x68] sm:$0xe]  ;;  %v9437_v44 = vld [vmem:[#allocation4 + $0x14] ss:$8 sps:$4 sm:$0xff]  }
  0xc4   :  { %2389 = vrot.lane.b32.xlu1 %v8726_v34, %s9849_s20  ;;  %v14151_v4 = vrot.slane %v10163_v9, 5  ;;  %v2074_v62 = vrot.slane %v2072_v32, 4  ;;  %v2086_v26 = vshrl.u32 %v10465_v22, 16  ;;  %v2089_v41 = vshll.u32 %v10465_v22, 16  ;;  %v10504_v14 = vld [vmem:[#allocation2 + $0x68] sm:$0xf] }
  0xc5   :  { %v2056_v34 = vsel %vm10053_vm8, %v2051_v39, %v2055_v11  ;;  %v2065_v57 = vrot.slane %v2064_v13, 4  ;;  %v2077_v19 = vrot.slane %v2075_v10, 5  ;;  %v2095_v32 = vshll.u32 %v10476_v51, 16  ;;  %v10496_v39 = vld [vmem:[#allocation2 + $0x60] sm:$0xf] }
  0xc6   :  { %v10484_v15 = vsel %vm10343_vm11, %v8606_v16, %v14151_v4  ;;  %v2088_v24 = vrot.slane %v2086_v26, 4  ;;  %v2091_v16 = vrot.slane %v2089_v41, 5  ;;  %v1178_v4 = vld [vmem:[#allocation2 + $0x70] sm:$0xe]  ;;  %v2083_v48 = vrot.slane %v2081_v55, 5 }
  0xc7   :  { %v2070_v22 = vsel %vm10053_vm8, %v2065_v57, %v2069_v45  ;;  %v2078_v31 = vor.u32 %v2077_v19, %v2074_v62  ;;  %v8607_v7 = vrot.slane %v1177_v52, 9  ;;  %v10498_v11 = vld [vmem:[#allocation2 + $0x64] sm:$0x1]  ;;  %v14152_v13 = vcombine.low %v10020_v5, %v10022_v6  ;;  %v9435_v5 = vld [vmem:[#allocation4 + $0x10] ss:$8 sps:$4 sm:$0xff]  }
  0xc8   :  { %v8727_v26 = vcombine.low %v2056_v34, %v2070_v22  ;;  %v2092_v41 = vor.u32 %v2091_v16, %v2088_v24  ;;  %v2097_v9 = vrot.slane %v2095_v32, 5  ;;  %v14153_v55 = vrot.slane %v10173_v42, 5  ;;  %v9441_v34 = vld [vmem:[#allocation4 + $0x24] ss:$8 sps:$4 sm:$0xff]  }
  0xc9   :  { %v2079_v19 = vrot.slane %v2078_v31, 4  ;;  %v8608_v52 = vrot.slane %v1178_v4, 9  ;;  %v14154_v6 = vcombine.low %v10370_v63, %v10376_v46  ;;  %v2100_v24 = vshrl.u32 %v10496_v39, 16  ;;  %v10529_v46 = vld [vmem:[#allocation2 + $0x6c] sm:$0x1] }
  0xca   :  { %v1344_v60 = vpop.permute.xlu0 %1343  ;;  %v10511_v62 = vsel %vm10343_vm11, %v8607_v7, %v14153_v55  ;;  %v2103_v22 = vshll.u32 %v10496_v39, 16  ;;  %v2109_v31 = vshll.u32 %v10498_v11, 16  ;;  %2391 = vrot.lane.b32.xlu0 %v8727_v26, %s9849_s20  ;;  %v2114_v57 = vshrl.u32 %v10504_v14, 16  ;;  %v10538_v55 = vld [vmem:[#allocation2 + $0x70] sm:$0xf] }
  0xcb   :  { %v1385_v10 = vsel %vm854_vm12, %v14152_v13, %v1344_v60  ;;  %v2093_v60 = vrot.slane %v2092_v41, 4  ;;  %v2084_v7 = vsel %vm10053_vm8, %v2079_v19, %v2083_v48  ;;  %v2117_v16 = vshll.u32 %v10504_v14, 16  ;;  %v1179_v13 = vld [vmem:[#allocation2 + $0x78] sm:$0xe]  ;;  %14156 = vst [vmem:[#allocation27_spill] sm:$0xff] %v10538_v55 }
  0xcc   :  { %1617 = vmatmul.mubr.bf16.vlgmr.msra.gmra.mrb[0].mxu0 %v1385_v10  ;;  %v2102_v48 = vrot.slane %v2100_v24, 4  ;;  %v2105_v41 = vrot.slane %v2103_v22, 5  ;;  %v2116_v19 = vrot.slane %v2114_v57, 4  ;;  %v2123_v24 = vshll.u32 %v10529_v46, 16  ;;  %v10547_v10 = vld [vmem:[#allocation2 + $0x74] sm:$0x1] }
  0xcd   :  { %1842 = vmatpush1.bf16.msra.mxu0 %v9432_v28  ;;  %8662 = vmatprep.mubr.msk.bf16.mxu0 %vm854_vm12, %v14154_v6  ;;  %v14155_v28 = vrot.slane %v10189_v8, 5  ;;  %v2098_v32 = vsel %vm10053_vm8, %v2093_v60, %v2097_v9  ;;  %v1180_v8 = vld [vmem:[#allocation2 + $0x80] sm:$0xe]  ;;  %v9444_v60 = vld [vmem:[#allocation4 + $0x34] ss:$8 sps:$4 sm:$0xff]   ;;  %v2111_v22 = vrot.slane %v2109_v31, 5 }
  0xce   :  { %1843 = vmatprep.subr.bf16.mxu0 %v9437_v44  ;;  %v1346_v42 = vpop.permute.xlu0 %1345  ;;  %v9439_v44 = vld [vmem:[#allocation4 + $0x20] ss:$8 sps:$4 sm:$0xff]   ;;  %v8728_v26 = vcombine.low %v2084_v7, %v2098_v32  ;;  %v2106_v7 = vor.u32 %v2105_v41, %v2102_v48  ;;  %v8609_v57 = vrot.slane %v1179_v13, 9  ;;  %v8610_v32 = vrot.slane %v1180_v8, 9  ;;  %v10566_v41 = vld [vmem:[#allocation2 + $0x7c] sm:$0x1] }
  0xcf   :  { %v10527_v63 = vsel %vm10343_vm11, %v8608_v52, %v14155_v28  ;;  %v14157_v52 = vcombine.low %v10038_v27, %v10040_v30  ;;  %v2119_v28 = vrot.slane %v2117_v16, 5  ;;  %v2125_v27 = vrot.slane %v2123_v24, 5  ;;  %v10549_v30 = vld [vmem:[#allocation2 + $0x78] sm:$0xf] }
  0xd0   :  { %2393 = vrot.lane.b32.xlu1 %v8728_v26, %s9849_s20  ;;  %14158 = vst [vmem:[#allocation28_spill] sm:$0xff] %v10549_v30  ;;  %v2131_v16 = vshll.u32 %v10538_v55, 16  ;;  %v2107_v26 = vrot.slane %v2106_v7, 4  ;;  %v14159_v31 = vrot.slane %v10218_v29, 5  ;;  %v14160_v13 = vrot.slane %v10234_v3, 5 }
  0xd1   :  { %1844 = vmatpush1.bf16.msra.mxu0 %v9435_v5  ;;  %v1389_v6 = vsel %vm854_vm12, %v14157_v52, %v1346_v42  ;;  %v9442_v5 = vld [vmem:[#allocation4 + $0x30] ss:$8 sps:$4 sm:$0xff]   ;;  %v2120_v45 = vor.u32 %v2119_v28, %v2116_v19  ;;  %v2128_v42 = vshrl.u32 %v10538_v55, 16  ;;  %v9448_v52 = vld [vmem:[#allocation4 + $0x44] ss:$8 sps:$4 sm:$0xff]   ;;  %v2137_v3 = vshll.u32 %v10547_v10, 16 }
  0xd2   :  { %1845 = vmatprep.subr.bf16.mxu0 %v9441_v34  ;;  %v10558_v48 = vsel %vm10343_vm11, %v8609_v57, %v14159_v31  ;;  %v10564_v8 = vsel %vm10343_vm11, %v8610_v32, %v14160_v13  ;;  %v1181_v7 = vld [vmem:[#allocation2 + $0x88] sm:$0xe]  ;;  %v2133_v32 = vrot.slane %v2131_v16, 5  ;;  %v2142_v31 = vshrl.u32 %v10549_v30, 16  ;;  %v9452_v16 = vld [vmem:[#allocation4 + $0x54] ss:$8 sps:$4 sm:$0xff]  }
  0xd3   :  { %v2121_v29 = vrot.slane %v2120_v45, 4  ;;  %v2130_v24 = vrot.slane %v2128_v42, 4  ;;  %v2145_v42 = vshll.u32 %v10549_v30, 16  ;;  %v14162_v57 = vcombine.low %v10061_v50, %v10066_v56  ;;  %v10590_v28 = vld [vmem:[#allocation2 + $0x84] sm:$0x1] }
  0xd4   :  { %1627 = vmatmul.mubr.bf16.gmra.mrb[4].mxu0 %v1389_v6  ;;  %v1348_v19 = vpop.permute.xlu1 %1347  ;;  %v14161_v6 = vcombine.low %v10400_v20, %v10411_v35  ;;  %v1182_v20 = vld [vmem:[#allocation2 + $0x90] sm:$0xe]  ;;  %v9446_v35 = vld [vmem:[#allocation4 + $0x40] ss:$8 sps:$4 sm:$0xff]   ;;  %v2144_v9 = vrot.slane %v2142_v31, 4  ;;  %v2139_v45 = vrot.slane %v2137_v3, 5 }
  0xd5   :  { %1846 = vmatpush1.bf16.msra.mxu0 %v9439_v44  ;;  %v2112_v44 = vsel %vm10053_vm8, %v2107_v26, %v2111_v22  ;;  %v2126_v13 = vsel %vm10053_vm8, %v2121_v29, %v2125_v27  ;;  %v1393_v22 = vsel %vm854_vm12, %v14162_v57, %v1348_v19  ;;  %v2134_v34 = vor.u32 %v2133_v32, %v2130_v24  ;;  %v10592_v55 = vld [vmem:[#allocation2 + $0x88] sm:$0xf]  ;;  %v9450_v24 = vld [vmem:[#allocation4 + $0x50] ss:$8 sps:$4 sm:$0xff]  }
  0xd6   :  { %8663 = vmatprep.mubr.msk.bf16.mxu0 %vm854_vm12, %v14161_v6  ;;  %1847 = vmatprep.subr.bf16.mxu0 %v9444_v60  ;;  %v2151_v6 = vshll.u32 %v10566_v41, 16  ;;  %v10584_v60 = vld [vmem:[#allocation2 + $0x80] sm:$0xf]  ;;  %v8729_v26 = vcombine.low %v2112_v44, %v2126_v13  ;;  %v2147_v27 = vrot.slane %v2145_v42, 5  ;;  %v8611_v29 = vrot.slane %v1181_v7, 9 }
  0xd7   :  { %v8612_v4 = vrot.slane %v1182_v20, 9  ;;  %v2135_v30 = vrot.slane %v2134_v34, 4  ;;  %v2156_v56 = vshrl.u32 %v10584_v60, 16  ;;  %v2159_v19 = vshll.u32 %v10584_v60, 16  ;;  %v10609_v34 = vld [vmem:[#allocation2 + $0x8c] sm:$0x1] }
  0xd8   :  { %2395 = vrot.lane.b32.xlu0 %v8729_v26, %s9849_s20  ;;  %v2153_v50 = vrot.slane %v2151_v6, 5  ;;  %v2148_v57 = vor.u32 %v2147_v27, %v2144_v9  ;;  %v14163_v44 = vrot.slane %v10246_v1, 5  ;;  %v14165_v3 = vrot.slane %v10260_v23, 5  ;;  %v9455_v9 = vld [vmem:[#allocation4 + $0x64] ss:$8 sps:$4 sm:$0xff]  }
  0xd9   :  { %1848 = vmatpush1.bf16.msra.mxu0 %v9442_v5  ;;  %v2165_v7 = vshll.u32 %v10590_v28, 16  ;;  %v2158_v31 = vrot.slane %v2156_v56, 4  ;;  %v2161_v20 = vrot.slane %v2159_v19, 5  ;;  %v635_v13 = vld [vmem:[#allocation2] sm:$0xe]  ;;  %v14167_v23 = vcombine.low %v10442_v33, %v10448_v2 }
  0xda   :  { %1849 = vmatprep.subr.bf16.mxu0 %v9448_v52  ;;  %v10601_v5 = vsel %vm10343_vm11, %v8611_v29, %v14163_v44  ;;  %v10607_v52 = vsel %vm10343_vm11, %v8612_v4, %v14165_v3  ;;  %v2140_v4 = vsel %vm10053_vm8, %v2135_v30, %v2139_v45  ;;  %v2149_v42 = vrot.slane %v2148_v57, 4  ;;  %v636_v26 = vld [vmem:[#allocation2 + $0x8] sm:$0xe]  ;;  %v10623_v27 = vld [vmem:[#allocation2 + $0x58] sm:$0xf] }
  0xdb   :  { %14164 = vst [vmem:[#allocation29_spill] sm:$0xff] %v10601_v5  ;;  %14166 = vst [vmem:[#allocation30_spill] sm:$0xff] %v10607_v52  ;;  %v2170_v6 = vshrl.u32 %v10592_v55, 16  ;;  %v10625_v29 = vld [vmem:[#allocation2 + $0x60] sm:$0xf]  ;;  %v2162_v33 = vor.u32 %v2161_v20, %v2158_v31  ;;  %v2167_v2 = vrot.slane %v2165_v7, 5 }
  0xdc   :  { %1637 = vmatmul.mubr.bf16.gmra.mrb[8].mxu0 %v1393_v22  ;;  %v2173_v22 = vshll.u32 %v10592_v55, 16  ;;  %v2179_v56 = vshll.u32 %v10609_v34, 16  ;;  %v10630_v19 = vld [vmem:[#allocation2 + $0x90] sm:$0xf]  ;;  %v2154_v45 = vsel %vm10053_vm8, %v2149_v42, %v2153_v50  ;;  %v10635_v44 = vld [vmem:[#allocation2 + $0x94] sm:$0x1]  ;;  %v14169_v50 = vcombine.low %v10086_v25, %v10125_v18 }
  0xdd   :  { %1850 = vmatpush1.bf16.msra.mxu0 %v9446_v35  ;;  %8664 = vmatprep.mubr.msk.bf16.mxu0 %vm854_vm12, %v14167_v23  ;;  %14168 = vst [vmem:[#allocation31_spill] sm:$0xff] %v10630_v19  ;;  %v2172_v57 = vrot.slane %v2170_v6, 4  ;;  %v9453_v3 = vld [vmem:[#allocation4 + $0x60] ss:$8 sps:$4 sm:$0xff]   ;;  %v8730_v23 = vcombine.low %v2140_v4, %v2154_v45  ;;  %v2163_v1 = vrot.slane %v2162_v33, 4  ;;  %v8557_v35 = vrot.slane %v635_v13, 9 }
  0xde   :  { %1851 = vmatprep.subr.bf16.mxu0 %v9452_v16  ;;  %v2175_v16 = vrot.slane %v2173_v22, 5  ;;  %v2181_v32 = vrot.slane %v2179_v56, 5  ;;  %v8558_v20 = vrot.slane %v636_v26, 9  ;;  %v10637_v52 = vld [vmem:[#allocation2 + $0x98] sm:$0xf]  ;;  %v2184_v30 = vshrl.u32 %v10630_v19, 16 }
  0xdf   :  { %v2187_v5 = vshll.u32 %v10630_v19, 16  ;;  %v9459_v4 = vld [vmem:[#allocation4 + $0x74] ss:$8 sps:$4 sm:$0xff]   ;;  %2397 = vrot.lane.b32.xlu1 %v8730_v23, %s9849_s20  ;;  %v14170_v13 = vrot.slane %v10203_v47, 5  ;;  %v2193_v26 = vshll.u32 %v10635_v44, 16  ;;  %v2198_v45 = vshrl.u32 %v10637_v52, 16 }
  0xe0   :  { %v1350_v31 = vpop.permute.xlu1 %1349  ;;  %v2176_v7 = vor.u32 %v2175_v16, %v2172_v57  ;;  %v10654_v22 = vld [vmem:[#allocation2 + $0x9c] sm:$0x1]  ;;  %v9457_v25 = vld [vmem:[#allocation4 + $0x70] ss:$8 sps:$4 sm:$0xff]   ;;  %v2186_v56 = vrot.slane %v2184_v30, 4  ;;  %v2201_v57 = vshll.u32 %v10637_v52, 16 }
  0xe1   :  { %1852 = vmatpush1.bf16.msra.mxu0 %v9450_v24  ;;  %v1397_v42 = vsel %vm854_vm12, %v14169_v50, %v1350_v31  ;;  %v2168_v24 = vsel %vm10053_vm8, %v2163_v1, %v2167_v2  ;;  %v10652_v6 = vsel %vm10343_vm11, %v8557_v35, %v14170_v13  ;;  %v2189_v1 = vrot.slane %v2187_v5, 5  ;;  %v637_v2 = vld [vmem:[#allocation2 + $0x10] sm:$0xe]  ;;  %v638_v16 = vld [vmem:[#allocation2 + $0x18] sm:$0xe] }
  0xe2   :  { %1853 = vmatprep.subr.bf16.mxu0 %v9455_v9  ;;  %14171 = vst [vmem:[#allocation32_spill] sm:$0xff] %v10652_v6  ;;  %v2177_v18 = vrot.slane %v2176_v7, 4  ;;  %v14172_v9 = vrot.slane %v10231_v58, 5  ;;  %v14174_v58 = vcombine.low %v10472_v54, %v10484_v15  ;;  %v2195_v23 = vrot.slane %v2193_v26, 5  ;;  %v639_v7 = vld [vmem:[#allocation2 + $0x20] sm:$0xe] }
  0xe3   :  { %v2190_v30 = vor.u32 %v2189_v1, %v2186_v56  ;;  %v2207_v31 = vshll.u32 %v10654_v22, 16  ;;  %v10675_v50 = vld [vmem:[#allocation2 + $0x68] sm:$0xf]  ;;  %v9463_v15 = vld [vmem:[#allocation4 + $0x84] ss:$8 sps:$4 sm:$0xff]   ;;  %v8560_v56 = vrot.slane %v638_v16, 9 }
  0xe4   :  { %v10661_v33 = vsel %vm10343_vm11, %v8558_v20, %v14172_v9  ;;  %1647 = vmatmul.mubr.bf16.gmra.mrb[12].mxu0 %v1397_v42  ;;  %v2182_v5 = vsel %vm10053_vm8, %v2177_v18, %v2181_v32  ;;  %v640_v20 = vld [vmem:[#allocation2 + $0x28] sm:$0xe]  ;;  %v10677_v42 = vld [vmem:[#allocation2 + $0x70] sm:$0xf]  ;;  %v2203_v9 = vrot.slane %v2201_v57, 5  ;;  %v8559_v18 = vrot.slane %v637_v2, 9 }
  0xe5   :  { %14173 = vst [vmem:[#allocation33_spill] sm:$0xff] %v10661_v33  ;;  %8665 = vmatprep.mubr.msk.bf16.mxu0 %vm854_vm12, %v14174_v58  ;;  %1854 = vmatpush1.bf16.msra.mxu0 %v9453_v3  ;;  %v8731_v13 = vcombine.low %v2168_v24, %v2182_v5  ;;  %v2200_v3 = vrot.slane %v2198_v45, 4  ;;  %v9461_v58 = vld [vmem:[#allocation4 + $0x80] ss:$8 sps:$4 sm:$0xff]   ;;  %v2191_v26 = vrot.slane %v2190_v30, 4  ;;  %v2209_v35 = vrot.slane %v2207_v31, 5 }
  0xe6   :  { %1855 = vmatprep.subr.bf16.mxu0 %v9459_v4  ;;  %v641_v1 = vld [vmem:[#allocation2 + $0x30] sm:$0xe]  ;;  %v8561_v47 = vrot.slane %v639_v7, 9  ;;  %v8562_v33 = vrot.slane %v640_v20, 9  ;;  %v642_v6 = vld [vmem:[#allocation2 + $0x38] sm:$0xe] }
  0xe7   :  { %2399 = vrot.lane.b32.xlu0 %v8731_v13, %s9849_s20  ;;  %v2204_v4 = vor.u32 %v2203_v9, %v2200_v3  ;;  %v2196_v45 = vsel %vm10053_vm8, %v2191_v26, %v2195_v23  ;;  %v14175_v57 = vld [vmem:[#allocation11_spill] sm:$0xff]  ;;  %v14177_v16 = vld [vmem:[#allocation12_spill] sm:$0xff]  ;;  %v644_v20 = vld [vmem:[#allocation2 + $0x58] sm:$0xe]  ;;  %v14196_v38 = vrot.slane %v10317_v53, 5  ;;  %vm3441_vm5 = vcmask 1047556  }
  0xe8   :  { %v1352_v19 = vpop.permute.xlu0 %1351  ;;  %v14176_v5 = vrot.slane %v14175_v57, 5  ;;  %v14178_v30 = vrot.slane %v14177_v16, 5  ;;  %v643_v7 = vld [vmem:[#allocation2 + $0x50] sm:$0xe]  ;;  %v9466_v23 = vld [vmem:[#allocation4 + $0x94] ss:$8 sps:$4 sm:$0xff]  }
  0xe9   :  { %1856 = vmatpush1.bf16.msra.mxu0 %v9457_v25  ;;  %v14179_v25 = vcombine.low %v10623_v27, %v10625_v29  ;;  %v2205_v3 = vrot.slane %v2204_v4, 4  ;;  %v14180_v26 = vld [vmem:[#allocation13_spill] sm:$0xff]  ;;  %v9470_v4 = vld [vmem:[#allocation4 + $0xa4] ss:$8 sps:$4 sm:$0xff]   ;;  %v646_v9 = vld [vmem:[#allocation2 + $0x68] sm:$0xe] }
  0xea   :  { %v10690_v2 = vsel %vm10343_vm11, %v8559_v18, %v14176_v5  ;;  %v10696_v31 = vsel %vm10343_vm11, %v8560_v56, %v14178_v30  ;;  %1857 = vmatprep.subr.bf16.mxu0 %v9463_v15  ;;  %v14181_v18 = vrot.slane %v14180_v26, 5  ;;  %v645_v56 = vld [vmem:[#allocation2 + $0x60] sm:$0xe]  ;;  %v9464_v5 = vld [vmem:[#allocation4 + $0x90] ss:$8 sps:$4 sm:$0xff]   ;;  %v8564_v15 = vrot.slane %v642_v6, 9 }
  0xeb   :  { %v1401_v13 = vsel %vm854_vm12, %v14179_v25, %v1352_v19  ;;  %v14182_v30 = vld [vmem:[#allocation14_spill] sm:$0xff]  ;;  %v8563_v19 = vrot.slane %v641_v1, 9  ;;  %v2210_v25 = vsel %vm10053_vm8, %v2205_v3, %v2209_v35  ;;  %v8565_v26 = vrot.slane %v643_v7, 9  ;;  %v647_v16 = vld [vmem:[#allocation2 + $0x70] sm:$0xe]  ;;  %v14185_v6 = vld [vmem:[#allocation15_spill] sm:$0xff] }
  0xec   :  { %v10708_v57 = vsel %vm10343_vm11, %v8561_v47, %v14181_v18  ;;  %v14183_v27 = vrot.slane %v14182_v30, 5  ;;  %1657 = vmatmul.mubr.bf16.gmra.mrb[16].mxu0 %v1401_v13  ;;  %v8566_v18 = vrot.slane %v644_v20, 9  ;;  %v14184_v30 = vcombine.low %v10511_v62, %v10527_v63  ;;  %v14187_v35 = vld [vmem:[#allocation16_spill] sm:$0xff]  ;;  %v649_v47 = vld [vmem:[#allocation2 + $0x80] sm:$0xe] }
  0xed   :  { %1858 = vmatpush1.bf16.msra.mxu0 %v9461_v58  ;;  %v14186_v1 = vrot.slane %v14185_v6, 5  ;;  %v14188_v3 = vrot.slane %v14187_v35, 5  ;;  %v8567_v20 = vrot.slane %v645_v56, 9  ;;  %v14189_v58 = vld [vmem:[#allocation17_spill] sm:$0xff]  ;;  %v650_v56 = vld [vmem:[#allocation2 + $0x88] sm:$0xe] }
  0xee   :  { %v10715_v29 = vsel %vm10343_vm11, %v8562_v33, %v14183_v27  ;;  %8666 = vmatprep.mubr.msk.bf16.mxu0 %vm854_vm12, %v14184_v30  ;;  %v8732_v33 = vcombine.low %v2196_v45, %v2210_v25  ;;  %v648_v27 = vld [vmem:[#allocation2 + $0x78] sm:$0xe]  ;;  %1859 = vmatprep.subr.bf16.mxu0 %v9466_v23  ;;  %v14190_v45 = vrot.slane %v14189_v58, 5  ;;  %v14191_v25 = vld [vmem:[#allocation18_spill] sm:$0xff]  ;;  %v2211_v6 = vld [vmem:[#allocation2 + $0x10] sm:$0xe] }
  0xef   :  { %v10729_v13 = vsel %vm10343_vm11, %v8563_v19, %v14186_v1  ;;  %v10735_v7 = vsel %vm10343_vm11, %v8564_v15, %v14188_v3  ;;  %v14192_v30 = vrot.slane %v14191_v25, 5  ;;  %v9468_v23 = vld [vmem:[#allocation4 + $0xa0] ss:$8 sps:$4 sm:$0xff]   ;;  %v14194_v3 = vrot.slane %v10312_v37, 5  ;;  %v10762_v63 = vld [vmem:[#allocation2 + $0x78] sm:$0xf] }
  0xf0   :  { %v10744_v19 = vsel %vm10343_vm11, %v8565_v26, %v14190_v45  ;;  %2401 = vrot.lane.b32.xlu1 %v8732_v33, %s9849_s20  ;;  %v8568_v58 = vrot.slane %v646_v9, 9  ;;  %v2212_v45 = vld [vmem:[#allocation2 + $0x18] sm:$0xe]  ;;  %v2214_v25 = vld [vmem:[#allocation2 + $0x28] sm:$0xe]  ;;  %v8569_v35 = vrot.slane %v647_v16, 9  ;;  %v14195_v9 = vcombine.low %v10675_v50, %v10677_v42 }
  0xf1   :  { %v10750_v15 = vsel %vm10343_vm11, %v8566_v18, %v14192_v30  ;;  %v10760_v26 = vsel %vm10343_vm11, %v8567_v20, %v14194_v3  ;;  %v2213_v18 = vld [vmem:[#allocation2 + $0x20] sm:$0xe]  ;;  %v1354_v30 = vpop.permute.xlu1 %1353  ;;  %v9474_v1 = vld [vmem:[#allocation4 + $0xb4] ss:$8 sps:$4 sm:$0xff]   ;;  %v8570_v24 = vrot.slane %v648_v27, 9  ;;  %v8571_v37 = vrot.slane %v649_v47, 9  ;;  %1860 = vmatpush1.bf16.msra.mxu0 %v9464_v5 }
  0xf2   :  { %14193 = vst [vmem:[#allocation11_spill] sm:$0xff] %v10750_v15  ;;  %v10764_v62 = vld [vmem:[#allocation2 + $0x80] sm:$0xf]  ;;  %v2215_v32 = vld [vmem:[#allocation2 + $0x30] sm:$0xe]  ;;  %v1405_v20 = vsel %vm854_vm12, %v14195_v9, %v1354_v30  ;;  %v2313_v3 = vrot.slane %v10609_v34, 5  ;;  %v10777_v15 = vsel %vm10343_vm11, %v8568_v58, %v14196_v38  ;;  %1861 = vmatprep.subr.bf16.mxu0 %v9470_v4 }
  0xf3   :  { %v2216_v54 = vld [vmem:[#allocation2 + $0x38] sm:$0xe]  ;;  %v8572_v33 = vrot.slane %v650_v56, 9  ;;  %v14197_v47 = vld [vmem:[#allocation19_spill] sm:$0xff]  ;;  %v14199_v42 = vld [vmem:[#allocation20_spill] sm:$0xff]  ;;  %v14201_v38 = vrot.slane %v10341_v21, 5 }
  0xf4   :  { %v14198_v27 = vrot.slane %v14197_v47, 5  ;;  %v14200_v5 = vrot.slane %v14199_v42, 5  ;;  %v9472_v56 = vld [vmem:[#allocation4 + $0xb0] ss:$8 sps:$4 sm:$0xff]   ;;  %v2217_v47 = vld [vmem:[#allocation2 + $0x40] sm:$0xe]  ;;  %1667 = vmatmul.mubr.bf16.gmra.mrb[20].mxu0 %v1405_v20 }
  0xf5   :  { %v10797_v4 = vsel %vm10343_vm11, %v8571_v37, %v14201_v38  ;;  %v9478_v21 = vld [vmem:[#allocation4 + $0x184] ss:$8 sps:$4 sm:$0xff]   ;;  %v8702_v42 = vrot.slane %v2212_v45, 9  ;;  %v8704_v38 = vrot.slane %v2214_v25, 9  ;;  %v2219_v16 = vld [vmem:[#allocation2 + $0x60] sm:$0xe]  ;;  %1862 = vmatpush1.bf16.msra.mxu0 %v9468_v23 }
  0xf6   :  { %v10785_v50 = vsel %vm10343_vm11, %v8569_v35, %v14198_v27  ;;  %v10791_v53 = vsel %vm10343_vm11, %v8570_v24, %v14200_v5  ;;  %v14202_v35 = vrot.slane %v10352_v49, 5  ;;  %v8701_v24 = vrot.slane %v2211_v6, 9  ;;  %v2218_v27 = vld [vmem:[#allocation2 + $0x48] sm:$0xe]  ;;  %v14205_v20 = vld [vmem:[#allocation22_spill] sm:$0xff]  ;;  %1863 = vmatprep.subr.bf16.mxu0 %v9474_v1 }
  0xf7   :  { %v8703_v5 = vrot.slane %v2213_v18, 9  ;;  %v2220_v58 = vld [vmem:[#allocation2 + $0x68] sm:$0xe]  ;;  %v14203_v49 = vcombine.low %v10558_v48, %v10564_v8  ;;  %v14204_v6 = vrot.slane %v10362_v0, 5  ;;  %v8705_v45 = vrot.slane %v2215_v32, 9 }
  0xf8   :  { %v10806_v9 = vsel %vm10343_vm11, %v8572_v33, %v14202_v35  ;;  %v14206_v35 = vld [vmem:[#allocation21_spill] sm:$0xff]  ;;  %v8706_v18 = vrot.slane %v2216_v54, 9  ;;  %v14207_v25 = vrot.slane %v10378_v36, 5  ;;  %v14208_v8 = vrot.slane %v10390_v43, 5  ;;  %v14210_v54 = vld [vmem:[#allocation24_spill] sm:$0xff]  ;;  %v14211_v32 = vld [vmem:[#allocation23_spill] sm:$0xff] }
  0xf9   :  { %8667 = vmatprep.mubr.msk.bf16.mxu0 %vm854_vm12, %v14203_v49  ;;  %v10818_v33 = vsel %vm10343_vm11, %v8701_v24, %v14204_v6  ;;  %v14209_v23 = vrot.slane %v10402_v40, 5  ;;  %v2221_v36 = vld [vmem:[#allocation2 + $0x70] sm:$0xe]  ;;  %v2222_v49 = vld [vmem:[#allocation2 + $0x78] sm:$0xe]  ;;  %v8707_v1 = vrot.slane %v2217_v47, 9  ;;  %1864 = vmatpush1.bf16.msra.mxu0 %v9472_v56 }
  0xfa   :  { %v10826_v48 = vsel %vm10343_vm11, %v8702_v42, %v14207_v25  ;;  %v10832_v0 = vsel %vm10343_vm11, %v8703_v5, %v14208_v8  ;;  %v14212_v5 = vrot.slane %v10429_v59, 5  ;;  %v2223_v25 = vld [vmem:[#allocation2 + $0x80] sm:$0xe]  ;;  %v2224_v8 = vld [vmem:[#allocation2 + $0x88] sm:$0xe]  ;;  %v8708_v37 = vrot.slane %v2218_v27, 9  ;;  %2628 = vmatprep.subr.bf16.mxu0 %v9478_v21 }
  0xfb   :  { %v10838_v24 = vsel %vm10343_vm11, %v8704_v38, %v14209_v23  ;;  %v14213_v38 = vrot.slane %v10434_v12, 5  ;;  %v14214_v43 = vld [vmem:[#allocation26_spill] sm:$0xff]  ;;  %v14215_v42 = vld [vmem:[#allocation25_spill] sm:$0xff]  ;;  %v8709_v30 = vrot.slane %v2219_v16, 9  ;;  %v8721_v12 = vcombine.low %v10496_v39, %v10504_v14  ;;  %v14218_v16 = vld [vmem:[#allocation28_spill] sm:$0xff] }
  0xfc   :  { %v10850_v40 = vsel %vm10343_vm11, %v8705_v45, %v14212_v5  ;;  %v8710_v45 = vrot.slane %v2220_v58, 9  ;;  %v8711_v5 = vrot.slane %v2221_v36, 9  ;;  %v14217_v47 = vrot.slane %v10476_v51, 5  ;;  %v14219_v58 = vld [vmem:[#allocation27_spill] sm:$0xff] }
  0xfd   :  { %v10856_v6 = vsel %vm10343_vm11, %v8706_v18, %v14213_v38  ;;  %v14216_v18 = vrot.slane %v10463_v61, 5  ;;  %v8712_v56 = vrot.slane %v2222_v49, 9  ;;  %v8722_v59 = vcombine.low %v14219_v58, %v14218_v16  ;;  %v9765_v34 = vld [vmem:[#allocation2 + $0x88] sm:$0xf] }
  0xfe   :  { %v8735_v23 = vcombine.low %v10850_v40, %v10856_v6  ;;  %v10874_v27 = vsel %vm10343_vm11, %v8708_v37, %v14217_v47  ;;  %v14220_v21 = vrot.slane %v10498_v11, 5  ;;  %v14222_v37 = vrot.slane %v10547_v10, 5 }
  0xff   :  { %v10868_v38 = vsel %vm10343_vm11, %v8707_v1, %v14216_v18  ;;  %v14221_v1 = vrot.slane %v10529_v46, 5  ;;  %v1356_v18 = vpop.permute.xlu0 %1355  ;;  %v14223_v47 = vrot.slane %v10566_v41, 5  ;;  %v8713_v46 = vrot.slane %v2223_v25, 9 }
 0x100   :  { %v8736_v36 = vcombine.low %v10868_v38, %v10874_v27  ;;  %v10884_v61 = vsel %vm10343_vm11, %v8709_v30, %v14220_v21  ;;  %v10896_v49 = vsel %vm10343_vm11, %v8711_v5, %v14222_v37  ;;  %v8714_v21 = vrot.slane %v2224_v8, 9  ;;  %v14226_v8 = vld [vmem:[#allocation29_spill] sm:$0xff] }
 0x101   :  { %v10890_v51 = vsel %vm10343_vm11, %v8710_v45, %v14221_v1  ;;  %v10904_v30 = vsel %vm10343_vm11, %v8712_v56, %v14223_v47  ;;  %v14224_v45 = vcombine.low %v10762_v63, %v10764_v62  ;;  %v2321_v5 = vrot.slane %v10654_v22, 5  ;;  %v2225_v22 = vld [vmem:[#allocation2 + $0x90] sm:$0xe]  ;;  %v2226_v63 = vld [vmem:[#allocation2 + $0x98] sm:$0xe]  ;;  %v14227_v56 = vld [vmem:[#allocation30_spill] sm:$0xff] }
 0x102   :  { %v8737_v11 = vcombine.low %v10884_v61, %v10890_v51  ;;  %v8738_v1 = vcombine.low %v10896_v49, %v10904_v30  ;;  %v14225_v41 = vrot.slane %v10590_v28, 5  ;;  %v10925_v62 = vsel %vm10343_vm11, %v8714_v21, %v2313_v3 }
 0x103   :  { %v1409_v10 = vsel %vm854_vm12, %v14224_v45, %v1356_v18  ;;  %v14228_v18 = vcombine.low %v14226_v8, %v14227_v56  ;;  %v8715_v47 = vrot.slane %v2225_v22, 9  ;;  %v8716_v45 = vrot.slane %v2226_v63, 9  ;;  %v9485_v22 = vld [vmem:[#allocation4 + $0x1a4] ss:$8 sps:$4 sm:$0xff]  }
 0x104   :  { %1677 = vmatmul.mubr.bf16.gmra.mrb[24].mxu0 %v1409_v10  ;;  %v10919_v25 = vsel %vm10343_vm11, %v8713_v46, %v14225_v41  ;;  %v14229_v46 = vld [vmem:[#allocation31_spill] sm:$0xff]  ;;  %v9766_v41 = vld [vmem:[#allocation2 + $0x90] sm:$0xf]  ;;  %v14230_v3 = vrot.slane %v10635_v44, 5  ;;  %v14232_v44 = vld [vmem:[#allocation33_spill] sm:$0xff]  ;;  %v14248_v39 = vcombine.low %v10584_v60, %v10592_v55  ;;  %vm8465_vm13 = vcmask 1046534  }
 0x105   :  { %8668 = vmatprep.mubr.msk.bf16.mxu0 %vm854_vm12, %v14228_v18  ;;  %v8620_v37 = vcombine.low %v9765_v34, %v9766_v41  ;;  %v10943_v8 = vsel %vm10343_vm11, %v8716_v45, %v2321_v5  ;;  %v1358_v63 = vpop.permute.xlu1 %1357  ;;  %v9767_v18 = vld [vmem:[#allocation2] sm:$0xf]  ;;  %v9768_v10 = vld [vmem:[#allocation2 + $0x8] sm:$0xf]  ;;  %v14231_v41 = vld [vmem:[#allocation32_spill] sm:$0xff]  ;;  %v14247_v40 = vcombine.low %v10919_v25, %v10925_v62 }
 0x106   :  { %v10939_v21 = vsel %vm10343_vm11, %v8715_v47, %v14230_v3  ;;  %v8573_v34 = vcombine.low %v9767_v18, %v9768_v10  ;;  %v14233_v28 = vcombine.low %v14231_v41, %v14232_v44  ;;  %v815_v47 = vpop.permute.xlu0 %814  ;;  %v9476_v3 = vld [vmem:[#allocation4 + $0x180] ss:$8 sps:$4 sm:$0xff]   ;;  %v9479_v45 = vld [vmem:[#allocation4 + $0x190] ss:$8 sps:$4 sm:$0xff]   ;;  %v9488_v41 = vld [vmem:[#allocation4 + $0x1b4] ss:$8 sps:$4 sm:$0xff]  }
 0x107   :  { %v1413_v56 = vsel %vm854_vm12, %v8620_v37, %v1358_v63  ;;  %v14234_v37 = vcombine.low %v10690_v2, %v10696_v31  ;;  %v9769_v10 = vld [vmem:[#allocation2 + $0x10] sm:$0xf]  ;;  %v9770_v63 = vld [vmem:[#allocation2 + $0x18] sm:$0xf]  ;;  %v14235_v2 = vcombine.low %v10708_v57, %v10715_v29  ;;  %v9771_v31 = vld [vmem:[#allocation2 + $0x20] sm:$0xf] }
 0x108   :  { %v857_v5 = vsel %vm854_vm12, %v8573_v34, %v815_v47  ;;  %v9486_v34 = vld [vmem:[#allocation4 + $0x1b0] ss:$8 sps:$4 sm:$0xff]   ;;  %v9492_v47 = vld [vmem:[#allocation4 + $0x1c4] ss:$8 sps:$4 sm:$0xff]   ;;  %vm3065_vm15 = vsmask.f32 4352 }
 0x109   :  { %v817_v18 = vpop.permute.xlu1 %816  ;;  %v9773_v57 = vld [vmem:[#allocation2 + $0x30] sm:$0xf]  ;;  %v9774_v29 = vld [vmem:[#allocation2 + $0x38] sm:$0xf]  ;;  %vm3066_vm1 = vmand %vm3064_vm14, %vm3065_vm15  ;;  %vm3442_vm6 = vsmask.f32 7954 }
 0x10a   :  { %vm11366_vm3 = vmor %vm3066_vm1, %vm11328_vm0  ;;  %vm8460_vm11 = vcmask 1045509   ;;  %vm8468_vm14 = vcmask 1043459   ;;  %vm8470_vm15 = vcmask 1047559  }
 0x10b   :  { %vm3443_vm9 = vmand %vm3441_vm5, %vm3442_vm6 }
 0x10c   :  { %1687 = vmatmul.mubr.bf16.gmra.mrb[28].mxu0 %v1413_v56  ;;  %v8574_v56 = vcombine.low %v9769_v10, %v9770_v63  ;;  %v14236_v10 = vcombine.low %v10729_v13, %v10735_v7  ;;  %v8576_v63 = vcombine.low %v9773_v57, %v9774_v29  ;;  %v9775_v13 = vld [vmem:[#allocation2 + $0x50] sm:$0xf]  ;;  %v9776_v7 = vld [vmem:[#allocation2 + $0x58] sm:$0xf]  ;;  %v9778_v57 = vld [vmem:[#allocation2 + $0x68] sm:$0xf] }
 0x10d   :  { %8693 = vmatprep.mubr.msk.bf16.mxu0 %vm854_vm12, %v14233_v28  ;;  %v9483_v28 = vld [vmem:[#allocation4 + $0x1a0] ss:$8 sps:$4 sm:$0xff]   ;;  %vm11729_vm2 = vmor %vm3443_vm9, %vm11711_vm7 }
 0x10e   :  { %v861_v44 = vsel %vm854_vm12, %v8574_v56, %v817_v18  ;;  %v9494_v56 = vld [vmem:[#allocation4 + $0x1d0] ss:$8 sps:$4 sm:$0xff]  }
 0x114   :  { %1874 = vmatmul.mubr.bf16.vlgmr.msra.gmra.mrb[0].mxu0 %v857_v5  ;;  %v821_v18 = vpop.permute.xlu1 %820 }
 0x115   :  { %2629 = vmatpush1.bf16.msra.mxu0 %v9476_v3  ;;  %8694 = vmatprep.mubr.msk.bf16.mxu0 %vm854_vm12, %v14234_v37  ;;  %v9772_v3 = vld [vmem:[#allocation2 + $0x28] sm:$0xf] }
 0x116   :  { %2630 = vmatprep.subr.bf16.mxu0 %v9481_v17  ;;  %v8575_v5 = vcombine.low %v9771_v31, %v9772_v3  ;;  %v819_v17 = vpop.permute.xlu0 %818  ;;  %v8577_v31 = vcombine.low %v9775_v13, %v9776_v7  ;;  %v9501_v3 = vld [vmem:[#allocation4 + $0x1f0] ss:$8 sps:$4 sm:$0xff]  }
 0x118   :  { %v865_v37 = vsel %vm854_vm12, %v8575_v5, %v819_v17  ;;  %v9507_v17 = vld [vmem:[#allocation4 + $0x204] ss:$8 sps:$4 sm:$0xff]  }
 0x119   :  { %2631 = vmatpush1.bf16.msra.mxu0 %v9479_v45  ;;  %v9490_v45 = vld [vmem:[#allocation4 + $0x1c0] ss:$8 sps:$4 sm:$0xff]  }
 0x11a   :  { %2632 = vmatprep.subr.bf16.mxu0 %v9485_v22  ;;  %v9496_v22 = vld [vmem:[#allocation4 + $0x1d4] ss:$8 sps:$4 sm:$0xff]   ;;  %v823_v5 = vpop.permute.xlu0 %822 }
 0x11c   :  { %1884 = vmatmul.mubr.bf16.gmra.mrb[4].mxu0 %v861_v44  ;;  %v9497_v44 = vld [vmem:[#allocation4 + $0x1e0] ss:$8 sps:$4 sm:$0xff]  }
 0x11d   :  { %2633 = vmatpush1.bf16.msra.mxu0 %v9483_v28  ;;  %8695 = vmatprep.mubr.msk.bf16.mxu0 %vm854_vm12, %v14235_v2  ;;  %v9499_v28 = vld [vmem:[#allocation4 + $0x1e4] ss:$8 sps:$4 sm:$0xff]  }
 0x11e   :  { %2634 = vmatprep.subr.bf16.mxu0 %v9488_v41  ;;  %v869_v41 = vsel %vm854_vm12, %v8576_v63, %v821_v18  ;;  %v9508_v63 = vld [vmem:[#allocation4 + $0x210] ss:$8 sps:$4 sm:$0xff]   ;;  %v9514_v18 = vld [vmem:[#allocation4 + $0x224] ss:$8 sps:$4 sm:$0xff]  }
 0x121   :  { %2635 = vmatpush1.bf16.msra.mxu0 %v9486_v34  ;;  %v9503_v34 = vld [vmem:[#allocation4 + $0x1f4] ss:$8 sps:$4 sm:$0xff]  }
 0x122   :  { %2636 = vmatprep.subr.bf16.mxu0 %v9492_v47  ;;  %v14237_v47 = vld [vmem:[#allocation11_spill] sm:$0xff]  ;;  %v827_v13 = vpop.permute.xlu0 %826 }
 0x123   :  { %v14238_v2 = vcombine.low %v10744_v19, %v14237_v47  ;;  %v14239_v19 = vcombine.low %v10760_v26, %v10777_v15  ;;  %v14240_v15 = vcombine.low %v10785_v50, %v10791_v53  ;;  %v9779_v26 = vld [vmem:[#allocation2 + $0x70] sm:$0xf]  ;;  %v9782_v50 = vld [vmem:[#allocation2 + $0x88] sm:$0xf] }
 0x124   :  { %1894 = vmatmul.mubr.bf16.gmra.mrb[8].mxu0 %v865_v37  ;;  %v873_v37 = vsel %vm854_vm12, %v8577_v31, %v823_v5  ;;  %v14241_v31 = vcombine.low %v10797_v4, %v10806_v9  ;;  %v14243_v9 = vcombine.low %v10832_v0, %v10838_v24 }
 0x125   :  { %2637 = vmatpush1.bf16.msra.mxu0 %v9490_v45  ;;  %8696 = vmatprep.mubr.msk.bf16.mxu0 %vm854_vm12, %v14236_v10  ;;  %v9505_v45 = vld [vmem:[#allocation4 + $0x200] ss:$8 sps:$4 sm:$0xff]  }
 0x126   :  { %2638 = vmatprep.subr.bf16.mxu0 %v9496_v22  ;;  %v9510_v22 = vld [vmem:[#allocation4 + $0x214] ss:$8 sps:$4 sm:$0xff]   ;;  %v9777_v10 = vld [vmem:[#allocation2 + $0x60] sm:$0xf] }
 0x127   :  { %v8578_v29 = vcombine.low %v9777_v10, %v9778_v57 }
 0x129   :  { %2639 = vmatpush1.bf16.msra.mxu0 %v9494_v56  ;;  %v825_v56 = vpop.permute.xlu1 %824 }
 0x12a   :  { %2640 = vmatprep.subr.bf16.mxu0 %v9499_v28  ;;  %v877_v28 = vsel %vm854_vm12, %v8578_v29, %v825_v56  ;;  %v14244_v29 = vcombine.low %v14206_v35, %v14205_v20  ;;  %v14246_v35 = vcombine.low %v14215_v42, %v14214_v43 }
 0x12c   :  { %1904 = vmatmul.mubr.bf16.gmra.mrb[12].mxu0 %v869_v41  ;;  %v9512_v41 = vld [vmem:[#allocation4 + $0x220] ss:$8 sps:$4 sm:$0xff]  }
 0x12d   :  { %8697 = vmatprep.mubr.msk.bf16.mxu0 %vm854_vm12, %v14238_v2  ;;  %2641 = vmatpush1.bf16.msra.mxu0 %v9497_v44  ;;  %v9518_v44 = vld [vmem:[#allocation4 + $0x234] ss:$8 sps:$4 sm:$0xff]   ;;  %v9516_v2 = vld [vmem:[#allocation4 + $0x230] ss:$8 sps:$4 sm:$0xff]   ;;  %v829_v5 = vpop.permute.xlu1 %828 }
 0x12e   :  { %2642 = vmatprep.subr.bf16.mxu0 %v9503_v34  ;;  %v9780_v34 = vld [vmem:[#allocation2 + $0x78] sm:$0xf] }
 0x12f   :  { %v8579_v47 = vcombine.low %v9779_v26, %v9780_v34  ;;  %v2388_v10 = vpop.permute.xlu0 %2387  ;;  %v9532_v26 = vld [vmem:[#allocation6 + $0x104] ss:$8 sps:$4 sm:$0xff]   ;;  %v9530_v34 = vld [vmem:[#allocation6 + $0x100] ss:$8 sps:$4 sm:$0xff]  }
 0x131   :  { %2643 = vmatpush1.bf16.msra.mxu0 %v9501_v3  ;;  %v881_v7 = vsel %vm854_vm12, %v8579_v47, %v827_v13  ;;  %v9781_v3 = vld [vmem:[#allocation2 + $0x80] sm:$0xf]  ;;  %v11091_v47 = vld [vmem:[#allocation6 + $0x14] ss:$8 sps:$4 sm:$0xff]   ;;  %v11095_v13 = vld [vmem:[#allocation6 + $0x10] ss:$8 sps:$4 sm:$0xff]  }
 0x132   :  { %2644 = vmatprep.subr.bf16.mxu0 %v9507_v17  ;;  %v8580_v53 = vcombine.low %v9781_v3, %v9782_v50  ;;  %v9536_v50 = vld [vmem:[#allocation6 + $0x110] ss:$8 sps:$4 sm:$0xff]  }
 0x134   :  { %1914 = vmatmul.mubr.bf16.gmra.mrb[16].mxu0 %v873_v37  ;;  %v885_v17 = vsel %vm854_vm12, %v8580_v53, %v829_v5  ;;  %v9783_v37 = vld [vmem:[#allocation2 + $0x10] sm:$0xf] }
 0x135   :  { %8698 = vmatprep.mubr.msk.bf16.mxu0 %vm854_vm12, %v14239_v19  ;;  %2645 = vmatpush1.bf16.msra.mxu0 %v9505_v45  ;;  %v9784_v45 = vld [vmem:[#allocation2 + $0x18] sm:$0xf]  ;;  %v14242_v19 = vcombine.low %v10818_v33, %v10826_v48  ;;  %v14245_v48 = vcombine.low %v14211_v32, %v14210_v54 }
 0x136   :  { %2646 = vmatprep.subr.bf16.mxu0 %v9510_v22  ;;  %v8717_v22 = vcombine.low %v9783_v37, %v9784_v45  ;;  %v2390_v57 = vpop.permute.xlu1 %2389  ;;  %v11108_v45 = vld [vmem:[#allocation6 + $0x24] ss:$8 sps:$4 sm:$0xff]  }
 0x138   :  { %v2429_v4 = vsel %vm854_vm12, %v8717_v22, %v2388_v10  ;;  %v9544_v10 = vld [vmem:[#allocation6 + $0x124] ss:$8 sps:$4 sm:$0xff]  }
 0x139   :  { %2647 = vmatpush1.bf16.msra.mxu0 %v9508_v63  ;;  %v2433_v63 = vsel %vm854_vm12, %v14244_v29, %v2390_v57  ;;  %v11119_v29 = vld [vmem:[#allocation6 + $0x30] ss:$8 sps:$4 sm:$0xff]  }
 0x13a   :  { %2648 = vmatprep.subr.bf16.mxu0 %v9514_v18 }
 0x13c   :  { %1924 = vmatmul.mubr.bf16.gmra.mrb[20].mxu0 %v877_v28  ;;  %v2392_v33 = vpop.permute.xlu0 %2391 }
 0x13d   :  { %8699 = vmatprep.mubr.msk.bf16.mxu0 %vm854_vm12, %v14240_v15  ;;  %2649 = vmatpush1.bf16.msra.mxu0 %v9512_v41  ;;  %v2437_v0 = vsel %vm854_vm12, %v14245_v48, %v2392_v33  ;;  %v11084_v41 = vld [vmem:[#allocation6 + $0x4] ss:$8 sps:$4 sm:$0xff]   ;;  %v11087_v15 = vld [vmem:[#allocation6] ss:$8 sps:$4 sm:$0xff]  }
 0x13e   :  { %2650 = vmatprep.subr.bf16.mxu0 %v9518_v44  ;;  %9077 = vmatprep.subr.bf16.mxu1 %v11084_v41 }
 0x13f   :  { %9093 = vmatpush1.bf16.msra.mxu1 %v11087_v15 }
 0x140   :  { %9078 = vmatprep.subr.bf16.mxu1 %v11091_v47 }
 0x141   :  { %2651 = vmatpush1.bf16.msra.mxu0 %v9516_v2 }
 0x142   :  { %v2394_v20 = vpop.permute.xlu1 %2393  ;;  %4396 = vmatprep.subr.bf16.mxu0 %v9532_v26  ;;  %v11163_v26 = vld [vmem:[#allocation6 + $0x74] ss:$8 sps:$4 sm:$0xff]  }
 0x143   :  { %v2441_v24 = vsel %vm854_vm12, %v14246_v35, %v2394_v20  ;;  %9094 = vmatpush1.bf16.msra.mxu1 %v11095_v13  ;;  %14251 = vst [vmem:[#allocation12_spill] sm:$0xff] %v11163_v26 }
 0x144   :  { %1934 = vmatmul.mubr.bf16.gmra.mrb[24].mxu0 %v881_v7  ;;  %v9538_v7 = vld [vmem:[#allocation6 + $0x114] ss:$8 sps:$4 sm:$0xff]   ;;  %9079 = vmatprep.subr.bf16.mxu1 %v11108_v45 }
 0x145   :  { %8700 = vmatprep.mubr.msk.bf16.mxu0 %vm854_vm12, %v14241_v31 }
 0x14a   :  { %v2396_v54 = vpop.permute.xlu0 %2395 }
 0x14b   :  { %v2445_v32 = vsel %vm854_vm12, %v8721_v12, %v2396_v54 }
 0x14c   :  { %1944 = vmatmul.mubr.bf16.gmra.mrb[28].mxu0 %v885_v17 }
 0x14d   :  { %8765 = vmatprep.mubr.msk.bf16.mxu0 %vm854_vm12, %v14242_v19  ;;  %v11111_v19 = vld [vmem:[#allocation6 + $0x20] ss:$8 sps:$4 sm:$0xff]  }
 0x14e   :  { %9095 = vmatpush1.bf16.msra.mxu1 %v11111_v19 }
 0x151   :  { %v2398_v42 = vpop.permute.xlu1 %2397 }
 0x152   :  { %v2449_v43 = vsel %vm854_vm12, %v8722_v59, %v2398_v42  ;;  %v14250_v59 = vcombine.low %v14229_v46, %v10637_v52 }
 0x154   :  { %2661 = vmatmul.mubr.bf16.vlgmr.msra.gmra.mrb[0].mxu0 %v2429_v4  ;;  %v9542_v4 = vld [vmem:[#allocation6 + $0x120] ss:$8 sps:$4 sm:$0xff]  }
 0x155   :  { %8766 = vmatprep.mubr.msk.bf16.mxu0 %vm854_vm12, %v14243_v9  ;;  %4397 = vmatpush1.bf16.msra.mxu0 %v9530_v34  ;;  %v11115_v9 = vld [vmem:[#allocation6 + $0x34] ss:$8 sps:$4 sm:$0xff]  }
 0x156   :  { %4398 = vmatprep.subr.bf16.mxu0 %v9538_v7  ;;  %9080 = vmatprep.subr.bf16.mxu1 %v11115_v9  ;;  %v11167_v7 = vld [vmem:[#allocation6 + $0x70] ss:$8 sps:$4 sm:$0xff]  }
 0x157   :  { %9096 = vmatpush1.bf16.msra.mxu1 %v11119_v29  ;;  %14252 = vst [vmem:[#allocation13_spill] sm:$0xff] %v11167_v7 }
 0x159   :  { %v2400_v14 = vpop.permute.xlu0 %2399  ;;  %4399 = vmatpush1.bf16.msra.mxu0 %v9536_v50 }
 0x15a   :  { %v2453_v6 = vsel %vm854_vm12, %v14248_v39, %v2400_v14  ;;  %4400 = vmatprep.subr.bf16.mxu0 %v9544_v10  ;;  %v9554_v14 = vld [vmem:[#allocation6 + $0x140] ss:$8 sps:$4 sm:$0xff]   ;;  %v11139_v39 = vld [vmem:[#allocation6 + $0x54] ss:$8 sps:$4 sm:$0xff]  }
 0x15c   :  { %2671 = vmatmul.mubr.bf16.gmra.mrb[4].mxu0 %v2433_v63  ;;  %v9550_v63 = vld [vmem:[#allocation6 + $0x134] ss:$8 sps:$4 sm:$0xff]  }
 0x15d   :  { %8767 = vmatprep.mubr.msk.bf16.mxu0 %vm854_vm12, %v8735_v23  ;;  %v14249_v23 = vcombine.low %v10939_v21, %v10943_v8  ;;  %4401 = vmatpush1.bf16.msra.mxu0 %v9542_v4 }
 0x15e   :  { %4402 = vmatprep.subr.bf16.mxu0 %v9550_v63 }
 0x162   :  { %v2402_v12 = vpop.permute.xlu1 %2401 }
 0x163   :  { %v2457_v38 = vsel %vm854_vm12, %v14250_v59, %v2402_v12  ;;  %v9562_v12 = vld [vmem:[#allocation6 + $0x154] ss:$8 sps:$4 sm:$0xff]  }
 0x164   :  { %2681 = vmatmul.mubr.bf16.gmra.mrb[8].mxu0 %v2437_v0  ;;  %v9548_v0 = vld [vmem:[#allocation6 + $0x130] ss:$8 sps:$4 sm:$0xff]  }
 0x165   :  { %8768 = vmatprep.mubr.msk.bf16.mxu0 %vm854_vm12, %v8736_v36  ;;  %4403 = vmatpush1.bf16.msra.mxu0 %v9548_v0 }
 0x16c   :  { %2691 = vmatmul.mubr.bf16.gmra.mrb[12].mxu0 %v2441_v24 }
 0x16d   :  { %8769 = vmatprep.mubr.msk.bf16.mxu0 %vm854_vm12, %v8737_v11 }
 0x174   :  { %2701 = vmatmul.mubr.bf16.gmra.mrb[16].mxu0 %v2445_v32  ;;  %v11132_v32 = vld [vmem:[#allocation6 + $0x44] ss:$8 sps:$4 sm:$0xff]  }
 0x175   :  { %8770 = vmatprep.mubr.msk.bf16.mxu0 %vm854_vm12, %v8738_v1  ;;  %9081 = vmatprep.subr.bf16.mxu1 %v11132_v32 }
 0x17c   :  { %2711 = vmatmul.mubr.bf16.gmra.mrb[20].mxu0 %v2449_v43  ;;  %v11135_v43 = vld [vmem:[#allocation6 + $0x40] ss:$8 sps:$4 sm:$0xff]  }
 0x17d   :  { %8771 = vmatprep.mubr.msk.bf16.mxu0 %vm854_vm12, %v14247_v40  ;;  %v9556_v40 = vld [vmem:[#allocation6 + $0x144] ss:$8 sps:$4 sm:$0xff]   ;;  %9097 = vmatpush1.bf16.msra.mxu1 %v11135_v43 }
 0x17e   :  { %4404 = vmatprep.subr.bf16.mxu0 %v9556_v40  ;;  %9082 = vmatprep.subr.bf16.mxu1 %v11139_v39  ;;  %v11187_v40 = vld [vmem:[#allocation6 + $0x94] ss:$8 sps:$4 sm:$0xff]  }
 0x17f   :  { %4405 = vmatpush1.bf16.msra.mxu0 %v9554_v14  ;;  %14255 = vst [vmem:[#allocation16_spill] sm:$0xff] %v11187_v40 }
 0x180   :  { %4406 = vmatprep.subr.bf16.mxu0 %v9562_v12  ;;  %v11191_v12 = vld [vmem:[#allocation6 + $0x90] ss:$8 sps:$4 sm:$0xff]  }
 0x181   :  { %14256 = vst [vmem:[#allocation17_spill] sm:$0xff] %v11191_v12 }
 0x184   :  { %2721 = vmatmul.mubr.bf16.gmra.mrb[24].mxu0 %v2453_v6 }
 0x185   :  { %8772 = vmatprep.mubr.msk.bf16.mxu0 %vm854_vm12, %v14249_v23  ;;  %v11143_v23 = vld [vmem:[#allocation6 + $0x50] ss:$8 sps:$4 sm:$0xff]   ;;  %vm8463_vm12 = vcmask 1042434  }
 0x186   :  { %9098 = vmatpush1.bf16.msra.mxu1 %v11143_v23 }
 0x18c   :  { %2731 = vmatmul.mubr.bf16.gmra.mrb[28].mxu0 %v2457_v38 }
 0x227   :  { %v11049_v27 = vpop.f32.mrb[0].mxu0 }
 0x228   :  { %v11051_v16 = vpop.f32.mrb[1].mxu0 }
 0x229   :  { %v11053_v55 = vpop.f32.mrb[2].mxu0 }
 0x22a   :  { %v2773_v60 = vadd.f32 %v11053_v55, %v11049_v27  ;;  %v11057_v58 = vpop.f32.mrb[3].mxu0 }
 0x22b   :  { %v2794_v36 = vadd.f32 %v11057_v58, %v11051_v16 }
 0x22f   :  { %v11061_v61 = vpop.f32.mrb[4].mxu0 }
 0x230   :  { %v2774_v52 = vadd.f32 %v2773_v60, %v11061_v61  ;;  %v11064_v51 = vpop.f32.mrb[5].mxu0  ;;  %v9560_v60 = vld [vmem:[#allocation6 + $0x150] ss:$8 sps:$4 sm:$0xff]  }
 0x231   :  { %v2795_v49 = vadd.f32 %v2794_v36, %v11064_v51  ;;  %v11067_v11 = vpop.f32.mrb[6].mxu0  ;;  %4407 = vmatpush1.bf16.msra.mxu0 %v9560_v60 }
 0x232   :  { %v2775_v30 = vadd.f32 %v2774_v52, %v11067_v11  ;;  %v11070_v1 = vpop.f32.mrb[7].mxu0 }
 0x233   :  { %v2796_v25 = vadd.f32 %v2795_v49, %v11070_v1 }
 0x237   :  { %v11073_v62 = vpop.f32.mrb[8].mxu0 }
 0x238   :  { %v2776_v46 = vadd.f32 %v2775_v30, %v11073_v62  ;;  %v11076_v21 = vpop.f32.mrb[9].mxu0 }
 0x239   :  { %v2797_v8 = vadd.f32 %v2796_v25, %v11076_v21  ;;  %v11079_v56 = vpop.f32.mrb[10].mxu0  ;;  %v11156_v25 = vld [vmem:[#allocation6 + $0x64] ss:$8 sps:$4 sm:$0xff]  }
 0x23a   :  { %v2777_v18 = vadd.f32 %v2776_v46, %v11079_v56  ;;  %v11082_v28 = vpop.f32.mrb[11].mxu0  ;;  %9083 = vmatprep.subr.bf16.mxu1 %v11156_v25 }
 0x23b   :  { %v2798_v44 = vadd.f32 %v2797_v8, %v11082_v28  ;;  %v11159_v8 = vld [vmem:[#allocation6 + $0x60] ss:$8 sps:$4 sm:$0xff]  }
 0x23c   :  { %9099 = vmatpush1.bf16.msra.mxu1 %v11159_v8 }
 0x23d   :  { %9084 = vmatprep.subr.bf16.mxu1 %v11163_v26 }
 0x23f   :  { %v11093_v2 = vpop.f32.mrb[12].mxu0 }
 0x240   :  { %v2778_v31 = vadd.f32 %v2777_v18, %v11093_v2  ;;  %v11098_v3 = vpop.f32.mrb[13].mxu0  ;;  %v9568_v18 = vld [vmem:[#allocation6 + $0x164] ss:$8 sps:$4 sm:$0xff]   ;;  %9100 = vmatpush1.bf16.msra.mxu1 %v11167_v7 }
 0x241   :  { %v2799_v53 = vadd.f32 %v2798_v44, %v11098_v3  ;;  %v11102_v5 = vpop.f32.mrb[14].mxu0  ;;  %v9566_v44 = vld [vmem:[#allocation6 + $0x160] ss:$8 sps:$4 sm:$0xff]   ;;  %4408 = vmatprep.subr.bf16.mxu0 %v9568_v18  ;;  %v9604_v7 = vld [vmem:[#allocation6 + $0x1c4] ss:$8 sps:$4 sm:$0xff]  }
 0x242   :  { %v2779_v17 = vadd.f32 %v2778_v31, %v11102_v5  ;;  %v11106_v37 = vpop.f32.mrb[15].mxu0  ;;  %4409 = vmatpush1.bf16.msra.mxu0 %v9566_v44  ;;  %v9574_v31 = vld [vmem:[#allocation6 + $0x174] ss:$8 sps:$4 sm:$0xff]  }
 0x243   :  { %v2800_v22 = vadd.f32 %v2799_v53, %v11106_v37  ;;  %4410 = vmatprep.subr.bf16.mxu0 %v9574_v31 }
 0x247   :  { %v11117_v57 = vpop.f32.mrb[16].mxu0 }
 0x248   :  { %v2780_v33 = vadd.f32 %v2779_v17, %v11117_v57  ;;  %v11122_v48 = vpop.f32.mrb[17].mxu0  ;;  %v9572_v17 = vld [vmem:[#allocation6 + $0x170] ss:$8 sps:$4 sm:$0xff]  }
 0x249   :  { %v2801_v20 = vadd.f32 %v2800_v22, %v11122_v48  ;;  %v11126_v35 = vpop.f32.mrb[18].mxu0  ;;  %4411 = vmatpush1.bf16.msra.mxu0 %v9572_v17 }
 0x24a   :  { %v2781_v24 = vadd.f32 %v2780_v33, %v11126_v35  ;;  %v11130_v54 = vpop.f32.mrb[19].mxu0  ;;  %v11180_v33 = vld [vmem:[#allocation6 + $0x84] ss:$8 sps:$4 sm:$0xff]  }
 0x24b   :  { %v2802_v42 = vadd.f32 %v2801_v20, %v11130_v54  ;;  %14253 = vst [vmem:[#allocation14_spill] sm:$0xff] %v11180_v33  ;;  %v11183_v20 = vld [vmem:[#allocation6 + $0x80] ss:$8 sps:$4 sm:$0xff]   ;;  %9085 = vmatprep.subr.bf16.mxu1 %v11180_v33 }
 0x24c   :  { %14254 = vst [vmem:[#allocation15_spill] sm:$0xff] %v11183_v20  ;;  %9101 = vmatpush1.bf16.msra.mxu1 %v11183_v20  ;;  %v9596_v20 = vld [vmem:[#allocation6 + $0x1b0] ss:$8 sps:$4 sm:$0xff]  }
 0x24d   :  { %9086 = vmatprep.subr.bf16.mxu1 %v11187_v40  ;;  %v9598_v40 = vld [vmem:[#allocation6 + $0x1b4] ss:$8 sps:$4 sm:$0xff]  }
 0x24f   :  { %v11141_v6 = vpop.f32.mrb[20].mxu0 }
 0x250   :  { %v2782_v59 = vadd.f32 %v2781_v24, %v11141_v6  ;;  %v11146_v38 = vpop.f32.mrb[21].mxu0  ;;  %v9580_v24 = vld [vmem:[#allocation6 + $0x184] ss:$8 sps:$4 sm:$0xff]   ;;  %9102 = vmatpush1.bf16.msra.mxu1 %v11191_v12  ;;  %v11213_v12 = vld [vmem:[#allocation6 + $0xb0] ss:$8 sps:$4 sm:$0xff]  }
 0x251   :  { %v2803_v36 = vadd.f32 %v2802_v42, %v11146_v38  ;;  %v11150_v52 = vpop.f32.mrb[22].mxu0  ;;  %v9578_v42 = vld [vmem:[#allocation6 + $0x180] ss:$8 sps:$4 sm:$0xff]   ;;  %4412 = vmatprep.subr.bf16.mxu0 %v9580_v24  ;;  %14260 = vst [vmem:[#allocation22_spill] sm:$0xff] %v11213_v12 }
 0x252   :  { %v2783_v49 = vadd.f32 %v2782_v59, %v11150_v52  ;;  %v11154_v30 = vpop.f32.mrb[23].mxu0  ;;  %4413 = vmatpush1.bf16.msra.mxu0 %v9578_v42  ;;  %v9586_v59 = vld [vmem:[#allocation6 + $0x194] ss:$8 sps:$4 sm:$0xff]  }
 0x253   :  { %v2804_v46 = vadd.f32 %v2803_v36, %v11154_v30  ;;  %4414 = vmatprep.subr.bf16.mxu0 %v9586_v59 }
 0x257   :  { %v11165_v34 = vpop.f32.mrb[24].mxu0 }
 0x258   :  { %v2784_v50 = vadd.f32 %v2783_v49, %v11165_v34  ;;  %v11170_v53 = vpop.f32.mrb[25].mxu0  ;;  %v9584_v49 = vld [vmem:[#allocation6 + $0x190] ss:$8 sps:$4 sm:$0xff]  }
 0x259   :  { %v2805_v22 = vadd.f32 %v2804_v46, %v11170_v53  ;;  %v11174_v10 = vpop.f32.mrb[26].mxu0  ;;  %4415 = vmatpush1.bf16.msra.mxu0 %v9584_v49 }
 0x25a   :  { %v2785_v4 = vadd.f32 %v2784_v50, %v11174_v10  ;;  %v11178_v63 = vpop.f32.mrb[27].mxu0  ;;  %v11204_v50 = vld [vmem:[#allocation6 + $0xa4] ss:$8 sps:$4 sm:$0xff]  }
 0x25b   :  { %v2806_v0 = vadd.f32 %v2805_v22, %v11178_v63  ;;  %14257 = vst [vmem:[#allocation18_spill] sm:$0xff] %v11204_v50  ;;  %v11207_v22 = vld [vmem:[#allocation6 + $0xa0] ss:$8 sps:$4 sm:$0xff]   ;;  %9087 = vmatprep.subr.bf16.mxu1 %v11204_v50 }
 0x25c   :  { %14258 = vst [vmem:[#allocation19_spill] sm:$0xff] %v11207_v22  ;;  %9103 = vmatpush1.bf16.msra.mxu1 %v11207_v22  ;;  %v11217_v22 = vld [vmem:[#allocation6 + $0xc4] ss:$8 sps:$4 sm:$0xff]  }
 0x25d   :  { %14261 = vst [vmem:[#allocation21_spill] sm:$0xff] %v11217_v22 }
 0x25f   :  { %v11189_v14 = vpop.f32.mrb[28].mxu0 }
 0x260   :  { %v2786_v60 = vadd.f32 %v2785_v4, %v11189_v14  ;;  %v11194_v36 = vpop.f32.mrb[29].mxu0  ;;  %v9592_v4 = vld [vmem:[#allocation6 + $0x1a4] ss:$8 sps:$4 sm:$0xff]  }
 0x261   :  { %v2807_v46 = vadd.f32 %v2806_v0, %v11194_v36  ;;  %v11198_v18 = vpop.f32.mrb[30].mxu0  ;;  %v9590_v0 = vld [vmem:[#allocation6 + $0x1a0] ss:$8 sps:$4 sm:$0xff]   ;;  %4416 = vmatprep.subr.bf16.mxu0 %v9592_v4 }
 0x262   :  { %v2787_v44 = vadd.f32 %v2786_v60, %v11198_v18  ;;  %v11202_v31 = vpop.f32.mrb[31].mxu0  ;;  %4417 = vmatpush1.bf16.msra.mxu0 %v9590_v0  ;;  %v11211_v60 = vld [vmem:[#allocation6 + $0xb4] ss:$8 sps:$4 sm:$0xff]  }
 0x263   :  { %v2808_v17 = vadd.f32 %v2807_v46, %v11202_v31  ;;  %14259 = vst [vmem:[#allocation20_spill] sm:$0xff] %v11211_v60  ;;  %9088 = vmatprep.subr.bf16.mxu1 %v11211_v60  ;;  %4418 = vmatprep.subr.bf16.mxu0 %v9598_v40  ;;  %v9602_v60 = vld [vmem:[#allocation6 + $0x1c0] ss:$8 sps:$4 sm:$0xff]  }
 0x264   :  { %v2788_v24 = vrot.slane %v2787_v44, 4  ;;  %9104 = vmatpush1.bf16.msra.mxu1 %v11213_v12  ;;  %v11223_v12 = vld [vmem:[#allocation6 + $0xd4] ss:$8 sps:$4 sm:$0xff]  }
 0x265   :  { %v2809_v42 = vrot.slane %v2808_v17, 4  ;;  %9089 = vmatprep.subr.bf16.mxu1 %v11217_v22  ;;  %14263 = vst [vmem:[#allocation23_spill] sm:$0xff] %v11223_v12 }
 0x266   :  { %v2789_v59 = vadd.f32 %v2788_v24, %v2787_v44  ;;  %4419 = vmatpush1.bf16.msra.mxu0 %v9596_v20 }
 0x267   :  { %v2810_v49 = vadd.f32 %v2809_v42, %v2808_v17  ;;  %v11220_v17 = vld [vmem:[#allocation6 + $0xc0] ss:$8 sps:$4 sm:$0xff]   ;;  %4420 = vmatprep.subr.bf16.mxu0 %v9604_v7 }
 0x268   :  { %v2790_v46 = vrot.slane %v2789_v59, 2  ;;  %14262 = vst [vmem:[#allocation24_spill] sm:$0xff] %v11220_v17  ;;  %9105 = vmatpush1.bf16.msra.mxu1 %v11220_v17 }
 0x269   :  { %v2811_v33 = vrot.slane %v2810_v49, 2  ;;  %9090 = vmatprep.subr.bf16.mxu1 %v11223_v12 }
 0x26a   :  { %v2791_v50 = vadd.f32 %v2790_v46, %v2789_v59  ;;  %4421 = vmatpush1.bf16.msra.mxu0 %v9602_v60 }
 0x26b   :  { %v2812_v44 = vadd.f32 %v2811_v33, %v2810_v49  ;;  %v9610_v49 = vld [vmem:[#allocation6 + $0x1d4] ss:$8 sps:$4 sm:$0xff]  }
 0x26c   :  { %v2792_v4 = vrot.slane %v2791_v50, 1  ;;  %4422 = vmatprep.subr.bf16.mxu0 %v9610_v49 }
 0x26d   :  { %v2813_v24 = vrot.slane %v2812_v44, 1 }
 0x26e   :  { %v2793_v0 = vadd.f32 %v2792_v4, %v2791_v50  ;;  %v11237_v50 = vld [vmem:[#allocation6 + $0xd0] ss:$8 sps:$4 sm:$0xff]  }
 0x26f   :  { %v2814_v26 = vadd.f32 %v2813_v24, %v2812_v44  ;;  %14264 = vst [vmem:[#allocation26_spill] sm:$0xff] %v11237_v50  ;;  %9106 = vmatpush1.bf16.msra.mxu1 %v11237_v50  ;;  %v9614_v24 = vld [vmem:[#allocation6 + $0x1e0] ss:$8 sps:$4 sm:$0xff]   ;;  %v9622_v50 = vld [vmem:[#allocation6 + $0x1f4] ss:$8 sps:$4 sm:$0xff]  }
 0x270   :  { %v2816_v42 = vmul.f32 0.0078125, %v2793_v0 }
 0x271   :  { %v2817_v4 = vmul.f32 0.0078125, %v2814_v26  ;;  %v11293_v26 = vld [vmem:[#allocation6 + $0xf0] ss:$8 sps:$4 sm:$0xff]  }
 0x272   :  { %v11226_v20 = vsub.f32 %v11049_v27, %v2816_v42  ;;  %v11229_v33 = vsub.f32 %v11053_v55, %v2816_v42  ;;  %v11232_v40 = vsub.f32 %v11061_v61, %v2816_v42  ;;  %v11235_v59 = vsub.f32 %v11067_v11, %v2816_v42  ;;  %v9608_v61 = vld [vmem:[#allocation6 + $0x1d0] ss:$8 sps:$4 sm:$0xff]   ;;  %14270 = vst [vmem:[#allocation31_spill] sm:$0xff] %v11293_v26 }
 0x273   :  { %v11240_v46 = vsub.f32 %v11073_v62, %v2816_v42  ;;  %v11243_v44 = vsub.f32 %v11079_v56, %v2816_v42  ;;  %v11246_v27 = vsub.f32 %v11093_v2, %v2816_v42  ;;  %v11249_v55 = vsub.f32 %v11102_v5, %v2816_v42  ;;  %v11264_v2 = vld [vmem:[#allocation6 + $0xe4] ss:$8 sps:$4 sm:$0xff]   ;;  %4423 = vmatpush1.bf16.msra.mxu0 %v9608_v61 }
 0x274   :  { %v11252_v11 = vsub.f32 %v11117_v57, %v2816_v42  ;;  %v11255_v7 = vsub.f32 %v11126_v35, %v2816_v42  ;;  %v11258_v62 = vsub.f32 %v11141_v6, %v2816_v42  ;;  %v11261_v56 = vsub.f32 %v11150_v52, %v2816_v42  ;;  %14267 = vst [vmem:[#allocation27_spill] sm:$0xff] %v11264_v2  ;;  %v11279_v6 = vld [vmem:[#allocation6 + $0xe0] ss:$8 sps:$4 sm:$0xff]  }
 0x275   :  { %14265 = vst [vmem:[#allocation25_spill] sm:$0xff] %v11249_v55  ;;  %v11267_v5 = vsub.f32 %v11165_v34, %v2816_v42  ;;  %v11270_v60 = vsub.f32 %v11174_v10, %v2816_v42  ;;  %v11273_v57 = vsub.f32 %v11189_v14, %v2816_v42  ;;  %v11276_v35 = vsub.f32 %v11198_v18, %v2816_v42  ;;  %v9616_v10 = vld [vmem:[#allocation6 + $0x1e4] ss:$8 sps:$4 sm:$0xff]   ;;  %v11286_v14 = vld [vmem:[#allocation6 + $0xf4] ss:$8 sps:$4 sm:$0xff]  }
 0x276   :  { %14266 = vst [vmem:[#allocation28_spill] sm:$0xff] %v11252_v11  ;;  %14268 = vst [vmem:[#allocation29_spill] sm:$0xff] %v11279_v6  ;;  %v2850_v52 = vmul.f32 %v11226_v20, %v11226_v20  ;;  %v2852_v34 = vmul.f32 %v11229_v33, %v11229_v33  ;;  %9091 = vmatprep.subr.bf16.mxu1 %v11264_v2  ;;  %v2854_v18 = vmul.f32 %v11232_v40, %v11232_v40 }
 0x277   :  { %14269 = vst [vmem:[#allocation30_spill] sm:$0xff] %v11286_v14  ;;  %v2856_v0 = vmul.f32 %v11235_v59, %v11235_v59  ;;  %9107 = vmatpush1.bf16.msra.mxu1 %v11279_v6  ;;  %v11296_v49 = vsub.f32 %v11051_v16, %v2817_v4  ;;  %v11299_v61 = vsub.f32 %v11057_v58, %v2817_v4  ;;  %v9620_v58 = vld [vmem:[#allocation6 + $0x1f0] ss:$8 sps:$4 sm:$0xff]  }
 0x278   :  { %v2882_v42 = vadd.f32 %v2852_v34, %v2850_v52  ;;  %v11302_v2 = vsub.f32 %v11064_v51, %v2817_v4  ;;  %4424 = vmatprep.subr.bf16.mxu0 %v9616_v10  ;;  %v11305_v12 = vsub.f32 %v11070_v1, %v2817_v4  ;;  %v11308_v17 = vsub.f32 %v11076_v21, %v2817_v4  ;;  %v9625_v21 = vld [vmem:[#allocation6 + $0x204] ss:$8 sps:$4 sm:$0xff]  }
 0x279   :  { %14271 = vst [vmem:[#allocation32_spill] sm:$0xff] %v11296_v49  ;;  %14272 = vst [vmem:[#allocation33_spill] sm:$0xff] %v11299_v61  ;;  %v11311_v6 = vsub.f32 %v11082_v28, %v2817_v4  ;;  %v11314_v16 = vsub.f32 %v11098_v3, %v2817_v4  ;;  %4425 = vmatpush1.bf16.msra.mxu0 %v9614_v24  ;;  %v11317_v51 = vsub.f32 %v11106_v37, %v2817_v4 }
 0x27a   :  { %14273 = vst [vmem:[#allocation11_spill] sm:$0xff] %v11302_v2  ;;  %14274 = vst [vmem:[#allocation34_spill] sm:$0xff] %v11305_v12  ;;  %v2883_v52 = vadd.f32 %v2882_v42, %v2854_v18  ;;  %v11320_v34 = vsub.f32 %v11122_v48, %v2817_v4  ;;  %v11323_v1 = vsub.f32 %v11130_v54, %v2817_v4  ;;  %9092 = vmatprep.subr.bf16.mxu1 %v11286_v14 }
 0x27b   :  { %v11333_v3 = vsub.f32 %v11146_v38, %v2817_v4  ;;  %v11336_v37 = vsub.f32 %v11154_v30, %v2817_v4  ;;  %v11339_v48 = vsub.f32 %v11170_v53, %v2817_v4  ;;  %v11342_v54 = vsub.f32 %v11178_v63, %v2817_v4  ;;  %9108 = vmatpush1.bf16.msra.mxu1 %v11293_v26 }
 0x27c   :  { %v2858_v10 = vmul.f32 %v11240_v46, %v11240_v46  ;;  %v2884_v24 = vadd.f32 %v2883_v52, %v2856_v0  ;;  %v11350_v38 = vsub.f32 %v11194_v36, %v2817_v4  ;;  %v11353_v30 = vsub.f32 %v11202_v31, %v2817_v4  ;;  %4426 = vmatprep.subr.bf16.mxu0 %v9622_v50  ;;  %v11361_v0 = vld [vmem:[#allocation3] sm:$0xff]  ;;  %v3068_v50 = vld [vmem:[#allocation3 + $0x10] sm:$0x11] }
 0x27d   :  { %v2851_v53 = vmul.f32 %v11296_v49, %v11296_v49  ;;  %v2853_v63 = vmul.f32 %v11299_v61, %v11299_v61  ;;  %4427 = vmatpush1.bf16.msra.mxu0 %v9620_v58  ;;  %v2860_v18 = vmul.f32 %v11243_v44, %v11243_v44  ;;  %5571 = vmatprep.subr.bf16.mxu1 %v9625_v21  ;;  %v3628_v36 = vshrl.u32 %v11361_v0, 16  ;;  %v3073_v21 = vld [vmem:[#allocation3 + $0x28] sm:$0x11]  ;;  %v3088_v61 = vld [vmem:[#allocation3 + $0x70] sm:$0x11] }
 0x27e   :  { %v2885_v42 = vadd.f32 %v2884_v24, %v2858_v10  ;;  %4949 = vmatprep.subr.bf16.mxu0 %v11084_v41  ;;  %v2862_v4 = vmul.f32 %v11246_v27, %v11246_v27  ;;  %v2864_v58 = vmul.f32 %v11249_v55, %v11249_v55  ;;  %v3078_v10 = vld [vmem:[#allocation3 + $0x40] sm:$0x11]  ;;  %v3083_v24 = vld [vmem:[#allocation3 + $0x58] sm:$0x11]  ;;  %v2866_v28 = vmul.f32 %v11252_v11, %v11252_v11 }
 0x27f   :  { %v2855_v26 = vmul.f32 %v11302_v2, %v11302_v2  ;;  %v2857_v14 = vmul.f32 %v11305_v12, %v11305_v12  ;;  %v2903_v41 = vadd.f32 %v2853_v63, %v2851_v53  ;;  %v3069_v22 = vsel %vm11366_vm3, 0, %v3068_v50  ;;  %v3093_v53 = vld [vmem:[#allocation3 + $0x88] sm:$0x11] }
 0x280   :  { %v2886_v52 = vadd.f32 %v2885_v42, %v2860_v18  ;;  %v3630_v55 = vrot.slane %v3628_v36, 4  ;;  %v3631_v18 = vshll.u32 %v11361_v0, 16  ;;  %3070 = vst [vmem:[#allocation3 + $0x10] sm:$0x11] %v3069_v22  ;;  %v3074_v11 = vsel %vm11366_vm3, 0, %v3073_v21 }
 0x281   :  { %v2904_v42 = vadd.f32 %v2903_v41, %v2855_v26  ;;  %v3079_v2 = vsel %vm11366_vm3, 0, %v3078_v10  ;;  %v3084_v12 = vsel %vm11366_vm3, 0, %v3083_v24  ;;  %3075 = vst [vmem:[#allocation3 + $0x28] sm:$0x11] %v3074_v11  ;;  %v3089_v36 = vsel %vm11366_vm3, 0, %v3088_v61 }
 0x282   :  { %v2887_v49 = vadd.f32 %v2886_v52, %v2862_v4  ;;  %v3633_v4 = vrot.slane %v3631_v18, 5  ;;  %3080 = vst [vmem:[#allocation3 + $0x40] sm:$0x11] %v3079_v2  ;;  %3085 = vst [vmem:[#allocation3 + $0x58] sm:$0x11] %v3084_v12  ;;  %v3094_v22 = vsel %vm11366_vm3, 0, %v3093_v53  ;;  %v2859_v26 = vmul.f32 %v11308_v17, %v11308_v17 }
 0x283   :  { %v2905_v50 = vadd.f32 %v2904_v42, %v2857_v14  ;;  %3090 = vst [vmem:[#allocation3 + $0x70] sm:$0x11] %v3089_v36  ;;  %3095 = vst [vmem:[#allocation3 + $0x88] sm:$0x11] %v3094_v22  ;;  %v2868_v52 = vmul.f32 %v11255_v7, %v11255_v7  ;;  %v2861_v12 = vmul.f32 %v11311_v6, %v11311_v6  ;;  %v3098_v21 = vld [vmem:[#allocation3 + $0xa0] sm:$0x11] }
 0x284   :  { %v2888_v63 = vadd.f32 %v2887_v49, %v2864_v58  ;;  %v3634_v58 = vor.u32 %v3633_v4, %v3630_v55  ;;  %v2870_v2 = vmul.f32 %v11258_v62, %v11258_v62  ;;  %v2863_v10 = vmul.f32 %v11314_v16, %v11314_v16 }
 0x285   :  { %v2906_v11 = vadd.f32 %v2905_v50, %v2859_v26  ;;  %v3099_v41 = vsel %vm11366_vm3, 0, %v3098_v21  ;;  %v2872_v55 = vmul.f32 %v11261_v56, %v11261_v56  ;;  %v2865_v42 = vmul.f32 %v11317_v51, %v11317_v51 }
 0x286   :  { %v2889_v49 = vadd.f32 %v2888_v63, %v2866_v28  ;;  %v11404_v24 = vrot.slane %v3634_v58, 4  ;;  %3100 = vst [vmem:[#allocation3 + $0xa0] sm:$0x11] %v3099_v41  ;;  %v2874_v36 = vmul.f32 %v11267_v5, %v11267_v5  ;;  %v2867_v26 = vmul.f32 %v11320_v34, %v11320_v34  ;;  %v3108_v41 = vld [vmem:[#allocation3 + $0xd0] sm:$0x11] }
 0x287   :  { %v2907_v14 = vadd.f32 %v2906_v11, %v2861_v12  ;;  %v3609_v18 = vld [vmem:[#allocation3 + $0x10] sm:$0x11]  ;;  %v3103_v12 = vld [vmem:[#allocation3 + $0xb8] sm:$0x11]  ;;  %v2876_v11 = vmul.f32 %v11270_v60, %v11270_v60  ;;  %v2869_v21 = vmul.f32 %v11323_v1, %v11323_v1 }
 0x288   :  { %v2890_v61 = vadd.f32 %v2889_v49, %v2868_v52  ;;  %v3647_v63 = vshll.u32 %v3609_v18, 16  ;;  %v11419_v49 = vsel %vm10053_vm8, %v11404_v24, %v3633_v4  ;;  %v3104_v18 = vsel %vm11366_vm3, 0, %v3103_v12 }
 0x289   :  { %v2908_v53 = vadd.f32 %v2907_v14, %v2863_v10  ;;  %3105 = vst [vmem:[#allocation3 + $0xb8] sm:$0x11] %v3104_v18  ;;  %v2875_v12 = vmul.f32 %v11339_v48, %v11339_v48  ;;  %v3128_v18 = vld [vmem:[#allocation3 + $0x130] sm:$0x11] }
 0x28a   :  { %v2891_v28 = vadd.f32 %v2890_v61, %v2870_v2  ;;  %v3649_v58 = vrot.slane %v3647_v63, 5  ;;  %v2878_v61 = vmul.f32 %v11273_v57, %v11273_v57  ;;  %v3109_v63 = vsel %vm11366_vm3, 0, %v3108_v41 }
 0x28b   :  { %v2909_v50 = vadd.f32 %v2908_v53, %v2865_v42  ;;  %v2871_v42 = vmul.f32 %v11333_v3, %v11333_v3  ;;  %3110 = vst [vmem:[#allocation3 + $0xd0] sm:$0x11] %v3109_v63 }
 0x28c   :  { %v2892_v22 = vadd.f32 %v2891_v28, %v2872_v55  ;;  %v3650_v14 = vsel %vm10053_vm8, %v11404_v24, %v3649_v58 }
 0x28d   :  { %v2910_v10 = vadd.f32 %v2909_v50, %v2867_v26  ;;  %v8789_v55 = vcombine.low %v11419_v49, %v3650_v14  ;;  %v8790_v28 = vcombine.high %v11419_v49, %v3650_v14  ;;  %v2873_v26 = vmul.f32 %v11336_v37, %v11336_v37 }
 0x28e   :  { %v2893_v2 = vadd.f32 %v2892_v22, %v2874_v36  ;;  %v2880_v36 = vmul.f32 %v11276_v35, %v11276_v35 }
 0x28f   :  { %v2911_v53 = vadd.f32 %v2910_v10, %v2869_v21  ;;  %4428 = vmatprep.mubr.bf16.mxu0 %v8790_v28  ;;  %v2877_v10 = vmul.f32 %v11342_v54, %v11342_v54 }
 0x290   :  { %v2894_v4 = vadd.f32 %v2893_v2, %v2876_v11  ;;  %4429 = vmatmul.mubr.bf16.vlgmr.msra.gmra.mrb[32].mxu0 %v8789_v55  ;;  %v3123_v2 = vld [vmem:[#allocation3 + $0x118] sm:$0x11] }
 0x291   :  { %v2912_v50 = vadd.f32 %v2911_v53, %v2871_v42  ;;  %4950 = vmatpush1.bf16.msra.mxu0 %v11087_v15  ;;  %v2879_v15 = vmul.f32 %v11350_v38, %v11350_v38  ;;  %v3129_v53 = vsel %vm11366_vm3, 0, %v3128_v18  ;;  %v14282_v18 = vld [vmem:[#allocation12_spill] sm:$0xff] }
 0x292   :  { %v2895_v22 = vadd.f32 %v2894_v4, %v2878_v61  ;;  %4951 = vmatprep.subr.bf16.mxu0 %v11091_v47  ;;  %v3124_v61 = vsel %vm11366_vm3, 0, %v3123_v2  ;;  %v2881_v47 = vmul.f32 %v11353_v30, %v11353_v30  ;;  %3130 = vst [vmem:[#allocation3 + $0x130] sm:$0x11] %v3129_v53 }
 0x293   :  { %v2913_v11 = vadd.f32 %v2912_v50, %v2873_v26  ;;  %3125 = vst [vmem:[#allocation3 + $0x118] sm:$0x11] %v3124_v61  ;;  %v2932_v26 = vlaneseq }
 0x294   :  { %v2896_v58 = vadd.f32 %v2895_v22, %v2880_v36 }
 0x295   :  { %v2914_v14 = vadd.f32 %v2913_v11, %v2875_v12  ;;  %4952 = vmatpush1.bf16.msra.mxu0 %v11095_v13  ;;  %v3138_v12 = vld [vmem:[#allocation3 + $0x160] sm:$0x11]  ;;  %v11469_v61 = vshrl.u32 %v2932_v26, 7 }
 0x296   :  { %v2897_v21 = vrot.slane %v2896_v58, 4  ;;  %4953 = vmatprep.subr.bf16.mxu0 %v11108_v45  ;;  %v3133_v45 = vld [vmem:[#allocation3 + $0x148] sm:$0x11] }
 0x297   :  { %v2915_v4 = vadd.f32 %v2914_v14, %v2877_v10  ;;  %14280 = vst [vmem:[#allocation10_spill] sm:$0xff] %v11469_v61  ;;  %v3148_v14 = vld [vmem:[#allocation3 + $0x190] sm:$0x11]  ;;  %v11500_v26 = vsub.s32 1, %v11469_v61 }
 0x298   :  { %v2898_v41 = vadd.f32 %v2897_v21, %v2896_v58  ;;  %v3134_v58 = vsel %vm11366_vm3, 0, %v3133_v45 }
 0x299   :  { %v2916_v28 = vadd.f32 %v2915_v4, %v2879_v15  ;;  %4954 = vmatpush1.bf16.msra.mxu0 %v11111_v19  ;;  %3135 = vst [vmem:[#allocation3 + $0x148] sm:$0x11] %v3134_v58  ;;  %v3139_v19 = vsel %vm11366_vm3, 0, %v3138_v12  ;;  %v11476_v15 = vsub.s32 0, %v11469_v61  ;;  %14285 = vst [vmem:[#allocation12_spill] sm:$0xff] %v11500_v26 }
 0x29a   :  { %v2899_v55 = vrot.slane %v2898_v41, 2  ;;  %4955 = vmatprep.subr.bf16.mxu0 %v11115_v9  ;;  %v3143_v9 = vld [vmem:[#allocation3 + $0x178] sm:$0x11]  ;;  %3140 = vst [vmem:[#allocation3 + $0x160] sm:$0x11] %v3139_v19 }
 0x29b   :  { %v2917_v63 = vadd.f32 %v2916_v28, %v2881_v47  ;;  %v3144_v21 = vsel %vm11366_vm3, 0, %v3143_v9  ;;  %14281 = vst [vmem:[#allocation35_spill] sm:$0xff] %v11476_v15  ;;  %v3158_v47 = vld [vmem:[#allocation3 + $0x1c0] sm:$0x11]  ;;  %v14287_v9 = vld [vmem:[#allocation16_spill] sm:$0xff] }
 0x29c   :  { %v2900_v42 = vadd.f32 %v2899_v55, %v2898_v41  ;;  %3145 = vst [vmem:[#allocation3 + $0x178] sm:$0x11] %v3144_v21  ;;  %v3149_v41 = vsel %vm11366_vm3, 0, %v3148_v14  ;;  %v14289_v14 = vld [vmem:[#allocation28_spill] sm:$0xff] }
 0x29d   :  { %v2918_v36 = vrot.slane %v2917_v63, 4  ;;  %4956 = vmatpush1.bf16.msra.mxu0 %v11119_v29  ;;  %3150 = vst [vmem:[#allocation3 + $0x190] sm:$0x11] %v3149_v41 }
 0x29e   :  { %v2901_v13 = vrot.slane %v2900_v42, 1  ;;  %4957 = vmatprep.subr.bf16.mxu0 %v11132_v32 }
 0x29f   :  { %v2919_v50 = vadd.f32 %v2918_v36, %v2917_v63  ;;  %v14283_v63 = vld [vmem:[#allocation13_spill] sm:$0xff]  ;;  %v14284_v36 = vld [vmem:[#allocation14_spill] sm:$0xff] }
 0x2a0   :  { %v2902_v22 = vadd.f32 %v2901_v13, %v2900_v42 }
 0x2a1   :  { %v2920_v2 = vrot.slane %v2919_v50, 2  ;;  %4958 = vmatpush1.bf16.msra.mxu0 %v11135_v43  ;;  %v11482_v43 = vld [vmem:[%s14006_s2] sm:$0x3] }
 0x2a2   :  { %v2924_v11 = vmul.f32 0.0078125, %v2902_v22  ;;  %4959 = vmatprep.subr.bf16.mxu0 %v11139_v39  ;;  %v3153_v39 = vld [vmem:[#allocation3 + $0x1a8] sm:$0x11]  ;;  %v2935_v28 = vrot.slane %v11482_v43, %v11476_v15 }
 0x2a3   :  { %v2921_v10 = vadd.f32 %v2920_v2, %v2919_v50  ;;  %v3154_v55 = vsel %vm11366_vm3, 0, %v3153_v39  ;;  %v14286_v50 = vld [vmem:[#allocation15_spill] sm:$0xff]  ;;  %v14290_v39 = vld [vmem:[#allocation17_spill] sm:$0xff] }
 0x2a4   :  { %v2926_v29 = vadd.f32 1e-05, %v2924_v11  ;;  %3155 = vst [vmem:[#allocation3 + $0x1a8] sm:$0x11] %v3154_v55  ;;  %v2939_v55 = vrot.slane %v11482_v43, %v11500_v26 }
 0x2a5   :  { %v2922_v32 = vrot.slane %v2921_v10, 1  ;;  %4960 = vmatpush1.bf16.msra.mxu0 %v11143_v23 }
 0x2a6   :  { %9749 = vrsqrt.f32 %v2926_v29  ;;  %4961 = vmatprep.subr.bf16.mxu0 %v11156_v25  ;;  %v3159_v25 = vsel %vm11366_vm3, 0, %v3158_v47 }
 0x2a7   :  { %v2923_v4 = vadd.f32 %v2922_v32, %v2921_v10  ;;  %3160 = vst [vmem:[#allocation3 + $0x1c0] sm:$0x11] %v3159_v25  ;;  %v14288_v10 = vld [vmem:[#allocation25_spill] sm:$0xff] }
 0x2a9   :  { %v2925_v23 = vmul.f32 0.0078125, %v2923_v4  ;;  %4962 = vmatpush1.bf16.msra.mxu0 %v11159_v8  ;;  %v2984_v8 = vld [vmem:[%s14007_s3] sm:$0x3] }
 0x2aa   :  { %4963 = vmatprep.subr.bf16.mxu0 %v14282_v18  ;;  %v2989_v45 = vrot.slane %v2984_v8, %v11476_v15 }
 0x2ab   :  { %v2927_v53 = vadd.f32 1e-05, %v2925_v23 }
 0x2ad   :  { %4964 = vmatpush1.bf16.msra.mxu0 %v14283_v63  ;;  %9751 = vrsqrt.f32 %v2927_v53 }
 0x2ae   :  { %4965 = vmatprep.subr.bf16.mxu0 %v14284_v36 }
 0x2b0   :  { %v9750_v42 = vpop.eup %9749 }
 0x2b1   :  { %v2942_v13 = vmul.f32 %v9750_v42, %v2935_v28  ;;  %4966 = vmatpush1.bf16.msra.mxu0 %v14286_v50  ;;  %v14293_v28 = vld [vmem:[#allocation20_spill] sm:$0xff] }
 0x2b2   :  { %4967 = vmatprep.subr.bf16.mxu0 %v14287_v9 }
 0x2b3   :  { %v2947_v22 = vrot.slane %v2942_v13, %v11476_v15 }
 0x2b5   :  { %v2952_v58 = vmul.f32 %v2947_v22, %v11226_v20  ;;  %v2954_v12 = vmul.f32 %v2947_v22, %v11229_v33  ;;  %v2956_v11 = vmul.f32 %v2947_v22, %v11232_v40  ;;  %v2958_v19 = vmul.f32 %v2947_v22, %v11235_v59  ;;  %4968 = vmatpush1.bf16.msra.mxu0 %v14290_v39 }
 0x2b6   :  { %v2960_v2 = vmul.f32 %v2947_v22, %v11240_v46  ;;  %v2962_v21 = vmul.f32 %v2947_v22, %v11243_v44  ;;  %v2964_v29 = vmul.f32 %v2947_v22, %v11246_v27  ;;  %v2966_v32 = vmul.f32 %v2947_v22, %v14288_v10  ;;  %v14291_v27 = vld [vmem:[#allocation18_spill] sm:$0xff]  ;;  %v14295_v10 = vld [vmem:[#allocation21_spill] sm:$0xff] }
 0x2b7   :  { %v2968_v41 = vmul.f32 %v2947_v22, %v14289_v14  ;;  %v2970_v20 = vmul.f32 %v2947_v22, %v11255_v7  ;;  %v2972_v33 = vmul.f32 %v2947_v22, %v11258_v62  ;;  %v2974_v40 = vmul.f32 %v2947_v22, %v11261_v56  ;;  %4969 = vmatprep.subr.bf16.mxu0 %v14291_v27  ;;  %v9752_v18 = vpop.eup %9751  ;;  %v14296_v27 = vld [vmem:[#allocation24_spill] sm:$0xff] }
 0x2b8   :  { %v2976_v59 = vmul.f32 %v2947_v22, %v11267_v5  ;;  %v2978_v4 = vmul.f32 %v2947_v22, %v11270_v60  ;;  %v2980_v46 = vmul.f32 %v2947_v22, %v11273_v57  ;;  %v2982_v44 = vmul.f32 %v2947_v22, %v11276_v35  ;;  %v14292_v57 = vld [vmem:[#allocation19_spill] sm:$0xff] }
 0x2b9   :  { %v11525_v7 = vrot.slane %v2984_v8, %v11500_v26  ;;  %v11527_v62 = vadd.f32 %v2989_v45, %v2952_v58  ;;  %v11529_v56 = vadd.f32 %v2989_v45, %v2954_v12  ;;  %v11531_v5 = vadd.f32 %v2989_v45, %v2956_v11  ;;  %4970 = vmatpush1.bf16.msra.mxu0 %v14292_v57 }
 0x2ba   :  { %v11533_v60 = vadd.f32 %v2989_v45, %v2958_v19  ;;  %v11536_v35 = vadd.f32 %v2989_v45, %v2960_v2  ;;  %v11538_v23 = vadd.f32 %v2989_v45, %v2962_v21  ;;  %v11540_v47 = vadd.f32 %v2989_v45, %v2964_v29  ;;  %4971 = vmatprep.subr.bf16.mxu0 %v14293_v28  ;;  %v14294_v19 = vld [vmem:[#allocation22_spill] sm:$0xff]  ;;  %v14298_v28 = vld [vmem:[#allocation33_spill] sm:$0xff] }
 0x2bb   :  { %v11542_v43 = vadd.f32 %v2989_v45, %v2966_v32  ;;  %v11545_v25 = vadd.f32 %v2989_v45, %v2968_v41  ;;  %v11547_v42 = vadd.f32 %v2989_v45, %v2970_v20  ;;  %v11549_v53 = vadd.f32 %v2989_v45, %v2972_v33  ;;  %v3118_v29 = vld [vmem:[#allocation3 + $0x100] sm:$0x11] }
 0x2bc   :  { %v11551_v63 = vadd.f32 %v2989_v45, %v2974_v40  ;;  %v11553_v13 = vadd.f32 %v2989_v45, %v2976_v59  ;;  %v11555_v8 = vadd.f32 %v2989_v45, %v2978_v4  ;;  %v11557_v36 = vadd.f32 %v2989_v45, %v2980_v46  ;;  %v14302_v4 = vld [vmem:[#allocation26_spill] sm:$0xff] }
 0x2bd   :  { %v11559_v22 = vadd.f32 %v2989_v45, %v2982_v44  ;;  %v3028_v50 = vmax.f32 %v11527_v62, 0.0  ;;  %v3030_v58 = vmax.f32 %v11529_v56, 0.0  ;;  %v3032_v12 = vmax.f32 %v11531_v5, 0.0  ;;  %4972 = vmatpush1.bf16.msra.mxu0 %v14294_v19  ;;  %v14299_v19 = vld [vmem:[#allocation11_spill] sm:$0xff]  ;;  %v14305_v33 = vld [vmem:[#allocation30_spill] sm:$0xff] }
 0x2be   :  { %v3034_v11 = vmax.f32 %v11533_v60, 0.0  ;;  %v3036_v9 = vmax.f32 %v11536_v35, 0.0  ;;  %v2943_v21 = vmul.f32 %v9752_v18, %v2939_v55  ;;  %4973 = vmatprep.subr.bf16.mxu0 %v14295_v10  ;;  %v3119_v41 = vsel %vm11366_vm3, 0, %v3118_v29  ;;  %v14297_v55 = vld [vmem:[#allocation32_spill] sm:$0xff]  ;;  %v14300_v10 = vld [vmem:[#allocation34_spill] sm:$0xff] }
 0x2bf   :  { %3120 = vst [vmem:[#allocation3 + $0x100] sm:$0x11] %v3119_v41  ;;  %v14309_v62 = vmax.f32 %v11542_v43, 0.0  ;;  %v14310_v56 = vmax.f32 %v11545_v25, 0.0  ;;  %v14311_v5 = vmax.f32 %v11547_v42, 0.0  ;;  %v14312_v60 = vmax.f32 %v11549_v53, 0.0 }
 0x2c0   :  { %v2951_v59 = vrot.slane %v2943_v21, %v11476_v15  ;;  %v14301_v21 = vld [vmem:[#allocation23_spill] sm:$0xff]  ;;  %v14315_v43 = vmax.f32 %v11555_v8, 0.0  ;;  %v14316_v42 = vmax.f32 %v11557_v36, 0.0  ;;  %v14317_v53 = vmax.f32 %v11559_v22, 0.0  ;;  %v5885_v15 = vld [vmem:[#allocation3 + $0x118] sm:$0x11] }
 0x2c1   :  { %4974 = vmatpush1.bf16.msra.mxu0 %v14296_v27 }
 0x2c2   :  { %v2953_v57 = vmul.f32 %v2951_v59, %v14297_v55  ;;  %v2955_v18 = vmul.f32 %v2951_v59, %v14298_v28  ;;  %v2957_v29 = vmul.f32 %v2951_v59, %v14299_v19  ;;  %v2959_v40 = vmul.f32 %v2951_v59, %v14300_v10  ;;  %4975 = vmatprep.subr.bf16.mxu0 %v14301_v21 }
 0x2c3   :  { %v2961_v41 = vmul.f32 %v2951_v59, %v11308_v17  ;;  %v2963_v46 = vmul.f32 %v2951_v59, %v11311_v6  ;;  %v2965_v44 = vmul.f32 %v2951_v59, %v11314_v16  ;;  %v2967_v39 = vmul.f32 %v2951_v59, %v11317_v51 }
 0x2c4   :  { %v2969_v27 = vmul.f32 %v2951_v59, %v11320_v34  ;;  %v2971_v55 = vmul.f32 %v2951_v59, %v11323_v1  ;;  %v2973_v28 = vmul.f32 %v2951_v59, %v11333_v3  ;;  %v2975_v19 = vmul.f32 %v2951_v59, %v11336_v37  ;;  %v14303_v3 = vld [vmem:[#allocation27_spill] sm:$0xff] }
 0x2c5   :  { %v2977_v10 = vmul.f32 %v2951_v59, %v11339_v48  ;;  %v2979_v21 = vmul.f32 %v2951_v59, %v11342_v54  ;;  %v2981_v17 = vmul.f32 %v2951_v59, %v11350_v38  ;;  %v2983_v6 = vmul.f32 %v2951_v59, %v11353_v30  ;;  %4976 = vmatpush1.bf16.msra.mxu0 %v14302_v4 }
 0x2c6   :  { %v2997_v16 = vadd.f32 %v11525_v7, %v2953_v57  ;;  %v2999_v51 = vadd.f32 %v11525_v7, %v2955_v18  ;;  %v3001_v34 = vadd.f32 %v11525_v7, %v2957_v29  ;;  %v3003_v1 = vadd.f32 %v11525_v7, %v2959_v40  ;;  %4977 = vmatprep.subr.bf16.mxu0 %v14303_v3 }
 0x2c7   :  { %v3005_v37 = vadd.f32 %v11525_v7, %v2961_v41  ;;  %v3007_v48 = vadd.f32 %v11525_v7, %v2963_v46  ;;  %v3009_v54 = vadd.f32 %v11525_v7, %v2965_v44  ;;  %v3011_v38 = vadd.f32 %v11525_v7, %v2967_v39  ;;  %v14304_v41 = vld [vmem:[#allocation29_spill] sm:$0xff] }
 0x2c8   :  { %v3013_v30 = vadd.f32 %v11525_v7, %v2969_v27  ;;  %v3015_v59 = vadd.f32 %v11525_v7, %v2971_v55  ;;  %v3017_v4 = vadd.f32 %v11525_v7, %v2973_v28  ;;  %v3019_v57 = vadd.f32 %v11525_v7, %v2975_v19 }
 0x2c9   :  { %v3021_v40 = vadd.f32 %v11525_v7, %v2977_v10  ;;  %v3023_v18 = vadd.f32 %v11525_v7, %v2979_v21  ;;  %v3025_v29 = vadd.f32 %v11525_v7, %v2981_v17  ;;  %v3027_v46 = vadd.f32 %v11525_v7, %v2983_v6  ;;  %4978 = vmatpush1.bf16.msra.mxu0 %v14304_v41  ;;  %v14306_v6 = vld [vmem:[#allocation31_spill] sm:$0xff] }
 0x2ca   :  { %v3029_v44 = vmax.f32 %v2997_v16, 0.0  ;;  %v3031_v39 = vmax.f32 %v2999_v51, 0.0  ;;  %v3033_v3 = vmax.f32 %v3001_v34, 0.0  ;;  %v3035_v27 = vmax.f32 %v3003_v1, 0.0  ;;  %4979 = vmatprep.subr.bf16.mxu0 %v14305_v33 }
 0x2cb   :  { %v3037_v55 = vmax.f32 %v3005_v37, 0.0  ;;  %v3039_v28 = vmax.f32 %v3007_v48, 0.0  ;;  %v3041_v20 = vmax.f32 %v3009_v54, 0.0  ;;  %v3043_v19 = vmax.f32 %v3011_v38, 0.0 }
 0x2cc   :  { %v3045_v14 = vmax.f32 %v3013_v30, 0.0  ;;  %v3047_v10 = vmax.f32 %v3015_v59, 0.0  ;;  %v3049_v32 = vmax.f32 %v3017_v4, 0.0  ;;  %v3051_v21 = vmax.f32 %v3019_v57, 0.0 }
 0x2cd   :  { %v3053_v45 = vmax.f32 %v3021_v40, 0.0  ;;  %v3055_v17 = vmax.f32 %v3023_v18, 0.0  ;;  %v3057_v2 = vmax.f32 %v3025_v29, 0.0  ;;  %v3059_v7 = vmax.f32 %v3027_v46, 0.0  ;;  %4980 = vmatpush1.bf16.msra.mxu0 %v14306_v6 }
 0x2ce   :  { %v9061_v16 = vpack.c.bf16 %v3029_v44, %v3028_v50  ;;  %v9062_v33 = vpack.c.bf16 %v3031_v39, %v3030_v58  ;;  %v9063_v51 = vpack.c.bf16 %v3033_v3, %v3032_v12  ;;  %v9064_v34 = vpack.c.bf16 %v3035_v27, %v3034_v11 }
 0x2cf   :  { %v9065_v1 = vpack.c.bf16 %v3037_v55, %v3036_v9  ;;  %v14307_v37 = vmax.f32 %v11538_v23, 0.0  ;;  %v14308_v54 = vmax.f32 %v11540_v47, 0.0  ;;  %v9068_v50 = vpack.c.bf16 %v3043_v19, %v14309_v62 }
 0x2d0   :  { %v9069_v58 = vpack.c.bf16 %v3045_v14, %v14310_v56  ;;  %v11641_v12 = vpack.c.bf16 %v3047_v10, %v14311_v5  ;;  %v11645_v35 = vpack.c.bf16 %v3049_v32, %v14312_v60  ;;  %v14313_v23 = vmax.f32 %v11551_v63, 0.0 }
 0x2d1   :  { %v9066_v48 = vpack.c.bf16 %v3039_v28, %v14307_v37  ;;  %v9067_v38 = vpack.c.bf16 %v3041_v20, %v14308_v54  ;;  %v14314_v47 = vmax.f32 %v11553_v13, 0.0  ;;  %v11657_v25 = vpack.c.bf16 %v3055_v17, %v14315_v43 }
 0x2d2   :  { %v11649_v11 = vpack.c.bf16 %v3051_v21, %v14313_v23  ;;  %v11661_v14 = vpack.c.bf16 %v3057_v2, %v14316_v42  ;;  %v11665_v32 = vpack.c.bf16 %v3059_v7, %v14317_v53  ;;  %v3279_v20 = vshrl.u32 %v9061_v16, 16 }
 0x2d3   :  { %v11653_v9 = vpack.c.bf16 %v3053_v45, %v14314_v47  ;;  %v3287_v63 = vshrl.u32 %v9062_v33, 16  ;;  %v3282_v30 = vshll.u32 %v9061_v16, 16  ;;  %v3295_v59 = vshrl.u32 %v9063_v51, 16 }
 0x2d4   :  { %v3303_v13 = vshrl.u32 %v9064_v34, 16  ;;  %v11667_v45 = vrot.slane %v3279_v20, 7  ;;  %v3290_v4 = vshll.u32 %v9062_v33, 16  ;;  %v3311_v36 = vshrl.u32 %v9065_v1, 16 }
 0x2d5   :  { %v11669_v8 = vrot.slane %v3287_v63, 7  ;;  %v11671_v2 = vrot.slane %v3295_v59, 7  ;;  %v3298_v57 = vshll.u32 %v9063_v51, 16  ;;  %v3319_v40 = vshrl.u32 %v9066_v48, 16 }
 0x2d6   :  { %v11673_v22 = vrot.slane %v3303_v13, 7  ;;  %v11676_v18 = vor.u32 %v3282_v30, %v11667_v45  ;;  %v3306_v29 = vshll.u32 %v9064_v34, 16  ;;  %v3314_v46 = vshll.u32 %v9065_v1, 16 }
 0x2d7   :  { %v3322_v41 = vshll.u32 %v9066_v48, 16  ;;  %v3285_v44 = vrot.slane %v11667_v45, 4  ;;  %v11680_v39 = vor.u32 %v3290_v4, %v11669_v8  ;;  %v3293_v3 = vrot.slane %v11669_v8, 4 }
 0x2d8   :  { %v3300_v27 = vor.u32 %v3298_v57, %v11671_v2  ;;  %v3308_v55 = vor.u32 %v3306_v29, %v11673_v22  ;;  %v11685_v28 = vrot.slane %v3311_v36, 7  ;;  %v11687_v19 = vrot.slane %v3319_v40, 7 }
 0x2d9   :  { %v3327_v10 = vshrl.u32 %v9067_v38, 16  ;;  %v3330_v21 = vshll.u32 %v9067_v38, 16  ;;  %v3335_v17 = vshrl.u32 %v9068_v50, 16  ;;  %v3338_v7 = vshll.u32 %v9068_v50, 16 }
 0x2da   :  { %v3343_v6 = vshrl.u32 %v9069_v58, 16  ;;  %v3316_v16 = vor.u32 %v3314_v46, %v11685_v28  ;;  %v3324_v33 = vor.u32 %v3322_v41, %v11687_v19  ;;  %v3325_v51 = vrot.slane %v11687_v19, 4  ;;  %v9623_v41 = vld [vmem:[#allocation6 + $0x200] ss:$8 sps:$4 sm:$0xff]  }
 0x2db   :  { %v3346_v34 = vshll.u32 %v9069_v58, 16  ;;  %v11692_v1 = vrot.slane %v3327_v10, 7  ;;  %v11694_v37 = vrot.slane %v3335_v17, 7  ;;  %v3351_v54 = vshrl.u32 %v11641_v12, 16 }
 0x2dc   :  { %v11696_v48 = vrot.slane %v3343_v6, 7  ;;  %v3354_v38 = vshll.u32 %v11641_v12, 16  ;;  %v3359_v62 = vshrl.u32 %v11645_v35, 16  ;;  %v3362_v50 = vshll.u32 %v11645_v35, 16 }
 0x2dd   :  { %v3367_v56 = vshrl.u32 %v11649_v11, 16  ;;  %v11704_v5 = vor.u32 %v3330_v21, %v11692_v1  ;;  %v3333_v58 = vrot.slane %v11692_v1, 4  ;;  %v3340_v60 = vor.u32 %v3338_v7, %v11694_v37 }
 0x2de   :  { %v3341_v23 = vrot.slane %v11694_v37, 4  ;;  %v3348_v12 = vor.u32 %v3346_v34, %v11696_v48  ;;  %v3349_v35 = vrot.slane %v11696_v48, 4  ;;  %v3353_v43 = vrot.slane %v3351_v54, 7 }
 0x2df   :  { %v3361_v42 = vrot.slane %v3359_v62, 7  ;;  %v11719_v53 = vrot.slane %v3367_v56, 7  ;;  %v3370_v20 = vshll.u32 %v11649_v11, 16  ;;  %v3375_v63 = vshrl.u32 %v11653_v9, 16  ;;  %v3496_v62 = vld [vmem:[#allocation3 + $0x110] sm:$0x11] }
 0x2e0   :  { %v3378_v30 = vshll.u32 %v11653_v9, 16  ;;  %v3356_v59 = vor.u32 %v3354_v38, %v3353_v43  ;;  %v3357_v13 = vrot.slane %v3353_v43, 4  ;;  %v3383_v46 = vshrl.u32 %v11657_v25, 16  ;;  %v3508_v43 = vld [vmem:[#allocation3 + $0x140] sm:$0x11] }
 0x2e1   :  { %v3364_v4 = vor.u32 %v3362_v50, %v3361_v42  ;;  %v3365_v36 = vrot.slane %v3361_v42, 4  ;;  %v3372_v57 = vor.u32 %v3370_v20, %v11719_v53  ;;  %v3373_v40 = vrot.slane %v11719_v53, 4 }
 0x2e2   :  { %v3377_v29 = vrot.slane %v3375_v63, 7  ;;  %v3386_v11 = vshll.u32 %v11657_v25, 16  ;;  %v3391_v9 = vshrl.u32 %v11661_v14, 16  ;;  %v3394_v10 = vshll.u32 %v11661_v14, 16  ;;  %v3478_v14 = vld [vmem:[#allocation3 + $0x98] sm:$0x11] }
 0x2e3   :  { %v3399_v21 = vshrl.u32 %v11665_v32, 16  ;;  %v3385_v6 = vrot.slane %v3383_v46, 7  ;;  %v3402_v34 = vshll.u32 %v11665_v32, 16  ;;  %v11741_v38 = vsel %vm11729_vm2, %v3300_v27, %v11361_v0  ;;  %v3502_v27 = vld [vmem:[#allocation3 + $0x128] sm:$0x11] }
 0x2e4   :  { %v3380_v17 = vor.u32 %v3378_v30, %v3377_v29  ;;  %v3381_v7 = vrot.slane %v3377_v29, 4  ;;  %v3393_v48 = vrot.slane %v3391_v9, 7  ;;  %v11746_v25 = vsel %vm11729_vm2, %v3308_v55, %v11361_v0  ;;  %3459 = vst [vmem:[#allocation3 + $0x48] sm:$0xff] %v11741_v38  ;;  %v3514_v63 = vld [vmem:[#allocation3 + $0x158] sm:$0x11] }
 0x2e5   :  { %v3401_v54 = vrot.slane %v3399_v21, 7  ;;  %v3388_v50 = vor.u32 %v3386_v11, %v3385_v6  ;;  %v3389_v56 = vrot.slane %v3385_v6, 4  ;;  %v11751_v32 = vsel %vm11729_vm2, %v3316_v16, %v11361_v0  ;;  %3465 = vst [vmem:[#allocation3 + $0x60] sm:$0xff] %v11746_v25  ;;  %v3520_v30 = vld [vmem:[#allocation3 + $0x170] sm:$0x11] }
 0x2e6   :  { %v11756_v47 = vsel %vm11729_vm2, %v3324_v33, %v11361_v0  ;;  %v3396_v55 = vor.u32 %v3394_v10, %v3393_v48  ;;  %v3397_v42 = vrot.slane %v3393_v48, 4  ;;  %3471 = vst [vmem:[#allocation3 + $0x78] sm:$0xff] %v11751_v32  ;;  %v3479_v16 = vsel %vm11366_vm3, %v3325_v51, %v3478_v14  ;;  %v3526_v11 = vld [vmem:[#allocation3 + $0x188] sm:$0x11]  ;;  %v3532_v9 = vld [vmem:[#allocation3 + $0x1a0] sm:$0x11] }
 0x2e7   :  { %v3404_v53 = vor.u32 %v3402_v34, %v3401_v54  ;;  %v3405_v20 = vrot.slane %v3401_v54, 4  ;;  %3477 = vst [vmem:[#allocation3 + $0x90] sm:$0xff] %v11756_v47  ;;  %v11769_v33 = vsel %vm11729_vm2, %v3340_v60, %v11361_v0  ;;  %v11774_v29 = vsel %vm11729_vm2, %v3348_v12, %v11361_v0  ;;  %v3538_v10 = vld [vmem:[#allocation3 + $0x1b8] sm:$0x11]  ;;  %3480 = vst [vmem:[#allocation3 + $0x98] sm:$0x11] %v3479_v16 }
 0x2e8   :  { %v3497_v46 = vsel %vm11366_vm3, %v3349_v35, %v3496_v62  ;;  %v11781_v19 = vsel %vm11729_vm2, %v3356_v59, %v11361_v0  ;;  %v3503_v51 = vsel %vm11366_vm3, %v3357_v13, %v3502_v27  ;;  %v11788_v60 = vsel %vm11729_vm2, %v3364_v4, %v11361_v0  ;;  %3489 = vst [vmem:[#allocation3 + $0xc0] sm:$0xff] %v11769_v33  ;;  %v3484_v35 = vld [vmem:[#allocation3 + $0xb0] sm:$0x11]  ;;  %v3490_v21 = vld [vmem:[#allocation3 + $0xc8] sm:$0x11] }
 0x2e9   :  { %v3509_v12 = vsel %vm11366_vm3, %v3365_v36, %v3508_v43  ;;  %3495 = vst [vmem:[#allocation3 + $0x108] sm:$0xff] %v11774_v29  ;;  %3498 = vst [vmem:[#allocation3 + $0x110] sm:$0x11] %v3497_v46  ;;  %v3512_v59 = vsel %vm11729_vm2, %v3372_v57, %v11361_v0  ;;  %v3515_v13 = vsel %vm11366_vm3, %v3373_v40, %v3514_v63  ;;  %v3448_v6 = vld [vmem:[#allocation3 + $0x20] sm:$0x11]  ;;  %v3309_v16 = vrot.slane %v11673_v22, 4 }
 0x2ea   :  { %3507 = vst [vmem:[#allocation3 + $0x138] sm:$0xff] %v11788_v60  ;;  %3510 = vst [vmem:[#allocation3 + $0x140] sm:$0x11] %v3509_v12  ;;  %v3518_v4 = vsel %vm11729_vm2, %v3380_v17, %v11361_v0  ;;  %v3521_v36 = vsel %vm11366_vm3, %v3381_v7, %v3520_v30  ;;  %v3524_v57 = vsel %vm11729_vm2, %v3388_v50, %v11361_v0  ;;  %v3454_v50 = vld [vmem:[#allocation3 + $0x38] sm:$0x11] }
 0x2eb   :  { %3501 = vst [vmem:[#allocation3 + $0x120] sm:$0xff] %v11781_v19  ;;  %3504 = vst [vmem:[#allocation3 + $0x128] sm:$0x11] %v3503_v51  ;;  %v3527_v40 = vsel %vm11366_vm3, %v3389_v56, %v3526_v11  ;;  %v3530_v17 = vsel %vm11729_vm2, %v3396_v55, %v11361_v0  ;;  %v3533_v7 = vsel %vm11366_vm3, %v3397_v42, %v3532_v9  ;;  %v3301_v56 = vrot.slane %v11671_v2, 4  ;;  %v3460_v2 = vld [vmem:[#allocation3 + $0x50] sm:$0x11] }
 0x2ec   :  { %3513 = vst [vmem:[#allocation3 + $0x150] sm:$0xff] %v3512_v59  ;;  %3516 = vst [vmem:[#allocation3 + $0x158] sm:$0x11] %v3515_v13  ;;  %v3536_v34 = vsel %vm11729_vm2, %v3404_v53, %v11361_v0  ;;  %v3539_v48 = vsel %vm11366_vm3, %v3405_v20, %v3538_v10  ;;  %v11825_v54 = vsel %vm11729_vm2, %v11704_v5, %v11361_v0  ;;  %v3610_v27 = vld [vmem:[#allocation3 + $0x28] sm:$0x11] }
 0x2ed   :  { %3519 = vst [vmem:[#allocation3 + $0x168] sm:$0xff] %v3518_v4  ;;  %3522 = vst [vmem:[#allocation3 + $0x170] sm:$0x11] %v3521_v36  ;;  %v3485_v14 = vsel %vm11366_vm3, %v3333_v58, %v3484_v35  ;;  %v3491_v62 = vsel %vm11366_vm3, %v3341_v23, %v3490_v21  ;;  %v11841_v1 = vsel %vm11729_vm2, %v11676_v18, %v11361_v0  ;;  %v9628_v55 = vld [vmem:[#allocation6 + $0x214] ss:$8 sps:$4 sm:$0xff]   ;;  %v3671_v11 = vshll.u32 %v3610_v27, 16 }
 0x2ee   :  { %3525 = vst [vmem:[#allocation3 + $0x180] sm:$0xff] %v3524_v57  ;;  %3528 = vst [vmem:[#allocation3 + $0x188] sm:$0x11] %v3527_v40  ;;  %v3449_v5 = vsel %vm11366_vm3, %v3285_v44, %v3448_v6  ;;  %v11851_v37 = vsel %vm11729_vm2, %v11680_v39, %v11361_v0  ;;  %v3652_v18 = vshrl.u32 %v11841_v1, 16  ;;  %v3655_v58 = vshll.u32 %v11841_v1, 16 }
 0x2ef   :  { %3531 = vst [vmem:[#allocation3 + $0x198] sm:$0xff] %v3530_v17  ;;  %3534 = vst [vmem:[#allocation3 + $0x1a0] sm:$0x11] %v3533_v7  ;;  %v3455_v45 = vsel %vm11366_vm3, %v3293_v3, %v3454_v50  ;;  %v3676_v44 = vshrl.u32 %v11851_v37, 16  ;;  %v3679_v39 = vshll.u32 %v11851_v37, 16  ;;  %v3461_v23 = vsel %vm11366_vm3, %v3301_v56, %v3460_v2 }
 0x2f0   :  { %3537 = vst [vmem:[#allocation3 + $0x1b0] sm:$0xff] %v3536_v34  ;;  %3540 = vst [vmem:[#allocation3 + $0x1b8] sm:$0x11] %v3539_v48  ;;  %v3654_v42 = vrot.slane %v3652_v18, 4  ;;  %v3657_v53 = vrot.slane %v3655_v58, 5  ;;  %v8876_v22 = vcombine.high %v11361_v0, %v11361_v0  ;;  %v3673_v34 = vrot.slane %v3671_v11, 5 }
 0x2f1   :  { %3483 = vst [vmem:[#allocation3 + $0xa8] sm:$0xff] %v11825_v54  ;;  %3486 = vst [vmem:[#allocation3 + $0xb0] sm:$0x11] %v3485_v14  ;;  %v3611_v63 = vld [vmem:[#allocation3 + $0x40] sm:$0x11]  ;;  %v3678_v9 = vrot.slane %v3676_v44, 4 }
 0x2f2   :  { %3492 = vst [vmem:[#allocation3 + $0xc8] sm:$0x11] %v3491_v62  ;;  %3447 = vst [vmem:[#allocation3 + $0x18] sm:$0xff] %v11841_v1  ;;  %v11873_v30 = vld [vmem:[#allocation3 + $0x58] sm:$0x11]  ;;  %v3681_v51 = vrot.slane %v3679_v39, 5  ;;  %v3658_v13 = vor.u32 %v3657_v53, %v3654_v42 }
 0x2f3   :  { %3450 = vst [vmem:[#allocation3 + $0x20] sm:$0x11] %v3449_v5  ;;  %3453 = vst [vmem:[#allocation3 + $0x30] sm:$0xff] %v11851_v37  ;;  %v3466_v59 = vld [vmem:[#allocation3 + $0x68] sm:$0x11]  ;;  %v3695_v36 = vshll.u32 %v3611_v63, 16 }
 0x2f4   :  { %3456 = vst [vmem:[#allocation3 + $0x38] sm:$0x11] %v3455_v45  ;;  %3462 = vst [vmem:[#allocation3 + $0x50] sm:$0x11] %v3461_v23  ;;  %v3719_v21 = vshll.u32 %v11873_v30, 16  ;;  %v3682_v48 = vor.u32 %v3681_v51, %v3678_v9  ;;  %v3700_v50 = vshrl.u32 %v11741_v38, 16  ;;  %v3467_v0 = vsel %vm11366_vm3, %v3309_v16, %v3466_v59 }
 0x2f5   :  { %v9626_v57 = vld [vmem:[#allocation6 + $0x210] ss:$8 sps:$4 sm:$0xff]   ;;  %v9631_v14 = vld [vmem:[#allocation6 + $0x224] ss:$8 sps:$4 sm:$0xff]   ;;  %v3703_v18 = vshll.u32 %v11741_v38, 16  ;;  %v3317_v58 = vrot.slane %v11685_v28, 4 }
 0x2f6   :  { %3468 = vst [vmem:[#allocation3 + $0x68] sm:$0x11] %v3467_v0  ;;  %v3697_v45 = vrot.slane %v3695_v36, 5  ;;  %v3659_v23 = vrot.slane %v3658_v13, 4  ;;  %v9629_v42 = vld [vmem:[#allocation6 + $0x220] ss:$8 sps:$4 sm:$0xff]  }
 0x2f7   :  { %v3683_v53 = vrot.slane %v3682_v48, 4  ;;  %v3702_v38 = vrot.slane %v3700_v50, 4  ;;  %v3705_v11 = vrot.slane %v3703_v18, 5  ;;  %v3472_v9 = vld [vmem:[#allocation3 + $0x80] sm:$0x11]  ;;  %v3721_v36 = vrot.slane %v3719_v21, 5 }
 0x2f8   :  { %v11865_v43 = vld [vmem:[#allocation3 + $0xb0] sm:$0xff]  ;;  %v9786_v0 = vld [vmem:[#allocation3] sm:$0xff] }
 0x2f9   :  { %v8872_v8 = vcombine.high %v11825_v54, %v11865_v43  ;;  %v8871_v3 = vcombine.low %v11825_v54, %v11865_v43  ;;  %v11871_v20 = vld [vmem:[#allocation3 + $0xc8] sm:$0xff]  ;;  %v9632_v13 = vld [vmem:[#allocation6 + $0x230] ss:$8 sps:$4 sm:$0xff]   ;;  %v3706_v48 = vor.u32 %v3705_v11, %v3702_v38  ;;  %v3748_v11 = vshrl.u32 %v11751_v32, 16 }
 0x2fa   :  { %v11876_v46 = vld [vmem:[#allocation3 + $0x20] sm:$0xff]  ;;  %v8874_v12 = vcombine.high %v11769_v33, %v11871_v20  ;;  %v8873_v27 = vcombine.low %v11769_v33, %v11871_v20  ;;  %v3613_v50 = vld [vmem:[#allocation3 + $0x70] sm:$0x11]  ;;  %v3614_v38 = vld [vmem:[#allocation3 + $0x88] sm:$0x11] }
 0x2fb   :  { %5051 = vmatprep.mubr.bf16.mxu1 %v8872_v8  ;;  %v3661_v10 = vshll.u32 %v11876_v46, 16  ;;  %v3665_v35 = vshrl.u32 %v11876_v46, 16  ;;  %v11882_v4 = vld [vmem:[#allocation3 + $0x38] sm:$0xff]  ;;  %v11889_v62 = vld [vmem:[#allocation3 + $0x50] sm:$0xff] }
 0x2fc   :  { %5052 = vmatmul.mubr.bf16.vlgmr.msra.gmra.mrb[0].mxu1 %v8871_v3  ;;  %v3685_v7 = vshll.u32 %v11882_v4, 16  ;;  %v3689_v6 = vshrl.u32 %v11882_v4, 16  ;;  %v3709_v44 = vshll.u32 %v11889_v62, 16  ;;  %v3713_v39 = vshrl.u32 %v11889_v62, 16  ;;  %v9634_v8 = vld [vmem:[#allocation6 + $0x234] ss:$8 sps:$4 sm:$0xff]  }
 0x2fd   :  { %5572 = vmatpush1.bf16.msra.mxu1 %v9623_v41  ;;  %5061 = vmatprep.mubr.bf16.mxu1 %v8874_v12  ;;  %v3663_v40 = vrot.slane %v3661_v10, 5  ;;  %v3667_v17 = vrot.slane %v3665_v35, 4 }
 0x2fe   :  { %5573 = vmatprep.subr.bf16.mxu1 %v9628_v55  ;;  %v3687_v5 = vrot.slane %v3685_v7, 5  ;;  %v3691_v2 = vrot.slane %v3689_v6, 4  ;;  %v3711_v3 = vrot.slane %v3709_v44, 5  ;;  %v3715_v63 = vrot.slane %v3713_v39, 4  ;;  %v9640_v39 = vld [vmem:[#allocation6 + $0x254] ss:$8 sps:$4 sm:$0xff]  }
 0x2ff   :  { %v3668_v56 = vor.u32 %v3667_v17, %v3663_v40  ;;  %v3664_v28 = vsel %vm10053_vm8, %v3659_v23, %v3663_v40  ;;  %v9637_v40 = vld [vmem:[#allocation6 + $0x244] ss:$8 sps:$4 sm:$0xff]   ;;  %v3724_v7 = vshrl.u32 %v11746_v25, 16  ;;  %v3727_v6 = vshll.u32 %v11746_v25, 16 }
 0x300   :  { %v3692_v55 = vor.u32 %v3691_v2, %v3687_v5  ;;  %v3716_v10 = vor.u32 %v3715_v63, %v3711_v3  ;;  %v3688_v35 = vsel %vm10053_vm8, %v3683_v53, %v3687_v5  ;;  %v11908_v17 = vld [vmem:[#allocation3 + $0x68] sm:$0xff]  ;;  %v11916_v5 = vld [vmem:[#allocation3 + $0x110] sm:$0xff]  ;;  %v3743_v44 = vshll.u32 %v3613_v50, 16 }
 0x301   :  { %5574 = vmatpush1.bf16.msra.mxu1 %v9626_v57  ;;  %v3669_v41 = vrot.slane %v3668_v56, 4  ;;  %v3737_v21 = vshrl.u32 %v11908_v17, 16  ;;  %v8875_v56 = vcombine.low %v9786_v0, %v9786_v0  ;;  %v9635_v2 = vld [vmem:[#allocation6 + $0x240] ss:$8 sps:$4 sm:$0xff]   ;;  %v8878_v23 = vcombine.high %v11774_v29, %v11916_v5 }
 0x302   :  { %5575 = vmatprep.subr.bf16.mxu1 %v9631_v14  ;;  %v3693_v16 = vrot.slane %v3692_v55, 4  ;;  %v3717_v14 = vrot.slane %v3716_v10, 4  ;;  %v3745_v10 = vrot.slane %v3743_v44, 5 }
 0x303   :  { %v3674_v30 = vsel %vm10053_vm8, %v3669_v41, %v3673_v34  ;;  %v3473_v34 = vsel %vm11366_vm3, %v3317_v58, %v3472_v9  ;;  %v3739_v18 = vrot.slane %v3737_v21, 4  ;;  %v3726_v58 = vrot.slane %v3724_v7, 4 }
 0x304   :  { %v8792_v51 = vcombine.high %v3664_v28, %v3674_v30  ;;  %5062 = vmatmul.mubr.bf16.gmra.mrb[4].mxu1 %v8873_v27  ;;  %v8791_v12 = vcombine.low %v3664_v28, %v3674_v30  ;;  %v3698_v59 = vsel %vm10053_vm8, %v3693_v16, %v3697_v45  ;;  %3474 = vst [vmem:[#allocation3 + $0x80] sm:$0x11] %v3473_v34  ;;  %v3729_v45 = vrot.slane %v3727_v6, 5  ;;  %v9643_v30 = vld [vmem:[#allocation6 + $0x264] ss:$8 sps:$4 sm:$0xff]  }
 0x305   :  { %5576 = vmatpush1.bf16.msra.mxu1 %v9629_v42  ;;  %5071 = vmatprep.mubr.bf16.mxu1 %v8876_v22  ;;  %v8794_v57 = vcombine.high %v3688_v35, %v3698_v59  ;;  %v3733_v22 = vshll.u32 %v11908_v17, 16  ;;  %v3707_v41 = vrot.slane %v3706_v48, 4  ;;  %v3722_v27 = vsel %vm10053_vm8, %v3717_v14, %v3721_v36  ;;  %v9641_v36 = vld [vmem:[#allocation6 + $0x260] ss:$8 sps:$4 sm:$0xff]   ;;  %v9646_v14 = vld [vmem:[#allocation6 + $0x274] ss:$8 sps:$4 sm:$0xff]  }
 0x306   :  { %4438 = vmatprep.mubr.bf16.mxu0 %v8792_v51  ;;  %5577 = vmatprep.subr.bf16.mxu1 %v9634_v8  ;;  %v8793_v42 = vcombine.low %v3688_v35, %v3698_v59  ;;  %v9638_v8 = vld [vmem:[#allocation6 + $0x250] ss:$8 sps:$4 sm:$0xff]   ;;  %v3730_v28 = vor.u32 %v3729_v45, %v3726_v58  ;;  %v3751_v9 = vshll.u32 %v11751_v32, 16  ;;  %v11928_v51 = vld [vmem:[#allocation3 + $0x128] sm:$0xff]  ;;  %v3767_v32 = vshll.u32 %v3614_v38, 16 }
 0x307   :  { %4439 = vmatmul.mubr.bf16.gmra.mrb[36].mxu0 %v8791_v12  ;;  %v3735_v25 = vrot.slane %v3733_v22, 5  ;;  %v3712_v53 = vsel %vm10053_vm8, %v3707_v41, %v3711_v3  ;;  %v11932_v59 = vld [vmem:[#allocation3 + $0x98] sm:$0xff]  ;;  %v8880_v7 = vcombine.high %v11781_v19, %v11928_v51  ;;  %v3750_v34 = vrot.slane %v3748_v11, 4  ;;  %v3615_v58 = vld [vmem:[#allocation3 + $0xa0] sm:$0x11] }
 0x308   :  { %4448 = vmatprep.mubr.bf16.mxu0 %v8794_v57  ;;  %v8796_v63 = vcombine.high %v3712_v53, %v3722_v27  ;;  %v3731_v6 = vrot.slane %v3730_v28, 4  ;;  %v3753_v48 = vrot.slane %v3751_v9, 5  ;;  %v3781_v21 = vshll.u32 %v11932_v59, 16  ;;  %v9650_v41 = vld [vmem:[#allocation6 + $0x284] ss:$8 sps:$4 sm:$0xff]  }
 0x309   :  { %5578 = vmatpush1.bf16.msra.mxu1 %v9632_v13  ;;  %v3740_v55 = vor.u32 %v3739_v18, %v3735_v25  ;;  %v8877_v13 = vcombine.low %v11774_v29, %v11916_v5  ;;  %v3785_v0 = vshrl.u32 %v11932_v59, 16  ;;  %v9644_v18 = vld [vmem:[#allocation6 + $0x270] ss:$8 sps:$4 sm:$0xff]   ;;  %v3769_v44 = vrot.slane %v3767_v32, 5  ;;  %v9655_v9 = vld [vmem:[#allocation6 + $0x294] ss:$8 sps:$4 sm:$0xff]  }
 0x30a   :  { %5579 = vmatprep.subr.bf16.mxu1 %v9637_v40  ;;  %v3791_v38 = vshll.u32 %v3615_v58, 16  ;;  %v3809_v28 = vshrl.u32 %v11865_v43, 16  ;;  %v9653_v32 = vld [vmem:[#allocation6 + $0x290] ss:$8 sps:$4 sm:$0xff]  }
 0x30b   :  { %v11924_v16 = vld [vmem:[#allocation3 + $0x80] sm:$0xff]  ;;  %v3741_v12 = vrot.slane %v3740_v55, 4 }
 0x30c   :  { %5072 = vmatmul.mubr.bf16.gmra.mrb[8].mxu1 %v8875_v56  ;;  %v3757_v3 = vshll.u32 %v11924_v16, 16  ;;  %v3761_v35 = vshrl.u32 %v11924_v16, 16  ;;  %v8795_v56 = vcombine.low %v3712_v53, %v3722_v27  ;;  %v11946_v55 = vld [vmem:[#allocation3 + $0x140] sm:$0xff]  ;;  %v3783_v53 = vrot.slane %v3781_v21, 5  ;;  %v11962_v21 = vld [vmem:[#allocation3 + $0x150] sm:$0xff] }
 0x30d   :  { %5081 = vmatprep.mubr.bf16.mxu1 %v8878_v23  ;;  %5580 = vmatpush1.bf16.msra.mxu1 %v9635_v2  ;;  %v3746_v50 = vsel %vm10053_vm8, %v3741_v12, %v3745_v10  ;;  %v3736_v2 = vsel %vm10053_vm8, %v3731_v6, %v3735_v25  ;;  %v3775_v23 = vshll.u32 %v11756_v47, 16  ;;  %v3805_v25 = vshll.u32 %v11865_v43, 16 }
 0x30e   :  { %5581 = vmatprep.subr.bf16.mxu1 %v9640_v39  ;;  %v3759_v57 = vrot.slane %v3757_v3, 5  ;;  %v3763_v40 = vrot.slane %v3761_v35, 4  ;;  %v8798_v45 = vcombine.high %v3736_v2, %v3746_v50  ;;  %v3772_v39 = vshrl.u32 %v11756_v47, 16 }
 0x30f   :  { %4449 = vmatmul.mubr.bf16.gmra.mrb[40].mxu0 %v8793_v42  ;;  %v3754_v42 = vor.u32 %v3753_v48, %v3750_v34  ;;  %v8882_v47 = vcombine.high %v11788_v60, %v11946_v55  ;;  %v3777_v3 = vrot.slane %v3775_v23, 5  ;;  %v3799_v43 = vshll.u32 %v11825_v54, 16  ;;  %v3616_v34 = vld [vmem:[#allocation3 + $0xb8] sm:$0x11]  ;;  %v9658_v48 = vld [vmem:[#allocation6 + $0x2a4] ss:$8 sps:$4 sm:$0xff]  }
 0x310   :  { %4458 = vmatprep.mubr.bf16.mxu0 %v8796_v63  ;;  %v3764_v22 = vor.u32 %v3763_v40, %v3759_v57  ;;  %v9648_v63 = vld [vmem:[#allocation6 + $0x280] ss:$8 sps:$4 sm:$0xff]   ;;  %v3774_v11 = vrot.slane %v3772_v39, 4  ;;  %v3793_v6 = vrot.slane %v3791_v38, 5  ;;  %v3815_v58 = vshll.u32 %v3616_v34, 16 }
 0x311   :  { %5582 = vmatpush1.bf16.msra.mxu1 %v9638_v8  ;;  %v3787_v8 = vrot.slane %v3785_v0, 4  ;;  %v3755_v12 = vrot.slane %v3754_v42, 4  ;;  %v11964_v0 = vld [vmem:[#allocation3 + $0x158] sm:$0xff]  ;;  %v8881_v39 = vcombine.low %v11788_v60, %v11946_v55  ;;  %v11981_v42 = vcombine.high %v11851_v37, %v11882_v4 }
 0x312   :  { %5583 = vmatprep.subr.bf16.mxu1 %v9643_v30  ;;  %v3765_v27 = vrot.slane %v3764_v22, 4  ;;  %v8879_v30 = vcombine.low %v11781_v19, %v11928_v51  ;;  %v3811_v22 = vrot.slane %v3809_v28, 4  ;;  %v8884_v23 = vcombine.high %v11962_v21, %v11964_v0 }
 0x313   :  { %v3788_v35 = vor.u32 %v3787_v8, %v3783_v53  ;;  %v3760_v40 = vsel %vm10053_vm8, %v3755_v12, %v3759_v57  ;;  %v11968_v57 = vcombine.low %v11841_v1, %v11876_v46  ;;  %v3829_v8 = vshll.u32 %v11871_v20, 16  ;;  %v3617_v12 = vld [vmem:[#allocation3 + $0xd0] sm:$0x11] }
 0x314   :  { %5082 = vmatmul.mubr.bf16.gmra.mrb[12].mxu1 %v8877_v13  ;;  %v3770_v10 = vsel %vm10053_vm8, %v3765_v27, %v3769_v44  ;;  %v3796_v13 = vshrl.u32 %v11825_v54, 16  ;;  %v3778_v54 = vor.u32 %v3777_v3, %v3774_v11  ;;  %v3833_v44 = vshrl.u32 %v11871_v20, 16  ;;  %v9668_v20 = vld [vmem:[#allocation6 + $0x2c4] ss:$8 sps:$4 sm:$0xff]  }
 0x315   :  { %5091 = vmatprep.mubr.bf16.mxu1 %v8880_v7  ;;  %5584 = vmatpush1.bf16.msra.mxu1 %v9641_v36  ;;  %v8797_v36 = vcombine.low %v3736_v2, %v3746_v50  ;;  %v8800_v7 = vcombine.high %v3760_v40, %v3770_v10  ;;  %v3789_v50 = vrot.slane %v3788_v35, 4  ;;  %v11991_v28 = vcombine.low %v11851_v37, %v11882_v4  ;;  %v11995_v3 = vld [vmem:[#allocation3 + $0x168] sm:$0xff] }
 0x316   :  { %5585 = vmatprep.subr.bf16.mxu1 %v9646_v14  ;;  %v11960_v14 = vrot.slane %v3805_v25, 5  ;;  %v3798_v2 = vrot.slane %v3796_v13, 4  ;;  %v8799_v25 = vcombine.low %v3760_v40, %v3770_v10  ;;  %v3823_v10 = vshll.u32 %v11769_v33, 16  ;;  %v9666_v37 = vld [vmem:[#allocation6 + $0x2c0] ss:$8 sps:$4 sm:$0xff]  }
 0x317   :  { %4459 = vmatmul.mubr.bf16.gmra.mrb[44].mxu0 %v8795_v56  ;;  %v11972_v56 = vcombine.high %v11841_v1, %v11876_v46  ;;  %v3779_v1 = vrot.slane %v3778_v54, 4  ;;  %v3794_v46 = vsel %vm10053_vm8, %v3789_v50, %v3793_v6  ;;  %v3831_v13 = vrot.slane %v3829_v8, 5  ;;  %v9669_v50 = vld [vmem:[#allocation6 + $0x2d0] ss:$8 sps:$4 sm:$0xff]   ;;  %v9680_v8 = vld [vmem:[#allocation6 + $0x2f4] ss:$8 sps:$4 sm:$0xff]  }
 0x318   :  { %4468 = vmatprep.mubr.bf16.mxu0 %v8798_v45  ;;  %v9656_v45 = vld [vmem:[#allocation6 + $0x2a0] ss:$8 sps:$4 sm:$0xff]   ;;  %v3812_v27 = vor.u32 %v3811_v22, %v11960_v14  ;;  %v8883_v4 = vcombine.low %v11962_v21, %v11964_v0  ;;  %v3825_v34 = vrot.slane %v3823_v10, 5  ;;  %v9678_v10 = vld [vmem:[#allocation6 + $0x2f0] ss:$8 sps:$4 sm:$0xff]  }
 0x319   :  { %5586 = vmatpush1.bf16.msra.mxu1 %v9644_v18  ;;  %v3801_v18 = vrot.slane %v3799_v43, 5  ;;  %v3784_v38 = vsel %vm10053_vm8, %v3779_v1, %v3783_v53  ;;  %v11997_v53 = vld [vmem:[#allocation3 + $0x170] sm:$0xff]  ;;  %v3835_v43 = vrot.slane %v3833_v44, 4 }
 0x31a   :  { %5587 = vmatprep.subr.bf16.mxu1 %v9650_v41  ;;  %v9663_v41 = vld [vmem:[#allocation6 + $0x2b4] ss:$8 sps:$4 sm:$0xff]   ;;  %v3813_v35 = vrot.slane %v3812_v27, 4  ;;  %v8801_v22 = vcombine.low %v3784_v38, %v3794_v46  ;;  %v12018_v27 = vcombine.low %v11995_v3, %v11997_v53 }
 0x31b   :  { %v3802_v11 = vor.u32 %v3801_v18, %v3798_v2  ;;  %v3618_v18 = vld [vmem:[#allocation3 + $0x100] sm:$0x11] }
 0x31c   :  { %5092 = vmatmul.mubr.bf16.gmra.mrb[16].mxu1 %v8879_v30  ;;  %v3820_v30 = vshrl.u32 %v11769_v33, 16  ;;  %v3839_v33 = vshll.u32 %v3617_v12, 16  ;;  %v3863_v1 = vshll.u32 %v3618_v18, 16 }
 0x31d   :  { %5101 = vmatprep.mubr.bf16.mxu1 %v8882_v47  ;;  %5588 = vmatpush1.bf16.msra.mxu1 %v9648_v63  ;;  %v9661_v63 = vld [vmem:[#allocation6 + $0x2b0] ss:$8 sps:$4 sm:$0xff]   ;;  %v8802_v47 = vcombine.high %v3784_v38, %v3794_v46  ;;  %v3803_v40 = vrot.slane %v3802_v11, 4  ;;  %v9674_v46 = vld [vmem:[#allocation6 + $0x2e0] ss:$8 sps:$4 sm:$0xff]  }
 0x31e   :  { %5589 = vmatprep.subr.bf16.mxu1 %v9655_v9  ;;  %v3817_v9 = vrot.slane %v3815_v58, 5  ;;  %v3822_v6 = vrot.slane %v3820_v30, 4  ;;  %v9676_v58 = vld [vmem:[#allocation6 + $0x2e4] ss:$8 sps:$4 sm:$0xff]   ;;  %v3877_v30 = vshll.u32 %v11916_v5, 16  ;;  %v3865_v12 = vrot.slane %v3863_v1, 5 }
 0x31f   :  { %4469 = vmatmul.mubr.bf16.gmra.mrb[48].mxu0 %v8797_v36  ;;  %v12003_v36 = vcombine.high %v11995_v3, %v11997_v53  ;;  %v3808_v54 = vsel %vm10053_vm8, %v3803_v40, %v11960_v14  ;;  %v3881_v14 = vshrl.u32 %v11916_v5, 16  ;;  %v9683_v5 = vld [vmem:[#allocation6 + $0x304] ss:$8 sps:$4 sm:$0xff]   ;;  %v3892_v1 = vshrl.u32 %v11781_v19, 16 }
 0x320   :  { %4478 = vmatprep.mubr.bf16.mxu0 %v8800_v7  ;;  %v3818_v7 = vsel %vm10053_vm8, %v3813_v35, %v3817_v9  ;;  %v3868_v35 = vshrl.u32 %v11774_v29, 16  ;;  %v12033_v40 = vrot.slane %v3877_v30, 5 }
 0x321   :  { %5590 = vmatpush1.bf16.msra.mxu1 %v9653_v32  ;;  %v9671_v32 = vld [vmem:[#allocation6 + $0x2d4] ss:$8 sps:$4 sm:$0xff]   ;;  %v8804_v2 = vcombine.high %v3808_v54, %v3818_v7  ;;  %v8803_v11 = vcombine.low %v3808_v54, %v3818_v7  ;;  %v3901_v54 = vshll.u32 %v11928_v51, 16 }
 0x322   :  { %5591 = vmatprep.subr.bf16.mxu1 %v9658_v48  ;;  %v3836_v48 = vor.u32 %v3835_v43, %v3831_v13  ;;  %v3871_v43 = vshll.u32 %v11774_v29, 16  ;;  %v12035_v7 = vld [vmem:[#allocation3 + $0x198] sm:$0xff]  ;;  %v12043_v29 = vsel %vm10053_vm8, %v11404_v24, %v3865_v12  ;;  %v3870_v18 = vrot.slane %v3868_v35, 4 }
 0x324   :  { %5102 = vmatmul.mubr.bf16.gmra.mrb[20].mxu1 %v8881_v39  ;;  %v3837_v44 = vrot.slane %v3836_v48, 4  ;;  %v3841_v39 = vrot.slane %v3839_v33, 5  ;;  %v3883_v33 = vrot.slane %v3881_v14, 4  ;;  %v3623_v48 = vld [vmem:[#allocation3 + $0x178] sm:$0x11] }
 0x325   :  { %5111 = vmatprep.mubr.bf16.mxu1 %v8884_v23  ;;  %5592 = vmatpush1.bf16.msra.mxu1 %v9656_v45  ;;  %v3826_v45 = vor.u32 %v3825_v34, %v3822_v6  ;;  %v12011_v23 = vld [vmem:[#allocation3 + $0x180] sm:$0xff]  ;;  %v3983_v24 = vshll.u32 %v3623_v48, 16  ;;  %v12060_v14 = vld [vmem:[#allocation3 + $0x190] sm:$0x11]  ;;  %v3940_v48 = vshrl.u32 %v11962_v21, 16 }
 0x326   :  { %5593 = vmatprep.subr.bf16.mxu1 %v9663_v41  ;;  %v12013_v41 = vld [vmem:[#allocation3 + $0x188] sm:$0xff] }
 0x327   :  { %4479 = vmatmul.mubr.bf16.gmra.mrb[52].mxu0 %v8799_v25  ;;  %v12022_v25 = vcombine.high %v12011_v23, %v12013_v41  ;;  %v3827_v38 = vrot.slane %v3826_v45, 4 }
 0x328   :  { %4488 = vmatprep.mubr.bf16.mxu0 %v8802_v47  ;;  %v3619_v47 = vld [vmem:[#allocation3 + $0x118] sm:$0x11] }
 0x329   :  { %5594 = vmatpush1.bf16.msra.mxu1 %v9661_v63  ;;  %v3842_v63 = vsel %vm10053_vm8, %v3837_v44, %v3841_v39  ;;  %v3832_v9 = vsel %vm10053_vm8, %v3827_v38, %v3831_v13  ;;  %v12037_v13 = vld [vmem:[#allocation3 + $0x1a0] sm:$0xff]  ;;  %v3887_v6 = vshll.u32 %v3619_v47, 16  ;;  %v3884_v39 = vor.u32 %v3883_v33, %v12033_v40  ;;  %v12079_v33 = vld [vmem:[#allocation3 + $0x1b8] sm:$0xff] }
 0x32a   :  { %5595 = vmatprep.subr.bf16.mxu1 %v9668_v20  ;;  %v3620_v20 = vld [vmem:[#allocation3 + $0x130] sm:$0x11]  ;;  %v12052_v44 = vcombine.high %v12035_v7, %v12037_v13  ;;  %v8805_v38 = vcombine.low %v3832_v9, %v3842_v63  ;;  %v12065_v47 = vrot.slane %v3901_v54, 5  ;;  %v3925_v54 = vshll.u32 %v11946_v55, 16 }
 0x32b   :  { %v3911_v34 = vshll.u32 %v3620_v20, 16  ;;  %v3889_v30 = vrot.slane %v3887_v6, 5  ;;  %v3885_v35 = vrot.slane %v3884_v39, 4  ;;  %v8807_v39 = vcombine.low %v11419_v49, %v12043_v29 }
 0x32c   :  { %5112 = vmatmul.mubr.bf16.gmra.mrb[24].mxu1 %v8883_v4  ;;  %v3621_v4 = vld [vmem:[#allocation3 + $0x148] sm:$0x11] }
 0x32d   :  { %5121 = vmatprep.mubr.bf16.mxu1 %v12003_v36  ;;  %5596 = vmatpush1.bf16.msra.mxu1 %v9666_v37  ;;  %v8806_v37 = vcombine.high %v3832_v9, %v3842_v63  ;;  %v3913_v20 = vrot.slane %v3911_v34, 5  ;;  %v3916_v9 = vshrl.u32 %v11788_v60, 16  ;;  %v3929_v34 = vshrl.u32 %v11946_v55, 16 }
 0x32e   :  { %5597 = vmatprep.subr.bf16.mxu1 %v9671_v32  ;;  %v3622_v32 = vld [vmem:[#allocation3 + $0x160] sm:$0x11]  ;;  %v3890_v55 = vsel %vm10053_vm8, %v3885_v35, %v3889_v30 }
 0x32f   :  { %4489 = vmatmul.mubr.bf16.gmra.mrb[56].mxu0 %v8801_v22  ;;  %v3905_v22 = vshrl.u32 %v11928_v51, 16  ;;  %v3959_v45 = vshll.u32 %v3622_v32, 16  ;;  %v3895_v51 = vshll.u32 %v11781_v19, 16  ;;  %v3894_v32 = vrot.slane %v3892_v1, 4 }
 0x330   :  { %4498 = vmatprep.mubr.bf16.mxu0 %v8804_v2  ;;  %v12048_v2 = vcombine.low %v12011_v23, %v12013_v41  ;;  %v3977_v1 = vshrl.u32 %v11997_v53, 16  ;;  %v3918_v35 = vrot.slane %v3916_v9, 4 }
 0x331   :  { %5598 = vmatpush1.bf16.msra.mxu1 %v9669_v50  ;;  %v3935_v50 = vshll.u32 %v3621_v4, 16  ;;  %v12069_v19 = vrot.slane %v3959_v45, 5  ;;  %v12077_v4 = vld [vmem:[#allocation3 + $0x1b0] sm:$0xff]  ;;  %v3897_v6 = vrot.slane %v3895_v51, 5  ;;  %v3964_v45 = vshrl.u32 %v11995_v3, 16 }
 0x332   :  { %5599 = vmatprep.subr.bf16.mxu1 %v9676_v58  ;;  %v3873_v58 = vrot.slane %v3871_v43, 5  ;;  %v12071_v43 = vrot.slane %v3983_v24, 5  ;;  %v12096_v24 = vcombine.high %v12077_v4, %v12079_v33  ;;  %v3979_v9 = vrot.slane %v3977_v1, 4 }
 0x334   :  { %5122 = vmatmul.mubr.bf16.gmra.mrb[28].mxu1 %v12018_v27  ;;  %v3874_v12 = vor.u32 %v3873_v58, %v3870_v18  ;;  %v3953_v18 = vshrl.u32 %v11964_v0, 16  ;;  %14323 = vst [vmem:[#allocation14_spill] sm:$0xff] %v12096_v24 }
 0x335   :  { %5131 = vmatprep.mubr.bf16.mxu1 %v12022_v25  ;;  %5600 = vmatpush1.bf16.msra.mxu1 %v9674_v46  ;;  %v8808_v46 = vcombine.high %v11419_v49, %v12043_v29  ;;  %v12107_v29 = vrot.slane %v3925_v54, 5  ;;  %v12118_v54 = vld [vmem:[#allocation3 + $0x1c0] sm:$0x11] }
 0x336   :  { %5601 = vmatprep.subr.bf16.mxu1 %v9680_v8  ;;  %v12062_v8 = vld [vmem:[#allocation3 + $0x1a8] sm:$0x11]  ;;  %v3875_v58 = vrot.slane %v3874_v12, 4  ;;  %v4001_v12 = vshrl.u32 %v12013_v41, 16 }
 0x337   :  { %4499 = vmatmul.mubr.bf16.gmra.mrb[60].mxu0 %v8803_v11  ;;  %v3907_v11 = vrot.slane %v3905_v22, 4  ;;  %v4031_v63 = vshll.u32 %v12062_v8, 16  ;;  %v3949_v8 = vshll.u32 %v11964_v0, 16 }
 0x338   :  { %4508 = vmatprep.mubr.bf16.mxu0 %v8806_v37  ;;  %v4007_v37 = vshll.u32 %v12060_v14, 16  ;;  %v3880_v51 = vsel %vm10053_vm8, %v3875_v58, %v12033_v40  ;;  %v3931_v14 = vrot.slane %v3929_v34, 4  ;;  %v12116_v40 = vcombine.low %v12077_v4, %v12079_v33 }
 0x339   :  { %5602 = vmatpush1.bf16.msra.mxu1 %v9678_v10  ;;  %v12067_v10 = vrot.slane %v3935_v50, 5  ;;  %v3908_v22 = vor.u32 %v3907_v11, %v12065_v47  ;;  %v3943_v50 = vshll.u32 %v11962_v21, 16  ;;  %v3967_v21 = vshll.u32 %v11995_v3, 16 }
 0x33a   :  { %6679 = vmatprep.subr.bf16.mxu1 %v9683_v5  ;;  %v3919_v5 = vshll.u32 %v11788_v60, 16  ;;  %v12089_v60 = vcombine.low %v12035_v7, %v12037_v13  ;;  %v3991_v3 = vshll.u32 %v12011_v23, 16  ;;  %v8810_v30 = vcombine.high %v3880_v51, %v3890_v55  ;;  %14324 = vst [vmem:[#allocation15_spill] sm:$0xff] %v12116_v40 }
 0x33b   :  { %v3909_v49 = vrot.slane %v3908_v22, 4  ;;  %v3973_v11 = vshll.u32 %v11997_v53, 16  ;;  %v3942_v34 = vrot.slane %v3940_v48, 4  ;;  %v3945_v0 = vrot.slane %v3943_v50, 5 }
 0x33c   :  { %5132 = vmatmul.mubr.bf16.gmra.mrb[32].mxu1 %v12048_v2  ;;  %14322 = vst [vmem:[#allocation13_spill] sm:$0xff] %v12089_v60  ;;  %v3955_v22 = vrot.slane %v3953_v18, 4  ;;  %v3932_v53 = vor.u32 %v3931_v14, %v12107_v29  ;;  %v3951_v58 = vrot.slane %v3949_v8, 5  ;;  %v3969_v61 = vrot.slane %v3967_v21, 5 }
 0x33d   :  { %5141 = vmatprep.mubr.bf16.mxu1 %v12052_v44  ;;  %v12125_v26 = vrot.slane %v3973_v11, 5  ;;  %v12133_v50 = vrot.slane %v4007_v37, 5  ;;  %v12135_v18 = vrot.slane %v4031_v63, 5  ;;  %v3993_v14 = vrot.slane %v3991_v3, 5  ;;  %v12142_v37 = vld [vmem:[#allocation3 + $0x48] sm:$0xff] }
 0x33e   :  { %14325 = vst [vmem:[#allocation16_spill] sm:$0xff] %v12142_v37  ;;  %v4003_v11 = vrot.slane %v4001_v12, 4  ;;  %v4039_v3 = vshll.u32 %v12077_v4, 16 }
 0x33f   :  { %4509 = vmatmul.mubr.bf16.gmra.mrb[64].mxu0 %v8805_v38  ;;  %v3988_v38 = vshrl.u32 %v12011_v23, 16  ;;  %v12122_v23 = vsel %vm10053_vm8, %v3909_v49, %v3913_v20  ;;  %v3956_v49 = vor.u32 %v3955_v22, %v3951_v58  ;;  %v3980_v8 = vor.u32 %v3979_v9, %v12125_v26 }
 0x340   :  { %4518 = vmatprep.mubr.bf16.mxu0 %v8808_v46  ;;  %v3898_v46 = vor.u32 %v3897_v6, %v3894_v32  ;;  %v3921_v32 = vrot.slane %v3919_v5, 5  ;;  %v3997_v5 = vshll.u32 %v12013_v41, 16  ;;  %v3933_v41 = vrot.slane %v3932_v53, 4 }
 0x341   :  { %v3957_v22 = vrot.slane %v3956_v49, 4 }
 0x342   :  { %v3899_v6 = vrot.slane %v3898_v46, 4  ;;  %v3922_v1 = vor.u32 %v3921_v32, %v3918_v35  ;;  %v3946_v46 = vor.u32 %v3945_v0, %v3942_v34  ;;  %v4025_v35 = vshrl.u32 %v12037_v13, 16  ;;  %v9681_v34 = vld [vmem:[#allocation6 + $0x300] ss:$8 sps:$4 sm:$0xff]  }
 0x343   :  { %v4021_v32 = vshll.u32 %v12037_v13, 16  ;;  %v12161_v13 = vsel %vm10053_vm8, %v3933_v41, %v12067_v10  ;;  %v9707_v41 = vld [vmem:[#allocation6 + $0x354] ss:$8 sps:$4 sm:$0xff]  }
 0x344   :  { %5142 = vmatmul.mubr.bf16.gmra.mrb[36].mxu1 %v12089_v60  ;;  %v12131_v48 = vsel %vm10053_vm8, %v3899_v6, %v12065_v47  ;;  %v3990_v47 = vrot.slane %v3988_v38, 4  ;;  %v4036_v38 = vshrl.u32 %v12077_v4, 16  ;;  %v3923_v6 = vrot.slane %v3922_v1, 4 }
 0x345   :  { %5151 = vmatprep.mubr.bf16.mxu1 %v12096_v24  ;;  %v8812_v21 = vcombine.high %v12131_v48, %v12122_v23  ;;  %v3947_v0 = vrot.slane %v3946_v46, 4  ;;  %v12164_v20 = vrot.slane %v4021_v32, 5  ;;  %v4027_v12 = vrot.slane %v4025_v35, 4 }
 0x346   :  { %v3994_v53 = vor.u32 %v3993_v14, %v3990_v47  ;;  %v8811_v46 = vcombine.low %v12131_v48, %v12122_v23  ;;  %v12172_v10 = vsel %vm10053_vm8, %v3923_v6, %v12107_v29  ;;  %v12178_v47 = vld [vmem:[#allocation3 + $0x78] sm:$0xff]  ;;  %v12188_v29 = vsel %vm10053_vm8, %v3957_v22, %v12069_v19  ;;  %v9700_v22 = vld [vmem:[#allocation6 + $0x340] ss:$8 sps:$4 sm:$0xff]  }
 0x347   :  { %4519 = vmatmul.mubr.bf16.gmra.mrb[68].mxu0 %v8807_v39  ;;  %v3966_v39 = vrot.slane %v3964_v45, 4  ;;  %v8809_v45 = vcombine.low %v3880_v51, %v3890_v55  ;;  %v4012_v55 = vshrl.u32 %v12035_v7, 16  ;;  %v4015_v51 = vshll.u32 %v12035_v7, 16  ;;  %v12156_v7 = vld [vmem:[#allocation3 + $0x60] sm:$0xff]  ;;  %v9684_v14 = vld [vmem:[#allocation6 + $0x310] ss:$8 sps:$4 sm:$0xff]  }
 0x348   :  { %4528 = vmatprep.mubr.bf16.mxu0 %v8810_v30  ;;  %v12145_v30 = vrot.slane %v3997_v5, 5  ;;  %14326 = vst [vmem:[#allocation25_spill] sm:$0xff] %v12156_v7  ;;  %v3981_v5 = vrot.slane %v3980_v8, 4  ;;  %v12183_v23 = vsel %vm10053_vm8, %v3947_v0, %v3951_v58  ;;  %v8814_v8 = vcombine.high %v12172_v10, %v12161_v13  ;;  %v12213_v0 = vld [vmem:[#allocation3 + $0xb0] sm:$0xff] }
 0x349   :  { %v3970_v63 = vor.u32 %v3969_v61, %v3966_v39  ;;  %v4049_v61 = vshrl.u32 %v12079_v33, 16  ;;  %v9686_v39 = vld [vmem:[#allocation6 + $0x314] ss:$8 sps:$4 sm:$0xff]   ;;  %v4017_v1 = vrot.slane %v4015_v51, 5  ;;  %v8813_v35 = vcombine.low %v12172_v10, %v12161_v13 }
 0x34a   :  { %v12202_v58 = vsel %vm10053_vm8, %v3981_v5, %v12071_v43  ;;  %v12204_v51 = vld [vmem:[#allocation3 + $0x90] sm:$0xff]  ;;  %v8816_v43 = vcombine.high %v12183_v23, %v12188_v29  ;;  %v4045_v13 = vshll.u32 %v12079_v33, 16  ;;  %v6068_v48 = vshrl.u32 %v12213_v0, 16 }
 0x34b   :  { %v3971_v9 = vrot.slane %v3970_v63, 4  ;;  %v3995_v63 = vrot.slane %v3994_v53, 4 }
 0x34c   :  { %5152 = vmatmul.mubr.bf16.gmra.mrb[40].mxu1 %v12116_v40  ;;  %v14330_v40 = vcombine.high %v12156_v7, %v11908_v17 }
 0x34d   :  { %5603 = vmatprep.mubr.bf16.mxu1 %v11972_v56  ;;  %v12229_v5 = vsel %vm10053_vm8, %v3995_v63, %v12145_v30  ;;  %v12243_v63 = vrot.slane %v4036_v38, 4  ;;  %v14327_v38 = vcombine.high %v12142_v37, %v11889_v62 }
 0x34f   :  { %4529 = vmatmul.mubr.bf16.gmra.mrb[72].mxu0 %v8809_v45  ;;  %v4004_v45 = vor.u32 %v4003_v11, %v12145_v30  ;;  %v9692_v11 = vld [vmem:[#allocation6 + $0x324] ss:$8 sps:$4 sm:$0xff]  }
 0x350   :  { %4538 = vmatprep.mubr.bf16.mxu0 %v8812_v21  ;;  %v4014_v21 = vrot.slane %v4012_v55, 4  ;;  %v12197_v55 = vsel %vm10053_vm8, %v3971_v9, %v12125_v26  ;;  %v12211_v26 = vld [vmem:[#allocation3 + $0xa8] sm:$0xff] }
 0x351   :  { %v4005_v19 = vrot.slane %v4004_v45, 4  ;;  %v6055_v10 = vshrl.u32 %v12211_v26, 16  ;;  %v12249_v45 = vld [vmem:[#allocation3 + $0xc0] sm:$0xff] }
 0x352   :  { %v4018_v6 = vor.u32 %v4017_v1, %v4014_v21  ;;  %v5876_v21 = vld [vmem:[#allocation3 + $0xb8] sm:$0x11] }
 0x353   :  { %v12236_v1 = vsel %vm10053_vm8, %v4005_v19, %v12133_v50  ;;  %v12251_v50 = vld [vmem:[#allocation3 + $0xc8] sm:$0xff]  ;;  %v12254_v19 = vrot.slane %v4045_v13, 5  ;;  %v6074_v13 = vshll.u32 %v5876_v21, 16 }
 0x354   :  { %5604 = vmatmul.mubr.bf16.vlgmr.msra.gmra.mrb[44].mxu1 %v11968_v57  ;;  %v4019_v53 = vrot.slane %v4018_v6, 4  ;;  %v12258_v6 = vrot.slane %v4049_v61, 4  ;;  %v6079_v61 = vshrl.u32 %v12249_v45, 16  ;;  %v12281_v21 = vld [vmem:[#allocation3 + $0x108] sm:$0xff] }
 0x355   :  { %6680 = vmatpush1.bf16.msra.mxu1 %v9681_v34  ;;  %5613 = vmatprep.mubr.bf16.mxu1 %v11981_v42  ;;  %v4028_v34 = vor.u32 %v4027_v12, %v12164_v20  ;;  %v9702_v12 = vld [vmem:[#allocation6 + $0x344] ss:$8 sps:$4 sm:$0xff]  }
 0x356   :  { %6681 = vmatprep.subr.bf16.mxu1 %v9686_v39  ;;  %v9690_v39 = vld [vmem:[#allocation6 + $0x320] ss:$8 sps:$4 sm:$0xff]   ;;  %v6081_v4 = vrot.slane %v6079_v61, 4 }
 0x357   :  { %4539 = vmatmul.mubr.bf16.gmra.mrb[76].mxu0 %v8811_v46  ;;  %v9697_v46 = vld [vmem:[#allocation6 + $0x334] ss:$8 sps:$4 sm:$0xff]   ;;  %v4029_v30 = vrot.slane %v4028_v34, 4  ;;  %v6057_v34 = vrot.slane %v6055_v10, 4  ;;  %v6082_v10 = vshll.u32 %v12249_v45, 16 }
 0x358   :  { %4548 = vmatprep.mubr.bf16.mxu0 %v8814_v8  ;;  %v6064_v8 = vshll.u32 %v12213_v0, 16 }
 0x359   :  { %6682 = vmatpush1.bf16.msra.mxu1 %v9684_v14  ;;  %v6058_v14 = vshll.u32 %v12211_v26, 16 }
 0x35a   :  { %6683 = vmatprep.subr.bf16.mxu1 %v9692_v11  ;;  %v12247_v11 = vrot.slane %v4039_v3, 5  ;;  %v9695_v3 = vld [vmem:[#allocation6 + $0x330] ss:$8 sps:$4 sm:$0xff]   ;;  %v6066_v32 = vrot.slane %v6064_v8, 5  ;;  %v12277_v8 = vsel %vm10053_vm8, %v4029_v30, %v12135_v18  ;;  %v6084_v30 = vrot.slane %v6082_v10, 5 }
 0x35b   :  { %v6060_v9 = vrot.slane %v6058_v14, 5  ;;  %v6088_v14 = vshll.u32 %v12251_v50, 16 }
 0x35c   :  { %5614 = vmatmul.mubr.bf16.gmra.mrb[48].mxu1 %v11991_v28  ;;  %v6085_v61 = vor.u32 %v6084_v30, %v6081_v4  ;;  %v9705_v4 = vld [vmem:[#allocation6 + $0x350] ss:$8 sps:$4 sm:$0xff]  }
 0x35d   :  { %5623 = vmatprep.mubr.bf16.mxu1 %v14327_v38  ;;  %6684 = vmatpush1.bf16.msra.mxu1 %v9690_v39  ;;  %v6061_v33 = vor.u32 %v6060_v9, %v6057_v34  ;;  %v12272_v39 = vsel %vm10053_vm8, %v4019_v53, %v12164_v20  ;;  %v5879_v34 = vld [vmem:[#allocation3 + $0xd0] sm:$0x11]  ;;  %v6076_v53 = vrot.slane %v6074_v13, 5  ;;  %v6090_v49 = vrot.slane %v6088_v14, 5 }
 0x35e   :  { %6685 = vmatprep.subr.bf16.mxu1 %v9697_v46  ;;  %v6070_v46 = vrot.slane %v6068_v48, 4  ;;  %v12285_v38 = vld [vmem:[#allocation3 + $0x110] sm:$0xff]  ;;  %v6092_v9 = vshrl.u32 %v12251_v50, 16  ;;  %v14329_v14 = vcombine.low %v12142_v37, %v11889_v62  ;;  %v6086_v62 = vrot.slane %v6085_v61, 4 }
 0x35f   :  { %4549 = vmatmul.mubr.bf16.gmra.mrb[80].mxu0 %v8813_v35  ;;  %v6062_v20 = vrot.slane %v6061_v33, 4  ;;  %v6127_v35 = vshrl.u32 %v12281_v21, 16  ;;  %v6130_v33 = vshll.u32 %v12281_v21, 16  ;;  %v6136_v10 = vshll.u32 %v12285_v38, 16 }
 0x360   :  { %4558 = vmatprep.mubr.bf16.mxu0 %v8816_v43  ;;  %v6071_v18 = vor.u32 %v6070_v46, %v6066_v32  ;;  %v6098_v43 = vshll.u32 %v5879_v34, 16  ;;  %v6140_v34 = vshrl.u32 %v12285_v38, 16  ;;  %v14332_v37 = vcombine.low %v12183_v23, %v12188_v29  ;;  %v12329_v29 = vld [vmem:[#allocation3 + $0x140] sm:$0xff] }
 0x361   :  { %6686 = vmatpush1.bf16.msra.mxu1 %v9695_v3  ;;  %v12290_v48 = vsel %vm10053_vm8, %v6062_v20, %v6066_v32  ;;  %v6094_v3 = vrot.slane %v6092_v9, 4  ;;  %v6129_v32 = vrot.slane %v6127_v35, 4  ;;  %v6132_v20 = vrot.slane %v6130_v33, 5  ;;  %v12304_v9 = vld [vmem:[#allocation3 + $0x128] sm:$0xff] }
 0x362   :  { %6687 = vmatprep.subr.bf16.mxu1 %v9702_v12  ;;  %14328 = vst [vmem:[#allocation28_spill] sm:$0xff] %v12290_v48  ;;  %v6072_v13 = vrot.slane %v6071_v18, 4  ;;  %v12298_v12 = vld [vmem:[#allocation3 + $0x120] sm:$0xff]  ;;  %v6100_v46 = vrot.slane %v6098_v43, 5  ;;  %v6146_v61 = vshll.u32 %v5885_v15, 16  ;;  %v6188_v24 = vshrl.u32 %v12329_v29, 16 }
 0x363   :  { %v6095_v30 = vor.u32 %v6094_v3, %v6090_v49  ;;  %v9712_v35 = vld [vmem:[#allocation6 + $0x364] ss:$8 sps:$4 sm:$0xff]   ;;  %v14334_v3 = vcombine.high %v12197_v55, %v12202_v58  ;;  %v6154_v23 = vshll.u32 %v12298_v12, 16 }
 0x364   :  { %5624 = vmatmul.mubr.bf16.gmra.mrb[52].mxu1 %v14329_v14  ;;  %v12308_v18 = vsel %vm10053_vm8, %v6072_v13, %v6076_v53  ;;  %v6138_v14 = vrot.slane %v6136_v10, 5  ;;  %v12319_v53 = vsel %vm10053_vm8, %v6086_v62, %v6090_v49  ;;  %v12325_v10 = vld [vmem:[#allocation3 + $0x138] sm:$0xff]  ;;  %v9710_v49 = vld [vmem:[#allocation6 + $0x360] ss:$8 sps:$4 sm:$0xff]   ;;  %v6148_v62 = vrot.slane %v6146_v61, 5 }
 0x365   :  { %5633 = vmatprep.mubr.bf16.mxu1 %v14330_v40  ;;  %6688 = vmatpush1.bf16.msra.mxu1 %v9700_v22  ;;  %14331 = vst [vmem:[#allocation17_spill] sm:$0xff] %v12308_v18  ;;  %v6133_v40 = vor.u32 %v6132_v20, %v6129_v32  ;;  %v6142_v22 = vrot.slane %v6140_v34, 4  ;;  %14333 = vst [vmem:[#allocation18_spill] sm:$0xff] %v12319_v53  ;;  %v6096_v13 = vrot.slane %v6095_v30, 4  ;;  %v5888_v34 = vld [vmem:[#allocation3 + $0x130] sm:$0x11] }
 0x366   :  { %6689 = vmatprep.subr.bf16.mxu1 %v9707_v41  ;;  %v6151_v41 = vshrl.u32 %v12298_v12, 16  ;;  %v6156_v18 = vrot.slane %v6154_v23, 5  ;;  %v6170_v61 = vshll.u32 %v5888_v34, 16  ;;  %v5891_v33 = vld [vmem:[#allocation3 + $0x148] sm:$0x11]  ;;  %v12359_v34 = vld [vmem:[#allocation3 + $0x158] sm:$0xff] }
 0x367   :  { %4559 = vmatmul.mubr.bf16.gmra.mrb[84].mxu0 %v14332_v37  ;;  %v6134_v32 = vrot.slane %v6133_v40, 4  ;;  %v6143_v20 = vor.u32 %v6142_v22, %v6138_v14  ;;  %v6160_v37 = vshll.u32 %v12304_v9, 16  ;;  %v12333_v15 = vsel %vm10053_vm8, %v6096_v13, %v6100_v46  ;;  %v9716_v40 = vld [vmem:[#allocation6 + $0x374] ss:$8 sps:$4 sm:$0xff]  }
 0x368   :  { %4568 = vmatprep.mubr.bf16.mxu0 %v14334_v3  ;;  %14335 = vst [vmem:[#allocation19_spill] sm:$0xff] %v12333_v15  ;;  %v6153_v30 = vrot.slane %v6151_v41, 4  ;;  %v6164_v3 = vshrl.u32 %v12304_v9, 16  ;;  %v14336_v41 = vcombine.low %v12156_v7, %v11908_v17  ;;  %v6175_v15 = vshrl.u32 %v12325_v10, 16  ;;  %v9714_v17 = vld [vmem:[#allocation6 + $0x370] ss:$8 sps:$4 sm:$0xff]  }
 0x369   :  { %6690 = vmatpush1.bf16.msra.mxu1 %v9705_v4  ;;  %v12342_v4 = vsel %vm10053_vm8, %v6134_v32, %v6138_v14  ;;  %v6144_v43 = vrot.slane %v6143_v20, 4  ;;  %v6162_v46 = vrot.slane %v6160_v37, 5  ;;  %v6178_v14 = vshll.u32 %v12325_v10, 16 }
 0x36a   :  { %6691 = vmatprep.subr.bf16.mxu1 %v9712_v35  ;;  %v6166_v13 = vrot.slane %v6164_v3, 4  ;;  %v12347_v35 = vld [vmem:[#allocation3 + $0x150] sm:$0xff]  ;;  %v6184_v32 = vshll.u32 %v12329_v29, 16  ;;  %v14337_v20 = vcombine.high %v12178_v47, %v11924_v16  ;;  %v6157_v37 = vor.u32 %v6156_v18, %v6153_v30  ;;  %v9720_v3 = vld [vmem:[#allocation6 + $0x384] ss:$8 sps:$4 sm:$0xff]  }
 0x36b   :  { %v12351_v22 = vsel %vm10053_vm8, %v6144_v43, %v6148_v62  ;;  %v6172_v62 = vrot.slane %v6170_v61, 5  ;;  %v6177_v53 = vrot.slane %v6175_v15, 4  ;;  %v6180_v48 = vrot.slane %v6178_v14, 5 }
 0x36c   :  { %5634 = vmatmul.mubr.bf16.gmra.mrb[56].mxu1 %v14336_v41  ;;  %v9011_v43 = vcombine.low %v12342_v4, %v12351_v22  ;;  %v6167_v41 = vor.u32 %v6166_v13, %v6162_v46  ;;  %v6186_v7 = vrot.slane %v6184_v32, 5  ;;  %v6194_v60 = vshll.u32 %v5891_v33, 16  ;;  %v5894_v13 = vld [vmem:[#allocation3 + $0x160] sm:$0x11] }
 0x36d   :  { %5643 = vmatprep.mubr.bf16.mxu1 %v14337_v20  ;;  %6692 = vmatpush1.bf16.msra.mxu1 %v9710_v49  ;;  %v14338_v49 = vcombine.low %v12197_v55, %v12202_v58  ;;  %v6158_v20 = vrot.slane %v6157_v37, 4  ;;  %v6199_v23 = vshrl.u32 %v12347_v35, 16  ;;  %v14339_v18 = vcombine.high %v12229_v5, %v12236_v1  ;;  %v9718_v55 = vld [vmem:[#allocation6 + $0x380] ss:$8 sps:$4 sm:$0xff]   ;;  %v9726_v37 = vld [vmem:[#allocation6 + $0x394] ss:$8 sps:$4 sm:$0xff]  }
 0x36e   :  { %6693 = vmatprep.subr.bf16.mxu1 %v9716_v40  ;;  %v6168_v30 = vrot.slane %v6167_v41, 4  ;;  %v6181_v40 = vor.u32 %v6180_v48, %v6177_v53  ;;  %v6202_v15 = vshll.u32 %v12347_v35, 16  ;;  %v6208_v61 = vshll.u32 %v12359_v34, 16 }
 0x36f   :  { %4569 = vmatmul.mubr.bf16.gmra.mrb[88].mxu0 %v14338_v49  ;;  %v12377_v58 = vsel %vm10053_vm8, %v6158_v20, %v6162_v46  ;;  %v6190_v33 = vrot.slane %v6188_v24, 4  ;;  %v6196_v14 = vrot.slane %v6194_v60, 5  ;;  %v6201_v32 = vrot.slane %v6199_v23, 4 }
 0x370   :  { %4578 = vmatprep.mubr.bf16.mxu0 %v14339_v18  ;;  %v12381_v41 = vsel %vm10053_vm8, %v6168_v30, %v6172_v62  ;;  %v6182_v48 = vrot.slane %v6181_v40, 4  ;;  %v6204_v53 = vrot.slane %v6202_v15, 5  ;;  %v6210_v49 = vrot.slane %v6208_v61, 5  ;;  %v9724_v40 = vld [vmem:[#allocation6 + $0x390] ss:$8 sps:$4 sm:$0xff]  }
 0x371   :  { %6694 = vmatpush1.bf16.msra.mxu1 %v9714_v17  ;;  %v9014_v17 = vcombine.high %v12377_v58, %v12381_v41  ;;  %v9013_v18 = vcombine.low %v12377_v58, %v12381_v41  ;;  %v6191_v46 = vor.u32 %v6190_v33, %v6186_v7  ;;  %v6212_v24 = vshrl.u32 %v12359_v34, 16 }
 0x372   :  { %6695 = vmatprep.subr.bf16.mxu1 %v9720_v3  ;;  %v14340_v60 = vcombine.low %v12178_v47, %v11924_v16  ;;  %v12393_v23 = vsel %vm10053_vm8, %v6182_v48, %v6186_v7  ;;  %v6205_v62 = vor.u32 %v6204_v53, %v6201_v32  ;;  %v6218_v3 = vshll.u32 %v5894_v13, 16 }
 0x373   :  { %v8819_v20 = vcombine.low %v12229_v5, %v12236_v1  ;;  %v14341_v30 = vcombine.high %v12204_v51, %v11932_v59  ;;  %v6192_v15 = vrot.slane %v6191_v46, 4  ;;  %v6214_v61 = vrot.slane %v6212_v24, 4  ;;  %v9732_v5 = vld [vmem:[#allocation6 + $0x3a4] ss:$8 sps:$4 sm:$0xff]   ;;  %v12422_v24 = vld [vmem:[#allocation3 + $0x98] sm:$0xff] }
 0x374   :  { %5644 = vmatmul.mubr.bf16.gmra.mrb[60].mxu1 %v14340_v60  ;;  %v8822_v16 = vcombine.high %v12272_v39, %v12277_v8  ;;  %v14342_v7 = vor.u32 %v12247_v11, %v12243_v63  ;;  %v14343_v13 = vshll.u32 %v12118_v54, 16  ;;  %v6206_v1 = vrot.slane %v6205_v62, 4  ;;  %v9736_v60 = vld [vmem:[#allocation6 + $0x3b4] ss:$8 sps:$4 sm:$0xff]  }
 0x375   :  { %5653 = vmatprep.mubr.bf16.mxu1 %v14341_v30  ;;  %6696 = vmatpush1.bf16.msra.mxu1 %v9718_v55  ;;  %v14344_v59 = vor.u32 %v12258_v6, %v12254_v19  ;;  %v12412_v48 = vsel %vm10053_vm8, %v6192_v15, %v6196_v14  ;;  %v6215_v53 = vor.u32 %v6214_v61, %v6210_v49  ;;  %v6220_v46 = vrot.slane %v6218_v3, 5  ;;  %v9730_v6 = vld [vmem:[#allocation6 + $0x3a0] ss:$8 sps:$4 sm:$0xff]  }
 0x376   :  { %v4043_v33 = vrot.slane %v14342_v7, 4  ;;  %v4057_v32 = vrot.slane %v14343_v13, 5  ;;  %6697 = vmatprep.subr.bf16.mxu1 %v9726_v37  ;;  %v9016_v63 = vcombine.high %v12393_v23, %v12412_v48  ;;  %v9015_v54 = vcombine.low %v12393_v23, %v12412_v48  ;;  %v9737_v7 = vld [vmem:[#allocation6 + $0x3c0] ss:$8 sps:$4 sm:$0xff]   ;;  %v9742_v13 = vld [vmem:[#allocation6 + $0x3d4] ss:$8 sps:$4 sm:$0xff]  }
 0x377   :  { %4579 = vmatmul.mubr.bf16.gmra.mrb[92].mxu0 %v8819_v20  ;;  %v4053_v55 = vrot.slane %v14344_v59, 4  ;;  %v12420_v11 = vsel %vm10053_vm8, %v6206_v1, %v6210_v49  ;;  %v6216_v37 = vrot.slane %v6215_v53, 4  ;;  %v8935_v14 = vcombine.low %v12204_v51, %v12422_v24  ;;  %v9740_v1 = vld [vmem:[#allocation6 + $0x3d0] ss:$8 sps:$4 sm:$0xff]   ;;  %v9745_v59 = vld [vmem:[#allocation6 + $0x3e4] ss:$8 sps:$4 sm:$0xff]  }
 0x378   :  { %4588 = vmatprep.mubr.bf16.mxu0 %v8822_v16  ;;  %v8938_v62 = vcombine.high %v12211_v26, %v12213_v0  ;;  %v4048_v3 = vsel %vm10053_vm8, %v4043_v33, %v12254_v19  ;;  %v8821_v15 = vcombine.low %v12272_v39, %v12277_v8  ;;  %v9734_v19 = vld [vmem:[#allocation6 + $0x3b0] ss:$8 sps:$4 sm:$0xff]   ;;  %v9739_v16 = vld [vmem:[#allocation6 + $0x3c4] ss:$8 sps:$4 sm:$0xff]   ;;  %v8937_v33 = vcombine.low %v12211_v26, %v12213_v0  ;;  %v9743_v26 = vld [vmem:[#allocation6 + $0x3e0] ss:$8 sps:$4 sm:$0xff]  }
 0x379   :  { %6698 = vmatpush1.bf16.msra.mxu1 %v9724_v40  ;;  %v4058_v49 = vsel %vm10053_vm8, %v4053_v55, %v4057_v32  ;;  %v12435_v20 = vsel %vm10053_vm8, %v6216_v37, %v6220_v46  ;;  %v8940_v32 = vcombine.high %v12249_v45, %v12251_v50  ;;  %v12447_v39 = vld [vmem:[#allocation3] sm:$0xff]  ;;  %v8939_v0 = vcombine.low %v12249_v45, %v12251_v50  ;;  %v9748_v55 = vld [vmem:[#allocation6 + $0x3f4] ss:$8 sps:$4 sm:$0xff]   ;;  %v9746_v46 = vld [vmem:[#allocation6 + $0x3f0] ss:$8 sps:$4 sm:$0xff]  }
 0x37a   :  { %6699 = vmatprep.subr.bf16.mxu1 %v9732_v5  ;;  %v9018_v30 = vcombine.high %v12420_v11, %v12435_v20  ;;  %v9017_v40 = vcombine.low %v12420_v11, %v12435_v20  ;;  %v8824_v61 = vcombine.high %v4048_v3, %v4058_v49  ;;  %v12451_v8 = vcombine.high %v12447_v39, %v12447_v39  ;;  %v9790_v37 = vld [vmem:[#allocation3 + $0x50] sm:$0xff] }
 0x37b   :  { %v8823_v5 = vcombine.low %v4048_v3, %v4058_v49  ;;  %v12458_v53 = vcombine.low %v12447_v39, %v12447_v39  ;;  %v8944_v45 = vcombine.high %v12281_v21, %v12285_v38  ;;  %v8943_v50 = vcombine.low %v12281_v21, %v12285_v38  ;;  %v3113_v21 = vld [vmem:[#allocation3 + $0xe8] sm:$0x11]  ;;  %v9791_v38 = vld [vmem:[#allocation3 + $0x60] sm:$0xff] }
 0x37c   :  { %5654 = vmatmul.mubr.bf16.gmra.mrb[64].mxu1 %v8935_v14  ;;  %v3114_v49 = vsel %vm11366_vm3, 0, %v3113_v21 }
 0x37d   :  { %5663 = vmatprep.mubr.bf16.mxu1 %v8938_v62  ;;  %6700 = vmatpush1.bf16.msra.mxu1 %v9730_v6  ;;  %v8946_v6 = vcombine.high %v12298_v12, %v12304_v9  ;;  %v9792_v62 = vld [vmem:[#allocation3 + $0x68] sm:$0xff]  ;;  %3115 = vst [vmem:[#allocation3 + $0xe8] sm:$0x11] %v3114_v49 }
 0x37e   :  { %6701 = vmatprep.subr.bf16.mxu1 %v9736_v60  ;;  %v8945_v60 = vcombine.low %v12298_v12, %v12304_v9  ;;  %v8866_v3 = vcombine.high %v9791_v38, %v9792_v62  ;;  %v8950_v12 = vcombine.high %v12347_v35, %v12359_v34  ;;  %v8865_v9 = vcombine.low %v9791_v38, %v9792_v62  ;;  %v14347_v38 = vld [vmem:[#allocation15_spill] sm:$0xff] }
 0x37f   :  { %4589 = vmatmul.mubr.bf16.gmra.mrb[96].mxu0 %v8821_v15  ;;  %v9793_v15 = vld [vmem:[#allocation3 + $0x78] sm:$0xff] }
 0x380   :  { %4598 = vmatprep.mubr.bf16.mxu0 %v8824_v61 }
 0x381   :  { %6702 = vmatpush1.bf16.msra.mxu1 %v9734_v19  ;;  %v9794_v19 = vld [vmem:[#allocation3 + $0x80] sm:$0xff] }
 0x382   :  { %6703 = vmatprep.subr.bf16.mxu1 %v9739_v16  ;;  %v8868_v61 = vcombine.high %v9793_v15, %v9794_v19  ;;  %v8949_v16 = vcombine.low %v12347_v35, %v12359_v34  ;;  %v5856_v35 = vld [vmem:[#allocation3 + $0x18] sm:$0xff]  ;;  %v5857_v34 = vld [vmem:[#allocation3 + $0x20] sm:$0xff] }
 0x384   :  { %5664 = vmatmul.mubr.bf16.gmra.mrb[68].mxu1 %v8937_v33  ;;  %v9795_v33 = vld [vmem:[#allocation3 + $0x90] sm:$0xff] }
 0x385   :  { %5673 = vmatprep.mubr.bf16.mxu1 %v8940_v32  ;;  %6704 = vmatpush1.bf16.msra.mxu1 %v9737_v7  ;;  %v8867_v7 = vcombine.low %v9793_v15, %v9794_v19  ;;  %v5920_v32 = vshll.u32 %v5857_v34, 16  ;;  %v14348_v19 = vld [vmem:[#allocation16_spill] sm:$0xff] }
 0x386   :  { %6705 = vmatprep.subr.bf16.mxu1 %v9742_v13  ;;  %v5911_v13 = vshrl.u32 %v5856_v35, 16 }
 0x387   :  { %4599 = vmatmul.mubr.bf16.gmra.mrb[100].mxu0 %v8823_v5  ;;  %v5924_v5 = vshrl.u32 %v5857_v34, 16 }
 0x388   :  { %4981 = vmatprep.mubr.bf16.mxu0 %v12451_v8 }
 0x389   :  { %6706 = vmatpush1.bf16.msra.mxu1 %v9740_v1  ;;  %v5859_v1 = vld [vmem:[#allocation3 + $0x30] sm:$0xff] }
 0x38a   :  { %6707 = vmatprep.subr.bf16.mxu1 %v9745_v59  ;;  %v14345_v59 = vld [vmem:[#allocation13_spill] sm:$0xff] }
 0x38c   :  { %5674 = vmatmul.mubr.bf16.gmra.mrb[0].mxu1 %v8939_v0  ;;  %v5922_v0 = vrot.slane %v5920_v32, 5 }
 0x38d   :  { %5683 = vmatprep.mubr.bf16.mxu1 %v12451_v8  ;;  %6708 = vmatpush1.bf16.msra.mxu1 %v9743_v26  ;;  %v5913_v26 = vrot.slane %v5911_v13, 4 }
 0x38e   :  { %6709 = vmatprep.subr.bf16.mxu1 %v9748_v55  ;;  %v5860_v55 = vld [vmem:[#allocation3 + $0x38] sm:$0xff] }
 0x38f   :  { %4982 = vmatmul.mubr.bf16.vlgmr.msra.gmra.mrb[32].mxu0 %v12458_v53 }
 0x390   :  { %4991 = vmatprep.mubr.bf16.mxu0 %v11972_v56  ;;  %v9789_v56 = vld [vmem:[#allocation3 + $0x48] sm:$0xff] }
 0x391   :  { %6710 = vmatpush1.bf16.msra.mxu1 %v9746_v46  ;;  %v8864_v14 = vcombine.high %v9789_v56, %v9790_v37  ;;  %v5858_v46 = vld [vmem:[#allocation3 + $0x28] sm:$0x11] }
 0x394   :  { %5684 = vmatmul.mubr.bf16.gmra.mrb[4].mxu1 %v12458_v53 }
 0x395   :  { %5693 = vmatprep.mubr.bf16.mxu1 %v8944_v45  ;;  %v5938_v45 = vshll.u32 %v5859_v1, 16 }
 0x397   :  { %4992 = vmatmul.mubr.bf16.gmra.mrb[36].mxu0 %v11968_v57  ;;  %v8948_v57 = vcombine.high %v12325_v10, %v12329_v29 }
 0x398   :  { %5001 = vmatprep.mubr.bf16.mxu0 %v11981_v42  ;;  %v8863_v42 = vcombine.low %v9789_v56, %v9790_v37  ;;  %v5930_v37 = vshll.u32 %v5858_v46, 16 }
 0x39a   :  { %v5932_v49 = vrot.slane %v5930_v37, 5 }
 0x39c   :  { %5694 = vmatmul.mubr.bf16.gmra.mrb[8].mxu1 %v8943_v50  ;;  %v5948_v50 = vshrl.u32 %v5860_v55, 16 }
 0x39d   :  { %5703 = vmatprep.mubr.bf16.mxu1 %v8946_v6 }
 0x39e   :  { %v5950_v21 = vrot.slane %v5948_v50, 4 }
 0x39f   :  { %5002 = vmatmul.mubr.bf16.gmra.mrb[40].mxu0 %v11991_v28  ;;  %v8947_v28 = vcombine.low %v12325_v10, %v12329_v29  ;;  %v8870_v10 = vcombine.high %v9795_v33, %v12422_v24  ;;  %v8869_v29 = vcombine.low %v9795_v33, %v12422_v24  ;;  %v5926_v24 = vrot.slane %v5924_v5, 4 }
 0x3a0   :  { %5011 = vmatprep.mubr.bf16.mxu0 %v8864_v14 }
 0x3a1   :  { %v5927_v56 = vor.u32 %v5926_v24, %v5922_v0 }
 0x3a4   :  { %5704 = vmatmul.mubr.bf16.gmra.mrb[12].mxu1 %v8945_v60  ;;  %v5940_v60 = vrot.slane %v5938_v45, 5 }
 0x3a5   :  { %5713 = vmatprep.mubr.bf16.mxu1 %v8948_v57  ;;  %v5861_v57 = vld [vmem:[#allocation3 + $0x40] sm:$0x11] }
 0x3a7   :  { %5012 = vmatmul.mubr.bf16.gmra.mrb[44].mxu0 %v8863_v42 }
 0x3a8   :  { %5021 = vmatprep.mubr.bf16.mxu0 %v8866_v3  ;;  %v5928_v3 = vrot.slane %v5927_v56, 4 }
 0x3aa   :  { %v5933_v33 = vsel %vm10053_vm8, %v5928_v3, %v5932_v49  ;;  %v6007_v3 = vshrl.u32 %v12178_v47, 16  ;;  %v6010_v49 = vshll.u32 %v12178_v47, 16 }
 0x3ac   :  { %5714 = vmatmul.mubr.bf16.gmra.mrb[16].mxu1 %v8947_v28  ;;  %v5863_v28 = vld [vmem:[#allocation3 + $0x50] sm:$0xff] }
 0x3ad   :  { %5723 = vmatprep.mubr.bf16.mxu1 %v8950_v12 }
 0x3af   :  { %5022 = vmatmul.mubr.bf16.gmra.mrb[48].mxu0 %v8865_v9  ;;  %v5954_v9 = vshll.u32 %v5861_v57, 16 }
 0x3b0   :  { %5031 = vmatprep.mubr.bf16.mxu0 %v8868_v61  ;;  %v5959_v61 = vshrl.u32 %v14348_v19, 16 }
 0x3b1   :  { %v5956_v34 = vrot.slane %v5954_v9, 5 }
 0x3b4   :  { %5724 = vmatmul.mubr.bf16.gmra.mrb[20].mxu1 %v8949_v16  ;;  %v5962_v16 = vshll.u32 %v14348_v19, 16 }
 0x3b5   :  { %5733 = vmatprep.mubr.bf16.mxu1 %v12003_v36  ;;  %v5914_v36 = vshll.u32 %v5856_v35, 16 }
 0x3b6   :  { %v5964_v32 = vrot.slane %v5962_v16, 5 }
 0x3b7   :  { %5032 = vmatmul.mubr.bf16.gmra.mrb[52].mxu0 %v8867_v7 }
 0x3b8   :  { %5041 = vmatprep.mubr.bf16.mxu0 %v8870_v10  ;;  %v5968_v10 = vshll.u32 %v5863_v28, 16 }
 0x3ba   :  { %v5970_v5 = vrot.slane %v5968_v10, 5  ;;  %v6012_v10 = vrot.slane %v6010_v49, 5 }
 0x3bc   :  { %5734 = vmatmul.mubr.bf16.gmra.mrb[24].mxu1 %v12018_v27  ;;  %v5916_v27 = vrot.slane %v5914_v36, 5  ;;  %v5961_v36 = vrot.slane %v5959_v61, 4 }
 0x3bd   :  { %5743 = vmatprep.mubr.bf16.mxu1 %v12022_v25  ;;  %v14346_v25 = vld [vmem:[#allocation14_spill] sm:$0xff] }
 0x3be   :  { %v5917_v6 = vor.u32 %v5916_v27, %v5913_v26  ;;  %v5866_v26 = vld [vmem:[#allocation3 + $0x68] sm:$0xff]  ;;  %v5965_v24 = vor.u32 %v5964_v32, %v5961_v36  ;;  %v5872_v32 = vld [vmem:[#allocation3 + $0x98] sm:$0xff] }
 0x3bf   :  { %5042 = vmatmul.mubr.bf16.gmra.mrb[56].mxu0 %v8869_v29  ;;  %v5972_v29 = vshrl.u32 %v5863_v28, 16 }
 0x3c0   :  { %v5918_v62 = vrot.slane %v5917_v6, 4  ;;  %v5966_v56 = vrot.slane %v5965_v24, 4  ;;  %v6031_v24 = vshrl.u32 %v12204_v51, 16 }
 0x3c2   :  { %v5923_v7 = vsel %vm10053_vm8, %v5918_v62, %v5922_v0  ;;  %v5867_v62 = vld [vmem:[#allocation3 + $0x70] sm:$0x11] }
 0x3c3   :  { %v8994_v13 = vcombine.high %v5923_v7, %v5933_v33  ;;  %v8993_v50 = vcombine.low %v5923_v7, %v5933_v33  ;;  %v6002_v16 = vshll.u32 %v5867_v62, 16  ;;  %v6009_v33 = vrot.slane %v6007_v3, 4 }
 0x3c4   :  { %5744 = vmatmul.mubr.bf16.gmra.mrb[28].mxu1 %v12048_v2  ;;  %v5935_v2 = vshrl.u32 %v5859_v1, 16  ;;  %v5974_v1 = vrot.slane %v5972_v29, 4 }
 0x3c5   :  { %5753 = vmatprep.mubr.bf16.mxu1 %v12052_v44  ;;  %v5944_v44 = vshll.u32 %v5860_v55, 16  ;;  %v14349_v55 = vld [vmem:[#allocation25_spill] sm:$0xff]  ;;  %v6004_v36 = vrot.slane %v6002_v16, 5  ;;  %v6103_v16 = vshrl.u32 %v12447_v39, 16 }
 0x3c6   :  { %v5937_v14 = vrot.slane %v5935_v2, 4  ;;  %v5986_v46 = vshll.u32 %v14349_v55, 16  ;;  %v5975_v2 = vor.u32 %v5974_v1, %v5970_v5  ;;  %v3163_v1 = vld [vmem:[#allocation3 + $0x1d8] sm:$0x11] }
 0x3c7   :  { %v5946_v42 = vrot.slane %v5944_v44, 5  ;;  %v5992_v44 = vshll.u32 %v5866_v26, 16 }
 0x3c8   :  { %v5941_v12 = vor.u32 %v5940_v60, %v5937_v14  ;;  %v5988_v14 = vrot.slane %v5986_v46, 5  ;;  %v5976_v60 = vrot.slane %v5975_v2, 4  ;;  %v6040_v46 = vshll.u32 %v5872_v32, 16 }
 0x3c9   :  { %v5951_v15 = vor.u32 %v5950_v21, %v5946_v42  ;;  %v6044_v2 = vshrl.u32 %v5872_v32, 16  ;;  %v14351_v32 = vld [vmem:[#allocation17_spill] sm:$0xff] }
 0x3ca   :  { %v5942_v35 = vrot.slane %v5941_v12, 4 }
 0x3cc   :  { %5754 = vmatmul.mubr.bf16.gmra.mrb[32].mxu1 %v14345_v59  ;;  %v5864_v59 = vld [vmem:[#allocation3 + $0x58] sm:$0x11]  ;;  %v5947_v27 = vsel %vm10053_vm8, %v5942_v35, %v5946_v42  ;;  %v5994_v42 = vrot.slane %v5992_v44, 5 }
 0x3cd   :  { %5763 = vmatprep.mubr.bf16.mxu1 %v14346_v25  ;;  %v5983_v25 = vshrl.u32 %v14349_v55, 16  ;;  %v5978_v45 = vshll.u32 %v5864_v59, 16  ;;  %v3164_v59 = vsel %vm11366_vm3, 0, %v3163_v1 }
 0x3ce   :  { %3165 = vst [vmem:[#allocation3 + $0x1d8] sm:$0x11] %v3164_v59 }
 0x3cf   :  { %v5985_v37 = vrot.slane %v5983_v25, 4  ;;  %v5980_v57 = vrot.slane %v5978_v45, 5  ;;  %v6034_v25 = vshll.u32 %v12204_v51, 16 }
 0x3d1   :  { %v5989_v28 = vor.u32 %v5988_v14, %v5985_v37  ;;  %v5981_v19 = vsel %vm10053_vm8, %v5976_v60, %v5980_v57  ;;  %v6042_v37 = vrot.slane %v6040_v46, 5  ;;  %v6046_v14 = vrot.slane %v6044_v2, 4  ;;  %v5873_v60 = vld [vmem:[#allocation3 + $0xa0] sm:$0x11]  ;;  %v14355_v2 = vld [vmem:[#allocation19_spill] sm:$0xff] }
 0x3d2   :  { %v14354_v46 = vld [vmem:[#allocation18_spill] sm:$0xff] }
 0x3d3   :  { %v5990_v35 = vrot.slane %v5989_v28, 4 }
 0x3d4   :  { %5764 = vmatmul.mubr.bf16.gmra.mrb[36].mxu1 %v14347_v38  ;;  %v5869_v38 = vld [vmem:[#allocation3 + $0x80] sm:$0xff] }
 0x3d5   :  { %5773 = vmatprep.mubr.bf16.mxu1 %v12451_v8  ;;  %v5952_v8 = vrot.slane %v5951_v15, 4  ;;  %v6016_v12 = vshll.u32 %v5869_v38, 16  ;;  %v6020_v9 = vshrl.u32 %v5869_v38, 16  ;;  %v5971_v15 = vsel %vm10053_vm8, %v5966_v56, %v5970_v5 }
 0x3d6   :  { %v8998_v29 = vcombine.high %v5971_v15, %v5981_v19  ;;  %v8997_v45 = vcombine.low %v5971_v15, %v5981_v19  ;;  %v6036_v56 = vrot.slane %v6034_v25, 5  ;;  %v6050_v38 = vshll.u32 %v5873_v60, 16 }
 0x3d7   :  { %v5957_v0 = vsel %vm10053_vm8, %v5952_v8, %v5956_v34  ;;  %v5870_v34 = vld [vmem:[#allocation3 + $0x88] sm:$0x11]  ;;  %v6022_v8 = vrot.slane %v6020_v9, 4 }
 0x3d8   :  { %v8996_v6 = vcombine.high %v5947_v27, %v5957_v0  ;;  %v8995_v7 = vcombine.low %v5947_v27, %v5957_v0  ;;  %v6026_v5 = vshll.u32 %v5870_v34, 16  ;;  %v6013_v27 = vor.u32 %v6012_v10, %v6009_v33 }
 0x3da   :  { %v6028_v31 = vrot.slane %v6026_v5, 5 }
 0x3dc   :  { %5774 = vmatmul.mubr.bf16.gmra.mrb[40].mxu1 %v12458_v53  ;;  %v5996_v53 = vshrl.u32 %v5866_v26, 16  ;;  %v5995_v26 = vsel %vm10053_vm8, %v5990_v35, %v5994_v42 }
 0x3dd   :  { %6711 = vmatprep.mubr.bf16.mxu1 %v8994_v13  ;;  %v6018_v13 = vrot.slane %v6016_v12, 5  ;;  %v6052_v12 = vrot.slane %v6050_v38, 5  ;;  %v14358_v38 = vcombine.high %v12342_v4, %v12351_v22 }
 0x3de   :  { %v5998_v21 = vrot.slane %v5996_v53, 4  ;;  %v6014_v53 = vrot.slane %v6013_v27, 4 }
 0x3df   :  { %v6023_v0 = vor.u32 %v6022_v8, %v6018_v13 }
 0x3e0   :  { %v5999_v61 = vor.u32 %v5998_v21, %v5994_v42  ;;  %v6019_v57 = vsel %vm10053_vm8, %v6014_v53, %v6018_v13  ;;  %v6047_v21 = vor.u32 %v6046_v14, %v6042_v37  ;;  %v5882_v13 = vld [vmem:[#allocation3 + $0xe8] sm:$0x11] }
 0x3e1   :  { %v6122_v59 = vshll.u32 %v5882_v13, 16 }
 0x3e2   :  { %v6000_v47 = vrot.slane %v5999_v61, 4  ;;  %v6048_v28 = vrot.slane %v6047_v21, 4 }
 0x3e3   :  { %v6124_v27 = vrot.slane %v6122_v59, 5 }
 0x3e4   :  { %6712 = vmatmul.mubr.bf16.vlgmr.msra.gmra.mrb[44].mxu1 %v8993_v50  ;;  %v6005_v55 = vsel %vm10053_vm8, %v6000_v47, %v6004_v36  ;;  %v6033_v50 = vrot.slane %v6031_v24, 4  ;;  %v6053_v15 = vsel %vm10053_vm8, %v6048_v28, %v6052_v12  ;;  %v14350_v36 = vld [vmem:[#allocation28_spill] sm:$0xff] }
 0x3e5   :  { %6721 = vmatprep.mubr.bf16.mxu1 %v8996_v6  ;;  %v9000_v44 = vcombine.high %v5995_v26, %v6005_v55  ;;  %v6024_v6 = vrot.slane %v6023_v0, 4  ;;  %v8999_v62 = vcombine.low %v5995_v26, %v6005_v55  ;;  %v14352_v1 = vcombine.high %v14350_v36, %v14351_v32 }
 0x3e6   :  { %v6037_v42 = vor.u32 %v6036_v56, %v6033_v50  ;;  %v14353_v55 = vcombine.low %v14350_v36, %v14351_v32  ;;  %v14357_v56 = vcombine.low %v14354_v46, %v14355_v2  ;;  %v5897_v36 = vld [vmem:[#allocation3 + $0x178] sm:$0x11]  ;;  %v5899_v32 = vld [vmem:[#allocation3 + $0x188] sm:$0xff] }
 0x3e7   :  { %v6029_v51 = vsel %vm10053_vm8, %v6024_v6, %v6028_v31 }
 0x3e8   :  { %v9002_v3 = vcombine.high %v6019_v57, %v6029_v51  ;;  %v6038_v49 = vrot.slane %v6037_v42, 4  ;;  %v9001_v19 = vcombine.low %v6019_v57, %v6029_v51 }
 0x3ea   :  { %v6043_v9 = vsel %vm10053_vm8, %v6038_v49, %v6042_v37  ;;  %v5895_v49 = vld [vmem:[#allocation3 + $0x168] sm:$0xff] }
 0x3eb   :  { %v9004_v61 = vcombine.high %v6043_v9, %v6053_v15  ;;  %v9003_v10 = vcombine.low %v6043_v9, %v6053_v15  ;;  %v5896_v9 = vld [vmem:[#allocation3 + $0x170] sm:$0xff]  ;;  %v6223_v15 = vshrl.u32 %v5895_v49, 16 }
 0x3ec   :  { %6722 = vmatmul.mubr.bf16.gmra.mrb[48].mxu1 %v8995_v7  ;;  %v6106_v7 = vshll.u32 %v12447_v39, 16 }
 0x3ed   :  { %6731 = vmatprep.mubr.bf16.mxu1 %v8998_v29  ;;  %v6105_v29 = vrot.slane %v6103_v16, 4  ;;  %v6236_v16 = vshrl.u32 %v5896_v9, 16 }
 0x3ee   :  { %v6108_v35 = vrot.slane %v6106_v7, 5 }
 0x3ef   :  { %v6238_v4 = vrot.slane %v6236_v16, 4 }
 0x3f0   :  { %v6109_v5 = vor.u32 %v6108_v35, %v6105_v29 }
 0x3f2   :  { %v12546_v26 = vrot.slane %v6109_v5, 4 }
 0x3f4   :  { %6732 = vmatmul.mubr.bf16.gmra.mrb[52].mxu1 %v8997_v45  ;;  %v14356_v45 = vcombine.high %v14354_v46, %v14355_v2  ;;  %v6125_v53 = vsel %vm10053_vm8, %v12546_v26, %v6124_v27  ;;  %v6256_v46 = vshll.u32 %v5899_v32, 16  ;;  %v6260_v2 = vshrl.u32 %v5899_v32, 16 }
 0x3f5   :  { %6741 = vmatprep.mubr.bf16.mxu1 %v9000_v44  ;;  %v12563_v44 = vsel %vm10053_vm8, %v12546_v26, %v6108_v35 }
 0x3f6   :  { %v9010_v31 = vcombine.high %v12563_v44, %v6125_v53  ;;  %v9009_v60 = vcombine.low %v12563_v44, %v6125_v53 }
 0x3fc   :  { %6742 = vmatmul.mubr.bf16.gmra.mrb[56].mxu1 %v8999_v62 }
 0x3fd   :  { %6751 = vmatprep.mubr.bf16.mxu1 %v9002_v3 }
 0x404   :  { %6752 = vmatmul.mubr.bf16.gmra.mrb[60].mxu1 %v9001_v19  ;;  %v6226_v19 = vshll.u32 %v5895_v49, 16  ;;  %v6262_v49 = vrot.slane %v6260_v2, 4 }
 0x405   :  { %6761 = vmatprep.mubr.bf16.mxu1 %v9004_v61  ;;  %v6232_v61 = vshll.u32 %v5896_v9, 16  ;;  %v5901_v9 = vld [vmem:[#allocation3 + $0x198] sm:$0xff] }
 0x406   :  { %v6228_v29 = vrot.slane %v6226_v19, 5  ;;  %v5902_v19 = vld [vmem:[#allocation3 + $0x1a0] sm:$0xff]  ;;  %v6274_v23 = vshll.u32 %v5901_v9, 16 }
 0x407   :  { %v6234_v22 = vrot.slane %v6232_v61, 5 }
 0x409   :  { %v6239_v27 = vor.u32 %v6238_v4, %v6234_v22  ;;  %v6280_v4 = vshll.u32 %v5902_v19, 16 }
 0x40a   :  { %v12533_v33 = vpop.f32.mrb[60].mxu0 }
 0x40b   :  { %v12535_v34 = vpop.f32.mrb[61].mxu0  ;;  %v6282_v2 = vrot.slane %v6280_v4, 5 }
 0x40c   :  { %v12537_v8 = vpop.f32.mrb[62].mxu0  ;;  %6762 = vmatmul.mubr.bf16.gmra.mrb[64].mxu1 %v9003_v10  ;;  %v6225_v10 = vrot.slane %v6223_v15, 4 }
 0x40d   :  { %v12539_v47 = vpop.f32.mrb[63].mxu0  ;;  %6771 = vmatprep.mubr.bf16.mxu1 %v14352_v1 }
 0x40e   :  { %v6229_v1 = vor.u32 %v6228_v29, %v6225_v10  ;;  %v6271_v29 = vshrl.u32 %v5901_v9, 16 }
 0x410   :  { %v6230_v41 = vrot.slane %v6229_v1, 4 }
 0x412   :  { %v12544_v39 = vpop.f32.mrb[64].mxu0  ;;  %v6235_v61 = vsel %vm10053_vm8, %v6230_v41, %v6234_v22 }
 0x413   :  { %v12548_v0 = vpop.f32.mrb[65].mxu0 }
 0x414   :  { %v12550_v24 = vpop.f32.mrb[66].mxu0  ;;  %6772 = vmatmul.mubr.bf16.gmra.mrb[68].mxu1 %v14353_v55  ;;  %v6242_v55 = vshll.u32 %v5897_v36, 16 }
 0x415   :  { %v12555_v25 = vpop.f32.mrb[67].mxu0  ;;  %6781 = vmatprep.mubr.bf16.mxu1 %v14356_v45  ;;  %v5900_v45 = vld [vmem:[#allocation3 + $0x190] sm:$0x11] }
 0x416   :  { %v6266_v10 = vshll.u32 %v5900_v45, 16  ;;  %v5904_v45 = vld [vmem:[#allocation3 + $0x1b0] sm:$0xff] }
 0x417   :  { %v6295_v9 = vshrl.u32 %v5904_v45, 16 }
 0x41a   :  { %v12569_v50 = vpop.f32.mrb[68].mxu0 }
 0x41b   :  { %v12571_v6 = vpop.f32.mrb[69].mxu0 }
 0x41c   :  { %6782 = vmatmul.mubr.bf16.gmra.mrb[0].mxu1 %v14357_v56  ;;  %v12576_v37 = vpop.f32.mrb[70].mxu0 }
 0x41d   :  { %v12578_v14 = vpop.f32.mrb[71].mxu0  ;;  %6791 = vmatprep.mubr.bf16.mxu1 %v9010_v31 }
 0x422   :  { %v12581_v57 = vpop.f32.mrb[72].mxu0 }
 0x423   :  { %v12583_v51 = vpop.f32.mrb[73].mxu0 }
 0x424   :  { %v12585_v42 = vpop.f32.mrb[74].mxu0  ;;  %6792 = vmatmul.mubr.bf16.gmra.mrb[4].mxu1 %v9009_v60  ;;  %v6244_v60 = vrot.slane %v6242_v55, 5 }
 0x425   :  { %v12587_v21 = vpop.f32.mrb[75].mxu0  ;;  %6801 = vmatprep.mubr.bf16.mxu1 %v14358_v38  ;;  %v6258_v38 = vrot.slane %v6256_v46, 5  ;;  %v6268_v46 = vrot.slane %v6266_v10, 5 }
 0x42a   :  { %v12592_v62 = vpop.f32.mrb[76].mxu0 }
 0x42b   :  { %v12594_v3 = vpop.f32.mrb[77].mxu0 }
 0x42c   :  { %v12596_v28 = vpop.f32.mrb[78].mxu0  ;;  %6802 = vmatmul.mubr.bf16.gmra.mrb[8].mxu1 %v9011_v43  ;;  %v5898_v43 = vld [vmem:[#allocation3 + $0x180] sm:$0xff] }
 0x42d   :  { %v12601_v12 = vpop.f32.mrb[79].mxu0  ;;  %6811 = vmatprep.mubr.bf16.mxu1 %v9014_v17  ;;  %v6247_v5 = vshrl.u32 %v5898_v43, 16  ;;  %v6250_v59 = vshll.u32 %v5898_v43, 16  ;;  %v6284_v43 = vshrl.u32 %v5902_v19, 16  ;;  %v6298_v19 = vshll.u32 %v5904_v45, 16 }
 0x42f   :  { %v6249_v53 = vrot.slane %v6247_v5, 4  ;;  %v6252_v31 = vrot.slane %v6250_v59, 5  ;;  %v5903_v5 = vld [vmem:[#allocation3 + $0x1a8] sm:$0x11]  ;;  %v6273_v59 = vrot.slane %v6271_v29, 4  ;;  %v6286_v41 = vrot.slane %v6284_v43, 4 }
 0x431   :  { %v6253_v16 = vor.u32 %v6252_v31, %v6249_v53  ;;  %v5905_v31 = vld [vmem:[#allocation3 + $0x1b8] sm:$0xff]  ;;  %v6287_v20 = vor.u32 %v6286_v41, %v6282_v2 }
 0x432   :  { %v12606_v7 = vpop.f32.mrb[80].mxu0 }
 0x433   :  { %v12608_v35 = vpop.f32.mrb[81].mxu0 }
 0x434   :  { %v12610_v13 = vpop.f32.mrb[82].mxu0  ;;  %6812 = vmatmul.mubr.bf16.gmra.mrb[12].mxu1 %v9013_v18 }
 0x435   :  { %14359 = vst [vmem:[#allocation20_spill] sm:$0xff] %v12610_v13  ;;  %v12615_v17 = vpop.f32.mrb[83].mxu0  ;;  %6821 = vmatprep.mubr.bf16.mxu1 %v9016_v63  ;;  %v6240_v63 = vrot.slane %v6239_v27, 4  ;;  %v6276_v27 = vrot.slane %v6274_v23, 5 }
 0x436   :  { %14360 = vst [vmem:[#allocation22_spill] sm:$0xff] %v12615_v17 }
 0x437   :  { %v6245_v48 = vsel %vm10053_vm8, %v6240_v63, %v6244_v60  ;;  %v6290_v63 = vshll.u32 %v5903_v5, 16  ;;  %v6297_v5 = vrot.slane %v6295_v9, 4 }
 0x438   :  { %v9020_v1 = vcombine.high %v6235_v61, %v6245_v48  ;;  %v9019_v29 = vcombine.low %v6235_v61, %v6245_v48 }
 0x439   :  { %v6292_v43 = vrot.slane %v6290_v63, 5 }
 0x43a   :  { %v12620_v58 = vpop.f32.mrb[84].mxu0 }
 0x43b   :  { %14361 = vst [vmem:[#allocation21_spill] sm:$0xff] %v12620_v58  ;;  %v12622_v18 = vpop.f32.mrb[85].mxu0 }
 0x43c   :  { %14362 = vst [vmem:[#allocation24_spill] sm:$0xff] %v12622_v18  ;;  %v12624_v56 = vpop.f32.mrb[86].mxu0  ;;  %6822 = vmatmul.mubr.bf16.gmra.mrb[16].mxu1 %v9015_v54  ;;  %v6263_v54 = vor.u32 %v6262_v49, %v6258_v38  ;;  %v6277_v49 = vor.u32 %v6276_v27, %v6273_v59  ;;  %v6300_v59 = vrot.slane %v6298_v19, 5 }
 0x43d   :  { %14363 = vst [vmem:[#allocation32_spill] sm:$0xff] %v12624_v56  ;;  %v12629_v15 = vpop.f32.mrb[87].mxu0  ;;  %6831 = vmatprep.mubr.bf16.mxu1 %v9018_v30  ;;  %v6254_v30 = vrot.slane %v6253_v16, 4  ;;  %v6308_v16 = vshrl.u32 %v5905_v31, 16 }
 0x43e   :  { %14364 = vst [vmem:[#allocation33_spill] sm:$0xff] %v12629_v15  ;;  %v6264_v55 = vrot.slane %v6263_v54, 4  ;;  %v6278_v4 = vrot.slane %v6277_v49, 4  ;;  %v6301_v45 = vor.u32 %v6300_v59, %v6297_v5 }
 0x43f   :  { %v6259_v60 = vsel %vm10053_vm8, %v6254_v30, %v6258_v38  ;;  %v6288_v30 = vrot.slane %v6287_v20, 4  ;;  %v5909_v20 = vld [vmem:[#allocation3 + $0x1d8] sm:$0x11] }
 0x440   :  { %v6269_v11 = vsel %vm10053_vm8, %v6264_v55, %v6268_v46  ;;  %v6310_v55 = vrot.slane %v6308_v16, 4  ;;  %v6283_v61 = vsel %vm10053_vm8, %v6278_v4, %v6282_v2  ;;  %v6302_v16 = vrot.slane %v6301_v45, 4 }
 0x441   :  { %v9022_v54 = vcombine.high %v6259_v60, %v6269_v11  ;;  %v6293_v48 = vsel %vm10053_vm8, %v6288_v30, %v6292_v43  ;;  %v9021_v49 = vcombine.low %v6259_v60, %v6269_v11  ;;  %v6338_v2 = vshll.u32 %v5909_v20, 16 }
 0x442   :  { %v12638_v36 = vpop.f32.mrb[88].mxu0  ;;  %v9024_v19 = vcombine.high %v6283_v61, %v6293_v48  ;;  %v9023_v43 = vcombine.low %v6283_v61, %v6293_v48 }
 0x443   :  { %14365 = vst [vmem:[#allocation11_spill] sm:$0xff] %v12638_v36  ;;  %v12640_v32 = vpop.f32.mrb[89].mxu0  ;;  %v6340_v5 = vrot.slane %v6338_v2, 5 }
 0x444   :  { %14366 = vst [vmem:[#allocation34_spill] sm:$0xff] %v12640_v32  ;;  %v12642_v22 = vpop.f32.mrb[90].mxu0  ;;  %6832 = vmatmul.mubr.bf16.gmra.mrb[20].mxu1 %v9017_v40  ;;  %v6304_v40 = vshll.u32 %v5905_v31, 16 }
 0x445   :  { %14367 = vst [vmem:[#allocation23_spill] sm:$0xff] %v12642_v22  ;;  %v12647_v53 = vpop.f32.mrb[91].mxu0  ;;  %6841 = vmatprep.mubr.bf16.mxu1 %v9020_v1  ;;  %v5906_v1 = vld [vmem:[#allocation3 + $0x1c0] sm:$0x11] }
 0x446   :  { %14368 = vst [vmem:[#allocation26_spill] sm:$0xff] %v12647_v53  ;;  %v6306_v27 = vrot.slane %v6304_v40, 5  ;;  %v6314_v41 = vshll.u32 %v5906_v1, 16 }
 0x448   :  { %v6311_v31 = vor.u32 %v6310_v55, %v6306_v27  ;;  %v6307_v4 = vsel %vm10053_vm8, %v6302_v16, %v6306_v27  ;;  %v6341_v27 = vsel %vm10053_vm8, %v12546_v26, %v6340_v5 }
 0x449   :  { %v9028_v45 = vcombine.high %v12563_v44, %v6341_v27  ;;  %v9027_v20 = vcombine.low %v12563_v44, %v6341_v27 }
 0x44a   :  { %v12653_v10 = vpop.f32.mrb[92].mxu0 }
 0x44b   :  { %14369 = vst [vmem:[#allocation27_spill] sm:$0xff] %v12653_v10  ;;  %v12655_v23 = vpop.f32.mrb[93].mxu0 }
 0x44c   :  { %14370 = vst [vmem:[#allocation29_spill] sm:$0xff] %v12655_v23  ;;  %v12657_v38 = vpop.f32.mrb[94].mxu0  ;;  %6842 = vmatmul.mubr.bf16.gmra.mrb[24].mxu1 %v9019_v29  ;;  %v6312_v29 = vrot.slane %v6311_v31, 4 }
 0x44d   :  { %14371 = vst [vmem:[#allocation30_spill] sm:$0xff] %v12657_v38  ;;  %v12659_v46 = vpop.f32.mrb[95].mxu0  ;;  %6851 = vmatprep.mubr.bf16.mxu1 %v9022_v54  ;;  %v6316_v54 = vrot.slane %v6314_v41, 5 }
 0x44e   :  { %14372 = vst [vmem:[#allocation31_spill] sm:$0xff] %v12659_v46 }
 0x44f   :  { %v6317_v60 = vsel %vm10053_vm8, %v6312_v29, %v6316_v54  ;;  %vm7912_vm8 = vcmask 1041408  }
 0x450   :  { %v9026_v59 = vcombine.high %v6307_v4, %v6317_v60 }
 0x452   :  { %v12665_v63 = vpop.f32.mrb[96].mxu0 }
 0x453   :  { %14373 = vst [vmem:[#allocation13_spill] sm:$0xff] %v12665_v63  ;;  %v12667_v9 = vpop.f32.mrb[97].mxu0 }
 0x454   :  { %14374 = vst [vmem:[#allocation14_spill] sm:$0xff] %v12667_v9  ;;  %v12669_v40 = vpop.f32.mrb[98].mxu0  ;;  %6852 = vmatmul.mubr.bf16.gmra.mrb[28].mxu1 %v9021_v49  ;;  %v9025_v49 = vcombine.low %v6307_v4, %v6317_v60 }
 0x455   :  { %14375 = vst [vmem:[#allocation15_spill] sm:$0xff] %v12669_v40  ;;  %v12671_v1 = vpop.f32.mrb[99].mxu0  ;;  %6861 = vmatprep.mubr.bf16.mxu1 %v9024_v19 }
 0x456   :  { %14376 = vst [vmem:[#allocation16_spill] sm:$0xff] %v12671_v1 }
 0x45a   :  { %v12677_v11 = vpop.f32.mrb[100].mxu0 }
 0x45b   :  { %14377 = vst [vmem:[#allocation25_spill] sm:$0xff] %v12677_v11  ;;  %v12679_v30 = vpop.f32.mrb[101].mxu0 }
 0x45c   :  { %14378 = vst [vmem:[#allocation28_spill] sm:$0xff] %v12679_v30  ;;  %v12681_v55 = vpop.f32.mrb[102].mxu0  ;;  %6862 = vmatmul.mubr.bf16.gmra.mrb[32].mxu1 %v9023_v43 }
 0x45d   :  { %14379 = vst [vmem:[#allocation17_spill] sm:$0xff] %v12681_v55  ;;  %v12683_v41 = vpop.f32.mrb[103].mxu0  ;;  %6871 = vmatprep.mubr.bf16.mxu1 %v9026_v59 }
 0x45e   :  { %14380 = vst [vmem:[#allocation18_spill] sm:$0xff] %v12683_v41 }
 0x462   :  { %v4983_v31 = vpop.f32.mrb[32].mxu0 }
 0x463   :  { %v4985_v19 = vpop.f32.mrb[33].mxu0 }
 0x464   :  { %v4987_v61 = vpop.f32.mrb[34].mxu0  ;;  %6872 = vmatmul.mubr.bf16.gmra.mrb[36].mxu1 %v9025_v49 }
 0x465   :  { %v4989_v48 = vpop.f32.mrb[35].mxu0  ;;  %6881 = vmatprep.mubr.bf16.mxu1 %v9028_v45 }
 0x46a   :  { %v4993_v16 = vpop.f32.mrb[36].mxu0 }
 0x46b   :  { %v4995_v29 = vpop.f32.mrb[37].mxu0 }
 0x46c   :  { %v4997_v54 = vpop.f32.mrb[38].mxu0  ;;  %6882 = vmatmul.mubr.bf16.gmra.mrb[40].mxu1 %v9027_v20 }
 0x46d   :  { %v4999_v2 = vpop.f32.mrb[39].mxu0 }
 0x472   :  { %v5003_v43 = vpop.f32.mrb[40].mxu0 }
 0x473   :  { %v5005_v59 = vpop.f32.mrb[41].mxu0 }
 0x474   :  { %v5007_v52 = vpop.f32.mrb[42].mxu0 }
 0x475   :  { %v5009_v26 = vpop.f32.mrb[43].mxu0 }
 0x47a   :  { %v5013_v5 = vpop.f32.mrb[44].mxu0 }
 0x47b   :  { %v5015_v41 = vpop.f32.mrb[45].mxu0 }
 0x47c   :  { %v5017_v55 = vpop.f32.mrb[46].mxu0 }
 0x47d   :  { %v5019_v4 = vpop.f32.mrb[47].mxu0 }
 0x482   :  { %v5023_v60 = vpop.f32.mrb[48].mxu0 }
 0x483   :  { %v5025_v30 = vpop.f32.mrb[49].mxu0 }
 0x484   :  { %v5027_v49 = vpop.f32.mrb[50].mxu0 }
 0x485   :  { %v5029_v11 = vpop.f32.mrb[51].mxu0 }
 0x48a   :  { %v5033_v45 = vpop.f32.mrb[52].mxu0 }
 0x48b   :  { %v5035_v1 = vpop.f32.mrb[53].mxu0 }
 0x48c   :  { %v5037_v44 = vpop.f32.mrb[54].mxu0 }
 0x48d   :  { %v5039_v27 = vpop.f32.mrb[55].mxu0 }
 0x492   :  { %v12690_v40 = vpop.f32.mrb[56].mxu0 }
 0x493   :  { %v12692_v20 = vpop.f32.mrb[57].mxu0 }
 0x494   :  { %v12694_v9 = vpop.f32.mrb[58].mxu0 }
 0x495   :  { %v12696_v63 = vpop.f32.mrb[59].mxu0 }
 0x4b7   :  { %v6713_v46 = vpop.f32.mrb[44].mxu1 }
 0x4b8   :  { %v12698_v38 = vadd.f32 %v6713_v46, %v4983_v31  ;;  %v6715_v23 = vpop.f32.mrb[45].mxu1 }
 0x4b9   :  { %v12700_v10 = vadd.f32 %v6715_v23, %v4985_v19  ;;  %v6717_v53 = vpop.f32.mrb[46].mxu1 }
 0x4ba   :  { %v12702_v22 = vadd.f32 %v6717_v53, %v4987_v61  ;;  %v6719_v32 = vpop.f32.mrb[47].mxu1 }
 0x4bb   :  { %v12704_v36 = vadd.f32 %v6719_v32, %v4989_v48 }
 0x4bd   :  { %14381 = vst [vmem:[#allocation19_spill] sm:$0xff] %v12704_v36 }
 0x4bf   :  { %v6723_v15 = vpop.f32.mrb[48].mxu1 }
 0x4c0   :  { %v12706_v56 = vadd.f32 %v6723_v15, %v4993_v16  ;;  %v6725_v18 = vpop.f32.mrb[49].mxu1 }
 0x4c1   :  { %v12708_v58 = vadd.f32 %v6725_v18, %v4995_v29  ;;  %v6727_v17 = vpop.f32.mrb[50].mxu1 }
 0x4c2   :  { %v12710_v13 = vadd.f32 %v6727_v17, %v4997_v54  ;;  %v6729_v46 = vpop.f32.mrb[51].mxu1 }
 0x4c3   :  { %v12712_v31 = vadd.f32 %v6729_v46, %v4999_v2 }
 0x4c7   :  { %v6733_v23 = vpop.f32.mrb[52].mxu1 }
 0x4c8   :  { %v12714_v19 = vadd.f32 %v6733_v23, %v5003_v43  ;;  %v6735_v53 = vpop.f32.mrb[53].mxu1 }
 0x4c9   :  { %v12716_v61 = vadd.f32 %v6735_v53, %v5005_v59  ;;  %v6737_v32 = vpop.f32.mrb[54].mxu1  ;;  %v6964_v59 = vadd.f32 %v12702_v22, %v12698_v38 }
 0x4ca   :  { %v12718_v48 = vadd.f32 %v6737_v32, %v5007_v52  ;;  %v6739_v15 = vpop.f32.mrb[55].mxu1 }
 0x4cb   :  { %v12720_v16 = vadd.f32 %v6739_v15, %v5009_v26  ;;  %v6965_v53 = vadd.f32 %v12706_v56, %v6964_v59 }
 0x4cf   :  { %v6743_v18 = vpop.f32.mrb[56].mxu1 }
 0x4d0   :  { %v12722_v29 = vadd.f32 %v6743_v18, %v5013_v5  ;;  %v6745_v17 = vpop.f32.mrb[57].mxu1 }
 0x4d1   :  { %v12724_v54 = vadd.f32 %v6745_v17, %v5015_v41  ;;  %v6747_v2 = vpop.f32.mrb[58].mxu1 }
 0x4d2   :  { %v12726_v46 = vadd.f32 %v6747_v2, %v5017_v55  ;;  %v6749_v43 = vpop.f32.mrb[59].mxu1  ;;  %v7005_v2 = vadd.f32 %v12704_v36, %v12700_v10 }
 0x4d3   :  { %v12728_v23 = vadd.f32 %v6749_v43, %v5019_v4  ;;  %v6966_v4 = vadd.f32 %v12710_v13, %v6965_v53 }
 0x4d5   :  { %14382 = vst [vmem:[#allocation36_spill] sm:$0xff] %v12728_v23  ;;  %v6967_v17 = vadd.f32 %v12714_v19, %v6966_v4 }
 0x4d7   :  { %v6753_v52 = vpop.f32.mrb[60].mxu1 }
 0x4d8   :  { %v12733_v26 = vadd.f32 %v6753_v52, %v5023_v60  ;;  %v6755_v32 = vpop.f32.mrb[61].mxu1 }
 0x4d9   :  { %v12735_v5 = vadd.f32 %v6755_v32, %v5025_v30  ;;  %v6757_v15 = vpop.f32.mrb[62].mxu1  ;;  %v7006_v30 = vadd.f32 %v12708_v58, %v7005_v2  ;;  %v6968_v32 = vadd.f32 %v12718_v48, %v6967_v17 }
 0x4da   :  { %v12737_v41 = vadd.f32 %v6757_v15, %v5027_v49  ;;  %v6759_v18 = vpop.f32.mrb[63].mxu1 }
 0x4db   :  { %14383 = vst [vmem:[#allocation37_spill] sm:$0xff] %v12735_v5  ;;  %v12739_v55 = vadd.f32 %v6759_v18, %v5029_v11  ;;  %v6969_v18 = vadd.f32 %v12722_v29, %v6968_v32  ;;  %v7007_v4 = vadd.f32 %v12712_v31, %v7006_v30 }
 0x4dd   :  { %14384 = vst [vmem:[#allocation38_spill] sm:$0xff] %v12739_v55  ;;  %v6970_v36 = vadd.f32 %v12726_v46, %v6969_v18 }
 0x4df   :  { %v6763_v43 = vpop.f32.mrb[64].mxu1 }
 0x4e0   :  { %v12745_v59 = vadd.f32 %v6763_v43, %v5033_v45  ;;  %v6765_v60 = vpop.f32.mrb[65].mxu1  ;;  %v7008_v45 = vadd.f32 %v12716_v61, %v7007_v4 }
 0x4e1   :  { %v12748_v52 = vadd.f32 %v6765_v60, %v5035_v1  ;;  %v6767_v49 = vpop.f32.mrb[66].mxu1 }
 0x4e2   :  { %v12751_v11 = vadd.f32 %v6767_v49, %v5037_v44  ;;  %v6769_v15 = vpop.f32.mrb[67].mxu1  ;;  %v7009_v30 = vadd.f32 %v12720_v16, %v7008_v45 }
 0x4e3   :  { %14385 = vst [vmem:[#allocation39_spill] sm:$0xff] %v12748_v52  ;;  %v12753_v53 = vadd.f32 %v6769_v15, %v5039_v27  ;;  %v6971_v27 = vadd.f32 %v12733_v26, %v6970_v36 }
 0x4e4   :  { %v7010_v15 = vadd.f32 %v12724_v54, %v7009_v30 }
 0x4e5   :  { %14386 = vst [vmem:[#allocation40_spill] sm:$0xff] %v12753_v53 }
 0x4e7   :  { %v6773_v43 = vpop.f32.mrb[68].mxu1 }
 0x4e8   :  { %v12760_v1 = vadd.f32 %v6773_v43, %v12690_v40  ;;  %v6775_v2 = vpop.f32.mrb[69].mxu1  ;;  %v6972_v40 = vadd.f32 %v12737_v41, %v6971_v27 }
 0x4e9   :  { %v12763_v17 = vadd.f32 %v6775_v2, %v12692_v20  ;;  %v6777_v44 = vpop.f32.mrb[70].mxu1 }
 0x4ea   :  { %v12767_v60 = vadd.f32 %v6777_v44, %v12694_v9  ;;  %v6779_v49 = vpop.f32.mrb[71].mxu1  ;;  %v6973_v20 = vadd.f32 %v12745_v59, %v6972_v40  ;;  %v7011_v9 = vadd.f32 %v12728_v23, %v7010_v15 }
 0x4eb   :  { %14387 = vst [vmem:[#allocation41_spill] sm:$0xff] %v12763_v17  ;;  %v12771_v32 = vadd.f32 %v6779_v49, %v12696_v63 }
 0x4ec   :  { %v7012_v44 = vadd.f32 %v12735_v5, %v7011_v9  ;;  %v6974_v49 = vadd.f32 %v12751_v11, %v6973_v20  ;;  %v14428_v5 = vld [vmem:[#allocation18_spill] sm:$0xff] }
 0x4ed   :  { %14388 = vst [vmem:[#allocation42_spill] sm:$0xff] %v12771_v32 }
 0x4ee   :  { %v7013_v30 = vadd.f32 %v12739_v55, %v7012_v44 }
 0x4ef   :  { %v6783_v18 = vpop.f32.mrb[0].mxu1 }
 0x4f0   :  { %v12777_v4 = vadd.f32 %v6783_v18, %v12533_v33  ;;  %v6785_v36 = vpop.f32.mrb[1].mxu1  ;;  %v6975_v33 = vadd.f32 %v12760_v1, %v6974_v49 }
 0x4f1   :  { %v12781_v43 = vadd.f32 %v6785_v36, %v12535_v34  ;;  %v6787_v45 = vpop.f32.mrb[2].mxu1 }
 0x4f2   :  { %v12784_v63 = vadd.f32 %v6787_v45, %v12537_v8  ;;  %v6789_v2 = vpop.f32.mrb[3].mxu1  ;;  %v7014_v8 = vadd.f32 %v12748_v52, %v7013_v30 }
 0x4f3   :  { %14389 = vst [vmem:[#allocation43_spill] sm:$0xff] %v12781_v43  ;;  %v12788_v27 = vadd.f32 %v6789_v2, %v12539_v47  ;;  %v6976_v47 = vadd.f32 %v12767_v60, %v6975_v33 }
 0x4f5   :  { %14390 = vst [vmem:[#allocation44_spill] sm:$0xff] %v12788_v27  ;;  %v6977_v2 = vadd.f32 %v12777_v4, %v6976_v47 }
 0x4f7   :  { %v6793_v15 = vpop.f32.mrb[4].mxu1 }
 0x4f8   :  { %v12794_v34 = vadd.f32 %v6793_v15, %v12544_v39  ;;  %v6795_v40 = vpop.f32.mrb[5].mxu1  ;;  %v7015_v39 = vadd.f32 %v12753_v53, %v7014_v8  ;;  %v14427_v53 = vld [vmem:[#allocation17_spill] sm:$0xff] }
 0x4f9   :  { %v12798_v18 = vadd.f32 %v6795_v40, %v12548_v0  ;;  %v6797_v36 = vpop.f32.mrb[6].mxu1  ;;  %v6978_v0 = vadd.f32 %v12784_v63, %v6977_v2 }
 0x4fa   :  { %v12802_v9 = vadd.f32 %v6797_v36, %v12550_v24  ;;  %v6799_v20 = vpop.f32.mrb[7].mxu1  ;;  %v7016_v44 = vadd.f32 %v12763_v17, %v7015_v39 }
 0x4fb   :  { %14391 = vst [vmem:[#allocation45_spill] sm:$0xff] %v12798_v18  ;;  %v12805_v45 = vadd.f32 %v6799_v20, %v12555_v25  ;;  %v6979_v25 = vadd.f32 %v12794_v34, %v6978_v0 }
 0x4fc   :  { %v7017_v8 = vadd.f32 %v12771_v32, %v7016_v44 }
 0x4fd   :  { %14392 = vst [vmem:[#allocation46_spill] sm:$0xff] %v12805_v45 }
 0x4fe   :  { %v7018_v20 = vadd.f32 %v12781_v43, %v7017_v8  ;;  %v14418_v43 = vld [vmem:[#allocation30_spill] sm:$0xff] }
 0x4ff   :  { %v6803_v49 = vpop.f32.mrb[8].mxu1 }
 0x500   :  { %v12812_v30 = vadd.f32 %v6803_v49, %v12569_v50  ;;  %v6805_v33 = vpop.f32.mrb[9].mxu1  ;;  %v6980_v50 = vadd.f32 %v12802_v9, %v6979_v25 }
 0x501   :  { %v12815_v24 = vadd.f32 %v6805_v33, %v12571_v6  ;;  %v6807_v15 = vpop.f32.mrb[10].mxu1 }
 0x502   :  { %v12819_v40 = vadd.f32 %v6807_v15, %v12576_v37  ;;  %v6809_v36 = vpop.f32.mrb[11].mxu1  ;;  %v6981_v6 = vadd.f32 %v12812_v30, %v6980_v50  ;;  %v7019_v37 = vadd.f32 %v12788_v27, %v7018_v20 }
 0x503   :  { %14393 = vst [vmem:[#allocation47_spill] sm:$0xff] %v12815_v24  ;;  %v12823_v47 = vadd.f32 %v6809_v36, %v12578_v14 }
 0x504   :  { %v7020_v15 = vadd.f32 %v12798_v18, %v7019_v37  ;;  %v6982_v36 = vadd.f32 %v12819_v40, %v6981_v6  ;;  %v14412_v18 = vld [vmem:[#allocation23_spill] sm:$0xff] }
 0x505   :  { %14394 = vst [vmem:[#allocation48_spill] sm:$0xff] %v12823_v47 }
 0x506   :  { %v7021_v8 = vadd.f32 %v12805_v45, %v7020_v15 }
 0x507   :  { %v6813_v2 = vpop.f32.mrb[12].mxu1 }
 0x508   :  { %v12829_v39 = vadd.f32 %v6813_v2, %v12581_v57  ;;  %v6815_v49 = vpop.f32.mrb[13].mxu1 }
 0x509   :  { %v12833_v0 = vadd.f32 %v6815_v49, %v12583_v51  ;;  %v6817_v44 = vpop.f32.mrb[14].mxu1 }
 0x50a   :  { %v12836_v14 = vadd.f32 %v6817_v44, %v12585_v42  ;;  %v6819_v33 = vpop.f32.mrb[15].mxu1  ;;  %v6983_v57 = vadd.f32 %v12829_v39, %v6982_v36  ;;  %v7022_v42 = vadd.f32 %v12815_v24, %v7021_v8 }
 0x50b   :  { %14395 = vst [vmem:[#allocation49_spill] sm:$0xff] %v12833_v0  ;;  %v12840_v25 = vadd.f32 %v6819_v33, %v12587_v21 }
 0x50c   :  { %v6984_v21 = vadd.f32 %v12836_v14, %v6983_v57 }
 0x50d   :  { %14396 = vst [vmem:[#allocation50_spill] sm:$0xff] %v12840_v25 }
 0x50f   :  { %v6823_v20 = vpop.f32.mrb[16].mxu1 }
 0x510   :  { %v12846_v51 = vadd.f32 %v6823_v20, %v12592_v62  ;;  %v6825_v50 = vpop.f32.mrb[17].mxu1  ;;  %v7023_v62 = vadd.f32 %v12823_v47, %v7022_v42  ;;  %v14404_v47 = vld [vmem:[#allocation24_spill] sm:$0xff] }
 0x511   :  { %v12850_v2 = vadd.f32 %v6825_v50, %v12594_v3  ;;  %v6827_v49 = vpop.f32.mrb[18].mxu1  ;;  %v14400_v50 = vld [vmem:[#allocation20_spill] sm:$0xff] }
 0x512   :  { %v12854_v37 = vadd.f32 %v6827_v49, %v12596_v28  ;;  %v6829_v6 = vpop.f32.mrb[19].mxu1  ;;  %v6985_v33 = vadd.f32 %v12846_v51, %v6984_v21  ;;  %v7024_v15 = vadd.f32 %v12833_v0, %v7023_v62  ;;  %v14403_v0 = vld [vmem:[#allocation21_spill] sm:$0xff] }
 0x513   :  { %14397 = vst [vmem:[#allocation51_spill] sm:$0xff] %v12850_v2  ;;  %v12857_v44 = vadd.f32 %v6829_v6, %v12601_v12  ;;  %v14401_v6 = vld [vmem:[#allocation22_spill] sm:$0xff] }
 0x514   :  { %v6986_v3 = vadd.f32 %v12854_v37, %v6985_v33  ;;  %v7025_v42 = vadd.f32 %v12840_v25, %v7024_v15  ;;  %v14406_v25 = vld [vmem:[#allocation32_spill] sm:$0xff] }
 0x515   :  { %14398 = vst [vmem:[#allocation52_spill] sm:$0xff] %v12857_v44 }
 0x517   :  { %v6833_v36 = vpop.f32.mrb[20].mxu1 }
 0x518   :  { %v12864_v8 = vadd.f32 %v6833_v36, %v12606_v7  ;;  %v6835_v57 = vpop.f32.mrb[21].mxu1  ;;  %v7026_v7 = vadd.f32 %v12850_v2, %v7025_v42  ;;  %v14407_v42 = vld [vmem:[#allocation33_spill] sm:$0xff] }
 0x519   :  { %v12867_v28 = vadd.f32 %v6835_v57, %v12608_v35  ;;  %v6837_v20 = vpop.f32.mrb[22].mxu1 }
 0x51a   :  { %v6987_v12 = vadd.f32 %v12864_v8, %v6986_v3  ;;  %v12871_v49 = vadd.f32 %v6837_v20, %v14400_v50  ;;  %v6839_v21 = vpop.f32.mrb[23].mxu1  ;;  %v7027_v3 = vadd.f32 %v12857_v44, %v7026_v7  ;;  %v14409_v44 = vld [vmem:[#allocation11_spill] sm:$0xff] }
 0x51b   :  { %14399 = vst [vmem:[#allocation53_spill] sm:$0xff] %v12867_v28  ;;  %v12875_v62 = vadd.f32 %v6839_v21, %v14401_v6 }
 0x51c   :  { %v6988_v33 = vadd.f32 %v12871_v49, %v6987_v12  ;;  %v7028_v12 = vadd.f32 %v12867_v28, %v7027_v3 }
 0x51d   :  { %14402 = vst [vmem:[#allocation20_spill] sm:$0xff] %v12875_v62 }
 0x51f   :  { %v6843_v36 = vpop.f32.mrb[24].mxu1 }
 0x520   :  { %v12880_v35 = vadd.f32 %v6843_v36, %v14403_v0  ;;  %v6845_v57 = vpop.f32.mrb[25].mxu1  ;;  %v7029_v36 = vadd.f32 %v12875_v62, %v7028_v12 }
 0x521   :  { %v12884_v20 = vadd.f32 %v6845_v57, %v14404_v47  ;;  %v6847_v50 = vpop.f32.mrb[26].mxu1 }
 0x522   :  { %v6989_v15 = vadd.f32 %v12880_v35, %v6988_v33  ;;  %v12888_v21 = vadd.f32 %v6847_v50, %v14406_v25  ;;  %v6849_v6 = vpop.f32.mrb[27].mxu1  ;;  %v14410_v33 = vld [vmem:[#allocation34_spill] sm:$0xff] }
 0x523   :  { %14405 = vst [vmem:[#allocation22_spill] sm:$0xff] %v12884_v20  ;;  %v12892_v2 = vadd.f32 %v6849_v6, %v14407_v42  ;;  %v7030_v24 = vadd.f32 %v12884_v20, %v7029_v36  ;;  %v14413_v6 = vld [vmem:[#allocation26_spill] sm:$0xff]  ;;  %v14416_v20 = vld [vmem:[#allocation29_spill] sm:$0xff] }
 0x524   :  { %v6990_v0 = vadd.f32 %v12888_v21, %v6989_v15 }
 0x525   :  { %14408 = vst [vmem:[#allocation21_spill] sm:$0xff] %v12892_v2  ;;  %v7031_v12 = vadd.f32 %v12892_v2, %v7030_v24  ;;  %v14421_v2 = vld [vmem:[#allocation13_spill] sm:$0xff] }
 0x527   :  { %v6853_v7 = vpop.f32.mrb[28].mxu1 }
 0x528   :  { %v9165_v47 = vadd.f32 %v6853_v7, %v14409_v44  ;;  %v6855_v57 = vpop.f32.mrb[29].mxu1  ;;  %v14415_v7 = vld [vmem:[#allocation27_spill] sm:$0xff] }
 0x529   :  { %v12899_v45 = vadd.f32 %v6855_v57, %v14410_v33  ;;  %v6857_v25 = vpop.f32.mrb[30].mxu1 }
 0x52a   :  { %v6991_v50 = vadd.f32 %v9165_v47, %v6990_v0  ;;  %v9167_v3 = vadd.f32 %v6857_v25, %v14412_v18  ;;  %v6859_v28 = vpop.f32.mrb[31].mxu1 }
 0x52b   :  { %14411 = vst [vmem:[#allocation24_spill] sm:$0xff] %v12899_v45  ;;  %v12903_v42 = vadd.f32 %v6859_v28, %v14413_v6  ;;  %v7032_v62 = vadd.f32 %v12899_v45, %v7031_v12  ;;  %v14419_v6 = vld [vmem:[#allocation31_spill] sm:$0xff] }
 0x52c   :  { %v6992_v15 = vadd.f32 %v9167_v3, %v6991_v50 }
 0x52d   :  { %14414 = vst [vmem:[#allocation32_spill] sm:$0xff] %v12903_v42  ;;  %v7033_v28 = vadd.f32 %v12903_v42, %v7032_v62 }
 0x52f   :  { %v6863_v44 = vpop.f32.mrb[32].mxu1 }
 0x530   :  { %v9169_v27 = vadd.f32 %v6863_v44, %v14415_v7  ;;  %v6865_v36 = vpop.f32.mrb[33].mxu1 }
 0x531   :  { %v12909_v57 = vadd.f32 %v6865_v36, %v14416_v20  ;;  %v6867_v33 = vpop.f32.mrb[34].mxu1  ;;  %v14422_v36 = vld [vmem:[#allocation14_spill] sm:$0xff] }
 0x532   :  { %v6993_v0 = vadd.f32 %v9169_v27, %v6992_v15  ;;  %v9171_v18 = vadd.f32 %v6867_v33, %v14418_v43  ;;  %v6869_v25 = vpop.f32.mrb[35].mxu1  ;;  %v14423_v33 = vld [vmem:[#allocation15_spill] sm:$0xff] }
 0x533   :  { %14417 = vst [vmem:[#allocation33_spill] sm:$0xff] %v12909_v57  ;;  %v12914_v50 = vadd.f32 %v6869_v25, %v14419_v6  ;;  %v7034_v12 = vadd.f32 %v12909_v57, %v7033_v28  ;;  %v14424_v6 = vld [vmem:[#allocation16_spill] sm:$0xff] }
 0x534   :  { %v6994_v24 = vadd.f32 %v9171_v18, %v6993_v0 }
 0x535   :  { %14420 = vst [vmem:[#allocation11_spill] sm:$0xff] %v12914_v50  ;;  %v7035_v20 = vadd.f32 %v12914_v50, %v7034_v12  ;;  %v14426_v50 = vld [vmem:[#allocation28_spill] sm:$0xff] }
 0x537   :  { %v6873_v45 = vpop.f32.mrb[36].mxu1 }
 0x538   :  { %v9173_v44 = vadd.f32 %v6873_v45, %v14421_v2  ;;  %v6875_v7 = vpop.f32.mrb[37].mxu1  ;;  %v14425_v2 = vld [vmem:[#allocation25_spill] sm:$0xff] }
 0x539   :  { %v12920_v32 = vadd.f32 %v6875_v7, %v14422_v36  ;;  %v6877_v15 = vpop.f32.mrb[38].mxu1 }
 0x53a   :  { %v6995_v43 = vadd.f32 %v9173_v44, %v6994_v24  ;;  %v9175_v17 = vadd.f32 %v6877_v15, %v14423_v33  ;;  %v6879_v62 = vpop.f32.mrb[39].mxu1 }
 0x53b   :  { %v7036_v25 = vadd.f32 %v12920_v32, %v7035_v20  ;;  %v12925_v0 = vadd.f32 %v6879_v62, %v14424_v6 }
 0x53c   :  { %v6996_v28 = vadd.f32 %v9175_v17, %v6995_v43 }
 0x53d   :  { %v7037_v57 = vadd.f32 %v12925_v0, %v7036_v25 }
 0x53f   :  { %v6883_v45 = vpop.f32.mrb[40].mxu1 }
 0x540   :  { %v9177_v42 = vadd.f32 %v6883_v45, %v14425_v2  ;;  %v6885_v12 = vpop.f32.mrb[41].mxu1 }
 0x541   :  { %v12930_v7 = vadd.f32 %v6885_v12, %v14426_v50  ;;  %v6887_v36 = vpop.f32.mrb[42].mxu1 }
 0x542   :  { %v6997_v24 = vadd.f32 %v9177_v42, %v6996_v28  ;;  %v9179_v15 = vadd.f32 %v6887_v36, %v14427_v53  ;;  %v6889_v25 = vpop.f32.mrb[43].mxu1 }
 0x543   :  { %v7038_v33 = vadd.f32 %v12930_v7, %v7037_v57  ;;  %v12935_v23 = vadd.f32 %v6889_v25, %v14428_v5 }
 0x544   :  { %v6998_v20 = vadd.f32 %v9179_v15, %v6997_v24 }
 0x545   :  { %v7039_v45 = vadd.f32 %v12935_v23, %v7038_v33 }
 0x546   :  { %v6999_v52 = vrot.slane %v6998_v20, 4 }
 0x548   :  { %v7000_v62 = vadd.f32 %v6999_v52, %v6998_v20 }
 0x54a   :  { %v7001_v6 = vrot.slane %v7000_v62, 2 }
 0x54c   :  { %v7002_v43 = vadd.f32 %v7001_v6, %v7000_v62 }
 0x54e   :  { %v7003_v55 = vrot.slane %v7002_v43, 1 }
 0x550   :  { %v7004_v50 = vadd.f32 %v7003_v55, %v7002_v43 }
 0x552   :  { %v12938_v2 = vmul.f32 0.0061728396, %v7004_v50 }
 0x554   :  { %v12942_v53 = vsub.f32 %v12864_v8, %v12938_v2  ;;  %v12946_v57 = vsub.f32 %v12871_v49, %v12938_v2  ;;  %v12950_v52 = vsub.f32 %v12880_v35, %v12938_v2  ;;  %v12954_v5 = vsub.f32 %v12888_v21, %v12938_v2 }
 0x555   :  { %v12957_v55 = vsub.f32 %v9165_v47, %v12938_v2  ;;  %v12960_v28 = vsub.f32 %v9167_v3, %v12938_v2  ;;  %v12963_v8 = vsub.f32 %v9169_v27, %v12938_v2  ;;  %v12966_v49 = vsub.f32 %v9171_v18, %v12938_v2 }
 0x556   :  { %v12969_v12 = vsub.f32 %v9173_v44, %v12938_v2  ;;  %v12972_v35 = vsub.f32 %v9175_v17, %v12938_v2  ;;  %v12975_v21 = vsub.f32 %v9177_v42, %v12938_v2  ;;  %v12978_v47 = vsub.f32 %v9179_v15, %v12938_v2 }
 0x557   :  { %v12982_v3 = vsub.f32 %v12698_v38, %v12938_v2  ;;  %v7050_v27 = vsub.f32 %v12702_v22, %v12938_v2  ;;  %v12988_v18 = vsub.f32 %v12706_v56, %v12938_v2  ;;  %v7040_v42 = vrot.slane %v7039_v45, 4 }
 0x558   :  { %v7054_v36 = vsub.f32 %v12710_v13, %v12938_v2  ;;  %v12996_v24 = vsub.f32 %v12714_v19, %v12938_v2  ;;  %v7058_v56 = vsub.f32 %v12718_v48, %v12938_v2  ;;  %v13004_v6 = vsub.f32 %v12722_v29, %v12938_v2 }
 0x559   :  { %v7120_v17 = vmul.f32 %v12982_v3, %v12982_v3  ;;  %v7122_v44 = vmul.f32 %v7050_v27, %v7050_v27  ;;  %v7124_v38 = vmul.f32 %v12988_v18, %v12988_v18  ;;  %v7041_v15 = vadd.f32 %v7040_v42, %v7039_v45 }
 0x55a   :  { %v7126_v33 = vmul.f32 %v7054_v36, %v7054_v36  ;;  %v7128_v13 = vmul.f32 %v12996_v24, %v12996_v24  ;;  %v7062_v25 = vsub.f32 %v12726_v46, %v12938_v2  ;;  %v7130_v50 = vmul.f32 %v7058_v56, %v7058_v56 }
 0x55b   :  { %v7192_v22 = vadd.f32 %v7122_v44, %v7120_v17  ;;  %v7042_v62 = vrot.slane %v7041_v15, 2  ;;  %v13012_v48 = vsub.f32 %v12733_v26, %v12938_v2  ;;  %v7132_v27 = vmul.f32 %v13004_v6, %v13004_v6 }
 0x55c   :  { %v7066_v44 = vsub.f32 %v12737_v41, %v12938_v2  ;;  %v7134_v42 = vmul.f32 %v7062_v25, %v7062_v25 }
 0x55d   :  { %v7193_v20 = vadd.f32 %v7192_v22, %v7124_v38  ;;  %v7043_v43 = vadd.f32 %v7042_v62, %v7041_v15  ;;  %v13020_v38 = vsub.f32 %v12745_v59, %v12938_v2  ;;  %v7136_v46 = vmul.f32 %v13012_v48, %v13012_v48 }
 0x55e   :  { %v7070_v15 = vsub.f32 %v12751_v11, %v12938_v2  ;;  %v7138_v56 = vmul.f32 %v7066_v44, %v7066_v44  ;;  %v13038_v11 = vsub.f32 %v12777_v4, %v12938_v2  ;;  %v7078_v4 = vsub.f32 %v12784_v63, %v12938_v2 }
 0x55f   :  { %v7194_v19 = vadd.f32 %v7193_v20, %v7126_v33  ;;  %v7044_v29 = vrot.slane %v7043_v43, 1  ;;  %v13028_v20 = vsub.f32 %v12760_v1, %v12938_v2  ;;  %v7140_v41 = vmul.f32 %v13020_v38, %v13020_v38 }
 0x561   :  { %v7195_v45 = vadd.f32 %v7194_v19, %v7128_v13  ;;  %v7045_v26 = vadd.f32 %v7044_v29, %v7043_v43  ;;  %v7074_v13 = vsub.f32 %v12767_v60, %v12938_v2  ;;  %v7142_v19 = vmul.f32 %v7070_v15, %v7070_v15 }
 0x562   :  { %v7144_v25 = vmul.f32 %v13028_v20, %v13028_v20 }
 0x563   :  { %v7196_v17 = vadd.f32 %v7195_v45, %v7130_v50  ;;  %v13032_v59 = vmul.f32 0.0061728396, %v7045_v26 }
 0x565   :  { %v7197_v36 = vadd.f32 %v7196_v17, %v7132_v27  ;;  %v13044_v50 = vsub.f32 %v12920_v32, %v13032_v59  ;;  %v13048_v45 = vsub.f32 %v12925_v0, %v13032_v59  ;;  %v13052_v60 = vsub.f32 %v12930_v7, %v13032_v59 }
 0x566   :  { %v7146_v27 = vmul.f32 %v7074_v13, %v7074_v13  ;;  %v13058_v29 = vsub.f32 %v12935_v23, %v13032_v59  ;;  %v7080_v32 = vsub.f32 %v12794_v34, %v12938_v2  ;;  %v7148_v0 = vmul.f32 %v13038_v11, %v13038_v11 }
 0x567   :  { %v7198_v22 = vadd.f32 %v7197_v36, %v7134_v42  ;;  %v13066_v7 = vsub.f32 %v12700_v10, %v13032_v59  ;;  %v14429_v42 = vld [vmem:[#allocation19_spill] sm:$0xff]  ;;  %v7082_v36 = vsub.f32 %v12802_v9, %v12938_v2  ;;  %v13078_v15 = vsub.f32 %v12708_v58, %v13032_v59 }
 0x568   :  { %v7051_v63 = vsub.f32 %v14429_v42, %v13032_v59  ;;  %v7152_v34 = vmul.f32 %v7080_v32, %v7080_v32 }
 0x569   :  { %v7199_v33 = vadd.f32 %v7198_v22, %v7136_v46  ;;  %v7150_v46 = vmul.f32 %v7078_v4, %v7078_v4  ;;  %v13074_v22 = vsub.f32 %v12812_v30, %v12938_v2  ;;  %v7121_v10 = vmul.f32 %v13066_v7, %v13066_v7 }
 0x56a   :  { %v7154_v9 = vmul.f32 %v7082_v36, %v7082_v36  ;;  %v13088_v30 = vsub.f32 %v12829_v39, %v12938_v2  ;;  %v7059_v39 = vsub.f32 %v12720_v16, %v13032_v59  ;;  %v7094_v16 = vsub.f32 %v12854_v37, %v12938_v2 }
 0x56b   :  { %v7200_v62 = vadd.f32 %v7199_v33, %v7138_v56  ;;  %v7123_v56 = vmul.f32 %v7051_v63, %v7051_v63  ;;  %v7086_v33 = vsub.f32 %v12819_v40, %v12938_v2  ;;  %v7156_v58 = vmul.f32 %v13074_v22, %v13074_v22 }
 0x56c   :  { %v7125_v40 = vmul.f32 %v13078_v15, %v13078_v15  ;;  %v7166_v37 = vmul.f32 %v7094_v16, %v7094_v16  ;;  %v7172_v16 = vmul.f32 %v12950_v52, %v12950_v52 }
 0x56d   :  { %v7201_v43 = vadd.f32 %v7200_v62, %v7140_v41  ;;  %v7055_v62 = vsub.f32 %v12712_v31, %v13032_v59  ;;  %v7158_v31 = vmul.f32 %v7086_v33, %v7086_v33 }
 0x56f   :  { %v7202_v1 = vadd.f32 %v7201_v43, %v7142_v19  ;;  %v13094_v19 = vsub.f32 %v12716_v61, %v13032_v59  ;;  %v7233_v43 = vadd.f32 %v7123_v56, %v7121_v10  ;;  %v7127_v4 = vmul.f32 %v7055_v62, %v7055_v62 }
 0x570   :  { %v7160_v61 = vmul.f32 %v13088_v30, %v13088_v30 }
 0x571   :  { %v7203_v17 = vadd.f32 %v7202_v1, %v7144_v25  ;;  %v7090_v25 = vsub.f32 %v12836_v14, %v12938_v2  ;;  %v7129_v14 = vmul.f32 %v13094_v19, %v13094_v19 }
 0x573   :  { %v7204_v44 = vadd.f32 %v7203_v17, %v7146_v27  ;;  %v7234_v27 = vadd.f32 %v7233_v43, %v7125_v40  ;;  %v13104_v17 = vsub.f32 %v12846_v51, %v12938_v2  ;;  %v7162_v42 = vmul.f32 %v7090_v25, %v7090_v25  ;;  %v14430_v51 = vld [vmem:[#allocation36_spill] sm:$0xff]  ;;  %v14433_v25 = vld [vmem:[#allocation39_spill] sm:$0xff] }
 0x574   :  { %v7063_v36 = vsub.f32 %v14430_v51, %v13032_v59  ;;  %v7168_v40 = vmul.f32 %v12942_v53, %v12942_v53 }
 0x575   :  { %v7205_v23 = vadd.f32 %v7204_v44, %v7148_v0  ;;  %v13110_v0 = vsub.f32 %v12724_v54, %v13032_v59  ;;  %v7235_v44 = vadd.f32 %v7234_v27, %v7127_v4  ;;  %v14431_v54 = vld [vmem:[#allocation37_spill] sm:$0xff]  ;;  %v7170_v4 = vmul.f32 %v12946_v57, %v12946_v57 }
 0x576   :  { %v13122_v10 = vsub.f32 %v14431_v54, %v13032_v59  ;;  %v7174_v57 = vmul.f32 %v12954_v5, %v12954_v5  ;;  %v7178_v5 = vmul.f32 %v12960_v28, %v12960_v28  ;;  %v7182_v28 = vmul.f32 %v12966_v49, %v12966_v49 }
 0x577   :  { %v7206_v26 = vadd.f32 %v7205_v23, %v7150_v46  ;;  %v7131_v46 = vmul.f32 %v7059_v39, %v7059_v39  ;;  %v7236_v23 = vadd.f32 %v7235_v44, %v7129_v14  ;;  %v7133_v56 = vmul.f32 %v13110_v0, %v13110_v0 }
 0x579   :  { %v7207_v41 = vadd.f32 %v7206_v26, %v7152_v34  ;;  %v7164_v34 = vmul.f32 %v13104_v17, %v13104_v17  ;;  %v7237_v33 = vadd.f32 %v7236_v23, %v7131_v46 }
 0x57b   :  { %v7208_v13 = vadd.f32 %v7207_v41, %v7154_v9  ;;  %v14432_v41 = vld [vmem:[#allocation38_spill] sm:$0xff] }
 0x57c   :  { %v7067_v62 = vsub.f32 %v14432_v41, %v13032_v59 }
 0x57d   :  { %v7209_v1 = vadd.f32 %v7208_v13, %v7156_v58  ;;  %v7135_v58 = vmul.f32 %v7063_v36, %v7063_v36  ;;  %v7238_v13 = vadd.f32 %v7237_v33, %v7133_v56  ;;  %v7176_v33 = vmul.f32 %v12957_v55, %v12957_v55 }
 0x57e   :  { %v7139_v14 = vmul.f32 %v7067_v62, %v7067_v62 }
 0x57f   :  { %v7210_v32 = vadd.f32 %v7209_v1, %v7158_v31  ;;  %v13132_v31 = vsub.f32 %v14433_v25, %v13032_v59  ;;  %v7137_v1 = vmul.f32 %v13122_v10, %v13122_v10  ;;  %v7239_v39 = vadd.f32 %v7238_v13, %v7135_v58 }
 0x581   :  { %v7211_v63 = vadd.f32 %v7210_v32, %v7160_v61  ;;  %v14434_v61 = vld [vmem:[#allocation40_spill] sm:$0xff]  ;;  %v7240_v44 = vadd.f32 %v7239_v39, %v7137_v1  ;;  %v7141_v36 = vmul.f32 %v13132_v31, %v13132_v31  ;;  %v7180_v39 = vmul.f32 %v12963_v8, %v12963_v8 }
 0x582   :  { %v7071_v32 = vsub.f32 %v14434_v61, %v13032_v59 }
 0x583   :  { %v7212_v26 = vadd.f32 %v7211_v63, %v7162_v42  ;;  %v14435_v63 = vld [vmem:[#allocation41_spill] sm:$0xff]  ;;  %v7241_v46 = vadd.f32 %v7240_v44, %v7139_v14 }
 0x584   :  { %v13144_v51 = vsub.f32 %v14435_v63, %v13032_v59  ;;  %v7143_v54 = vmul.f32 %v7071_v32, %v7071_v32 }
 0x585   :  { %v7213_v9 = vadd.f32 %v7212_v26, %v7164_v34  ;;  %v14436_v34 = vld [vmem:[#allocation42_spill] sm:$0xff]  ;;  %v7242_v56 = vadd.f32 %v7241_v46, %v7141_v36  ;;  %v7184_v46 = vmul.f32 %v12969_v12, %v12969_v12 }
 0x586   :  { %v7075_v26 = vsub.f32 %v14436_v34, %v13032_v59  ;;  %v7145_v62 = vmul.f32 %v13144_v51, %v13144_v51 }
 0x587   :  { %v7214_v43 = vadd.f32 %v7213_v9, %v7166_v37  ;;  %v14437_v9 = vld [vmem:[#allocation43_spill] sm:$0xff]  ;;  %v7243_v58 = vadd.f32 %v7242_v56, %v7143_v54  ;;  %v7186_v56 = vmul.f32 %v12972_v35, %v12972_v35  ;;  %v7190_v35 = vmul.f32 %v12978_v47, %v12978_v47 }
 0x588   :  { %v13156_v41 = vsub.f32 %v14437_v9, %v13032_v59  ;;  %v7147_v25 = vmul.f32 %v7075_v26, %v7075_v26 }
 0x589   :  { %v7215_v27 = vadd.f32 %v7214_v43, %v7168_v40  ;;  %v14438_v40 = vld [vmem:[#allocation44_spill] sm:$0xff]  ;;  %v7244_v1 = vadd.f32 %v7243_v58, %v7145_v62  ;;  %v7188_v58 = vmul.f32 %v12975_v21, %v12975_v21  ;;  %v14445_v21 = vld [vmem:[#allocation51_spill] sm:$0xff] }
 0x58a   :  { %v7079_v43 = vsub.f32 %v14438_v40, %v13032_v59  ;;  %v7149_v32 = vmul.f32 %v13156_v41, %v13156_v41 }
 0x58b   :  { %v7216_v42 = vadd.f32 %v7215_v27, %v7170_v4  ;;  %v14439_v27 = vld [vmem:[#allocation45_spill] sm:$0xff]  ;;  %v7245_v14 = vadd.f32 %v7244_v1, %v7147_v25 }
 0x58c   :  { %v7081_v61 = vsub.f32 %v14439_v27, %v13032_v59  ;;  %v7151_v63 = vmul.f32 %v7079_v43, %v7079_v43 }
 0x58d   :  { %v7217_v23 = vadd.f32 %v7216_v42, %v7172_v16  ;;  %v14440_v16 = vld [vmem:[#allocation46_spill] sm:$0xff]  ;;  %v7246_v36 = vadd.f32 %v7245_v14, %v7149_v32  ;;  %v13198_v14 = vsub.f32 %v14445_v21, %v13032_v59  ;;  %v14451_v21 = vld [vmem:[#allocation24_spill] sm:$0xff] }
 0x58e   :  { %v7083_v42 = vsub.f32 %v14440_v16, %v13032_v59  ;;  %v7153_v26 = vmul.f32 %v7081_v61, %v7081_v61 }
 0x58f   :  { %v7218_v37 = vadd.f32 %v7217_v23, %v7174_v57  ;;  %v14441_v23 = vld [vmem:[#allocation47_spill] sm:$0xff]  ;;  %v7247_v54 = vadd.f32 %v7246_v36, %v7151_v63 }
 0x590   :  { %v13178_v34 = vsub.f32 %v14441_v23, %v13032_v59  ;;  %v7155_v9 = vmul.f32 %v7083_v42, %v7083_v42  ;;  %v14446_v42 = vld [vmem:[#allocation52_spill] sm:$0xff] }
 0x591   :  { %v7219_v13 = vadd.f32 %v7218_v37, %v7176_v33  ;;  %v14442_v33 = vld [vmem:[#allocation48_spill] sm:$0xff]  ;;  %v7248_v62 = vadd.f32 %v7247_v54, %v7153_v26  ;;  %v7095_v63 = vsub.f32 %v14446_v42, %v13032_v59  ;;  %v7165_v26 = vmul.f32 %v13198_v14, %v13198_v14 }
 0x592   :  { %v7087_v37 = vsub.f32 %v14442_v33, %v13032_v59  ;;  %v7157_v43 = vmul.f32 %v13178_v34, %v13178_v34 }
 0x593   :  { %v7220_v4 = vadd.f32 %v7219_v13, %v7178_v5  ;;  %v14443_v13 = vld [vmem:[#allocation49_spill] sm:$0xff]  ;;  %v7249_v25 = vadd.f32 %v7248_v62, %v7155_v9  ;;  %v7274_v62 = vmul.f32 126.0, %v12938_v2 }
 0x594   :  { %v13188_v40 = vsub.f32 %v14443_v13, %v13032_v59  ;;  %v7159_v27 = vmul.f32 %v7087_v37, %v7087_v37  ;;  %v7167_v37 = vmul.f32 %v7095_v63, %v7095_v63  ;;  %v14452_v63 = vld [vmem:[#allocation32_spill] sm:$0xff] }
 0x595   :  { %v7221_v44 = vadd.f32 %v7220_v4, %v7180_v39  ;;  %v14444_v39 = vld [vmem:[#allocation50_spill] sm:$0xff]  ;;  %v7250_v61 = vadd.f32 %v7249_v25, %v7157_v43 }
 0x596   :  { %v7091_v4 = vsub.f32 %v14444_v39, %v13032_v59 }
 0x597   :  { %v7222_v57 = vadd.f32 %v7221_v44, %v7182_v28  ;;  %v7161_v28 = vmul.f32 %v13188_v40, %v13188_v40  ;;  %v7251_v44 = vadd.f32 %v7250_v61, %v7159_v27  ;;  %v7276_v61 = vmul.f32 %v7274_v62, %v12938_v2 }
 0x598   :  { %v7163_v47 = vmul.f32 %v7091_v4, %v7091_v4 }
 0x599   :  { %v7223_v49 = vadd.f32 %v7222_v57, %v7184_v46  ;;  %v7252_v36 = vadd.f32 %v7251_v44, %v7161_v28  ;;  %v14447_v57 = vld [vmem:[#allocation53_spill] sm:$0xff]  ;;  %v13224_v28 = vsub.f32 %v14451_v21, %v13032_v59  ;;  %v7189_v21 = vmul.f32 %v13052_v60, %v13052_v60 }
 0x59a   :  { %v13206_v23 = vsub.f32 %v14447_v57, %v13032_v59 }
 0x59b   :  { %v7224_v5 = vadd.f32 %v7223_v49, %v7186_v56  ;;  %v7253_v54 = vadd.f32 %v7252_v36, %v7163_v47  ;;  %v14448_v49 = vld [vmem:[#allocation20_spill] sm:$0xff]  ;;  %v7107_v47 = vsub.f32 %v14452_v63, %v13032_v59  ;;  %v7177_v2 = vmul.f32 %v13224_v28, %v13224_v28 }
 0x59c   :  { %v7099_v33 = vsub.f32 %v14448_v49, %v13032_v59  ;;  %v7169_v43 = vmul.f32 %v13206_v23, %v13206_v23 }
 0x59d   :  { %v7225_v1 = vadd.f32 %v7224_v5, %v7188_v58  ;;  %v7254_v9 = vadd.f32 %v7253_v54, %v7165_v26  ;;  %v14449_v5 = vld [vmem:[#allocation22_spill] sm:$0xff]  ;;  %v14453_v26 = vld [vmem:[#allocation33_spill] sm:$0xff] }
 0x59e   :  { %v13215_v13 = vsub.f32 %v14449_v5, %v13032_v59  ;;  %v7171_v4 = vmul.f32 %v7099_v33, %v7099_v33  ;;  %v13232_v54 = vsub.f32 %v14453_v26, %v13032_v59  ;;  %v14454_v33 = vld [vmem:[#allocation11_spill] sm:$0xff] }
 0x59f   :  { %v7226_v32 = vadd.f32 %v7225_v1, %v7190_v35  ;;  %v7255_v25 = vadd.f32 %v7254_v9, %v7167_v37  ;;  %v14450_v1 = vld [vmem:[#allocation21_spill] sm:$0xff]  ;;  %v7111_v37 = vsub.f32 %v14454_v33, %v13032_v59  ;;  %v7179_v9 = vmul.f32 %v7107_v47, %v7107_v47 }
 0x5a0   :  { %v7103_v39 = vsub.f32 %v14450_v1, %v13032_v59  ;;  %v7173_v44 = vmul.f32 %v13215_v13, %v13215_v13  ;;  %v7185_v1 = vmul.f32 %v13044_v50, %v13044_v50 }
 0x5a1   :  { %v7227_v16 = vrot.slane %v7226_v32, 4  ;;  %v7256_v27 = vadd.f32 %v7255_v25, %v7169_v43  ;;  %v7183_v43 = vmul.f32 %v7111_v37, %v7111_v37 }
 0x5a2   :  { %v7175_v36 = vmul.f32 %v7103_v39, %v7103_v39 }
 0x5a3   :  { %v7228_v46 = vadd.f32 %v7227_v16, %v7226_v32  ;;  %v7257_v16 = vadd.f32 %v7256_v27, %v7171_v4  ;;  %v7187_v4 = vmul.f32 %v13048_v45, %v13048_v45 }
 0x5a5   :  { %v7229_v56 = vrot.slane %v7228_v46, 2 }
 0x5a7   :  { %v7230_v58 = vadd.f32 %v7229_v56, %v7228_v46  ;;  %v7258_v46 = vadd.f32 %v7257_v16, %v7173_v44 }
 0x5a9   :  { %v7231_v35 = vrot.slane %v7230_v58, 1  ;;  %v7259_v56 = vadd.f32 %v7258_v46, %v7175_v36  ;;  %v13258_v46 = vld [vmem:[%s14010_s6] sm:$0x3] }
 0x5ab   :  { %v7232_v32 = vadd.f32 %v7231_v35, %v7230_v58  ;;  %v7260_v62 = vadd.f32 %v7259_v56, %v7177_v2  ;;  %v7181_v58 = vmul.f32 %v13232_v54, %v13232_v54  ;;  %v13243_v35 = vld [vmem:[%s14009_s5] sm:$0x3] }
 0x5ad   :  { %v7278_v42 = vsub.f32 %v7232_v32, %v7276_v61  ;;  %v7261_v5 = vadd.f32 %v7260_v62, %v7179_v9  ;;  %v14455_v61 = vld [vmem:[#allocation35_spill] sm:$0xff] }
 0x5ae   :  { %v7291_v32 = vrot.slane %v13243_v35, %v14455_v61 }
 0x5af   :  { %v7280_v57 = vmul.f32 0.0061728396, %v7278_v42  ;;  %v7262_v25 = vadd.f32 %v7261_v5, %v7181_v58  ;;  %v7191_v42 = vmul.f32 %v13058_v29, %v13058_v29 }
 0x5b1   :  { %v7282_v49 = vadd.f32 1e-05, %v7280_v57  ;;  %v7263_v39 = vadd.f32 %v7262_v25, %v7183_v43  ;;  %v7345_v57 = vrot.slane %v13258_v46, %v14455_v61 }
 0x5b3   :  { %9753 = vrsqrt.f32 %v7282_v49  ;;  %v7264_v27 = vadd.f32 %v7263_v39, %v7185_v1 }
 0x5b5   :  { %v7265_v44 = vadd.f32 %v7264_v27, %v7187_v4 }
 0x5b7   :  { %v7266_v63 = vadd.f32 %v7265_v44, %v7189_v21 }
 0x5b9   :  { %v7267_v36 = vadd.f32 %v7266_v63, %v7191_v42 }
 0x5bb   :  { %v7268_v9 = vrot.slane %v7267_v36, 4 }
 0x5bd   :  { %v9754_v16 = vpop.eup %9753 }
 0x5be   :  { %v7298_v47 = vmul.f32 %v9754_v16, %v7291_v32 }
 0x5c0   :  { %v7303_v45 = vrot.slane %v7298_v47, %v14455_v61 }
 0x5c2   :  { %v7332_v60 = vmul.f32 %v7303_v45, %v12950_v52  ;;  %v7334_v26 = vmul.f32 %v7303_v45, %v12957_v55  ;;  %v7336_v2 = vmul.f32 %v7303_v45, %v12963_v8  ;;  %v7338_v29 = vmul.f32 %v7303_v45, %v12969_v12 }
 0x5c3   :  { %v7269_v52 = vadd.f32 %v7268_v9, %v7267_v36  ;;  %v7275_v8 = vmul.f32 126.0, %v13032_v59  ;;  %v7308_v16 = vmul.f32 %v7303_v45, %v12982_v3  ;;  %v7310_v42 = vmul.f32 %v7303_v45, %v12988_v18 }
 0x5c4   :  { %v7376_v56 = vadd.f32 %v7345_v57, %v7332_v60  ;;  %v7378_v49 = vadd.f32 %v7345_v57, %v7334_v26  ;;  %v7380_v33 = vadd.f32 %v7345_v57, %v7336_v2  ;;  %v7382_v37 = vadd.f32 %v7345_v57, %v7338_v29 }
 0x5c5   :  { %v7270_v39 = vrot.slane %v7269_v52, 2  ;;  %v7277_v27 = vmul.f32 %v7275_v8, %v13032_v59  ;;  %v7312_v63 = vmul.f32 %v7303_v45, %v12996_v24  ;;  %v7314_v47 = vmul.f32 %v7303_v45, %v13004_v6 }
 0x5c6   :  { %v7408_v62 = vmax.f32 %v7376_v56, 0.0  ;;  %v7410_v58 = vmax.f32 %v7378_v49, 0.0  ;;  %v7412_v5 = vmax.f32 %v7380_v33, 0.0  ;;  %v7414_v43 = vmax.f32 %v7382_v37, 0.0 }
 0x5c7   :  { %v7271_v55 = vadd.f32 %v7270_v39, %v7269_v52  ;;  %v7316_v36 = vmul.f32 %v7303_v45, %v13012_v48  ;;  %v7318_v60 = vmul.f32 %v7303_v45, %v13020_v38  ;;  %v7320_v26 = vmul.f32 %v7303_v45, %v13028_v20 }
 0x5c8   :  { %v13267_v25 = vmax.f32 %v7408_v62, %v7410_v58  ;;  %v13269_v1 = vmax.f32 %v7412_v5, %v7414_v43  ;;  %v7322_v59 = vmul.f32 %v7303_v45, %v13038_v11  ;;  %v7324_v2 = vmul.f32 %v7303_v45, %v13074_v22 }
 0x5c9   :  { %v7272_v4 = vrot.slane %v7271_v55, 1  ;;  %v7326_v29 = vmul.f32 %v7303_v45, %v13088_v30  ;;  %v7328_v3 = vmul.f32 %v7303_v45, %v13104_v17  ;;  %v7330_v18 = vmul.f32 %v7303_v45, %v12942_v53  ;;  %v14456_v30 = vld [vmem:[#allocation12_spill] sm:$0xff] }
 0x5ca   :  { %v9850_v24 = vmov 1983009808   ;;  %v7352_v6 = vadd.f32 %v7345_v57, %v7308_v16  ;;  %v7354_v49 = vadd.f32 %v7345_v57, %v7310_v42  ;;  %v7356_v33 = vadd.f32 %v7345_v57, %v7312_v63  ;;  %v14457_v42 = vld [vmem:[#allocation10_spill] sm:$0xff] }
 0x5cb   :  { %v7273_v12 = vadd.f32 %v7272_v4, %v7271_v55  ;;  %v7451_v56 = vunpack.c.l.s4 %v9850_v24  ;;  %v7358_v48 = vadd.f32 %v7345_v57, %v7314_v47  ;;  %v7360_v37 = vadd.f32 %v7345_v57, %v7316_v36 }
 0x5cc   :  { %v7362_v38 = vadd.f32 %v7345_v57, %v7318_v60  ;;  %v7364_v9 = vadd.f32 %v7345_v57, %v7320_v26  ;;  %v7366_v20 = vadd.f32 %v7345_v57, %v7322_v59  ;;  %v7368_v62 = vadd.f32 %v7345_v57, %v7324_v2 }
 0x5cd   :  { %v7279_v32 = vsub.f32 %v7273_v12, %v7277_v27  ;;  %v7370_v11 = vadd.f32 %v7345_v57, %v7326_v29  ;;  %v7372_v58 = vadd.f32 %v7345_v57, %v7328_v3  ;;  %v7374_v22 = vadd.f32 %v7345_v57, %v7330_v18 }
 0x5ce   :  { %v7452_v5 = vunpack.c.0.s8 %v7451_v56  ;;  %v7295_v17 = vrot.slane %v13243_v35, %v14456_v30  ;;  %v7384_v43 = vmax.f32 %v7352_v6, 0.0  ;;  %v7386_v53 = vmax.f32 %v7354_v49, 0.0 }
 0x5cf   :  { %v7281_v21 = vmul.f32 0.0061728396, %v7279_v32  ;;  %v7388_v45 = vmax.f32 %v7356_v33, 0.0  ;;  %v7390_v52 = vmax.f32 %v7358_v48, 0.0  ;;  %v7392_v39 = vmax.f32 %v7360_v37, 0.0 }
 0x5d0   :  { %v7394_v55 = vmax.f32 %v7362_v38, 0.0  ;;  %v7396_v8 = vmax.f32 %v7364_v9, 0.0  ;;  %v7398_v4 = vmax.f32 %v7366_v20, 0.0  ;;  %v7400_v27 = vmax.f32 %v7368_v62, 0.0 }
 0x5d1   :  { %v7283_v44 = vadd.f32 1e-05, %v7281_v21  ;;  %v7402_v32 = vmax.f32 %v7370_v11, 0.0  ;;  %v7404_v21 = vmax.f32 %v7372_v58, 0.0  ;;  %v13288_v57 = vsub.s32 %v7452_v5, %v14457_v42 }
 0x5d2   :  { %v7349_v35 = vrot.slane %v13258_v46, %v14456_v30  ;;  %v13292_v63 = vmax.f32 %v7384_v43, %v7386_v53  ;;  %v13294_v47 = vmax.f32 %v7388_v45, %v7390_v52  ;;  %v13297_v60 = vmax.f32 %v7392_v39, %v7394_v55 }
 0x5d3   :  { %9755 = vrsqrt.f32 %v7283_v44  ;;  %v7406_v44 = vmax.f32 %v7374_v22, 0.0  ;;  %v13299_v26 = vmax.f32 %v7396_v8, %v7398_v4  ;;  %v13301_v59 = vmax.f32 %v7400_v27, %v7402_v32 }
 0x5d5   :  { %v13303_v2 = vmax.f32 %v7404_v21, %v7406_v44 }
 0x5dd   :  { %v9756_v12 = vpop.eup %9755 }
 0x5de   :  { %v7299_v16 = vmul.f32 %v9756_v12, %v7295_v17 }
 0x5e0   :  { %v7307_v36 = vrot.slane %v7299_v16, %v14455_v61 }
 0x5e2   :  { %v7309_v29 = vmul.f32 %v7307_v36, %v13066_v7  ;;  %v7311_v3 = vmul.f32 %v7307_v36, %v13078_v15  ;;  %v7313_v46 = vmul.f32 %v7307_v36, %v13094_v19  ;;  %v7315_v18 = vmul.f32 %v7307_v36, %v13110_v0 }
 0x5e3   :  { %v7317_v24 = vmul.f32 %v7307_v36, %v13122_v10  ;;  %v7319_v61 = vmul.f32 %v7307_v36, %v13132_v31  ;;  %v7321_v56 = vmul.f32 %v7307_v36, %v13144_v51  ;;  %v7323_v6 = vmul.f32 %v7307_v36, %v13156_v41 }
 0x5e4   :  { %v7325_v49 = vmul.f32 %v7307_v36, %v13178_v34  ;;  %v7327_v33 = vmul.f32 %v7307_v36, %v13188_v40  ;;  %v7329_v7 = vmul.f32 %v7307_v36, %v13198_v14  ;;  %v7331_v15 = vmul.f32 %v7307_v36, %v13206_v23 }
 0x5e5   :  { %v7333_v19 = vmul.f32 %v7307_v36, %v13215_v13  ;;  %v7335_v0 = vmul.f32 %v7307_v36, %v13224_v28  ;;  %v7337_v10 = vmul.f32 %v7307_v36, %v13232_v54  ;;  %v7339_v31 = vmul.f32 %v7307_v36, %v13044_v50 }
 0x5e6   :  { %v7353_v48 = vadd.f32 %v7349_v35, %v7309_v29  ;;  %v7355_v51 = vadd.f32 %v7349_v35, %v7311_v3  ;;  %v7357_v37 = vadd.f32 %v7349_v35, %v7313_v46  ;;  %v7359_v41 = vadd.f32 %v7349_v35, %v7315_v18 }
 0x5e7   :  { %v7361_v38 = vadd.f32 %v7349_v35, %v7317_v24  ;;  %v7363_v34 = vadd.f32 %v7349_v35, %v7319_v61  ;;  %v7365_v9 = vadd.f32 %v7349_v35, %v7321_v56  ;;  %v7367_v40 = vadd.f32 %v7349_v35, %v7323_v6 }
 0x5e8   :  { %v7369_v20 = vadd.f32 %v7349_v35, %v7325_v49  ;;  %v7371_v14 = vadd.f32 %v7349_v35, %v7327_v33  ;;  %v7373_v62 = vadd.f32 %v7349_v35, %v7329_v7  ;;  %v7375_v23 = vadd.f32 %v7349_v35, %v7331_v15 }
 0x5e9   :  { %v7377_v11 = vadd.f32 %v7349_v35, %v7333_v19  ;;  %v7379_v13 = vadd.f32 %v7349_v35, %v7335_v0  ;;  %v7381_v58 = vadd.f32 %v7349_v35, %v7337_v10  ;;  %v7383_v28 = vadd.f32 %v7349_v35, %v7339_v31 }
 0x5ea   :  { %v7385_v22 = vmax.f32 %v7353_v48, 0.0  ;;  %v7387_v54 = vmax.f32 %v7355_v51, 0.0  ;;  %v7389_v5 = vmax.f32 %v7357_v37, 0.0  ;;  %v7391_v50 = vmax.f32 %v7359_v41, 0.0 }
 0x5eb   :  { %v7393_v30 = vmax.f32 %v7361_v38, 0.0  ;;  %v7395_v17 = vmax.f32 %v7363_v34, 0.0  ;;  %v7397_v43 = vmax.f32 %v7365_v9, 0.0  ;;  %v7399_v53 = vmax.f32 %v7367_v40, 0.0 }
 0x5ec   :  { %v7401_v45 = vmax.f32 %v7369_v20, 0.0  ;;  %v7403_v52 = vmax.f32 %v7371_v14, 0.0  ;;  %v7405_v39 = vmax.f32 %v7373_v62, 0.0  ;;  %v7407_v55 = vmax.f32 %v7375_v23, 0.0 }
 0x5ed   :  { %v7409_v8 = vmax.f32 %v7377_v11, 0.0  ;;  %v7411_v4 = vmax.f32 %v7379_v13, 0.0  ;;  %v7413_v12 = vmax.f32 %v7381_v58, 0.0  ;;  %v7415_v27 = vmax.f32 %v7383_v28, 0.0 }
 0x5ee   :  { %v7417_v32 = vmax.f32 %v7385_v22, %v7387_v54  ;;  %v7419_v21 = vmax.f32 %v7389_v5, %v7391_v50  ;;  %v7421_v44 = vmax.f32 %v7393_v30, %v7395_v17  ;;  %v7423_v16 = vmax.f32 %v7397_v43, %v7399_v53 }
 0x5ef   :  { %v7425_v42 = vmax.f32 %v7401_v45, %v7403_v52  ;;  %v7427_v35 = vmax.f32 %v7405_v39, %v7407_v55  ;;  %v7429_v36 = vmax.f32 %v7409_v8, %v7411_v4  ;;  %v7431_v29 = vmax.f32 %v7413_v12, %v7415_v27 }
 0x5f0   :  { %v7448_v3 = vcombine.low %v13292_v63, %v7417_v32  ;;  %v7449_v46 = vcombine.high %v13292_v63, %v7417_v32  ;;  %v7466_v18 = vcombine.low %v13294_v47, %v7419_v21  ;;  %v7467_v24 = vcombine.high %v13294_v47, %v7419_v21 }
 0x5f1   :  { %v7484_v61 = vcombine.low %v13297_v60, %v7421_v44  ;;  %v7485_v56 = vcombine.high %v13297_v60, %v7421_v44  ;;  %v7502_v6 = vcombine.low %v13299_v26, %v7423_v16  ;;  %v7503_v49 = vcombine.high %v13299_v26, %v7423_v16 }
 0x5f2   :  { %v7456_v33 = vrot.slane %v7448_v3, %v13288_v57  ;;  %v7463_v7 = vrot.slane %v7449_v46, %v13288_v57  ;;  %v7474_v15 = vrot.slane %v7466_v18, %v13288_v57  ;;  %v7481_v63 = vrot.slane %v7467_v24, %v13288_v57 }
 0x5f3   :  { %v7492_v19 = vrot.slane %v7484_v61, %v13288_v57  ;;  %v7499_v47 = vrot.slane %v7485_v56, %v13288_v57  ;;  %v7510_v0 = vrot.slane %v7502_v6, %v13288_v57  ;;  %v7517_v60 = vrot.slane %v7503_v49, %v13288_v57 }
 0x5f4   :  { %v7464_v10 = vcombine.high %v7456_v33, %v7456_v33  ;;  %v7465_v31 = vcombine.high %v7463_v7, %v7463_v7  ;;  %v7482_v48 = vcombine.high %v7474_v15, %v7474_v15  ;;  %v7483_v26 = vcombine.high %v7481_v63, %v7481_v63 }
 0x5f5   :  { %v7500_v51 = vcombine.high %v7492_v19, %v7492_v19  ;;  %v7501_v37 = vcombine.high %v7499_v47, %v7499_v47  ;;  %v7518_v41 = vcombine.high %v7510_v0, %v7510_v0  ;;  %v7519_v38 = vcombine.high %v7517_v60, %v7517_v60 }
 0x5f6   :  { %v7520_v34 = vcombine.low %v13301_v59, %v7425_v42  ;;  %v7521_v9 = vcombine.high %v13301_v59, %v7425_v42  ;;  %v7538_v40 = vcombine.low %v13303_v2, %v7427_v35  ;;  %v7539_v20 = vcombine.high %v13303_v2, %v7427_v35 }
 0x5f7   :  { %v7556_v14 = vcombine.low %v13267_v25, %v7429_v36  ;;  %v7557_v62 = vcombine.high %v13267_v25, %v7429_v36  ;;  %v7574_v23 = vcombine.low %v13269_v1, %v7431_v29  ;;  %v7575_v11 = vcombine.high %v13269_v1, %v7431_v29 }
 0x5f8   :  { %v7528_v13 = vrot.slane %v7520_v34, %v13288_v57  ;;  %v7535_v58 = vrot.slane %v7521_v9, %v13288_v57  ;;  %v7546_v28 = vrot.slane %v7538_v40, %v13288_v57  ;;  %v7553_v59 = vrot.slane %v7539_v20, %v13288_v57 }
 0x5f9   :  { %v13350_v22 = vrot.slane %v7556_v14, %v13288_v57  ;;  %v13353_v2 = vrot.slane %v7557_v62, %v13288_v57  ;;  %v13356_v25 = vrot.slane %v7574_v23, %v13288_v57  ;;  %v13359_v54 = vrot.slane %v7575_v11, %v13288_v57 }
 0x5fa   :  { %v7536_v1 = vcombine.high %v7528_v13, %v7528_v13  ;;  %v7537_v5 = vcombine.high %v7535_v58, %v7535_v58  ;;  %v7554_v50 = vcombine.high %v7546_v28, %v7546_v28  ;;  %v7555_v30 = vcombine.high %v7553_v59, %v7553_v59 }
 0x5fb   :  { %v7572_v17 = vcombine.high %v13350_v22, %v13350_v22  ;;  %v7573_v43 = vcombine.high %v13353_v2, %v13353_v2  ;;  %v7590_v53 = vcombine.high %v13356_v25, %v13356_v25  ;;  %v7591_v45 = vcombine.high %v13359_v54, %v13359_v54 }
 0x5fc   :  { %v13370_v52 = vrot.slane %v7456_v33, %v13288_v57  ;;  %v13373_v39 = vrot.slane %v7464_v10, %v13288_v57  ;;  %v13376_v55 = vrot.slane %v7463_v7, %v13288_v57  ;;  %v13379_v8 = vrot.slane %v7465_v31, %v13288_v57 }
 0x5fd   :  { %v13382_v4 = vrot.slane %v7474_v15, %v13288_v57  ;;  %v13385_v12 = vrot.slane %v7482_v48, %v13288_v57  ;;  %v13388_v27 = vrot.slane %v7481_v63, %v13288_v57  ;;  %v13391_v32 = vrot.slane %v7483_v26, %v13288_v57 }
 0x5fe   :  { %v7599_v21 = vcombine.high %v13370_v52, %v13370_v52  ;;  %v7607_v44 = vcombine.high %v13373_v39, %v13373_v39  ;;  %v7615_v16 = vcombine.high %v13376_v55, %v13376_v55  ;;  %v7623_v42 = vcombine.high %v13379_v8, %v13379_v8 }
 0x5ff   :  { %v13410_v46 = vrot.slane %v7492_v19, %v13288_v57  ;;  %v13413_v18 = vrot.slane %v7500_v51, %v13288_v57  ;;  %v13416_v24 = vrot.slane %v7499_v47, %v13288_v57  ;;  %v13419_v61 = vrot.slane %v7501_v37, %v13288_v57 }
 0x600   :  { %v13422_v56 = vrot.slane %v7510_v0, %v13288_v57  ;;  %v13425_v6 = vrot.slane %v7518_v41, %v13288_v57  ;;  %v13428_v49 = vrot.slane %v7517_v60, %v13288_v57  ;;  %v13431_v33 = vrot.slane %v7519_v38, %v13288_v57 }
 0x601   :  { %v13450_v31 = vrot.slane %v7528_v13, %v13288_v57  ;;  %v13453_v48 = vrot.slane %v7536_v1, %v13288_v57  ;;  %v13456_v26 = vrot.slane %v7535_v58, %v13288_v57  ;;  %v13459_v51 = vrot.slane %v7537_v5, %v13288_v57 }
 0x602   :  { %v13462_v37 = vrot.slane %v7546_v28, %v13288_v57  ;;  %v13465_v41 = vrot.slane %v7554_v50, %v13288_v57  ;;  %v13468_v38 = vrot.slane %v7553_v59, %v13288_v57  ;;  %v13471_v34 = vrot.slane %v7555_v30, %v13288_v57 }
 0x603   :  { %v13491_v58 = vrot.slane %v13350_v22, %v13288_v57  ;;  %v13494_v28 = vrot.slane %v7572_v17, %v13288_v57  ;;  %v13498_v59 = vrot.slane %v13353_v2, %v13288_v57  ;;  %v13501_v1 = vrot.slane %v7573_v43, %v13288_v57 }
 0x604   :  { %v13505_v5 = vrot.slane %v13356_v25, %v13288_v57  ;;  %v13508_v50 = vrot.slane %v7590_v53, %v13288_v57  ;;  %v13512_v22 = vrot.slane %v13359_v54, %v13288_v57  ;;  %v13515_v30 = vrot.slane %v7591_v45, %v13288_v57 }
 0x605   :  { %v7913_v17 = vsel %vm7912_vm8, %v13370_v52, -inf  ;;  %v7920_v25 = vsel %vm7912_vm8, %v7599_v21, -inf  ;;  %v7927_v43 = vsel %vm7912_vm8, %v13373_v39, -inf  ;;  %v7934_v2 = vsel %vm7912_vm8, %v7607_v44, -inf }
 0x606   :  { %v7914_v53 = vrot.slane %v7913_v17, 4  ;;  %v7921_v13 = vrot.slane %v7920_v25, 4  ;;  %v7928_v11 = vrot.slane %v7927_v43, 4  ;;  %v7935_v54 = vrot.slane %v7934_v2, 4 }
 0x607   :  { %v7941_v57 = vsel %vm7912_vm8, %v13376_v55, -inf  ;;  %v7948_v45 = vsel %vm7912_vm8, %v7615_v16, -inf  ;;  %v7955_v52 = vsel %vm7912_vm8, %v13379_v8, -inf  ;;  %v7962_v39 = vsel %vm7912_vm8, %v7623_v42, -inf }
 0x608   :  { %v7915_v21 = vmax.f32 %v7913_v17, %v7914_v53  ;;  %v7922_v44 = vmax.f32 %v7920_v25, %v7921_v13  ;;  %v7929_v23 = vmax.f32 %v7927_v43, %v7928_v11  ;;  %v7936_v62 = vmax.f32 %v7934_v2, %v7935_v54 }
 0x609   :  { %v7942_v14 = vrot.slane %v7941_v57, 4  ;;  %v7949_v20 = vrot.slane %v7948_v45, 4  ;;  %v7956_v40 = vrot.slane %v7955_v52, 4  ;;  %v7963_v9 = vrot.slane %v7962_v39, 4 }
 0x60a   :  { %v7916_v10 = vrot.slane %v7915_v21, 2  ;;  %v7923_v55 = vrot.slane %v7922_v44, 2  ;;  %v7930_v60 = vrot.slane %v7929_v23, 2  ;;  %v7937_v16 = vrot.slane %v7936_v62, 2 }
 0x60b   :  { %v7943_v0 = vmax.f32 %v7941_v57, %v7942_v14  ;;  %v7950_v47 = vmax.f32 %v7948_v45, %v7949_v20  ;;  %v7957_v19 = vmax.f32 %v7955_v52, %v7956_v40  ;;  %v7964_v63 = vmax.f32 %v7962_v39, %v7963_v9 }
 0x60c   :  { %v7917_v15 = vmax.f32 %v7915_v21, %v7916_v10  ;;  %v7924_v8 = vmax.f32 %v7922_v44, %v7923_v55  ;;  %v7931_v7 = vmax.f32 %v7929_v23, %v7930_v60  ;;  %v7938_v42 = vmax.f32 %v7936_v62, %v7937_v16 }
 0x60d   :  { %v7944_v17 = vrot.slane %v7943_v0, 2  ;;  %v7951_v13 = vrot.slane %v7950_v47, 2  ;;  %v7958_v11 = vrot.slane %v7957_v19, 2  ;;  %v7965_v2 = vrot.slane %v7964_v63, 2 }
 0x60e   :  { %v7918_v25 = vrot.slane %v7917_v15, 1  ;;  %v7925_v43 = vrot.slane %v7924_v8, 1  ;;  %v7932_v53 = vrot.slane %v7931_v7, 1  ;;  %v7939_v54 = vrot.slane %v7938_v42, 1 }
 0x60f   :  { %v7945_v3 = vmax.f32 %v7943_v0, %v7944_v17  ;;  %v7952_v29 = vmax.f32 %v7950_v47, %v7951_v13  ;;  %v7959_v36 = vmax.f32 %v7957_v19, %v7958_v11  ;;  %v7966_v35 = vmax.f32 %v7964_v63, %v7965_v2 }
 0x610   :  { %v13551_v14 = vmax.f32 %v7917_v15, %v7918_v25  ;;  %v13553_v40 = vmax.f32 %v7924_v8, %v7925_v43  ;;  %v13555_v10 = vmax.f32 %v7931_v7, %v7932_v53  ;;  %v13557_v60 = vmax.f32 %v7938_v42, %v7939_v54 }
 0x611   :  { %v7946_v9 = vrot.slane %v7945_v3, 1  ;;  %v7953_v20 = vrot.slane %v7952_v29, 1  ;;  %v7960_v62 = vrot.slane %v7959_v36, 1  ;;  %v7967_v23 = vrot.slane %v7966_v35, 1 }
 0x612   :  { %v7969_v57 = vsel %vm7912_vm8, %v13382_v4, -inf  ;;  %v14458_v47 = vcombine.high %v13382_v4, %v13382_v4  ;;  %v7983_v15 = vsel %vm7912_vm8, %v13385_v12, -inf  ;;  %v14459_v7 = vcombine.high %v13385_v12, %v13385_v12 }
 0x613   :  { %v13571_v0 = vmax.f32 %v7945_v3, %v7946_v9  ;;  %v13573_v45 = vmax.f32 %v7952_v29, %v7953_v20  ;;  %v13575_v52 = vmax.f32 %v7959_v36, %v7960_v62  ;;  %v13577_v39 = vmax.f32 %v7966_v35, %v7967_v23 }
 0x614   :  { %v7976_v63 = vsel %vm7912_vm8, %v14458_v47, -inf  ;;  %v7990_v19 = vsel %vm7912_vm8, %v14459_v7, -inf  ;;  %v7970_v21 = vrot.slane %v7969_v57, 4  ;;  %v7984_v44 = vrot.slane %v7983_v15, 4 }
 0x615   :  { %14460 = vst [vmem:[#allocation34_spill] sm:$0xff] %v13571_v0  ;;  %14461 = vst [vmem:[#allocation23_spill] sm:$0xff] %v13573_v45  ;;  %v7977_v4 = vrot.slane %v7976_v63, 4  ;;  %v7991_v55 = vrot.slane %v7990_v19, 4  ;;  %v7997_v16 = vsel %vm7912_vm8, %v13388_v27, -inf  ;;  %v14464_v12 = vcombine.high %v13388_v27, %v13388_v27 }
 0x616   :  { %14462 = vst [vmem:[#allocation26_spill] sm:$0xff] %v13575_v52  ;;  %14463 = vst [vmem:[#allocation27_spill] sm:$0xff] %v13577_v39  ;;  %v8011_v29 = vsel %vm7912_vm8, %v13391_v32, -inf  ;;  %v14465_v36 = vcombine.high %v13391_v32, %v13391_v32  ;;  %v7971_v3 = vmax.f32 %v7969_v57, %v7970_v21  ;;  %v7985_v17 = vmax.f32 %v7983_v15, %v7984_v44 }
 0x617   :  { %v8004_v8 = vsel %vm7912_vm8, %v14464_v12, -inf  ;;  %v7978_v42 = vmax.f32 %v7976_v63, %v7977_v4  ;;  %v7992_v13 = vmax.f32 %v7990_v19, %v7991_v55  ;;  %v7998_v11 = vrot.slane %v7997_v16, 4 }
 0x618   :  { %v8018_v35 = vsel %vm7912_vm8, %v14465_v36, -inf  ;;  %v8005_v2 = vrot.slane %v8004_v8, 4  ;;  %v8012_v25 = vrot.slane %v8011_v29, 4  ;;  %v7972_v53 = vrot.slane %v7971_v3, 2 }
 0x619   :  { %v8019_v43 = vrot.slane %v8018_v35, 4  ;;  %v7979_v27 = vrot.slane %v7978_v42, 2  ;;  %v7986_v54 = vrot.slane %v7985_v17, 2  ;;  %v7993_v9 = vrot.slane %v7992_v13, 2 }
 0x61a   :  { %v7999_v20 = vmax.f32 %v7997_v16, %v7998_v11  ;;  %v8006_v62 = vmax.f32 %v8004_v8, %v8005_v2  ;;  %v8013_v23 = vmax.f32 %v8011_v29, %v8012_v25  ;;  %v7973_v7 = vmax.f32 %v7971_v3, %v7972_v53 }
 0x61b   :  { %v8020_v47 = vmax.f32 %v8018_v35, %v8019_v43  ;;  %v7980_v32 = vmax.f32 %v7978_v42, %v7979_v27  ;;  %v7987_v12 = vmax.f32 %v7985_v17, %v7986_v54  ;;  %v7994_v36 = vmax.f32 %v7992_v13, %v7993_v9 }
 0x61c   :  { %v8000_v57 = vrot.slane %v7999_v20, 2  ;;  %v8007_v63 = vrot.slane %v8006_v62, 2  ;;  %v8014_v15 = vrot.slane %v8013_v23, 2  ;;  %v7974_v21 = vrot.slane %v7973_v7, 1 }
 0x61d   :  { %v8021_v19 = vrot.slane %v8020_v47, 2  ;;  %v7981_v4 = vrot.slane %v7980_v32, 1  ;;  %v7988_v44 = vrot.slane %v7987_v12, 1  ;;  %v7995_v55 = vrot.slane %v7994_v36, 1 }
 0x61e   :  { %v8001_v52 = vmax.f32 %v7999_v20, %v8000_v57  ;;  %v8008_v39 = vmax.f32 %v8006_v62, %v8007_v63  ;;  %v8015_v0 = vmax.f32 %v8013_v23, %v8014_v15  ;;  %v13591_v16 = vmax.f32 %v7973_v7, %v7974_v21 }
 0x61f   :  { %v8022_v45 = vmax.f32 %v8020_v47, %v8021_v19  ;;  %v13593_v8 = vmax.f32 %v7980_v32, %v7981_v4  ;;  %v13595_v29 = vmax.f32 %v7987_v12, %v7988_v44  ;;  %v13597_v35 = vmax.f32 %v7994_v36, %v7995_v55 }
 0x620   :  { %v8002_v3 = vrot.slane %v8001_v52, 1  ;;  %v8009_v42 = vrot.slane %v8008_v39, 1  ;;  %v8016_v17 = vrot.slane %v8015_v0, 1  ;;  %v8025_v11 = vsel %vm7912_vm8, %v13410_v46, -inf }
 0x621   :  { %v8023_v13 = vrot.slane %v8022_v45, 1  ;;  %v14466_v2 = vcombine.high %v13410_v46, %v13410_v46  ;;  %v8039_v43 = vsel %vm7912_vm8, %v13413_v18, -inf  ;;  %v14467_v53 = vcombine.high %v13413_v18, %v13413_v18 }
 0x622   :  { %v13611_v54 = vmax.f32 %v8001_v52, %v8002_v3  ;;  %v13613_v9 = vmax.f32 %v8008_v39, %v8009_v42  ;;  %v13615_v20 = vmax.f32 %v8015_v0, %v8016_v17  ;;  %v8026_v23 = vrot.slane %v8025_v11, 4 }
 0x623   :  { %v8032_v25 = vsel %vm7912_vm8, %v14466_v2, -inf  ;;  %v8046_v27 = vsel %vm7912_vm8, %v14467_v53, -inf  ;;  %v13617_v62 = vmax.f32 %v8022_v45, %v8023_v13  ;;  %v8040_v47 = vrot.slane %v8039_v43, 4 }
 0x624   :  { %14468 = vst [vmem:[#allocation29_spill] sm:$0xff] %v13611_v54  ;;  %14469 = vst [vmem:[#allocation30_spill] sm:$0xff] %v13613_v9  ;;  %v8033_v46 = vrot.slane %v8032_v25, 4  ;;  %v8047_v7 = vrot.slane %v8046_v27, 4  ;;  %v8053_v32 = vsel %vm7912_vm8, %v13416_v24, -inf  ;;  %v14472_v18 = vcombine.high %v13416_v24, %v13416_v24 }
 0x625   :  { %14470 = vst [vmem:[#allocation31_spill] sm:$0xff] %v13615_v20  ;;  %14471 = vst [vmem:[#allocation13_spill] sm:$0xff] %v13617_v62  ;;  %v8067_v52 = vsel %vm7912_vm8, %v13419_v61, -inf  ;;  %v14473_v0 = vcombine.high %v13419_v61, %v13419_v61  ;;  %v8027_v39 = vmax.f32 %v8025_v11, %v8026_v23  ;;  %v8041_v57 = vmax.f32 %v8039_v43, %v8040_v47 }
 0x626   :  { %v8060_v12 = vsel %vm7912_vm8, %v14472_v18, -inf  ;;  %v8034_v36 = vmax.f32 %v8032_v25, %v8033_v46  ;;  %v8048_v63 = vmax.f32 %v8046_v27, %v8047_v7  ;;  %v8054_v15 = vrot.slane %v8053_v32, 4 }
 0x627   :  { %v8074_v45 = vsel %vm7912_vm8, %v14473_v0, -inf  ;;  %v8061_v19 = vrot.slane %v8060_v12, 4  ;;  %v8068_v21 = vrot.slane %v8067_v52, 4  ;;  %v8028_v44 = vrot.slane %v8027_v39, 2 }
 0x628   :  { %v8075_v4 = vrot.slane %v8074_v45, 4  ;;  %v8035_v24 = vrot.slane %v8034_v36, 2  ;;  %v8042_v55 = vrot.slane %v8041_v57, 2  ;;  %v8049_v3 = vrot.slane %v8048_v63, 2 }
 0x629   :  { %v8055_v42 = vmax.f32 %v8053_v32, %v8054_v15  ;;  %v8062_v17 = vmax.f32 %v8060_v12, %v8061_v19  ;;  %v8069_v13 = vmax.f32 %v8067_v52, %v8068_v21  ;;  %v8029_v53 = vmax.f32 %v8027_v39, %v8028_v44 }
 0x62a   :  { %v8076_v2 = vmax.f32 %v8074_v45, %v8075_v4  ;;  %v8036_v61 = vmax.f32 %v8034_v36, %v8035_v24  ;;  %v8043_v18 = vmax.f32 %v8041_v57, %v8042_v55  ;;  %v8050_v0 = vmax.f32 %v8048_v63, %v8049_v3 }
 0x62b   :  { %v8056_v11 = vrot.slane %v8055_v42, 2  ;;  %v8063_v25 = vrot.slane %v8062_v17, 2  ;;  %v8070_v43 = vrot.slane %v8069_v13, 2  ;;  %v8030_v23 = vrot.slane %v8029_v53, 1 }
 0x62c   :  { %v8077_v27 = vrot.slane %v8076_v2, 2  ;;  %v8037_v46 = vrot.slane %v8036_v61, 1  ;;  %v8044_v47 = vrot.slane %v8043_v18, 1  ;;  %v8051_v7 = vrot.slane %v8050_v0, 1 }
 0x62d   :  { %v8057_v20 = vmax.f32 %v8055_v42, %v8056_v11  ;;  %v8064_v62 = vmax.f32 %v8062_v17, %v8063_v25  ;;  %v8071_v54 = vmax.f32 %v8069_v13, %v8070_v43  ;;  %v13631_v32 = vmax.f32 %v8029_v53, %v8030_v23 }
 0x62e   :  { %v8078_v9 = vmax.f32 %v8076_v2, %v8077_v27  ;;  %v13633_v12 = vmax.f32 %v8036_v61, %v8037_v46  ;;  %v13635_v52 = vmax.f32 %v8043_v18, %v8044_v47  ;;  %v13637_v45 = vmax.f32 %v8050_v0, %v8051_v7 }
 0x62f   :  { %v8058_v39 = vrot.slane %v8057_v20, 1  ;;  %v8065_v36 = vrot.slane %v8064_v62, 1  ;;  %v8072_v57 = vrot.slane %v8071_v54, 1  ;;  %v8081_v15 = vsel %vm7912_vm8, %v13422_v56, -inf }
 0x630   :  { %v8079_v63 = vrot.slane %v8078_v9, 1  ;;  %v14474_v19 = vcombine.high %v13422_v56, %v13422_v56  ;;  %v8095_v4 = vsel %vm7912_vm8, %v13425_v6, -inf  ;;  %v14475_v44 = vcombine.high %v13425_v6, %v13425_v6 }
 0x631   :  { %v13651_v55 = vmax.f32 %v8057_v20, %v8058_v39  ;;  %v13653_v3 = vmax.f32 %v8064_v62, %v8065_v36  ;;  %v13655_v42 = vmax.f32 %v8071_v54, %v8072_v57  ;;  %v8082_v13 = vrot.slane %v8081_v15, 4 }
 0x632   :  { %v8088_v21 = vsel %vm7912_vm8, %v14474_v19, -inf  ;;  %v8102_v24 = vsel %vm7912_vm8, %v14475_v44, -inf  ;;  %v13657_v17 = vmax.f32 %v8078_v9, %v8079_v63  ;;  %v8096_v2 = vrot.slane %v8095_v4, 4 }
 0x633   :  { %14476 = vst [vmem:[#allocation14_spill] sm:$0xff] %v13651_v55  ;;  %14477 = vst [vmem:[#allocation15_spill] sm:$0xff] %v13653_v3  ;;  %v8089_v56 = vrot.slane %v8088_v21, 4  ;;  %v8103_v53 = vrot.slane %v8102_v24, 4  ;;  %v8109_v61 = vsel %vm7912_vm8, %v13428_v49, -inf  ;;  %v14480_v6 = vcombine.high %v13428_v49, %v13428_v49 }
 0x634   :  { %14478 = vst [vmem:[#allocation16_spill] sm:$0xff] %v13655_v42  ;;  %14479 = vst [vmem:[#allocation25_spill] sm:$0xff] %v13657_v17  ;;  %v8123_v20 = vsel %vm7912_vm8, %v13431_v33, -inf  ;;  %v14481_v54 = vcombine.high %v13431_v33, %v13431_v33  ;;  %v8083_v62 = vmax.f32 %v8081_v15, %v8082_v13  ;;  %v8097_v11 = vmax.f32 %v8095_v4, %v8096_v2 }
 0x635   :  { %v8116_v18 = vsel %vm7912_vm8, %v14480_v6, -inf  ;;  %v8090_v0 = vmax.f32 %v8088_v21, %v8089_v56  ;;  %v8104_v25 = vmax.f32 %v8102_v24, %v8103_v53  ;;  %v8110_v43 = vrot.slane %v8109_v61, 4 }
 0x636   :  { %v8130_v9 = vsel %vm7912_vm8, %v14481_v54, -inf  ;;  %v8117_v27 = vrot.slane %v8116_v18, 4  ;;  %v8124_v23 = vrot.slane %v8123_v20, 4  ;;  %v8084_v47 = vrot.slane %v8083_v62, 2 }
 0x637   :  { %v8131_v46 = vrot.slane %v8130_v9, 4  ;;  %v8091_v49 = vrot.slane %v8090_v0, 2  ;;  %v8098_v7 = vrot.slane %v8097_v11, 2  ;;  %v8105_v39 = vrot.slane %v8104_v25, 2 }
 0x638   :  { %v8111_v36 = vmax.f32 %v8109_v61, %v8110_v43  ;;  %v8118_v57 = vmax.f32 %v8116_v18, %v8117_v27  ;;  %v8125_v63 = vmax.f32 %v8123_v20, %v8124_v23  ;;  %v8085_v44 = vmax.f32 %v8083_v62, %v8084_v47 }
 0x639   :  { %v8132_v19 = vmax.f32 %v8130_v9, %v8131_v46  ;;  %v8092_v33 = vmax.f32 %v8090_v0, %v8091_v49  ;;  %v8099_v6 = vmax.f32 %v8097_v11, %v8098_v7  ;;  %v8106_v54 = vmax.f32 %v8104_v25, %v8105_v39 }
 0x63a   :  { %v8112_v15 = vrot.slane %v8111_v36, 2  ;;  %v8119_v21 = vrot.slane %v8118_v57, 2  ;;  %v8126_v4 = vrot.slane %v8125_v63, 2  ;;  %v8086_v13 = vrot.slane %v8085_v44, 1 }
 0x63b   :  { %v8133_v24 = vrot.slane %v8132_v19, 2  ;;  %v8093_v56 = vrot.slane %v8092_v33, 1  ;;  %v8100_v2 = vrot.slane %v8099_v6, 1  ;;  %v8107_v53 = vrot.slane %v8106_v54, 1 }
 0x63c   :  { %v8113_v42 = vmax.f32 %v8111_v36, %v8112_v15  ;;  %v8120_v17 = vmax.f32 %v8118_v57, %v8119_v21  ;;  %v8127_v55 = vmax.f32 %v8125_v63, %v8126_v4  ;;  %v13671_v61 = vmax.f32 %v8085_v44, %v8086_v13 }
 0x63d   :  { %v8134_v3 = vmax.f32 %v8132_v19, %v8133_v24  ;;  %v13673_v18 = vmax.f32 %v8092_v33, %v8093_v56  ;;  %v13675_v20 = vmax.f32 %v8099_v6, %v8100_v2  ;;  %v13677_v9 = vmax.f32 %v8106_v54, %v8107_v53 }
 0x63e   :  { %v8114_v62 = vrot.slane %v8113_v42, 1  ;;  %v8121_v0 = vrot.slane %v8120_v17, 1  ;;  %v8128_v11 = vrot.slane %v8127_v55, 1  ;;  %v8137_v43 = vsel %vm7912_vm8, %v13450_v31, -inf }
 0x63f   :  { %v8135_v25 = vrot.slane %v8134_v3, 1  ;;  %v14482_v27 = vcombine.high %v13450_v31, %v13450_v31  ;;  %v8151_v46 = vsel %vm7912_vm8, %v13453_v48, -inf  ;;  %v14483_v47 = vcombine.high %v13453_v48, %v13453_v48 }
 0x640   :  { %v13691_v7 = vmax.f32 %v8113_v42, %v8114_v62  ;;  %v13693_v39 = vmax.f32 %v8120_v17, %v8121_v0  ;;  %v13695_v36 = vmax.f32 %v8127_v55, %v8128_v11  ;;  %v8138_v63 = vrot.slane %v8137_v43, 4 }
 0x641   :  { %v8144_v23 = vsel %vm7912_vm8, %v14482_v27, -inf  ;;  %v8158_v49 = vsel %vm7912_vm8, %v14483_v47, -inf  ;;  %v13697_v57 = vmax.f32 %v8134_v3, %v8135_v25  ;;  %v8152_v19 = vrot.slane %v8151_v46, 4 }
 0x642   :  { %14484 = vst [vmem:[#allocation28_spill] sm:$0xff] %v13691_v7  ;;  %14485 = vst [vmem:[#allocation17_spill] sm:$0xff] %v13693_v39  ;;  %v8145_v31 = vrot.slane %v8144_v23, 4  ;;  %v8159_v44 = vrot.slane %v8158_v49, 4  ;;  %v8165_v33 = vsel %vm7912_vm8, %v13456_v26, -inf  ;;  %v14488_v48 = vcombine.high %v13456_v26, %v13456_v26 }
 0x643   :  { %14486 = vst [vmem:[#allocation18_spill] sm:$0xff] %v13695_v36  ;;  %14487 = vst [vmem:[#allocation19_spill] sm:$0xff] %v13697_v57  ;;  %v8179_v42 = vsel %vm7912_vm8, %v13459_v51, -inf  ;;  %v14489_v55 = vcombine.high %v13459_v51, %v13459_v51  ;;  %v8139_v17 = vmax.f32 %v8137_v43, %v8138_v63  ;;  %v8153_v15 = vmax.f32 %v8151_v46, %v8152_v19 }
 0x644   :  { %v8172_v6 = vsel %vm7912_vm8, %v14488_v48, -inf  ;;  %v8146_v54 = vmax.f32 %v8144_v23, %v8145_v31  ;;  %v8160_v21 = vmax.f32 %v8158_v49, %v8159_v44  ;;  %v8166_v4 = vrot.slane %v8165_v33, 4 }
 0x645   :  { %v8186_v3 = vsel %vm7912_vm8, %v14489_v55, -inf  ;;  %v8173_v24 = vrot.slane %v8172_v6, 4  ;;  %v8180_v13 = vrot.slane %v8179_v42, 4  ;;  %v8140_v2 = vrot.slane %v8139_v17, 2 }
 0x646   :  { %v8187_v56 = vrot.slane %v8186_v3, 4  ;;  %v8147_v26 = vrot.slane %v8146_v54, 2  ;;  %v8154_v53 = vrot.slane %v8153_v15, 2  ;;  %v8161_v62 = vrot.slane %v8160_v21, 2 }
 0x647   :  { %v8167_v0 = vmax.f32 %v8165_v33, %v8166_v4  ;;  %v8174_v11 = vmax.f32 %v8172_v6, %v8173_v24  ;;  %v8181_v25 = vmax.f32 %v8179_v42, %v8180_v13  ;;  %v8141_v47 = vmax.f32 %v8139_v17, %v8140_v2 }
 0x648   :  { %v8188_v27 = vmax.f32 %v8186_v3, %v8187_v56  ;;  %v8148_v51 = vmax.f32 %v8146_v54, %v8147_v26  ;;  %v8155_v48 = vmax.f32 %v8153_v15, %v8154_v53  ;;  %v8162_v55 = vmax.f32 %v8160_v21, %v8161_v62 }
 0x649   :  { %v8168_v43 = vrot.slane %v8167_v0, 2  ;;  %v8175_v23 = vrot.slane %v8174_v11, 2  ;;  %v8182_v46 = vrot.slane %v8181_v25, 2  ;;  %v8142_v63 = vrot.slane %v8141_v47, 1 }
 0x64a   :  { %v8189_v49 = vrot.slane %v8188_v27, 2  ;;  %v8149_v31 = vrot.slane %v8148_v51, 1  ;;  %v8156_v19 = vrot.slane %v8155_v48, 1  ;;  %v8163_v44 = vrot.slane %v8162_v55, 1 }
 0x64b   :  { %v8169_v36 = vmax.f32 %v8167_v0, %v8168_v43  ;;  %v8176_v57 = vmax.f32 %v8174_v11, %v8175_v23  ;;  %v8183_v7 = vmax.f32 %v8181_v25, %v8182_v46  ;;  %v13711_v33 = vmax.f32 %v8141_v47, %v8142_v63 }
 0x64c   :  { %v8190_v39 = vmax.f32 %v8188_v27, %v8189_v49  ;;  %v13713_v6 = vmax.f32 %v8148_v51, %v8149_v31  ;;  %v13715_v42 = vmax.f32 %v8155_v48, %v8156_v19  ;;  %v13717_v3 = vmax.f32 %v8162_v55, %v8163_v44 }
 0x64d   :  { %v8170_v17 = vrot.slane %v8169_v36, 1  ;;  %v8177_v54 = vrot.slane %v8176_v57, 1  ;;  %v8184_v15 = vrot.slane %v8183_v7, 1  ;;  %v8193_v4 = vsel %vm7912_vm8, %v13462_v37, -inf }
 0x64e   :  { %v8191_v21 = vrot.slane %v8190_v39, 1  ;;  %v14490_v24 = vcombine.high %v13462_v37, %v13462_v37  ;;  %v8207_v56 = vsel %vm7912_vm8, %v13465_v41, -inf  ;;  %v14491_v2 = vcombine.high %v13465_v41, %v13465_v41 }
 0x64f   :  { %v13731_v53 = vmax.f32 %v8169_v36, %v8170_v17  ;;  %v13733_v62 = vmax.f32 %v8176_v57, %v8177_v54  ;;  %v13735_v0 = vmax.f32 %v8183_v7, %v8184_v15  ;;  %v8194_v25 = vrot.slane %v8193_v4, 4 }
 0x650   :  { %v8200_v13 = vsel %vm7912_vm8, %v14490_v24, -inf  ;;  %v8214_v26 = vsel %vm7912_vm8, %v14491_v2, -inf  ;;  %v13737_v11 = vmax.f32 %v8190_v39, %v8191_v21  ;;  %v8208_v27 = vrot.slane %v8207_v56, 4 }
 0x651   :  { %14492 = vst [vmem:[#allocation36_spill] sm:$0xff] %v13731_v53  ;;  %14493 = vst [vmem:[#allocation37_spill] sm:$0xff] %v13733_v62  ;;  %v8201_v37 = vrot.slane %v8200_v13, 4  ;;  %v8215_v47 = vrot.slane %v8214_v26, 4  ;;  %v8221_v51 = vsel %vm7912_vm8, %v13468_v38, -inf  ;;  %v14496_v41 = vcombine.high %v13468_v38, %v13468_v38 }
 0x652   :  { %14494 = vst [vmem:[#allocation38_spill] sm:$0xff] %v13735_v0  ;;  %14495 = vst [vmem:[#allocation39_spill] sm:$0xff] %v13737_v11  ;;  %v8235_v36 = vsel %vm7912_vm8, %v13471_v34, -inf  ;;  %v14497_v7 = vcombine.high %v13471_v34, %v13471_v34  ;;  %v8195_v57 = vmax.f32 %v8193_v4, %v8194_v25  ;;  %v8209_v43 = vmax.f32 %v8207_v56, %v8208_v27 }
 0x653   :  { %v8228_v48 = vsel %vm7912_vm8, %v14496_v41, -inf  ;;  %v8202_v55 = vmax.f32 %v8200_v13, %v8201_v37  ;;  %v8216_v23 = vmax.f32 %v8214_v26, %v8215_v47  ;;  %v8222_v46 = vrot.slane %v8221_v51, 4 }
 0x654   :  { %v8242_v39 = vsel %vm7912_vm8, %v14497_v7, -inf  ;;  %v8229_v49 = vrot.slane %v8228_v48, 4  ;;  %v8236_v63 = vrot.slane %v8235_v36, 4  ;;  %v8196_v19 = vrot.slane %v8195_v57, 2 }
 0x655   :  { %v8243_v31 = vrot.slane %v8242_v39, 4  ;;  %v8203_v38 = vrot.slane %v8202_v55, 2  ;;  %v8210_v44 = vrot.slane %v8209_v43, 2  ;;  %v8217_v17 = vrot.slane %v8216_v23, 2 }
 0x656   :  { %v8223_v54 = vmax.f32 %v8221_v51, %v8222_v46  ;;  %v8230_v15 = vmax.f32 %v8228_v48, %v8229_v49  ;;  %v8237_v21 = vmax.f32 %v8235_v36, %v8236_v63  ;;  %v8197_v2 = vmax.f32 %v8195_v57, %v8196_v19 }
 0x657   :  { %v8244_v24 = vmax.f32 %v8242_v39, %v8243_v31  ;;  %v8204_v34 = vmax.f32 %v8202_v55, %v8203_v38  ;;  %v8211_v41 = vmax.f32 %v8209_v43, %v8210_v44  ;;  %v8218_v7 = vmax.f32 %v8216_v23, %v8217_v17 }
 0x658   :  { %v8224_v4 = vrot.slane %v8223_v54, 2  ;;  %v8231_v13 = vrot.slane %v8230_v15, 2  ;;  %v8238_v56 = vrot.slane %v8237_v21, 2  ;;  %v8198_v25 = vrot.slane %v8197_v2, 1 }
 0x659   :  { %v8245_v26 = vrot.slane %v8244_v24, 2  ;;  %v8205_v37 = vrot.slane %v8204_v34, 1  ;;  %v8212_v27 = vrot.slane %v8211_v41, 1  ;;  %v8219_v47 = vrot.slane %v8218_v7, 1 }
 0x65a   :  { %v8225_v0 = vmax.f32 %v8223_v54, %v8224_v4  ;;  %v8232_v11 = vmax.f32 %v8230_v15, %v8231_v13  ;;  %v8239_v53 = vmax.f32 %v8237_v21, %v8238_v56  ;;  %v13751_v51 = vmax.f32 %v8197_v2, %v8198_v25 }
 0x65b   :  { %v8246_v62 = vmax.f32 %v8244_v24, %v8245_v26  ;;  %v13753_v48 = vmax.f32 %v8204_v34, %v8205_v37  ;;  %v13755_v36 = vmax.f32 %v8211_v41, %v8212_v27  ;;  %v13757_v39 = vmax.f32 %v8218_v7, %v8219_v47 }
 0x65c   :  { %v8226_v57 = vrot.slane %v8225_v0, 1  ;;  %v8233_v55 = vrot.slane %v8232_v11, 1  ;;  %v8240_v43 = vrot.slane %v8239_v53, 1  ;;  %v8249_v46 = vsel %vm7912_vm8, %v13491_v58, -inf }
 0x65d   :  { %v8247_v23 = vrot.slane %v8246_v62, 1  ;;  %v14498_v49 = vcombine.high %v13491_v58, %v13491_v58  ;;  %v8263_v31 = vsel %vm7912_vm8, %v13494_v28, -inf  ;;  %v14499_v19 = vcombine.high %v13494_v28, %v13494_v28 }
 0x65e   :  { %v13771_v44 = vmax.f32 %v8225_v0, %v8226_v57  ;;  %v13773_v17 = vmax.f32 %v8232_v11, %v8233_v55  ;;  %v13775_v54 = vmax.f32 %v8239_v53, %v8240_v43  ;;  %v8250_v21 = vrot.slane %v8249_v46, 4 }
 0x65f   :  { %v8256_v63 = vsel %vm7912_vm8, %v14498_v49, -inf  ;;  %v8270_v38 = vsel %vm7912_vm8, %v14499_v19, -inf  ;;  %v13777_v15 = vmax.f32 %v8246_v62, %v8247_v23  ;;  %v8264_v24 = vrot.slane %v8263_v31, 4 }
 0x660   :  { %14500 = vst [vmem:[#allocation40_spill] sm:$0xff] %v13771_v44  ;;  %14501 = vst [vmem:[#allocation41_spill] sm:$0xff] %v13773_v17  ;;  %v8257_v58 = vrot.slane %v8256_v63, 4  ;;  %v8271_v2 = vrot.slane %v8270_v38, 4  ;;  %v8277_v34 = vsel %vm7912_vm8, %v13498_v59, -inf  ;;  %v14504_v28 = vcombine.high %v13498_v59, %v13498_v59 }
 0x661   :  { %14502 = vst [vmem:[#allocation42_spill] sm:$0xff] %v13775_v54  ;;  %14503 = vst [vmem:[#allocation43_spill] sm:$0xff] %v13777_v15  ;;  %v8291_v0 = vsel %vm7912_vm8, %v13501_v1, -inf  ;;  %v14505_v53 = vcombine.high %v13501_v1, %v13501_v1  ;;  %v8251_v11 = vmax.f32 %v8249_v46, %v8250_v21  ;;  %v8265_v4 = vmax.f32 %v8263_v31, %v8264_v24 }
 0x662   :  { %v8284_v41 = vsel %vm7912_vm8, %v14504_v28, -inf  ;;  %v8258_v7 = vmax.f32 %v8256_v63, %v8257_v58  ;;  %v8272_v13 = vmax.f32 %v8270_v38, %v8271_v2  ;;  %v8278_v56 = vrot.slane %v8277_v34, 4 }
 0x663   :  { %v8298_v62 = vsel %vm7912_vm8, %v14505_v53, -inf  ;;  %v8285_v26 = vrot.slane %v8284_v41, 4  ;;  %v8292_v25 = vrot.slane %v8291_v0, 4  ;;  %v8252_v27 = vrot.slane %v8251_v11, 2 }
 0x664   :  { %v8299_v37 = vrot.slane %v8298_v62, 4  ;;  %v8259_v59 = vrot.slane %v8258_v7, 2  ;;  %v8266_v47 = vrot.slane %v8265_v4, 2  ;;  %v8273_v57 = vrot.slane %v8272_v13, 2 }
 0x665   :  { %v8279_v55 = vmax.f32 %v8277_v34, %v8278_v56  ;;  %v8286_v43 = vmax.f32 %v8284_v41, %v8285_v26  ;;  %v8293_v23 = vmax.f32 %v8291_v0, %v8292_v25  ;;  %v8253_v19 = vmax.f32 %v8251_v11, %v8252_v27 }
 0x666   :  { %v8300_v49 = vmax.f32 %v8298_v62, %v8299_v37  ;;  %v8260_v1 = vmax.f32 %v8258_v7, %v8259_v59  ;;  %v8267_v28 = vmax.f32 %v8265_v4, %v8266_v47  ;;  %v8274_v53 = vmax.f32 %v8272_v13, %v8273_v57 }
 0x667   :  { %v8280_v46 = vrot.slane %v8279_v55, 2  ;;  %v8287_v63 = vrot.slane %v8286_v43, 2  ;;  %v8294_v31 = vrot.slane %v8293_v23, 2  ;;  %v8254_v21 = vrot.slane %v8253_v19, 1 }
 0x668   :  { %v8301_v38 = vrot.slane %v8300_v49, 2  ;;  %v8261_v58 = vrot.slane %v8260_v1, 1  ;;  %v8268_v24 = vrot.slane %v8267_v28, 1  ;;  %v8275_v2 = vrot.slane %v8274_v53, 1 }
 0x669   :  { %v8281_v54 = vmax.f32 %v8279_v55, %v8280_v46  ;;  %v8288_v15 = vmax.f32 %v8286_v43, %v8287_v63  ;;  %v8295_v44 = vmax.f32 %v8293_v23, %v8294_v31  ;;  %v13791_v34 = vmax.f32 %v8253_v19, %v8254_v21 }
 0x66a   :  { %v8302_v17 = vmax.f32 %v8300_v49, %v8301_v38  ;;  %v13793_v41 = vmax.f32 %v8260_v1, %v8261_v58  ;;  %v13795_v0 = vmax.f32 %v8267_v28, %v8268_v24  ;;  %v13797_v62 = vmax.f32 %v8274_v53, %v8275_v2 }
 0x66b   :  { %v8282_v11 = vrot.slane %v8281_v54, 1  ;;  %v8289_v7 = vrot.slane %v8288_v15, 1  ;;  %v8296_v4 = vrot.slane %v8295_v44, 1  ;;  %v8305_v56 = vsel %vm7912_vm8, %v13505_v5, -inf }
 0x66c   :  { %v8303_v13 = vrot.slane %v8302_v17, 1  ;;  %v14506_v26 = vcombine.high %v13505_v5, %v13505_v5  ;;  %v8319_v37 = vsel %vm7912_vm8, %v13508_v50, -inf  ;;  %v14507_v27 = vcombine.high %v13508_v50, %v13508_v50 }
 0x66d   :  { %v13811_v47 = vmax.f32 %v8281_v54, %v8282_v11  ;;  %v13813_v57 = vmax.f32 %v8288_v15, %v8289_v7  ;;  %v13815_v55 = vmax.f32 %v8295_v44, %v8296_v4  ;;  %v8306_v23 = vrot.slane %v8305_v56, 4 }
 0x66e   :  { %v8312_v25 = vsel %vm7912_vm8, %v14506_v26, -inf  ;;  %v8326_v59 = vsel %vm7912_vm8, %v14507_v27, -inf  ;;  %v13817_v43 = vmax.f32 %v8302_v17, %v8303_v13  ;;  %v8320_v49 = vrot.slane %v8319_v37, 4 }
 0x66f   :  { %14508 = vst [vmem:[#allocation44_spill] sm:$0xff] %v13811_v47  ;;  %14509 = vst [vmem:[#allocation45_spill] sm:$0xff] %v13813_v57  ;;  %v8313_v5 = vrot.slane %v8312_v25, 4  ;;  %v8327_v19 = vrot.slane %v8326_v59, 4  ;;  %v8333_v1 = vsel %vm7912_vm8, %v13512_v22, -inf  ;;  %v14512_v50 = vcombine.high %v13512_v22, %v13512_v22 }
 0x670   :  { %14510 = vst [vmem:[#allocation46_spill] sm:$0xff] %v13815_v55  ;;  %14511 = vst [vmem:[#allocation47_spill] sm:$0xff] %v13817_v43  ;;  %v8347_v54 = vsel %vm7912_vm8, %v13515_v30, -inf  ;;  %v14513_v44 = vcombine.high %v13515_v30, %v13515_v30  ;;  %v8307_v15 = vmax.f32 %v8305_v56, %v8306_v23  ;;  %v8321_v46 = vmax.f32 %v8319_v37, %v8320_v49 }
 0x671   :  { %v8340_v28 = vsel %vm7912_vm8, %v14512_v50, -inf  ;;  %v8314_v53 = vmax.f32 %v8312_v25, %v8313_v5  ;;  %v8328_v63 = vmax.f32 %v8326_v59, %v8327_v19  ;;  %v8334_v31 = vrot.slane %v8333_v1, 4 }
 0x672   :  { %v8354_v17 = vsel %vm7912_vm8, %v14513_v44, -inf  ;;  %v8341_v38 = vrot.slane %v8340_v28, 4  ;;  %v8348_v21 = vrot.slane %v8347_v54, 4  ;;  %v8308_v24 = vrot.slane %v8307_v15, 2 }
 0x673   :  { %v8355_v58 = vrot.slane %v8354_v17, 4  ;;  %v8315_v22 = vrot.slane %v8314_v53, 2  ;;  %v8322_v2 = vrot.slane %v8321_v46, 2  ;;  %v8329_v11 = vrot.slane %v8328_v63, 2 }
 0x674   :  { %v8335_v7 = vmax.f32 %v8333_v1, %v8334_v31  ;;  %v8342_v4 = vmax.f32 %v8340_v28, %v8341_v38  ;;  %v8349_v13 = vmax.f32 %v8347_v54, %v8348_v21  ;;  %v8309_v27 = vmax.f32 %v8307_v15, %v8308_v24  ;;  %v14514_v21 = vld [vmem:[#allocation23_spill] sm:$0xff] }
 0x675   :  { %v8356_v26 = vmax.f32 %v8354_v17, %v8355_v58  ;;  %v8316_v30 = vmax.f32 %v8314_v53, %v8315_v22  ;;  %v8323_v50 = vmax.f32 %v8321_v46, %v8322_v2  ;;  %v8330_v44 = vmax.f32 %v8328_v63, %v8329_v11  ;;  %v14515_v58 = vld [vmem:[#allocation34_spill] sm:$0xff]  ;;  %v14516_v22 = vld [vmem:[#allocation27_spill] sm:$0xff] }
 0x676   :  { %v8336_v56 = vrot.slane %v8335_v7, 2  ;;  %v8343_v25 = vrot.slane %v8342_v4, 2  ;;  %v8350_v37 = vrot.slane %v8349_v13, 2  ;;  %v8310_v23 = vrot.slane %v8309_v27, 1  ;;  %v14517_v2 = vld [vmem:[#allocation26_spill] sm:$0xff] }
 0x677   :  { %v8357_v59 = vrot.slane %v8356_v26, 2  ;;  %v8317_v5 = vrot.slane %v8316_v30, 1  ;;  %v8324_v49 = vrot.slane %v8323_v50, 1  ;;  %v8331_v19 = vrot.slane %v8330_v44, 1 }
 0x678   :  { %v8337_v55 = vmax.f32 %v8335_v7, %v8336_v56  ;;  %v8344_v43 = vmax.f32 %v8342_v4, %v8343_v25  ;;  %v8351_v47 = vmax.f32 %v8349_v13, %v8350_v37  ;;  %v13831_v1 = vmax.f32 %v8309_v27, %v8310_v23  ;;  %v14524_v25 = vld [vmem:[#allocation25_spill] sm:$0xff] }
 0x679   :  { %v8358_v57 = vmax.f32 %v8356_v26, %v8357_v59  ;;  %v13833_v28 = vmax.f32 %v8316_v30, %v8317_v5  ;;  %v13835_v54 = vmax.f32 %v8323_v50, %v8324_v49  ;;  %v13837_v17 = vmax.f32 %v8330_v44, %v8331_v19  ;;  %v14520_v30 = vld [vmem:[#allocation13_spill] sm:$0xff]  ;;  %v14521_v50 = vld [vmem:[#allocation31_spill] sm:$0xff]  ;;  %v14527_v59 = vld [vmem:[#allocation28_spill] sm:$0xff] }
 0x67a   :  { %v8338_v15 = vrot.slane %v8337_v55, 1  ;;  %v8345_v53 = vrot.slane %v8344_v43, 1  ;;  %v8352_v46 = vrot.slane %v8351_v47, 1  ;;  %v8425_v31 = vcombine.low %v13551_v14, %v13553_v40  ;;  %v14526_v37 = vld [vmem:[#allocation17_spill] sm:$0xff]  ;;  %v14528_v5 = vld [vmem:[#allocation19_spill] sm:$0xff]  ;;  %v14531_v19 = vld [vmem:[#allocation36_spill] sm:$0xff] }
 0x67b   :  { %v8359_v63 = vrot.slane %v8358_v57, 1  ;;  %v8426_v38 = vcombine.low %v13555_v10, %v13557_v60  ;;  %v8427_v24 = vcombine.low %v14515_v58, %v14514_v21  ;;  %v8428_v11 = vcombine.low %v14517_v2, %v14516_v22  ;;  %v14518_v10 = vld [vmem:[#allocation30_spill] sm:$0xff]  ;;  %v14519_v60 = vld [vmem:[#allocation29_spill] sm:$0xff]  ;;  %v14536_v58 = vld [vmem:[#allocation43_spill] sm:$0xff] }
 0x67c   :  { %v13847_v7 = vmax.f32 %v8337_v55, %v8338_v15  ;;  %v13849_v4 = vmax.f32 %v8344_v43, %v8345_v53  ;;  %v13851_v13 = vmax.f32 %v8351_v47, %v8352_v46  ;;  %v8429_v14 = vcombine.low %v13591_v16, %v13593_v8  ;;  %v14523_v43 = vld [vmem:[#allocation14_spill] sm:$0xff]  ;;  %v14525_v16 = vld [vmem:[#allocation16_spill] sm:$0xff]  ;;  %v14530_v49 = vld [vmem:[#allocation37_spill] sm:$0xff] }
 0x67d   :  { %v13853_v26 = vmax.f32 %v8358_v57, %v8359_v63  ;;  %v8430_v40 = vcombine.low %v13595_v29, %v13597_v35  ;;  %v8431_v27 = vcombine.low %v14519_v60, %v14518_v10  ;;  %v8432_v44 = vcombine.low %v14521_v50, %v14520_v30  ;;  %v14522_v57 = vld [vmem:[#allocation15_spill] sm:$0xff]  ;;  %v14534_v46 = vld [vmem:[#allocation41_spill] sm:$0xff]  ;;  %v14535_v63 = vld [vmem:[#allocation40_spill] sm:$0xff] }
 0x67e   :  { %v8433_v55 = vcombine.low %v13631_v32, %v13633_v12  ;;  %v8434_v47 = vcombine.low %v13635_v52, %v13637_v45  ;;  %v8435_v56 = vcombine.low %v14523_v43, %v14522_v57  ;;  %v8436_v8 = vcombine.low %v14525_v16, %v14524_v25  ;;  %v14529_v32 = vld [vmem:[#allocation18_spill] sm:$0xff]  ;;  %v14532_v53 = vld [vmem:[#allocation39_spill] sm:$0xff]  ;;  %v14538_v10 = vld [vmem:[#allocation45_spill] sm:$0xff] }
 0x67f   :  { %v8437_v29 = vcombine.low %v13671_v61, %v13673_v18  ;;  %v8438_v35 = vcombine.low %v13675_v20, %v13677_v9  ;;  %v8439_v23 = vcombine.low %v14527_v59, %v14526_v37  ;;  %v8440_v12 = vcombine.low %v14529_v32, %v14528_v5  ;;  %v14533_v61 = vld [vmem:[#allocation38_spill] sm:$0xff]  ;;  %v14539_v60 = vld [vmem:[#allocation44_spill] sm:$0xff]  ;;  %v14540_v50 = vld [vmem:[#allocation47_spill] sm:$0xff] }
 0x680   :  { %v8441_v52 = vcombine.low %v13711_v33, %v13713_v6  ;;  %v8442_v45 = vcombine.low %v13715_v42, %v13717_v3  ;;  %v8443_v15 = vcombine.low %v14531_v19, %v14530_v49  ;;  %v8444_v18 = vcombine.low %v14533_v61, %v14532_v53  ;;  %v14537_v22 = vld [vmem:[#allocation42_spill] sm:$0xff] }
 0x681   :  { %v8445_v20 = vcombine.low %v13751_v51, %v13753_v48  ;;  %v8446_v9 = vcombine.low %v13755_v36, %v13757_v39  ;;  %v8447_v21 = vcombine.low %v14535_v63, %v14534_v46  ;;  %v8448_v2 = vcombine.low %v14537_v22, %v14536_v58  ;;  %v14541_v57 = vld [vmem:[#allocation46_spill] sm:$0xff] }
 0x682   :  { %v8449_v42 = vcombine.low %v13791_v34, %v13793_v41  ;;  %v8450_v3 = vcombine.low %v13795_v0, %v13797_v62  ;;  %v8451_v30 = vcombine.low %v14539_v60, %v14538_v10  ;;  %v8452_v43 = vcombine.low %v14541_v57, %v14540_v50 }
 0x683   :  { %v8453_v36 = vcombine.low %v13831_v1, %v13833_v28  ;;  %v8454_v39 = vcombine.low %v13835_v54, %v13837_v17  ;;  %v8455_v25 = vcombine.low %v13847_v7, %v13849_v4  ;;  %v8456_v16 = vcombine.low %v13851_v13, %v13853_v26 }
 0x684   :  { %v8457_v37 = vrot.slane %v8426_v38, 7  ;;  %v8462_v0 = vrot.slane %v8427_v24, 6  ;;  %v8467_v62 = vrot.slane %v8428_v11, 5  ;;  %v8472_v5 = vrot.slane %v8430_v40, 7 }
 0x685   :  { %v8475_v32 = vrot.slane %v8431_v27, 6  ;;  %v8478_v17 = vrot.slane %v8432_v44, 5  ;;  %v8481_v49 = vrot.slane %v8434_v47, 7  ;;  %v8484_v19 = vrot.slane %v8435_v56, 6 }
 0x686   :  { %v8459_v59 = vsel %vm8458_vm10, %v8457_v37, %v8425_v31  ;;  %v8473_v38 = vsel %vm8458_vm10, %v8472_v5, %v8429_v14  ;;  %v8487_v61 = vrot.slane %v8436_v8, 5  ;;  %v8490_v24 = vrot.slane %v8438_v35, 7 }
 0x687   :  { %v8461_v54 = vsel %vm8460_vm11, %v8457_v37, %v8459_v59  ;;  %v8474_v11 = vsel %vm8460_vm11, %v8472_v5, %v8473_v38  ;;  %v8482_v31 = vsel %vm8458_vm10, %v8481_v49, %v8433_v55  ;;  %v8493_v63 = vrot.slane %v8439_v23, 6 }
 0x688   :  { %v8464_v53 = vsel %vm8463_vm12, %v8462_v0, %v8461_v54  ;;  %v8476_v27 = vsel %vm8463_vm12, %v8475_v32, %v8474_v11  ;;  %v8483_v44 = vsel %vm8460_vm11, %v8481_v49, %v8482_v31  ;;  %v8491_v47 = vsel %vm8458_vm10, %v8490_v24, %v8437_v29 }
 0x689   :  { %v8466_v46 = vsel %vm8465_vm13, %v8462_v0, %v8464_v53  ;;  %v8477_v14 = vsel %vm8465_vm13, %v8475_v32, %v8476_v27  ;;  %v8485_v8 = vsel %vm8463_vm12, %v8484_v19, %v8483_v44  ;;  %v8492_v35 = vsel %vm8460_vm11, %v8490_v24, %v8491_v47 }
 0x68a   :  { %v8469_v40 = vsel %vm8468_vm14, %v8467_v62, %v8466_v46  ;;  %v8479_v58 = vsel %vm8468_vm14, %v8478_v17, %v8477_v14  ;;  %v8486_v55 = vsel %vm8465_vm13, %v8484_v19, %v8485_v8  ;;  %v8494_v23 = vsel %vm8463_vm12, %v8493_v63, %v8492_v35 }
 0x68b   :  { %v8471_v56 = vsel %vm8470_vm15, %v8467_v62, %v8469_v40  ;;  %v8496_v22 = vrot.slane %v8440_v12, 5  ;;  %v8480_v29 = vsel %vm8470_vm15, %v8478_v17, %v8479_v58  ;;  %v8488_v10 = vsel %vm8468_vm14, %v8487_v61, %v8486_v55 }
 0x68c   :  { %8543 = vst [vmem:[%s14011_s7] sm:$0xff] %v8471_v56  ;;  %v8495_v60 = vsel %vm8465_vm13, %v8493_v63, %v8494_v23  ;;  %v8499_v37 = vrot.slane %v8442_v45, 7  ;;  %v8489_v0 = vsel %vm8470_vm15, %v8487_v61, %v8488_v10  ;;  %v8502_v59 = vrot.slane %v8443_v15, 6  ;;  %8544 = vst [vmem:[%s14011_s7 + $0x8] sm:$0xff] %v8480_v29 }
 0x68d   :  { %v8497_v62 = vsel %vm8468_vm14, %v8496_v22, %v8495_v60  ;;  %v8505_v5 = vrot.slane %v8444_v18, 5  ;;  %v8508_v54 = vrot.slane %v8446_v9, 7  ;;  %v8511_v17 = vrot.slane %v8447_v21, 6  ;;  %8545 = vst [vmem:[%s14011_s7 + $0x10] sm:$0xff] %v8489_v0 }
 0x68e   :  { %v8498_v12 = vsel %vm8470_vm15, %v8496_v22, %v8497_v62  ;;  %v8500_v32 = vsel %vm8458_vm10, %v8499_v37, %v8441_v52  ;;  %v8514_v15 = vrot.slane %v8448_v2, 5  ;;  %v8517_v18 = vrot.slane %v8450_v3, 7 }
 0x68f   :  { %v8501_v45 = vsel %vm8460_vm11, %v8499_v37, %v8500_v32  ;;  %v8520_v49 = vrot.slane %v8451_v30, 6  ;;  %8546 = vst [vmem:[%s14011_s7 + $0x18] sm:$0xff] %v8498_v12  ;;  %v8509_v33 = vsel %vm8458_vm10, %v8508_v54, %v8445_v20  ;;  %v8523_v6 = vrot.slane %v8452_v43, 5 }
 0x690   :  { %v8503_v19 = vsel %vm8463_vm12, %v8502_v59, %v8501_v45  ;;  %v8526_v52 = vrot.slane %v8454_v39, 7  ;;  %v8510_v21 = vsel %vm8460_vm11, %v8508_v54, %v8509_v33  ;;  %v8518_v2 = vsel %vm8458_vm10, %v8517_v18, %v8449_v42 }
 0x691   :  { %v8504_v9 = vsel %vm8465_vm13, %v8502_v59, %v8503_v19  ;;  %v8529_v51 = vrot.slane %v8455_v25, 6  ;;  %v8512_v20 = vsel %vm8463_vm12, %v8511_v17, %v8510_v21  ;;  %v8519_v3 = vsel %vm8460_vm11, %v8517_v18, %v8518_v2 }
 0x692   :  { %v8506_v48 = vsel %vm8468_vm14, %v8505_v5, %v8504_v9  ;;  %v8527_v30 = vsel %vm8458_vm10, %v8526_v52, %v8453_v36  ;;  %v8513_v34 = vsel %vm8465_vm13, %v8511_v17, %v8512_v20  ;;  %v8521_v41 = vsel %vm8463_vm12, %v8520_v49, %v8519_v3 }
 0x693   :  { %v8507_v50 = vsel %vm8470_vm15, %v8505_v5, %v8506_v48  ;;  %v8528_v7 = vsel %vm8460_vm11, %v8526_v52, %v8527_v30  ;;  %v8515_v4 = vsel %vm8468_vm14, %v8514_v15, %v8513_v34  ;;  %v8522_v42 = vsel %vm8465_vm13, %v8520_v49, %v8521_v41 }
 0x694   :  { %v8530_v57 = vsel %vm8463_vm12, %v8529_v51, %v8528_v7  ;;  %v8532_v1 = vrot.slane %v8456_v16, 5  ;;  %8547 = vst [vmem:[%s14011_s7 + $0x20] sm:$0xff] %v8507_v50  ;;  %v8516_v28 = vsel %vm8470_vm15, %v8514_v15, %v8515_v4  ;;  %v8524_v43 = vsel %vm8468_vm14, %v8523_v6, %v8522_v42 }
 0x695   :  { %v8531_v36 = vsel %vm8465_vm13, %v8529_v51, %v8530_v57  ;;  %v8525_v39 = vsel %vm8470_vm15, %v8523_v6, %v8524_v43  ;;  %8548 = vst [vmem:[%s14011_s7 + $0x28] sm:$0xff] %v8516_v28 }
 0x696   :  { %v8533_v25 = vsel %vm8468_vm14, %v8532_v1, %v8531_v36  ;;  %8549 = vst [vmem:[%s14011_s7 + $0x30] sm:$0xff] %v8525_v39 }
 0x697   :  { %v8534_v13 = vsel %vm8470_vm15, %v8532_v1, %v8533_v25 }
 0x698   :  { %8550 = vst [vmem:[%s14011_s7 + $0x38] sm:$0xff] %v8534_v13 }
 0x699   :  { %8555 = vsyncpa [#allocation5], 1 }
 0x69a   :  { %8556 = vsyncpa [#allocation7], 1 }

</bundles_post_ra>
